<compile_context>
chip_gen: v5e
topology: v5e:2x2
jax: 0.10.0
libtpu: 0.0.40
codegen_flags: <defaults>
</compile_context>

<pallas_src>
import functools
import math

import jax
import jax.numpy as jnp
import numpy as np
from jax.experimental import pallas as pl
from jax.experimental.pallas import tpu as pltpu

Z_SIZE = 100      # latent vector length (matches module default)
CONV_DIM = 8      # small conv_dim for the example
K = 4             # transpose-conv kernel size
EPS = 1e-5        # BatchNorm eps (PyTorch default)

_LANE = 128
_TILE_R = 1024    # target lane-tile over R = N*H*W (512-1024 ~ 85% of HBM roofline)
_VMEM_LIMIT = 32 * 1024 * 1024   # conservative: sized against v7x's 64 MiB physical VMEM

_VMEM = pl.BlockSpec(memory_space=pltpu.MemorySpace.VMEM)


def _round_up(x, m):
    return (x + m - 1) // m * m


def _pad16(c):
    return max(16, _round_up(c, 16))


def _log2(v):
    assert v > 0 and v & (v - 1) == 0, "spatial dims must be powers of two"
    return v.bit_length() - 1


def _tiling(r, hw, *, max_tile=_TILE_R, min_tiles=1):
    """Lane tiling of R = N*H*W.

    The tile is a multiple of 128 (dense, unmasked vst) and a multiple of H*W
    (so every in-kernel tap shift stays inside the tile -> no halo DMA).
    """
    unit = math.lcm(_LANE, hw)
    r_pad = _round_up(r, unit)
    n_units = r_pad // unit
    cands = [k for k in range(1, n_units + 1)
             if n_units % k == 0 and unit * k <= max_tile] or [1]
    good = [k for k in cands if n_units // k >= min_tiles]
    k = max(good) if good else max(cands)
    return unit * k, r_pad


# ---------------------------------------------------------------------------
# In-kernel tap construction (replaces the HBM im2col materialization)
# ---------------------------------------------------------------------------
_SHIFTS = tuple((sy, sx) for sy in (-1, 0, 1) for sx in (-1, 0, 1))


def _build_patches(x, tile_start, *, h, w, r, tile):
    """Build the 9-tap shifted patch matrix for one activation tile in VMEM.

    x: (c_in_pad, tile) bf16, columns are flattened (n, m, q) positions.
    tap(sy,sx)[:, n*h*w + m*w + q] = x[:, n*h*w + (m+sy)*w + (q+sx)] if the
    shifted position is inside the image, else 0 (transposed-conv zero pad).
    The tile is a whole number of images, so shifts never need a halo and any
    roll wrap-around only lands on masked lanes.
    """
    hw = h * w
    lane = jax.lax.broadcasted_iota(jnp.int32, (1, tile), 1)
    gidx = lane + tile_start                      # global column index in R
    pos = lane & (hw - 1)                         # == gidx % (h*w); tile % hw == 0
    m = pos >> _log2(w)
    q = pos & (w - 1)
    lane_ok = gidx < r                            # mask the zero-padded lanes
    zero = jnp.zeros_like(x)
    taps = []
    for sy, sx in _SHIFTS:
        ok = lane_ok
        if sy:
            ok = jnp.logical_and(ok, jnp.logical_and(m + sy >= 0, m + sy < h))
        if sx:
            ok = jnp.logical_and(ok, jnp.logical_and(q + sx >= 0, q + sx < w))
        s = sy * w + sx
        xs = x if s == 0 else jnp.roll(x, -s, axis=1)
        taps.append(jnp.where(ok, xs, zero))
    return jnp.concatenate(taps, axis=0)          # (9*c_in_pad, tile) bf16


# ---------------------------------------------------------------------------
# Pallas kernels
# ---------------------------------------------------------------------------
def _fc_kernel(z_ref, w_ref, b_ref, o_ref):
    # z: (N, Z_pad) bf16, w: (Z_pad, F) bf16, b: (1, F) f32 -> o: (N, F) bf16
    o_ref[...] = (
        jnp.dot(z_ref[...], w_ref[...], preferred_element_type=jnp.float32)
        + b_ref[...]
    ).astype(o_ref.dtype)


def _bn_deconv_kernel(x_ref, w_ref, g_ref, b_ref, o_ref,
                      sum_ref, sq_ref, sc_ref, sh_ref,
                      *, h, w, r, tile, cp, inv_count):
    """Fused ConvTranspose2d + training-mode BatchNorm + ReLU.

    grid = (2, n_tiles): pass 0 accumulates per-(parity,channel) sum / sumsq
    in VMEM scratch; pass 1 recomputes the cheap matmul and applies the
    finalized per-channel scale/shift + ReLU (no f32 HBM round-trip).
    """
    p = pl.program_id(0)          # 0 = stats pass, 1 = normalize/apply pass
    i = pl.program_id(1)          # R-tile index

    @pl.when(jnp.logical_and(p == 0, i == 0))
    def _init():
        sum_ref[...] = jnp.zeros_like(sum_ref)
        sq_ref[...] = jnp.zeros_like(sq_ref)

    patches = _build_patches(x_ref[...], i * tile, h=h, w=w, r=r, tile=tile)
    y = jnp.dot(w_ref[...], patches, preferred_element_type=jnp.float32)

    @pl.when(p == 0)
    def _accumulate():
        # padded lanes are masked to zero in the taps -> contribute exactly 0
        sum_ref[...] += jnp.sum(y, axis=1, keepdims=True)
        sq_ref[...] += jnp.sum(y * y, axis=1, keepdims=True)

    @pl.when(jnp.logical_and(p == 1, i == 0))
    def _finalize_stats():
        s4, q4 = sum_ref[...], sq_ref[...]
        # combine the 4 sub-pixel parity groups -> per-channel stats
        s_c = s4[0:cp] + s4[cp:2 * cp] + s4[2 * cp:3 * cp] + s4[3 * cp:4 * cp]
        q_c = q4[0:cp] + q4[cp:2 * cp] + q4[2 * cp:3 * cp] + q4[3 * cp:4 * cp]
        mean = s_c * inv_count
        var = jnp.maximum(q_c * inv_count - mean * mean, 0.0)   # biased (train BN)
        scale = g_ref[...] * jax.lax.rsqrt(var + EPS)
        shift = b_ref[...] - mean * scale
        for par in range(4):                                     # parity-major rows
            sc_ref[par * cp:(par + 1) * cp, :] = scale
            sh_ref[par * cp:(par + 1) * cp, :] = shift

    @pl.when(p == 1)
    def _apply():
        o_ref[...] = jnp.maximum(
            y * sc_ref[...] + sh_ref[...], 0.0).astype(o_ref.dtype)


def _tanh_deconv_kernel(x_ref, w_ref, o_ref, *, h, w, r, tile):
    # final layer: no BatchNorm, tanh fused, bf16 output (halves the HBM store)
    i = pl.program_id(0)
    patches = _build_patches(x_ref[...], i * tile, h=h, w=w, r=r, tile=tile)
    y = jnp.dot(w_ref[...], patches, preferred_element_type=jnp.float32)
    o_ref[...] = jnp.tanh(y).astype(o_ref.dtype)


# ---------------------------------------------------------------------------
# Layer wrappers
# ---------------------------------------------------------------------------
def deconv_layer(x_flat, w_mat, gamma_p=None, beta_p=None, *, n, h, w, use_bn):
    """ConvTranspose2d(k=4, s=2, p=1, bias=False) [+ BN + ReLU | tanh].

    x_flat: (c_in_pad, n*h*w) bf16, channel-major flattened activation.
    Returns (cp, n*2h*2w) bf16 channel-major flattened output, cp = padded
    output-channel count.
    """
    c_in_pad = x_flat.shape[0]
    cp4, kc = w_mat.shape
    cp = cp4 // 4
    assert kc == 9 * c_in_pad, (kc, c_in_pad)
    r = n * h * w
    hw = h * w

    tile, r_pad = _tiling(r, hw, min_tiles=1 if use_bn else 2)
    if x_flat.shape[1] != r_pad:
        x_flat = jnp.pad(x_flat, ((0, 0), (0, r_pad - x_flat.shape[1])))
    n_tiles = r_pad // tile

    if use_bn:
        kernel = functools.partial(
            _bn_deconv_kernel, h=h, w=w, r=r, tile=tile, cp=cp,
            inv_count=1.0 / float(4 * r))            # true count = N * 2H * 2W
        out = pl.pallas_call(
            kernel,
            grid=(2, n_tiles),
            in_specs=[pl.BlockSpec((c_in_pad, tile), lambda p, i: (0, i)),
                      pl.BlockSpec((cp4, kc), lambda p, i: (0, 0)),   # resident weight
                      pl.BlockSpec((cp, 1), lambda p, i: (0, 0)),
                      pl.BlockSpec((cp, 1), lambda p, i: (0, 0))],
            out_specs=pl.BlockSpec((cp4, tile), lambda p, i: (0, i)),
            out_shape=jax.ShapeDtypeStruct((cp4, r_pad), jnp.bfloat16),
            scratch_shapes=[pltpu.VMEM((cp4, 1), jnp.float32),   # sum
                            pltpu.VMEM((cp4, 1), jnp.float32),   # sum of squares
                            pltpu.VMEM((cp4, 1), jnp.float32),   # scale
                            pltpu.VMEM((cp4, 1), jnp.float32)],  # shift
            compiler_params=pltpu.CompilerParams(
                # BN stats are global over R tiles -> keep the grid sequential.
                dimension_semantics=("arbitrary", "arbitrary"),
                vmem_limit_bytes=_VMEM_LIMIT),
        )(x_flat, w_mat, gamma_p, beta_p)
    else:
        kernel = functools.partial(_tanh_deconv_kernel, h=h, w=w, r=r, tile=tile)
        out = pl.pallas_call(
            kernel,
            grid=(n_tiles,),
            in_specs=[pl.BlockSpec((c_in_pad, tile), lambda i: (0, i)),
                      pl.BlockSpec((cp4, kc), lambda i: (0, 0))],
            out_specs=pl.BlockSpec((cp4, tile), lambda i: (0, i)),
            out_shape=jax.ShapeDtypeStruct((cp4, r_pad), jnp.bfloat16),
            compiler_params=pltpu.CompilerParams(
                dimension_semantics=("parallel",),   # >=2 tiles -> both v7x TCs
                vmem_limit_bytes=_VMEM_LIMIT),
        )(x_flat, w_mat)

    # glue: drop lane padding, de-interleave the sub-pixel parities ->
    # channel-major flattened (cp, N * 2H * 2W) for the next layer.
    a = out[:, :r].reshape(2, 2, cp, n, h, w)            # (py, px, c, n, h, w)
    a = jnp.transpose(a, (2, 3, 4, 0, 5, 1)).reshape(cp, n * 2 * h * 2 * w)
    return a


# ---------------------------------------------------------------------------
# Parameter init (deterministic; shapes per Generator.__init__) + weight prep
# ---------------------------------------------------------------------------
def _subpixel_weight_matrix(wt, cp, c_in_pad):
    """(C_in, C_out, 4, 4) ConvTranspose2d weight -> (4*cp, 9*c_in_pad) bf16.

    Row = parity * cp + c_out (parity = 2*py + px); column = tap * c_in_pad +
    c_in with tap = 3*(sy+1) + (sx+1).  For output pixel (2m+py, 2q+px) the
    kernel index is ky = py + 1 - 2*sy (ditto kx); out-of-range taps stay 0.
    """
    wt = np.asarray(wt)
    c_in, c_out = wt.shape[0], wt.shape[1]
    mat = np.zeros((4 * cp, 9 * c_in_pad), np.float32)
    for py in (0, 1):
        for px in (0, 1):
            par = 2 * py + px
            for sy in (-1, 0, 1):
                ky = py + 1 - 2 * sy
                if not 0 <= ky < K:
                    continue
                for sx in (-1, 0, 1):
                    kx = px + 1 - 2 * sx
                    if not 0 <= kx < K:
                        continue
                    t = 3 * (sy + 1) + (sx + 1)
                    mat[par * cp:par * cp + c_out,
                        t * c_in_pad:t * c_in_pad + c_in] = wt[:, :, ky, kx].T
    return jnp.asarray(mat, jnp.bfloat16)


def _pad_affine(v, cp):
    v = jnp.asarray(v, jnp.float32)
    if v.shape[0] != cp:
        v = jnp.pad(v, (0, cp - v.shape[0]))     # gamma padded with 0 -> padded rows stay 0
    return v.reshape(cp, 1)


def init_params(key, z_size=Z_SIZE, conv_dim=CONV_DIM):
    ks = jax.random.split(key, 5)
    fc_out = conv_dim * 8 * 2 * 2
    z_pad = _round_up(z_size, 128)

    def rnd(k, shape):
        return jax.random.normal(k, shape, jnp.float32) * 0.02

    fc_w = rnd(ks[0], (fc_out, z_size))                    # nn.Linear weight (out, in)
    w1 = rnd(ks[1], (conv_dim * 8, conv_dim * 4, K, K))    # ConvTranspose2d (Cin,Cout,K,K)
    w2 = rnd(ks[2], (conv_dim * 4, conv_dim * 2, K, K))
    w3 = rnd(ks[3], (conv_dim * 2, conv_dim, K, K))
    w4 = rnd(ks[4], (conv_dim, 3, K, K))

    cp1, cp2, cp3, cp4_ = (_pad16(conv_dim * 4), _pad16(conv_dim * 2),
                           _pad16(conv_dim), _pad16(3))
    params = {
        # fc: zero-pad Z -> 128 and pre-transpose so it is matmul-ready in bf16
        "fc_wt": jnp.pad(fc_w, ((0, 0), (0, z_pad - z_size))).T.astype(jnp.bfloat16),
        "fc_b": jnp.zeros((1, fc_out), jnp.float32),
        # sub-pixel matmul weight matrices (flipped taps folded in), init-time prep
        "wm1": _subpixel_weight_matrix(w1, cp1, _pad16(conv_dim * 8)),
        "wm2": _subpixel_weight_matrix(w2, cp2, cp1),
        "wm3": _subpixel_weight_matrix(w3, cp3, cp2),
        "wm4": _subpixel_weight_matrix(w4, cp4_, cp3),
        # BatchNorm2d affine params (PyTorch default init: gamma=1, beta=0), padded
        "g1": _pad_affine(jnp.ones((conv_dim * 4,)), cp1),
        "b1": _pad_affine(jnp.zeros((conv_dim * 4,)), cp1),
        "g2": _pad_affine(jnp.ones((conv_dim * 2,)), cp2),
        "b2": _pad_affine(jnp.zeros((conv_dim * 2,)), cp2),
        "g3": _pad_affine(jnp.ones((conv_dim,)), cp3),
        "b3": _pad_affine(jnp.zeros((conv_dim,)), cp3),
        # raw weights kept for the numerical cross-check against lax convs
        "fc_w_raw": fc_w, "w1_raw": w1, "w2_raw": w2, "w3_raw": w3, "w4_raw": w4,
    }
    return params


# ---------------------------------------------------------------------------
# Generator forward (matches the PyTorch module semantics, training-mode BN)
# ---------------------------------------------------------------------------
def generator_forward(params, z, conv_dim=CONV_DIM):
    n = z.shape[0]
    z_pad = params["fc_wt"].shape[0]
    zp = jnp.pad(z, ((0, 0), (0, z_pad - z.shape[1]))).astype(jnp.bfloat16)
    x = pl.pallas_call(
        _fc_kernel,
        out_shape=jax.ShapeDtypeStruct((n, params["fc_wt"].shape[1]), jnp.bfloat16),
        in_specs=[_VMEM, _VMEM, _VMEM],
        out_specs=_VMEM,
    )(zp, params["fc_wt"], params["fc_b"])                       # (N, 8c*2*2) bf16

    # x.view(N, 8c, 2, 2) -> channel-major flattened (8c, N*2*2)
    c0 = conv_dim * 8
    x = jnp.transpose(x.reshape(n, c0, 4), (1, 0, 2)).reshape(c0, n * 4)

    x = deconv_layer(x, params["wm1"], params["g1"], params["b1"],
                     n=n, h=2, w=2, use_bn=True)                 # (32, N*4*4)
    x = deconv_layer(x, params["wm2"], params["g2"], params["b2"],
                     n=n, h=4, w=4, use_bn=True)                 # (16, N*8*8)
    x = deconv_layer(x, params["wm3"], params["g3"], params["b3"],
                     n=n, h=8, w=8, use_bn=True)                 # (16, N*16*16)
    x = deconv_layer(x, params["wm4"],
                     n=n, h=16, w=16, use_bn=False)              # (16, N*32*32)

    # back to PyTorch NCHW: (N, 3, 32, 32)
    x = x.reshape(-1, n, 32, 32)[:3]
    return jnp.transpose(x, (1, 0, 2, 3)).astype(jnp.float32)


# ---------------------------------------------------------------------------
# Pure-XLA reference (for the numerical cross-check requested by the review)
# ---------------------------------------------------------------------------
def generator_forward_ref(params, z, conv_dim=CONV_DIM):
    n = z.shape[0]
    x = jnp.dot(z, params["fc_w_raw"].T, precision=jax.lax.Precision.HIGHEST)
    x = x.reshape(n, conv_dim * 8, 2, 2)

    def deconv_ref(x, w):
        # ConvTranspose2d(k=4,s=2,p=1) == dilated conv with flipped/transposed kernel
        wf = jnp.transpose(w, (1, 0, 2, 3))[:, :, ::-1, ::-1]    # (Cout, Cin, 4, 4)
        return jax.lax.conv_general_dilated(
            x, wf, window_strides=(1, 1), padding=((2, 2), (2, 2)),
            lhs_dilation=(2, 2), rhs_dilation=(1, 1),
            dimension_numbers=("NCHW", "OIHW", "NCHW"),
            precision=jax.lax.Precision.HIGHEST)

    def bn_relu(x):                                              # train-mode BN, gamma=1, beta=0
        mean = x.mean(axis=(0, 2, 3), keepdims=True)
        var = jnp.square(x - mean).mean(axis=(0, 2, 3), keepdims=True)
        return jnp.maximum((x - mean) * jax.lax.rsqrt(var + EPS), 0.0)

    x = bn_relu(deconv_ref(x, params["w1_raw"]))
    x = bn_relu(deconv_ref(x, params["w2_raw"]))
    x = bn_relu(deconv_ref(x, params["w3_raw"]))
    return jnp.tanh(deconv_ref(x, params["w4_raw"]))


if __name__ == "__main__":
    key = jax.random.PRNGKey(0)
    pkey, zkey = jax.random.split(key)
    params = init_params(pkey)
    z = jax.random.normal(zkey, (2, Z_SIZE), jnp.float32)        # batch=2 latents

    out = jax.jit(generator_forward)(params, z)
    out = jax.block_until_ready(out)

    assert out.shape == (2, 3, 32, 32), out.shape
    assert bool(jnp.all(jnp.isfinite(out)))
    assert bool(jnp.all(jnp.abs(out) <= 1.0 + 1e-6))             # tanh range

    # Numerical cross-check of the sub-pixel tap/parity mapping + fused BN
    # against plain XLA.  bf16 MXU operands / bf16 inter-layer activations
    # bound rounding error well below these thresholds, while a wrong tap or
    # parity mapping produces O(0.3+) discrepancies.
    ref = jax.block_until_ready(jax.jit(generator_forward_ref)(params, z))
    max_err = float(jnp.max(jnp.abs(out - ref)))
    mean_err = float(jnp.mean(jnp.abs(out - ref)))
    assert max_err < 1e-1, f"max abs err vs conv_transpose reference: {max_err}"
    assert mean_err < 2e-2, f"mean abs err vs conv_transpose reference: {mean_err}"

    print("KERNEL_OK")
</pallas_src>

<mosaic_0001>
module attributes {stable_mosaic.version = 11 : i64} {
  func.func @_fc_kernel(%arg0: memref<2x128xbf16, #tpu.memory_space<vmem>>, %arg1: memref<128x256xbf16, #tpu.memory_space<vmem>>, %arg2: memref<1x256xf32, #tpu.memory_space<vmem>>, %arg3: memref<2x256xbf16, #tpu.memory_space<vmem>>) attributes {dimension_semantics = [], scalar_prefetch = 0 : i64, scratch_operands = 0 : i64, tpu.core_type = #tpu.core_type<tc>} {
    %c0 = arith.constant 0 : index
    %c0_0 = arith.constant 0 : index
    %0 = vector.load %arg0[%c0, %c0_0] : memref<2x128xbf16, #tpu.memory_space<vmem>>, vector<2x128xbf16>
    %c0_1 = arith.constant 0 : index
    %c0_2 = arith.constant 0 : index
    %1 = vector.load %arg1[%c0_1, %c0_2] : memref<128x256xbf16, #tpu.memory_space<vmem>>, vector<128x256xbf16>
    %cst = arith.constant dense<0.000000e+00> : vector<2x256xf32>
    %2 = tpu.matmul %0, %1, %cst {dimension_numbers = #tpu.dot_dimension_numbers<[1], [0], [0], [1], [0, 0, 1, 1], [], []>} : vector<2x128xbf16>, vector<128x256xbf16>, vector<2x256xf32> -> vector<2x256xf32>
    %c0_3 = arith.constant 0 : index
    %c0_4 = arith.constant 0 : index
    %3 = vector.load %arg2[%c0_3, %c0_4] : memref<1x256xf32, #tpu.memory_space<vmem>>, vector<1x256xf32>
    %4 = vector.broadcast %3 : vector<1x256xf32> to vector<2x256xf32>
    %5 = arith.addf %2, %4 : vector<2x256xf32>
    %6 = arith.truncf %5 : vector<2x256xf32> to vector<2x256xbf16>
    %c0_5 = arith.constant 0 : index
    %c0_6 = arith.constant 0 : index
    %7 = vector.load %arg3[%c0_5, %c0_6] : memref<2x256xbf16, #tpu.memory_space<vmem>>, vector<2x256xbf16>
    tpu.vector_store %arg3[%c0_5, %c0_6], %6 {strides = array<i32>} : memref<2x256xbf16, #tpu.memory_space<vmem>>, vector<2x256xbf16>,
    return
  }
}

module attributes {stable_mosaic.version = 11 : i64} {
  func.func @_bn_deconv_kernel(%arg0: i32, %arg1: i32, %arg2: memref<64x128xbf16, #tpu.memory_space<vmem>>, %arg3: memref<128x576xbf16, #tpu.memory_space<vmem>>, %arg4: memref<32x1xf32, #tpu.memory_space<vmem>>, %arg5: memref<32x1xf32, #tpu.memory_space<vmem>>, %arg6: memref<128x128xbf16, #tpu.memory_space<vmem>>, %arg7: memref<128x1xf32, #tpu.memory_space<vmem>>, %arg8: memref<128x1xf32, #tpu.memory_space<vmem>>, %arg9: memref<128x1xf32, #tpu.memory_space<vmem>>, %arg10: memref<128x1xf32, #tpu.memory_space<vmem>>) attributes {dimension_semantics = [#tpu.dimension_semantics<arbitrary>, #tpu.dimension_semantics<arbitrary>], iteration_bounds = array<i64: 2, 1>, scalar_prefetch = 0 : i64, scratch_operands = 4 : i64, tpu.core_type = #tpu.core_type<tc>, window_params = [{transform_indices = @transform_0, window_bounds = array<i64: 64, 128>}, {pipeline_mode = #tpu.pipeline_mode<synchronous>, transform_indices = @transform_1, window_bounds = array<i64: 128, 576>}, {pipeline_mode = #tpu.pipeline_mode<synchronous>, transform_indices = @transform_2, window_bounds = array<i64: 32, 1>}, {pipeline_mode = #tpu.pipeline_mode<synchronous>, transform_indices = @transform_3, window_bounds = array<i64: 32, 1>}, {transform_indices = @transform_4, window_bounds = array<i64: 128, 128>}]} {
    %c0_i32 = arith.constant 0 : i32
    %0 = arith.cmpi eq, %arg0, %c0_i32 : i32
    %c0_i32_0 = arith.constant 0 : i32
    %1 = arith.cmpi eq, %arg1, %c0_i32_0 : i32
    %2 = arith.andi %0, %1 : i1
    %3 = arith.extui %2 : i1 to i32
    %c0_i32_1 = arith.constant 0 : i32
    %4 = arith.cmpi ne, %3, %c0_i32_1 : i32
    scf.if %4 {
      %cst_60 = arith.constant 0.000000e+00 : f32
      %204 = vector.broadcast %cst_60 : f32 to vector<128x1xf32>
      %c0_61 = arith.constant 0 : index
      %c0_62 = arith.constant 0 : index
      %205 = vector.load %arg7[%c0_61, %c0_62] : memref<128x1xf32, #tpu.memory_space<vmem>>, vector<128x1xf32>
      tpu.vector_store %arg7[%c0_61, %c0_62], %204 {strides = array<i32>} : memref<128x1xf32, #tpu.memory_space<vmem>>, vector<128x1xf32>,
      %cst_63 = arith.constant 0.000000e+00 : f32
      %206 = vector.broadcast %cst_63 : f32 to vector<128x1xf32>
      %c0_64 = arith.constant 0 : index
      %c0_65 = arith.constant 0 : index
      %207 = vector.load %arg8[%c0_64, %c0_65] : memref<128x1xf32, #tpu.memory_space<vmem>>, vector<128x1xf32>
      tpu.vector_store %arg8[%c0_64, %c0_65], %206 {strides = array<i32>} : memref<128x1xf32, #tpu.memory_space<vmem>>, vector<128x1xf32>,
    } else {
    }
    %c0 = arith.constant 0 : index
    %c0_2 = arith.constant 0 : index
    %5 = vector.load %arg2[%c0, %c0_2] : memref<64x128xbf16, #tpu.memory_space<vmem>>, vector<64x128xbf16>
    %c128_i32 = arith.constant 128 : i32
    %6 = arith.muli %arg1, %c128_i32 : i32
    %7 = tpu.iota {dimensions = array<i32: 1>} : vector<1x128xi32>
    %8 = vector.broadcast %6 : i32 to vector<1x128xi32>
    %9 = arith.addi %7, %8 : vector<1x128xi32>
    %c3_i32 = arith.constant 3 : i32
    %10 = vector.broadcast %c3_i32 : i32 to vector<1x128xi32>
    %11 = arith.andi %7, %10 : vector<1x128xi32>
    %c1_i32 = arith.constant 1 : i32
    %12 = vector.broadcast %c1_i32 : i32 to vector<1x128xi32>
    %13 = arith.shrsi %11, %12 : vector<1x128xi32>
    %c1_i32_3 = arith.constant 1 : i32
    %14 = vector.broadcast %c1_i32_3 : i32 to vector<1x128xi32>
    %15 = arith.andi %11, %14 : vector<1x128xi32>
    %c8_i32 = arith.constant 8 : i32
    %16 = vector.broadcast %c8_i32 : i32 to vector<1x128xi32>
    %17 = arith.cmpi slt, %9, %16 : vector<1x128xi32>
    %cst = arith.constant 0.000000e+00 : bf16
    %18 = vector.broadcast %cst : bf16 to vector<64x128xbf16>
    %c-1_i32 = arith.constant -1 : i32
    %19 = vector.broadcast %c-1_i32 : i32 to vector<1x128xi32>
    %20 = arith.addi %13, %19 : vector<1x128xi32>
    %c0_i32_4 = arith.constant 0 : i32
    %21 = vector.broadcast %c0_i32_4 : i32 to vector<1x128xi32>
    %22 = arith.cmpi sge, %20, %21 : vector<1x128xi32>
    %c-1_i32_5 = arith.constant -1 : i32
    %23 = vector.broadcast %c-1_i32_5 : i32 to vector<1x128xi32>
    %24 = arith.addi %13, %23 : vector<1x128xi32>
    %c2_i32 = arith.constant 2 : i32
    %25 = vector.broadcast %c2_i32 : i32 to vector<1x128xi32>
    %26 = arith.cmpi slt, %24, %25 : vector<1x128xi32>
    %27 = arith.andi %22, %26 : vector<1x128xi1>
    %28 = arith.andi %17, %27 : vector<1x128xi1>
    %c-1_i32_6 = arith.constant -1 : i32
    %29 = vector.broadcast %c-1_i32_6 : i32 to vector<1x128xi32>
    %30 = arith.addi %15, %29 : vector<1x128xi32>
    %c0_i32_7 = arith.constant 0 : i32
    %31 = vector.broadcast %c0_i32_7 : i32 to vector<1x128xi32>
    %32 = arith.cmpi sge, %30, %31 : vector<1x128xi32>
    %c-1_i32_8 = arith.constant -1 : i32
    %33 = vector.broadcast %c-1_i32_8 : i32 to vector<1x128xi32>
    %34 = arith.addi %15, %33 : vector<1x128xi32>
    %c2_i32_9 = arith.constant 2 : i32
    %35 = vector.broadcast %c2_i32_9 : i32 to vector<1x128xi32>
    %36 = arith.cmpi slt, %34, %35 : vector<1x128xi32>
    %37 = arith.andi %32, %36 : vector<1x128xi1>
    %38 = arith.andi %28, %37 : vector<1x128xi1>
    %39 = vector.extract_strided_slice %5 {offsets = [0, 125], sizes = [64, 3], strides = [1, 1]} : vector<64x128xbf16> to vector<64x3xbf16>
    %40 = vector.extract_strided_slice %5 {offsets = [0, 0], sizes = [64, 125], strides = [1, 1]} : vector<64x128xbf16> to vector<64x125xbf16>
    %41 = tpu.concatenate %39, %40 in 1 : vector<64x3xbf16>, vector<64x125xbf16> -> vector<64x128xbf16>
    %42 = vector.shape_cast %38 : vector<1x128xi1> to vector<1x128xi1>
    %43 = vector.broadcast %42 : vector<1x128xi1> to vector<64x128xi1>
    %44 = arith.select %43, %41, %18 : vector<64x128xi1>, vector<64x128xbf16>
    %c-1_i32_10 = arith.constant -1 : i32
    %45 = vector.broadcast %c-1_i32_10 : i32 to vector<1x128xi32>
    %46 = arith.addi %13, %45 : vector<1x128xi32>
    %c0_i32_11 = arith.constant 0 : i32
    %47 = vector.broadcast %c0_i32_11 : i32 to vector<1x128xi32>
    %48 = arith.cmpi sge, %46, %47 : vector<1x128xi32>
    %c-1_i32_12 = arith.constant -1 : i32
    %49 = vector.broadcast %c-1_i32_12 : i32 to vector<1x128xi32>
    %50 = arith.addi %13, %49 : vector<1x128xi32>
    %c2_i32_13 = arith.constant 2 : i32
    %51 = vector.broadcast %c2_i32_13 : i32 to vector<1x128xi32>
    %52 = arith.cmpi slt, %50, %51 : vector<1x128xi32>
    %53 = arith.andi %48, %52 : vector<1x128xi1>
    %54 = arith.andi %17, %53 : vector<1x128xi1>
    %55 = vector.extract_strided_slice %5 {offsets = [0, 126], sizes = [64, 2], strides = [1, 1]} : vector<64x128xbf16> to vector<64x2xbf16>
    %56 = vector.extract_strided_slice %5 {offsets = [0, 0], sizes = [64, 126], strides = [1, 1]} : vector<64x128xbf16> to vector<64x126xbf16>
    %57 = tpu.concatenate %55, %56 in 1 : vector<64x2xbf16>, vector<64x126xbf16> -> vector<64x128xbf16>
    %58 = vector.shape_cast %54 : vector<1x128xi1> to vector<1x128xi1>
    %59 = vector.broadcast %58 : vector<1x128xi1> to vector<64x128xi1>
    %60 = arith.select %59, %57, %18 : vector<64x128xi1>, vector<64x128xbf16>
    %c-1_i32_14 = arith.constant -1 : i32
    %61 = vector.broadcast %c-1_i32_14 : i32 to vector<1x128xi32>
    %62 = arith.addi %13, %61 : vector<1x128xi32>
    %c0_i32_15 = arith.constant 0 : i32
    %63 = vector.broadcast %c0_i32_15 : i32 to vector<1x128xi32>
    %64 = arith.cmpi sge, %62, %63 : vector<1x128xi32>
    %c-1_i32_16 = arith.constant -1 : i32
    %65 = vector.broadcast %c-1_i32_16 : i32 to vector<1x128xi32>
    %66 = arith.addi %13, %65 : vector<1x128xi32>
    %c2_i32_17 = arith.constant 2 : i32
    %67 = vector.broadcast %c2_i32_17 : i32 to vector<1x128xi32>
    %68 = arith.cmpi slt, %66, %67 : vector<1x128xi32>
    %69 = arith.andi %64, %68 : vector<1x128xi1>
    %70 = arith.andi %17, %69 : vector<1x128xi1>
    %c1_i32_18 = arith.constant 1 : i32
    %71 = vector.broadcast %c1_i32_18 : i32 to vector<1x128xi32>
    %72 = arith.addi %15, %71 : vector<1x128xi32>
    %c0_i32_19 = arith.constant 0 : i32
    %73 = vector.broadcast %c0_i32_19 : i32 to vector<1x128xi32>
    %74 = arith.cmpi sge, %72, %73 : vector<1x128xi32>
    %c1_i32_20 = arith.constant 1 : i32
    %75 = vector.broadcast %c1_i32_20 : i32 to vector<1x128xi32>
    %76 = arith.addi %15, %75 : vector<1x128xi32>
    %c2_i32_21 = arith.constant 2 : i32
    %77 = vector.broadcast %c2_i32_21 : i32 to vector<1x128xi32>
    %78 = arith.cmpi slt, %76, %77 : vector<1x128xi32>
    %79 = arith.andi %74, %78 : vector<1x128xi1>
    %80 = arith.andi %70, %79 : vector<1x128xi1>
    %81 = vector.extract_strided_slice %5 {offsets = [0, 127], sizes = [64, 1], strides = [1, 1]} : vector<64x128xbf16> to vector<64x1xbf16>
    %82 = vector.extract_strided_slice %5 {offsets = [0, 0], sizes = [64, 127], strides = [1, 1]} : vector<64x128xbf16> to vector<64x127xbf16>
    %83 = tpu.concatenate %81, %82 in 1 : vector<64x1xbf16>, vector<64x127xbf16> -> vector<64x128xbf16>
    %84 = vector.shape_cast %80 : vector<1x128xi1> to vector<1x128xi1>
    %85 = vector.broadcast %84 : vector<1x128xi1> to vector<64x128xi1>
    %86 = arith.select %85, %83, %18 : vector<64x128xi1>, vector<64x128xbf16>
    %c-1_i32_22 = arith.constant -1 : i32
    %87 = vector.broadcast %c-1_i32_22 : i32 to vector<1x128xi32>
    %88 = arith.addi %15, %87 : vector<1x128xi32>
    %c0_i32_23 = arith.constant 0 : i32
    %89 = vector.broadcast %c0_i32_23 : i32 to vector<1x128xi32>
    %90 = arith.cmpi sge, %88, %89 : vector<1x128xi32>
    %c-1_i32_24 = arith.constant -1 : i32
    %91 = vector.broadcast %c-1_i32_24 : i32 to vector<1x128xi32>
    %92 = arith.addi %15, %91 : vector<1x128xi32>
    %c2_i32_25 = arith.constant 2 : i32
    %93 = vector.broadcast %c2_i32_25 : i32 to vector<1x128xi32>
    %94 = arith.cmpi slt, %92, %93 : vector<1x128xi32>
    %95 = arith.andi %90, %94 : vector<1x128xi1>
    %96 = arith.andi %17, %95 : vector<1x128xi1>
    %97 = vector.extract_strided_slice %5 {offsets = [0, 127], sizes = [64, 1], strides = [1, 1]} : vector<64x128xbf16> to vector<64x1xbf16>
    %98 = vector.extract_strided_slice %5 {offsets = [0, 0], sizes = [64, 127], strides = [1, 1]} : vector<64x128xbf16> to vector<64x127xbf16>
    %99 = tpu.concatenate %97, %98 in 1 : vector<64x1xbf16>, vector<64x127xbf16> -> vector<64x128xbf16>
    %100 = vector.shape_cast %96 : vector<1x128xi1> to vector<1x128xi1>
    %101 = vector.broadcast %100 : vector<1x128xi1> to vector<64x128xi1>
    %102 = arith.select %101, %99, %18 : vector<64x128xi1>, vector<64x128xbf16>
    %103 = vector.shape_cast %17 : vector<1x128xi1> to vector<1x128xi1>
    %104 = vector.broadcast %103 : vector<1x128xi1> to vector<64x128xi1>
    %105 = arith.select %104, %5, %18 : vector<64x128xi1>, vector<64x128xbf16>
    %c1_i32_26 = arith.constant 1 : i32
    %106 = vector.broadcast %c1_i32_26 : i32 to vector<1x128xi32>
    %107 = arith.addi %15, %106 : vector<1x128xi32>
    %c0_i32_27 = arith.constant 0 : i32
    %108 = vector.broadcast %c0_i32_27 : i32 to vector<1x128xi32>
    %109 = arith.cmpi sge, %107, %108 : vector<1x128xi32>
    %c1_i32_28 = arith.constant 1 : i32
    %110 = vector.broadcast %c1_i32_28 : i32 to vector<1x128xi32>
    %111 = arith.addi %15, %110 : vector<1x128xi32>
    %c2_i32_29 = arith.constant 2 : i32
    %112 = vector.broadcast %c2_i32_29 : i32 to vector<1x128xi32>
    %113 = arith.cmpi slt, %111, %112 : vector<1x128xi32>
    %114 = arith.andi %109, %113 : vector<1x128xi1>
    %115 = arith.andi %17, %114 : vector<1x128xi1>
    %116 = vector.extract_strided_slice %5 {offsets = [0, 1], sizes = [64, 127], strides = [1, 1]} : vector<64x128xbf16> to vector<64x127xbf16>
    %117 = vector.extract_strided_slice %5 {offsets = [0, 0], sizes = [64, 1], strides = [1, 1]} : vector<64x128xbf16> to vector<64x1xbf16>
    %118 = tpu.concatenate %116, %117 in 1 : vector<64x127xbf16>, vector<64x1xbf16> -> vector<64x128xbf16>
    %119 = vector.shape_cast %115 : vector<1x128xi1> to vector<1x128xi1>
    %120 = vector.broadcast %119 : vector<1x128xi1> to vector<64x128xi1>
    %121 = arith.select %120, %118, %18 : vector<64x128xi1>, vector<64x128xbf16>
    %c1_i32_30 = arith.constant 1 : i32
    %122 = vector.broadcast %c1_i32_30 : i32 to vector<1x128xi32>
    %123 = arith.addi %13, %122 : vector<1x128xi32>
    %c0_i32_31 = arith.constant 0 : i32
    %124 = vector.broadcast %c0_i32_31 : i32 to vector<1x128xi32>
    %125 = arith.cmpi sge, %123, %124 : vector<1x128xi32>
    %c1_i32_32 = arith.constant 1 : i32
    %126 = vector.broadcast %c1_i32_32 : i32 to vector<1x128xi32>
    %127 = arith.addi %13, %126 : vector<1x128xi32>
    %c2_i32_33 = arith.constant 2 : i32
    %128 = vector.broadcast %c2_i32_33 : i32 to vector<1x128xi32>
    %129 = arith.cmpi slt, %127, %128 : vector<1x128xi32>
    %130 = arith.andi %125, %129 : vector<1x128xi1>
    %131 = arith.andi %17, %130 : vector<1x128xi1>
    %c-1_i32_34 = arith.constant -1 : i32
    %132 = vector.broadcast %c-1_i32_34 : i32 to vector<1x128xi32>
    %133 = arith.addi %15, %132 : vector<1x128xi32>
    %c0_i32_35 = arith.constant 0 : i32
    %134 = vector.broadcast %c0_i32_35 : i32 to vector<1x128xi32>
    %135 = arith.cmpi sge, %133, %134 : vector<1x128xi32>
    %c-1_i32_36 = arith.constant -1 : i32
    %136 = vector.broadcast %c-1_i32_36 : i32 to vector<1x128xi32>
    %137 = arith.addi %15, %136 : vector<1x128xi32>
    %c2_i32_37 = arith.constant 2 : i32
    %138 = vector.broadcast %c2_i32_37 : i32 to vector<1x128xi32>
    %139 = arith.cmpi slt, %137, %138 : vector<1x128xi32>
    %140 = arith.andi %135, %139 : vector<1x128xi1>
    %141 = arith.andi %131, %140 : vector<1x128xi1>
    %142 = vector.extract_strided_slice %5 {offsets = [0, 1], sizes = [64, 127], strides = [1, 1]} : vector<64x128xbf16> to vector<64x127xbf16>
    %143 = vector.extract_strided_slice %5 {offsets = [0, 0], sizes = [64, 1], strides = [1, 1]} : vector<64x128xbf16> to vector<64x1xbf16>
    %144 = tpu.concatenate %142, %143 in 1 : vector<64x127xbf16>, vector<64x1xbf16> -> vector<64x128xbf16>
    %145 = vector.shape_cast %141 : vector<1x128xi1> to vector<1x128xi1>
    %146 = vector.broadcast %145 : vector<1x128xi1> to vector<64x128xi1>
    %147 = arith.select %146, %144, %18 : vector<64x128xi1>, vector<64x128xbf16>
    %c1_i32_38 = arith.constant 1 : i32
    %148 = vector.broadcast %c1_i32_38 : i32 to vector<1x128xi32>
    %149 = arith.addi %13, %148 : vector<1x128xi32>
    %c0_i32_39 = arith.constant 0 : i32
    %150 = vector.broadcast %c0_i32_39 : i32 to vector<1x128xi32>
    %151 = arith.cmpi sge, %149, %150 : vector<1x128xi32>
    %c1_i32_40 = arith.constant 1 : i32
    %152 = vector.broadcast %c1_i32_40 : i32 to vector<1x128xi32>
    %153 = arith.addi %13, %152 : vector<1x128xi32>
    %c2_i32_41 = arith.constant 2 : i32
    %154 = vector.broadcast %c2_i32_41 : i32 to vector<1x128xi32>
    %155 = arith.cmpi slt, %153, %154 : vector<1x128xi32>
    %156 = arith.andi %151, %155 : vector<1x128xi1>
    %157 = arith.andi %17, %156 : vector<1x128xi1>
    %158 = vector.extract_strided_slice %5 {offsets = [0, 2], sizes = [64, 126], strides = [1, 1]} : vector<64x128xbf16> to vector<64x126xbf16>
    %159 = vector.extract_strided_slice %5 {offsets = [0, 0], sizes = [64, 2], strides = [1, 1]} : vector<64x128xbf16> to vector<64x2xbf16>
    %160 = tpu.concatenate %158, %159 in 1 : vector<64x126xbf16>, vector<64x2xbf16> -> vector<64x128xbf16>
    %161 = vector.shape_cast %157 : vector<1x128xi1> to vector<1x128xi1>
    %162 = vector.broadcast %161 : vector<1x128xi1> to vector<64x128xi1>
    %163 = arith.select %162, %160, %18 : vector<64x128xi1>, vector<64x128xbf16>
    %c1_i32_42 = arith.constant 1 : i32
    %164 = vector.broadcast %c1_i32_42 : i32 to vector<1x128xi32>
    %165 = arith.addi %13, %164 : vector<1x128xi32>
    %c0_i32_43 = arith.constant 0 : i32
    %166 = vector.broadcast %c0_i32_43 : i32 to vector<1x128xi32>
    %167 = arith.cmpi sge, %165, %166 : vector<1x128xi32>
    %c1_i32_44 = arith.constant 1 : i32
    %168 = vector.broadcast %c1_i32_44 : i32 to vector<1x128xi32>
    %169 = arith.addi %13, %168 : vector<1x128xi32>
    %c2_i32_45 = arith.constant 2 : i32
    %170 = vector.broadcast %c2_i32_45 : i32 to vector<1x128xi32>
    %171 = arith.cmpi slt, %169, %170 : vector<1x128xi32>
    %172 = arith.andi %167, %171 : vector<1x128xi1>
    %173 = arith.andi %17, %172 : vector<1x128xi1>
    %c1_i32_46 = arith.constant 1 : i32
    %174 = vector.broadcast %c1_i32_46 : i32 to vector<1x128xi32>
    %175 = arith.addi %15, %174 : vector<1x128xi32>
    %c0_i32_47 = arith.constant 0 : i32
    %176 = vector.broadcast %c0_i32_47 : i32 to vector<1x128xi32>
    %177 = arith.cmpi sge, %175, %176 : vector<1x128xi32>
    %c1_i32_48 = arith.constant 1 : i32
    %178 = vector.broadcast %c1_i32_48 : i32 to vector<1x128xi32>
    %179 = arith.addi %15, %178 : vector<1x128xi32>
    %c2_i32_49 = arith.constant 2 : i32
    %180 = vector.broadcast %c2_i32_49 : i32 to vector<1x128xi32>
    %181 = arith.cmpi slt, %179, %180 : vector<1x128xi32>
    %182 = arith.andi %177, %181 : vector<1x128xi1>
    %183 = arith.andi %173, %182 : vector<1x128xi1>
    %184 = vector.extract_strided_slice %5 {offsets = [0, 3], sizes = [64, 125], strides = [1, 1]} : vector<64x128xbf16> to vector<64x125xbf16>
    %185 = vector.extract_strided_slice %5 {offsets = [0, 0], sizes = [64, 3], strides = [1, 1]} : vector<64x128xbf16> to vector<64x3xbf16>
    %186 = tpu.concatenate %184, %185 in 1 : vector<64x125xbf16>, vector<64x3xbf16> -> vector<64x128xbf16>
    %187 = vector.shape_cast %183 : vector<1x128xi1> to vector<1x128xi1>
    %188 = vector.broadcast %187 : vector<1x128xi1> to vector<64x128xi1>
    %189 = arith.select %188, %186, %18 : vector<64x128xi1>, vector<64x128xbf16>
    %190 = tpu.concatenate %44, %60, %86, %102, %105, %121, %147, %163, %189 in 0 : vector<64x128xbf16>, vector<64x128xbf16>, vector<64x128xbf16>, vector<64x128xbf16>, vector<64x128xbf16>, vector<64x128xbf16>, vector<64x128xbf16>, vector<64x128xbf16>, vector<64x128xbf16> -> vector<576x128xbf16>
    %c0_50 = arith.constant 0 : index
    %c0_51 = arith.constant 0 : index
    %191 = vector.load %arg3[%c0_50, %c0_51] : memref<128x576xbf16, #tpu.memory_space<vmem>>, vector<128x576xbf16>
    %cst_52 = arith.constant dense<0.000000e+00> : vector<128x128xf32>
    %192 = tpu.matmul %191, %190, %cst_52 {dimension_numbers = #tpu.dot_dimension_numbers<[1], [0], [0], [1], [0, 0, 1, 1], [], []>} : vector<128x576xbf16>, vector<576x128xbf16>, vector<128x128xf32> -> vector<128x128xf32>
    %c0_i32_53 = arith.constant 0 : i32
    %193 = arith.cmpi eq, %arg0, %c0_i32_53 : i32
    %194 = arith.extui %193 : i1 to i32
    %c0_i32_54 = arith.constant 0 : i32
    %195 = arith.cmpi ne, %194, %c0_i32_54 : i32
    scf.if %195 {
      %c0_60 = arith.constant 0 : index
      %c0_61 = arith.constant 0 : index
      %204 = vector.load %arg7[%c0_60, %c0_61] : memref<128x1xf32, #tpu.memory_space<vmem>>, vector<128x1xf32>
      %cst_62 = arith.constant dense<0.000000e+00> : vector<128xf32>
      %205 = vector.multi_reduction <add>, %192, %cst_62 [1] : vector<128x128xf32> to vector<128xf32>
      %206 = vector.shape_cast %205 : vector<128xf32> to vector<128x1xf32>
      %207 = arith.addf %204, %206 : vector<128x1xf32>
      %c0_63 = arith.constant 0 : index
      %c0_64 = arith.constant 0 : index
      %208 = vector.load %arg7[%c0_63, %c0_64] : memref<128x1xf32, #tpu.memory_space<vmem>>, vector<128x1xf32>
      tpu.vector_store %arg7[%c0_63, %c0_64], %207 {strides = array<i32>} : memref<128x1xf32, #tpu.memory_space<vmem>>, vector<128x1xf32>,
      %c0_65 = arith.constant 0 : index
      %c0_66 = arith.constant 0 : index
      %209 = vector.load %arg8[%c0_65, %c0_66] : memref<128x1xf32, #tpu.memory_space<vmem>>, vector<128x1xf32>
      %210 = arith.mulf %192, %192 : vector<128x128xf32>
      %cst_67 = arith.constant dense<0.000000e+00> : vector<128xf32>
      %211 = vector.multi_reduction <add>, %210, %cst_67 [1] : vector<128x128xf32> to vector<128xf32>
      %212 = vector.shape_cast %211 : vector<128xf32> to vector<128x1xf32>
      %213 = arith.addf %209, %212 : vector<128x1xf32>
      %c0_68 = arith.constant 0 : index
      %c0_69 = arith.constant 0 : index
      %214 = vector.load %arg8[%c0_68, %c0_69] : memref<128x1xf32, #tpu.memory_space<vmem>>, vector<128x1xf32>
      tpu.vector_store %arg8[%c0_68, %c0_69], %213 {strides = array<i32>} : memref<128x1xf32, #tpu.memory_space<vmem>>, vector<128x1xf32>,
    } else {
    }
    %c1_i32_55 = arith.constant 1 : i32
    %196 = arith.cmpi eq, %arg0, %c1_i32_55 : i32
    %c0_i32_56 = arith.constant 0 : i32
    %197 = arith.cmpi eq, %arg1, %c0_i32_56 : i32
    %198 = arith.andi %196, %197 : i1
    %199 = arith.extui %198 : i1 to i32
    %c0_i32_57 = arith.constant 0 : i32
    %200 = arith.cmpi ne, %199, %c0_i32_57 : i32
    scf.if %200 {
      %c0_60 = arith.constant 0 : index
      %c0_61 = arith.constant 0 : index
      %204 = vector.load %arg7[%c0_60, %c0_61] : memref<128x1xf32, #tpu.memory_space<vmem>>, vector<128x1xf32>
      %c0_62 = arith.constant 0 : index
      %c0_63 = arith.constant 0 : index
      %205 = vector.load %arg8[%c0_62, %c0_63] : memref<128x1xf32, #tpu.memory_space<vmem>>, vector<128x1xf32>
      %206 = vector.extract_strided_slice %204 {offsets = [0, 0], sizes = [32, 1], strides = [1, 1]} : vector<128x1xf32> to vector<32x1xf32>
      %207 = vector.extract_strided_slice %204 {offsets = [32, 0], sizes = [32, 1], strides = [1, 1]} : vector<128x1xf32> to vector<32x1xf32>
      %208 = arith.addf %206, %207 : vector<32x1xf32>
      %209 = vector.extract_strided_slice %204 {offsets = [64, 0], sizes = [32, 1], strides = [1, 1]} : vector<128x1xf32> to vector<32x1xf32>
      %210 = arith.addf %208, %209 : vector<32x1xf32>
      %211 = vector.extract_strided_slice %204 {offsets = [96, 0], sizes = [32, 1], strides = [1, 1]} : vector<128x1xf32> to vector<32x1xf32>
      %212 = arith.addf %210, %211 : vector<32x1xf32>
      %213 = vector.extract_strided_slice %205 {offsets = [0, 0], sizes = [32, 1], strides = [1, 1]} : vector<128x1xf32> to vector<32x1xf32>
      %214 = vector.extract_strided_slice %205 {offsets = [32, 0], sizes = [32, 1], strides = [1, 1]} : vector<128x1xf32> to vector<32x1xf32>
      %215 = arith.addf %213, %214 : vector<32x1xf32>
      %216 = vector.extract_strided_slice %205 {offsets = [64, 0], sizes = [32, 1], strides = [1, 1]} : vector<128x1xf32> to vector<32x1xf32>
      %217 = arith.addf %215, %216 : vector<32x1xf32>
      %218 = vector.extract_strided_slice %205 {offsets = [96, 0], sizes = [32, 1], strides = [1, 1]} : vector<128x1xf32> to vector<32x1xf32>
      %219 = arith.addf %217, %218 : vector<32x1xf32>
      %cst_64 = arith.constant 3.125000e-02 : f32
      %220 = vector.broadcast %cst_64 : f32 to vector<32x1xf32>
      %221 = arith.mulf %212, %220 : vector<32x1xf32>
      %cst_65 = arith.constant 3.125000e-02 : f32
      %222 = vector.broadcast %cst_65 : f32 to vector<32x1xf32>
      %223 = arith.mulf %219, %222 : vector<32x1xf32>
      %224 = arith.mulf %221, %221 : vector<32x1xf32>
      %225 = arith.subf %223, %224 : vector<32x1xf32>
      %cst_66 = arith.constant 0.000000e+00 : f32
      %226 = vector.broadcast %cst_66 : f32 to vector<32x1xf32>
      %227 = arith.maximumf %225, %226 : vector<32x1xf32>
      %c0_67 = arith.constant 0 : index
      %c0_68 = arith.constant 0 : index
      %228 = vector.load %arg4[%c0_67, %c0_68] : memref<32x1xf32, #tpu.memory_space<vmem>>, vector<32x1xf32>
      %cst_69 = arith.constant 9.99999974E-6 : f32
      %229 = vector.broadcast %cst_69 : f32 to vector<32x1xf32>
      %230 = arith.addf %227, %229 : vector<32x1xf32>
      %231 = math.rsqrt %230 : vector<32x1xf32>
      %232 = arith.mulf %228, %231 : vector<32x1xf32>
      %c0_70 = arith.constant 0 : index
      %c0_71 = arith.constant 0 : index
      %233 = vector.load %arg5[%c0_70, %c0_71] : memref<32x1xf32, #tpu.memory_space<vmem>>, vector<32x1xf32>
      %234 = arith.mulf %221, %232 : vector<32x1xf32>
      %235 = arith.subf %233, %234 : vector<32x1xf32>
      %c0_72 = arith.constant 0 : index
      %c0_73 = arith.constant 0 : index
      %236 = vector.load %arg9[%c0_72, %c0_73] : memref<128x1xf32, #tpu.memory_space<vmem>>, vector<32x1xf32>
      tpu.vector_store %arg9[%c0_72, %c0_73], %232 {strides = array<i32>} : memref<128x1xf32, #tpu.memory_space<vmem>>, vector<32x1xf32>,
      %c0_74 = arith.constant 0 : index
      %c0_75 = arith.constant 0 : index
      %237 = vector.load %arg10[%c0_74, %c0_75] : memref<128x1xf32, #tpu.memory_space<vmem>>, vector<32x1xf32>
      tpu.vector_store %arg10[%c0_74, %c0_75], %235 {strides = array<i32>} : memref<128x1xf32, #tpu.memory_space<vmem>>, vector<32x1xf32>,
      %c32 = arith.constant 32 : index
      %c0_76 = arith.constant 0 : index
      %238 = vector.load %arg9[%c32, %c0_76] : memref<128x1xf32, #tpu.memory_space<vmem>>, vector<32x1xf32>
      tpu.vector_store %arg9[%c32, %c0_76], %232 {strides = array<i32>} : memref<128x1xf32, #tpu.memory_space<vmem>>, vector<32x1xf32>,
      %c32_77 = arith.constant 32 : index
      %c0_78 = arith.constant 0 : index
      %239 = vector.load %arg10[%c32_77, %c0_78] : memref<128x1xf32, #tpu.memory_space<vmem>>, vector<32x1xf32>
      tpu.vector_store %arg10[%c32_77, %c0_78], %235 {strides = array<i32>} : memref<128x1xf32, #tpu.memory_space<vmem>>, vector<32x1xf32>,
      %c64 = arith.constant 64 : index
      %c0_79 = arith.constant 0 : index
      %240 = vector.load %arg9[%c64, %c0_79] : memref<128x1xf32, #tpu.memory_space<vmem>>, vector<32x1xf32>
      tpu.vector_store %arg9[%c64, %c0_79], %232 {strides = array<i32>} : memref<128x1xf32, #tpu.memory_space<vmem>>, vector<32x1xf32>,
      %c64_80 = arith.constant 64 : index
      %c0_81 = arith.constant 0 : index
      %241 = vector.load %arg10[%c64_80, %c0_81] : memref<128x1xf32, #tpu.memory_space<vmem>>, vector<32x1xf32>
      tpu.vector_store %arg10[%c64_80, %c0_81], %235 {strides = array<i32>} : memref<128x1xf32, #tpu.memory_space<vmem>>, vector<32x1xf32>,
      %c96 = arith.constant 96 : index
      %c0_82 = arith.constant 0 : index
      %242 = vector.load %arg9[%c96, %c0_82] : memref<128x1xf32, #tpu.memory_space<vmem>>, vector<32x1xf32>
      tpu.vector_store %arg9[%c96, %c0_82], %232 {strides = array<i32>} : memref<128x1xf32, #tpu.memory_space<vmem>>, vector<32x1xf32>,
      %c96_83 = arith.constant 96 : index
      %c0_84 = arith.constant 0 : index
      %243 = vector.load %arg10[%c96_83, %c0_84] : memref<128x1xf32, #tpu.memory_space<vmem>>, vector<32x1xf32>
      tpu.vector_store %arg10[%c96_83, %c0_84], %235 {strides = array<i32>} : memref<128x1xf32, #tpu.memory_space<vmem>>, vector<32x1xf32>,
    } else {
    }
    %c1_i32_58 = arith.constant 1 : i32
    %201 = arith.cmpi eq, %arg0, %c1_i32_58 : i32
    %202 = arith.extui %201 : i1 to i32
    %c0_i32_59 = arith.constant 0 : i32
    %203 = arith.cmpi ne, %202, %c0_i32_59 : i32
    scf.if %203 {
      %c0_60 = arith.constant 0 : index
      %c0_61 = arith.constant 0 : index
      %204 = vector.load %arg9[%c0_60, %c0_61] : memref<128x1xf32, #tpu.memory_space<vmem>>, vector<128x1xf32>
      %205 = vector.broadcast %204 : vector<128x1xf32> to vector<128x128xf32>
      %206 = arith.mulf %192, %205 : vector<128x128xf32>
      %c0_62 = arith.constant 0 : index
      %c0_63 = arith.constant 0 : index
      %207 = vector.load %arg10[%c0_62, %c0_63] : memref<128x1xf32, #tpu.memory_space<vmem>>, vector<128x1xf32>
      %208 = vector.broadcast %207 : vector<128x1xf32> to vector<128x128xf32>
      %209 = arith.addf %206, %208 : vector<128x128xf32>
      %cst_64 = arith.constant 0.000000e+00 : f32
      %210 = vector.broadcast %cst_64 : f32 to vector<128x128xf32>
      %211 = arith.maximumf %209, %210 : vector<128x128xf32>
      %212 = arith.truncf %211 : vector<128x128xf32> to vector<128x128xbf16>
      %c0_65 = arith.constant 0 : index
      %c0_66 = arith.constant 0 : index
      %213 = vector.load %arg6[%c0_65, %c0_66] : memref<128x128xbf16, #tpu.memory_space<vmem>>, vector<128x128xbf16>
      tpu.vector_store %arg6[%c0_65, %c0_66], %212 {strides = array<i32>} : memref<128x128xbf16, #tpu.memory_space<vmem>>, vector<128x128xbf16>,
    } else {
    }
    return
  }
  func.func @transform_0(%arg0: i32, %arg1: i32) -> (i32, i32) {
    %c0_i32 = arith.constant 0 : i32
    %c0_i32_0 = arith.constant 0 : i32
    return %c0_i32, %arg1 : i32, i32
  }
  func.func @transform_1(%arg0: i32, %arg1: i32) -> (i32, i32) {
    %c0_i32 = arith.constant 0 : i32
    %c0_i32_0 = arith.constant 0 : i32
    %c0_i32_1 = arith.constant 0 : i32
    return %c0_i32, %c0_i32_0 : i32, i32
  }
  func.func @transform_2(%arg0: i32, %arg1: i32) -> (i32, i32) {
    %c0_i32 = arith.constant 0 : i32
    %c0_i32_0 = arith.constant 0 : i32
    %c0_i32_1 = arith.constant 0 : i32
    return %c0_i32, %c0_i32_0 : i32, i32
  }
  func.func @transform_3(%arg0: i32, %arg1: i32) -> (i32, i32) {
    %c0_i32 = arith.constant 0 : i32
    %c0_i32_0 = arith.constant 0 : i32
    %c0_i32_1 = arith.constant 0 : i32
    return %c0_i32, %c0_i32_0 : i32, i32
  }
  func.func @transform_4(%arg0: i32, %arg1: i32) -> (i32, i32) {
    %c0_i32 = arith.constant 0 : i32
    %c0_i32_0 = arith.constant 0 : i32
    return %c0_i32, %arg1 : i32, i32
  }
}

module attributes {stable_mosaic.version = 11 : i64} {
  func.func @_bn_deconv_kernel(%arg0: i32, %arg1: i32, %arg2: memref<32x128xbf16, #tpu.memory_space<vmem>>, %arg3: memref<64x288xbf16, #tpu.memory_space<vmem>>, %arg4: memref<16x1xf32, #tpu.memory_space<vmem>>, %arg5: memref<16x1xf32, #tpu.memory_space<vmem>>, %arg6: memref<64x128xbf16, #tpu.memory_space<vmem>>, %arg7: memref<64x1xf32, #tpu.memory_space<vmem>>, %arg8: memref<64x1xf32, #tpu.memory_space<vmem>>, %arg9: memref<64x1xf32, #tpu.memory_space<vmem>>, %arg10: memref<64x1xf32, #tpu.memory_space<vmem>>) attributes {dimension_semantics = [#tpu.dimension_semantics<arbitrary>, #tpu.dimension_semantics<arbitrary>], iteration_bounds = array<i64: 2, 1>, scalar_prefetch = 0 : i64, scratch_operands = 4 : i64, tpu.core_type = #tpu.core_type<tc>, window_params = [{transform_indices = @transform_0, window_bounds = array<i64: 32, 128>}, {pipeline_mode = #tpu.pipeline_mode<synchronous>, transform_indices = @transform_1, window_bounds = array<i64: 64, 288>}, {pipeline_mode = #tpu.pipeline_mode<synchronous>, transform_indices = @transform_2, window_bounds = array<i64: 16, 1>}, {pipeline_mode = #tpu.pipeline_mode<synchronous>, transform_indices = @transform_3, window_bounds = array<i64: 16, 1>}, {transform_indices = @transform_4, window_bounds = array<i64: 64, 128>}]} {
    %c0_i32 = arith.constant 0 : i32
    %0 = arith.cmpi eq, %arg0, %c0_i32 : i32
    %c0_i32_0 = arith.constant 0 : i32
    %1 = arith.cmpi eq, %arg1, %c0_i32_0 : i32
    %2 = arith.andi %0, %1 : i1
    %3 = arith.extui %2 : i1 to i32
    %c0_i32_1 = arith.constant 0 : i32
    %4 = arith.cmpi ne, %3, %c0_i32_1 : i32
    scf.if %4 {
      %cst_58 = arith.constant 0.000000e+00 : f32
      %204 = vector.broadcast %cst_58 : f32 to vector<64x1xf32>
      %c0_59 = arith.constant 0 : index
      %c0_60 = arith.constant 0 : index
      %205 = vector.load %arg7[%c0_59, %c0_60] : memref<64x1xf32, #tpu.memory_space<vmem>>, vector<64x1xf32>
      tpu.vector_store %arg7[%c0_59, %c0_60], %204 {strides = array<i32>} : memref<64x1xf32, #tpu.memory_space<vmem>>, vector<64x1xf32>,
      %cst_61 = arith.constant 0.000000e+00 : f32
      %206 = vector.broadcast %cst_61 : f32 to vector<64x1xf32>
      %c0_62 = arith.constant 0 : index
      %c0_63 = arith.constant 0 : index
      %207 = vector.load %arg8[%c0_62, %c0_63] : memref<64x1xf32, #tpu.memory_space<vmem>>, vector<64x1xf32>
      tpu.vector_store %arg8[%c0_62, %c0_63], %206 {strides = array<i32>} : memref<64x1xf32, #tpu.memory_space<vmem>>, vector<64x1xf32>,
    } else {
    }
    %c0 = arith.constant 0 : index
    %c0_2 = arith.constant 0 : index
    %5 = vector.load %arg2[%c0, %c0_2] : memref<32x128xbf16, #tpu.memory_space<vmem>>, vector<32x128xbf16>
    %c128_i32 = arith.constant 128 : i32
    %6 = arith.muli %arg1, %c128_i32 : i32
    %7 = tpu.iota {dimensions = array<i32: 1>} : vector<1x128xi32>
    %8 = vector.broadcast %6 : i32 to vector<1x128xi32>
    %9 = arith.addi %7, %8 : vector<1x128xi32>
    %c15_i32 = arith.constant 15 : i32
    %10 = vector.broadcast %c15_i32 : i32 to vector<1x128xi32>
    %11 = arith.andi %7, %10 : vector<1x128xi32>
    %c2_i32 = arith.constant 2 : i32
    %12 = vector.broadcast %c2_i32 : i32 to vector<1x128xi32>
    %13 = arith.shrsi %11, %12 : vector<1x128xi32>
    %c3_i32 = arith.constant 3 : i32
    %14 = vector.broadcast %c3_i32 : i32 to vector<1x128xi32>
    %15 = arith.andi %11, %14 : vector<1x128xi32>
    %c32_i32 = arith.constant 32 : i32
    %16 = vector.broadcast %c32_i32 : i32 to vector<1x128xi32>
    %17 = arith.cmpi slt, %9, %16 : vector<1x128xi32>
    %cst = arith.constant 0.000000e+00 : bf16
    %18 = vector.broadcast %cst : bf16 to vector<32x128xbf16>
    %c-1_i32 = arith.constant -1 : i32
    %19 = vector.broadcast %c-1_i32 : i32 to vector<1x128xi32>
    %20 = arith.addi %13, %19 : vector<1x128xi32>
    %c0_i32_3 = arith.constant 0 : i32
    %21 = vector.broadcast %c0_i32_3 : i32 to vector<1x128xi32>
    %22 = arith.cmpi sge, %20, %21 : vector<1x128xi32>
    %c-1_i32_4 = arith.constant -1 : i32
    %23 = vector.broadcast %c-1_i32_4 : i32 to vector<1x128xi32>
    %24 = arith.addi %13, %23 : vector<1x128xi32>
    %c4_i32 = arith.constant 4 : i32
    %25 = vector.broadcast %c4_i32 : i32 to vector<1x128xi32>
    %26 = arith.cmpi slt, %24, %25 : vector<1x128xi32>
    %27 = arith.andi %22, %26 : vector<1x128xi1>
    %28 = arith.andi %17, %27 : vector<1x128xi1>
    %c-1_i32_5 = arith.constant -1 : i32
    %29 = vector.broadcast %c-1_i32_5 : i32 to vector<1x128xi32>
    %30 = arith.addi %15, %29 : vector<1x128xi32>
    %c0_i32_6 = arith.constant 0 : i32
    %31 = vector.broadcast %c0_i32_6 : i32 to vector<1x128xi32>
    %32 = arith.cmpi sge, %30, %31 : vector<1x128xi32>
    %c-1_i32_7 = arith.constant -1 : i32
    %33 = vector.broadcast %c-1_i32_7 : i32 to vector<1x128xi32>
    %34 = arith.addi %15, %33 : vector<1x128xi32>
    %c4_i32_8 = arith.constant 4 : i32
    %35 = vector.broadcast %c4_i32_8 : i32 to vector<1x128xi32>
    %36 = arith.cmpi slt, %34, %35 : vector<1x128xi32>
    %37 = arith.andi %32, %36 : vector<1x128xi1>
    %38 = arith.andi %28, %37 : vector<1x128xi1>
    %39 = vector.extract_strided_slice %5 {offsets = [0, 123], sizes = [32, 5], strides = [1, 1]} : vector<32x128xbf16> to vector<32x5xbf16>
    %40 = vector.extract_strided_slice %5 {offsets = [0, 0], sizes = [32, 123], strides = [1, 1]} : vector<32x128xbf16> to vector<32x123xbf16>
    %41 = tpu.concatenate %39, %40 in 1 : vector<32x5xbf16>, vector<32x123xbf16> -> vector<32x128xbf16>
    %42 = vector.shape_cast %38 : vector<1x128xi1> to vector<1x128xi1>
    %43 = vector.broadcast %42 : vector<1x128xi1> to vector<32x128xi1>
    %44 = arith.select %43, %41, %18 : vector<32x128xi1>, vector<32x128xbf16>
    %c-1_i32_9 = arith.constant -1 : i32
    %45 = vector.broadcast %c-1_i32_9 : i32 to vector<1x128xi32>
    %46 = arith.addi %13, %45 : vector<1x128xi32>
    %c0_i32_10 = arith.constant 0 : i32
    %47 = vector.broadcast %c0_i32_10 : i32 to vector<1x128xi32>
    %48 = arith.cmpi sge, %46, %47 : vector<1x128xi32>
    %c-1_i32_11 = arith.constant -1 : i32
    %49 = vector.broadcast %c-1_i32_11 : i32 to vector<1x128xi32>
    %50 = arith.addi %13, %49 : vector<1x128xi32>
    %c4_i32_12 = arith.constant 4 : i32
    %51 = vector.broadcast %c4_i32_12 : i32 to vector<1x128xi32>
    %52 = arith.cmpi slt, %50, %51 : vector<1x128xi32>
    %53 = arith.andi %48, %52 : vector<1x128xi1>
    %54 = arith.andi %17, %53 : vector<1x128xi1>
    %55 = vector.extract_strided_slice %5 {offsets = [0, 124], sizes = [32, 4], strides = [1, 1]} : vector<32x128xbf16> to vector<32x4xbf16>
    %56 = vector.extract_strided_slice %5 {offsets = [0, 0], sizes = [32, 124], strides = [1, 1]} : vector<32x128xbf16> to vector<32x124xbf16>
    %57 = tpu.concatenate %55, %56 in 1 : vector<32x4xbf16>, vector<32x124xbf16> -> vector<32x128xbf16>
    %58 = vector.shape_cast %54 : vector<1x128xi1> to vector<1x128xi1>
    %59 = vector.broadcast %58 : vector<1x128xi1> to vector<32x128xi1>
    %60 = arith.select %59, %57, %18 : vector<32x128xi1>, vector<32x128xbf16>
    %c-1_i32_13 = arith.constant -1 : i32
    %61 = vector.broadcast %c-1_i32_13 : i32 to vector<1x128xi32>
    %62 = arith.addi %13, %61 : vector<1x128xi32>
    %c0_i32_14 = arith.constant 0 : i32
    %63 = vector.broadcast %c0_i32_14 : i32 to vector<1x128xi32>
    %64 = arith.cmpi sge, %62, %63 : vector<1x128xi32>
    %c-1_i32_15 = arith.constant -1 : i32
    %65 = vector.broadcast %c-1_i32_15 : i32 to vector<1x128xi32>
    %66 = arith.addi %13, %65 : vector<1x128xi32>
    %c4_i32_16 = arith.constant 4 : i32
    %67 = vector.broadcast %c4_i32_16 : i32 to vector<1x128xi32>
    %68 = arith.cmpi slt, %66, %67 : vector<1x128xi32>
    %69 = arith.andi %64, %68 : vector<1x128xi1>
    %70 = arith.andi %17, %69 : vector<1x128xi1>
    %c1_i32 = arith.constant 1 : i32
    %71 = vector.broadcast %c1_i32 : i32 to vector<1x128xi32>
    %72 = arith.addi %15, %71 : vector<1x128xi32>
    %c0_i32_17 = arith.constant 0 : i32
    %73 = vector.broadcast %c0_i32_17 : i32 to vector<1x128xi32>
    %74 = arith.cmpi sge, %72, %73 : vector<1x128xi32>
    %c1_i32_18 = arith.constant 1 : i32
    %75 = vector.broadcast %c1_i32_18 : i32 to vector<1x128xi32>
    %76 = arith.addi %15, %75 : vector<1x128xi32>
    %c4_i32_19 = arith.constant 4 : i32
    %77 = vector.broadcast %c4_i32_19 : i32 to vector<1x128xi32>
    %78 = arith.cmpi slt, %76, %77 : vector<1x128xi32>
    %79 = arith.andi %74, %78 : vector<1x128xi1>
    %80 = arith.andi %70, %79 : vector<1x128xi1>
    %81 = vector.extract_strided_slice %5 {offsets = [0, 125], sizes = [32, 3], strides = [1, 1]} : vector<32x128xbf16> to vector<32x3xbf16>
    %82 = vector.extract_strided_slice %5 {offsets = [0, 0], sizes = [32, 125], strides = [1, 1]} : vector<32x128xbf16> to vector<32x125xbf16>
    %83 = tpu.concatenate %81, %82 in 1 : vector<32x3xbf16>, vector<32x125xbf16> -> vector<32x128xbf16>
    %84 = vector.shape_cast %80 : vector<1x128xi1> to vector<1x128xi1>
    %85 = vector.broadcast %84 : vector<1x128xi1> to vector<32x128xi1>
    %86 = arith.select %85, %83, %18 : vector<32x128xi1>, vector<32x128xbf16>
    %c-1_i32_20 = arith.constant -1 : i32
    %87 = vector.broadcast %c-1_i32_20 : i32 to vector<1x128xi32>
    %88 = arith.addi %15, %87 : vector<1x128xi32>
    %c0_i32_21 = arith.constant 0 : i32
    %89 = vector.broadcast %c0_i32_21 : i32 to vector<1x128xi32>
    %90 = arith.cmpi sge, %88, %89 : vector<1x128xi32>
    %c-1_i32_22 = arith.constant -1 : i32
    %91 = vector.broadcast %c-1_i32_22 : i32 to vector<1x128xi32>
    %92 = arith.addi %15, %91 : vector<1x128xi32>
    %c4_i32_23 = arith.constant 4 : i32
    %93 = vector.broadcast %c4_i32_23 : i32 to vector<1x128xi32>
    %94 = arith.cmpi slt, %92, %93 : vector<1x128xi32>
    %95 = arith.andi %90, %94 : vector<1x128xi1>
    %96 = arith.andi %17, %95 : vector<1x128xi1>
    %97 = vector.extract_strided_slice %5 {offsets = [0, 127], sizes = [32, 1], strides = [1, 1]} : vector<32x128xbf16> to vector<32x1xbf16>
    %98 = vector.extract_strided_slice %5 {offsets = [0, 0], sizes = [32, 127], strides = [1, 1]} : vector<32x128xbf16> to vector<32x127xbf16>
    %99 = tpu.concatenate %97, %98 in 1 : vector<32x1xbf16>, vector<32x127xbf16> -> vector<32x128xbf16>
    %100 = vector.shape_cast %96 : vector<1x128xi1> to vector<1x128xi1>
    %101 = vector.broadcast %100 : vector<1x128xi1> to vector<32x128xi1>
    %102 = arith.select %101, %99, %18 : vector<32x128xi1>, vector<32x128xbf16>
    %103 = vector.shape_cast %17 : vector<1x128xi1> to vector<1x128xi1>
    %104 = vector.broadcast %103 : vector<1x128xi1> to vector<32x128xi1>
    %105 = arith.select %104, %5, %18 : vector<32x128xi1>, vector<32x128xbf16>
    %c1_i32_24 = arith.constant 1 : i32
    %106 = vector.broadcast %c1_i32_24 : i32 to vector<1x128xi32>
    %107 = arith.addi %15, %106 : vector<1x128xi32>
    %c0_i32_25 = arith.constant 0 : i32
    %108 = vector.broadcast %c0_i32_25 : i32 to vector<1x128xi32>
    %109 = arith.cmpi sge, %107, %108 : vector<1x128xi32>
    %c1_i32_26 = arith.constant 1 : i32
    %110 = vector.broadcast %c1_i32_26 : i32 to vector<1x128xi32>
    %111 = arith.addi %15, %110 : vector<1x128xi32>
    %c4_i32_27 = arith.constant 4 : i32
    %112 = vector.broadcast %c4_i32_27 : i32 to vector<1x128xi32>
    %113 = arith.cmpi slt, %111, %112 : vector<1x128xi32>
    %114 = arith.andi %109, %113 : vector<1x128xi1>
    %115 = arith.andi %17, %114 : vector<1x128xi1>
    %116 = vector.extract_strided_slice %5 {offsets = [0, 1], sizes = [32, 127], strides = [1, 1]} : vector<32x128xbf16> to vector<32x127xbf16>
    %117 = vector.extract_strided_slice %5 {offsets = [0, 0], sizes = [32, 1], strides = [1, 1]} : vector<32x128xbf16> to vector<32x1xbf16>
    %118 = tpu.concatenate %116, %117 in 1 : vector<32x127xbf16>, vector<32x1xbf16> -> vector<32x128xbf16>
    %119 = vector.shape_cast %115 : vector<1x128xi1> to vector<1x128xi1>
    %120 = vector.broadcast %119 : vector<1x128xi1> to vector<32x128xi1>
    %121 = arith.select %120, %118, %18 : vector<32x128xi1>, vector<32x128xbf16>
    %c1_i32_28 = arith.constant 1 : i32
    %122 = vector.broadcast %c1_i32_28 : i32 to vector<1x128xi32>
    %123 = arith.addi %13, %122 : vector<1x128xi32>
    %c0_i32_29 = arith.constant 0 : i32
    %124 = vector.broadcast %c0_i32_29 : i32 to vector<1x128xi32>
    %125 = arith.cmpi sge, %123, %124 : vector<1x128xi32>
    %c1_i32_30 = arith.constant 1 : i32
    %126 = vector.broadcast %c1_i32_30 : i32 to vector<1x128xi32>
    %127 = arith.addi %13, %126 : vector<1x128xi32>
    %c4_i32_31 = arith.constant 4 : i32
    %128 = vector.broadcast %c4_i32_31 : i32 to vector<1x128xi32>
    %129 = arith.cmpi slt, %127, %128 : vector<1x128xi32>
    %130 = arith.andi %125, %129 : vector<1x128xi1>
    %131 = arith.andi %17, %130 : vector<1x128xi1>
    %c-1_i32_32 = arith.constant -1 : i32
    %132 = vector.broadcast %c-1_i32_32 : i32 to vector<1x128xi32>
    %133 = arith.addi %15, %132 : vector<1x128xi32>
    %c0_i32_33 = arith.constant 0 : i32
    %134 = vector.broadcast %c0_i32_33 : i32 to vector<1x128xi32>
    %135 = arith.cmpi sge, %133, %134 : vector<1x128xi32>
    %c-1_i32_34 = arith.constant -1 : i32
    %136 = vector.broadcast %c-1_i32_34 : i32 to vector<1x128xi32>
    %137 = arith.addi %15, %136 : vector<1x128xi32>
    %c4_i32_35 = arith.constant 4 : i32
    %138 = vector.broadcast %c4_i32_35 : i32 to vector<1x128xi32>
    %139 = arith.cmpi slt, %137, %138 : vector<1x128xi32>
    %140 = arith.andi %135, %139 : vector<1x128xi1>
    %141 = arith.andi %131, %140 : vector<1x128xi1>
    %142 = vector.extract_strided_slice %5 {offsets = [0, 3], sizes = [32, 125], strides = [1, 1]} : vector<32x128xbf16> to vector<32x125xbf16>
    %143 = vector.extract_strided_slice %5 {offsets = [0, 0], sizes = [32, 3], strides = [1, 1]} : vector<32x128xbf16> to vector<32x3xbf16>
    %144 = tpu.concatenate %142, %143 in 1 : vector<32x125xbf16>, vector<32x3xbf16> -> vector<32x128xbf16>
    %145 = vector.shape_cast %141 : vector<1x128xi1> to vector<1x128xi1>
    %146 = vector.broadcast %145 : vector<1x128xi1> to vector<32x128xi1>
    %147 = arith.select %146, %144, %18 : vector<32x128xi1>, vector<32x128xbf16>
    %c1_i32_36 = arith.constant 1 : i32
    %148 = vector.broadcast %c1_i32_36 : i32 to vector<1x128xi32>
    %149 = arith.addi %13, %148 : vector<1x128xi32>
    %c0_i32_37 = arith.constant 0 : i32
    %150 = vector.broadcast %c0_i32_37 : i32 to vector<1x128xi32>
    %151 = arith.cmpi sge, %149, %150 : vector<1x128xi32>
    %c1_i32_38 = arith.constant 1 : i32
    %152 = vector.broadcast %c1_i32_38 : i32 to vector<1x128xi32>
    %153 = arith.addi %13, %152 : vector<1x128xi32>
    %c4_i32_39 = arith.constant 4 : i32
    %154 = vector.broadcast %c4_i32_39 : i32 to vector<1x128xi32>
    %155 = arith.cmpi slt, %153, %154 : vector<1x128xi32>
    %156 = arith.andi %151, %155 : vector<1x128xi1>
    %157 = arith.andi %17, %156 : vector<1x128xi1>
    %158 = vector.extract_strided_slice %5 {offsets = [0, 4], sizes = [32, 124], strides = [1, 1]} : vector<32x128xbf16> to vector<32x124xbf16>
    %159 = vector.extract_strided_slice %5 {offsets = [0, 0], sizes = [32, 4], strides = [1, 1]} : vector<32x128xbf16> to vector<32x4xbf16>
    %160 = tpu.concatenate %158, %159 in 1 : vector<32x124xbf16>, vector<32x4xbf16> -> vector<32x128xbf16>
    %161 = vector.shape_cast %157 : vector<1x128xi1> to vector<1x128xi1>
    %162 = vector.broadcast %161 : vector<1x128xi1> to vector<32x128xi1>
    %163 = arith.select %162, %160, %18 : vector<32x128xi1>, vector<32x128xbf16>
    %c1_i32_40 = arith.constant 1 : i32
    %164 = vector.broadcast %c1_i32_40 : i32 to vector<1x128xi32>
    %165 = arith.addi %13, %164 : vector<1x128xi32>
    %c0_i32_41 = arith.constant 0 : i32
    %166 = vector.broadcast %c0_i32_41 : i32 to vector<1x128xi32>
    %167 = arith.cmpi sge, %165, %166 : vector<1x128xi32>
    %c1_i32_42 = arith.constant 1 : i32
    %168 = vector.broadcast %c1_i32_42 : i32 to vector<1x128xi32>
    %169 = arith.addi %13, %168 : vector<1x128xi32>
    %c4_i32_43 = arith.constant 4 : i32
    %170 = vector.broadcast %c4_i32_43 : i32 to vector<1x128xi32>
    %171 = arith.cmpi slt, %169, %170 : vector<1x128xi32>
    %172 = arith.andi %167, %171 : vector<1x128xi1>
    %173 = arith.andi %17, %172 : vector<1x128xi1>
    %c1_i32_44 = arith.constant 1 : i32
    %174 = vector.broadcast %c1_i32_44 : i32 to vector<1x128xi32>
    %175 = arith.addi %15, %174 : vector<1x128xi32>
    %c0_i32_45 = arith.constant 0 : i32
    %176 = vector.broadcast %c0_i32_45 : i32 to vector<1x128xi32>
    %177 = arith.cmpi sge, %175, %176 : vector<1x128xi32>
    %c1_i32_46 = arith.constant 1 : i32
    %178 = vector.broadcast %c1_i32_46 : i32 to vector<1x128xi32>
    %179 = arith.addi %15, %178 : vector<1x128xi32>
    %c4_i32_47 = arith.constant 4 : i32
    %180 = vector.broadcast %c4_i32_47 : i32 to vector<1x128xi32>
    %181 = arith.cmpi slt, %179, %180 : vector<1x128xi32>
    %182 = arith.andi %177, %181 : vector<1x128xi1>
    %183 = arith.andi %173, %182 : vector<1x128xi1>
    %184 = vector.extract_strided_slice %5 {offsets = [0, 5], sizes = [32, 123], strides = [1, 1]} : vector<32x128xbf16> to vector<32x123xbf16>
    %185 = vector.extract_strided_slice %5 {offsets = [0, 0], sizes = [32, 5], strides = [1, 1]} : vector<32x128xbf16> to vector<32x5xbf16>
    %186 = tpu.concatenate %184, %185 in 1 : vector<32x123xbf16>, vector<32x5xbf16> -> vector<32x128xbf16>
    %187 = vector.shape_cast %183 : vector<1x128xi1> to vector<1x128xi1>
    %188 = vector.broadcast %187 : vector<1x128xi1> to vector<32x128xi1>
    %189 = arith.select %188, %186, %18 : vector<32x128xi1>, vector<32x128xbf16>
    %190 = tpu.concatenate %44, %60, %86, %102, %105, %121, %147, %163, %189 in 0 : vector<32x128xbf16>, vector<32x128xbf16>, vector<32x128xbf16>, vector<32x128xbf16>, vector<32x128xbf16>, vector<32x128xbf16>, vector<32x128xbf16>, vector<32x128xbf16>, vector<32x128xbf16> -> vector<288x128xbf16>
    %c0_48 = arith.constant 0 : index
    %c0_49 = arith.constant 0 : index
    %191 = vector.load %arg3[%c0_48, %c0_49] : memref<64x288xbf16, #tpu.memory_space<vmem>>, vector<64x288xbf16>
    %cst_50 = arith.constant dense<0.000000e+00> : vector<64x128xf32>
    %192 = tpu.matmul %191, %190, %cst_50 {dimension_numbers = #tpu.dot_dimension_numbers<[1], [0], [0], [1], [0, 0, 1, 1], [], []>} : vector<64x288xbf16>, vector<288x128xbf16>, vector<64x128xf32> -> vector<64x128xf32>
    %c0_i32_51 = arith.constant 0 : i32
    %193 = arith.cmpi eq, %arg0, %c0_i32_51 : i32
    %194 = arith.extui %193 : i1 to i32
    %c0_i32_52 = arith.constant 0 : i32
    %195 = arith.cmpi ne, %194, %c0_i32_52 : i32
    scf.if %195 {
      %c0_58 = arith.constant 0 : index
      %c0_59 = arith.constant 0 : index
      %204 = vector.load %arg7[%c0_58, %c0_59] : memref<64x1xf32, #tpu.memory_space<vmem>>, vector<64x1xf32>
      %cst_60 = arith.constant dense<0.000000e+00> : vector<64xf32>
      %205 = vector.multi_reduction <add>, %192, %cst_60 [1] : vector<64x128xf32> to vector<64xf32>
      %206 = vector.shape_cast %205 : vector<64xf32> to vector<64x1xf32>
      %207 = arith.addf %204, %206 : vector<64x1xf32>
      %c0_61 = arith.constant 0 : index
      %c0_62 = arith.constant 0 : index
      %208 = vector.load %arg7[%c0_61, %c0_62] : memref<64x1xf32, #tpu.memory_space<vmem>>, vector<64x1xf32>
      tpu.vector_store %arg7[%c0_61, %c0_62], %207 {strides = array<i32>} : memref<64x1xf32, #tpu.memory_space<vmem>>, vector<64x1xf32>,
      %c0_63 = arith.constant 0 : index
      %c0_64 = arith.constant 0 : index
      %209 = vector.load %arg8[%c0_63, %c0_64] : memref<64x1xf32, #tpu.memory_space<vmem>>, vector<64x1xf32>
      %210 = arith.mulf %192, %192 : vector<64x128xf32>
      %cst_65 = arith.constant dense<0.000000e+00> : vector<64xf32>
      %211 = vector.multi_reduction <add>, %210, %cst_65 [1] : vector<64x128xf32> to vector<64xf32>
      %212 = vector.shape_cast %211 : vector<64xf32> to vector<64x1xf32>
      %213 = arith.addf %209, %212 : vector<64x1xf32>
      %c0_66 = arith.constant 0 : index
      %c0_67 = arith.constant 0 : index
      %214 = vector.load %arg8[%c0_66, %c0_67] : memref<64x1xf32, #tpu.memory_space<vmem>>, vector<64x1xf32>
      tpu.vector_store %arg8[%c0_66, %c0_67], %213 {strides = array<i32>} : memref<64x1xf32, #tpu.memory_space<vmem>>, vector<64x1xf32>,
    } else {
    }
    %c1_i32_53 = arith.constant 1 : i32
    %196 = arith.cmpi eq, %arg0, %c1_i32_53 : i32
    %c0_i32_54 = arith.constant 0 : i32
    %197 = arith.cmpi eq, %arg1, %c0_i32_54 : i32
    %198 = arith.andi %196, %197 : i1
    %199 = arith.extui %198 : i1 to i32
    %c0_i32_55 = arith.constant 0 : i32
    %200 = arith.cmpi ne, %199, %c0_i32_55 : i32
    scf.if %200 {
      %c0_58 = arith.constant 0 : index
      %c0_59 = arith.constant 0 : index
      %204 = vector.load %arg7[%c0_58, %c0_59] : memref<64x1xf32, #tpu.memory_space<vmem>>, vector<64x1xf32>
      %c0_60 = arith.constant 0 : index
      %c0_61 = arith.constant 0 : index
      %205 = vector.load %arg8[%c0_60, %c0_61] : memref<64x1xf32, #tpu.memory_space<vmem>>, vector<64x1xf32>
      %206 = vector.extract_strided_slice %204 {offsets = [0, 0], sizes = [16, 1], strides = [1, 1]} : vector<64x1xf32> to vector<16x1xf32>
      %207 = vector.extract_strided_slice %204 {offsets = [16, 0], sizes = [16, 1], strides = [1, 1]} : vector<64x1xf32> to vector<16x1xf32>
      %208 = arith.addf %206, %207 : vector<16x1xf32>
      %209 = vector.extract_strided_slice %204 {offsets = [32, 0], sizes = [16, 1], strides = [1, 1]} : vector<64x1xf32> to vector<16x1xf32>
      %210 = arith.addf %208, %209 : vector<16x1xf32>
      %211 = vector.extract_strided_slice %204 {offsets = [48, 0], sizes = [16, 1], strides = [1, 1]} : vector<64x1xf32> to vector<16x1xf32>
      %212 = arith.addf %210, %211 : vector<16x1xf32>
      %213 = vector.extract_strided_slice %205 {offsets = [0, 0], sizes = [16, 1], strides = [1, 1]} : vector<64x1xf32> to vector<16x1xf32>
      %214 = vector.extract_strided_slice %205 {offsets = [16, 0], sizes = [16, 1], strides = [1, 1]} : vector<64x1xf32> to vector<16x1xf32>
      %215 = arith.addf %213, %214 : vector<16x1xf32>
      %216 = vector.extract_strided_slice %205 {offsets = [32, 0], sizes = [16, 1], strides = [1, 1]} : vector<64x1xf32> to vector<16x1xf32>
      %217 = arith.addf %215, %216 : vector<16x1xf32>
      %218 = vector.extract_strided_slice %205 {offsets = [48, 0], sizes = [16, 1], strides = [1, 1]} : vector<64x1xf32> to vector<16x1xf32>
      %219 = arith.addf %217, %218 : vector<16x1xf32>
      %cst_62 = arith.constant 7.812500e-03 : f32
      %220 = vector.broadcast %cst_62 : f32 to vector<16x1xf32>
      %221 = arith.mulf %212, %220 : vector<16x1xf32>
      %cst_63 = arith.constant 7.812500e-03 : f32
      %222 = vector.broadcast %cst_63 : f32 to vector<16x1xf32>
      %223 = arith.mulf %219, %222 : vector<16x1xf32>
      %224 = arith.mulf %221, %221 : vector<16x1xf32>
      %225 = arith.subf %223, %224 : vector<16x1xf32>
      %cst_64 = arith.constant 0.000000e+00 : f32
      %226 = vector.broadcast %cst_64 : f32 to vector<16x1xf32>
      %227 = arith.maximumf %225, %226 : vector<16x1xf32>
      %c0_65 = arith.constant 0 : index
      %c0_66 = arith.constant 0 : index
      %228 = vector.load %arg4[%c0_65, %c0_66] : memref<16x1xf32, #tpu.memory_space<vmem>>, vector<16x1xf32>
      %cst_67 = arith.constant 9.99999974E-6 : f32
      %229 = vector.broadcast %cst_67 : f32 to vector<16x1xf32>
      %230 = arith.addf %227, %229 : vector<16x1xf32>
      %231 = math.rsqrt %230 : vector<16x1xf32>
      %232 = arith.mulf %228, %231 : vector<16x1xf32>
      %c0_68 = arith.constant 0 : index
      %c0_69 = arith.constant 0 : index
      %233 = vector.load %arg5[%c0_68, %c0_69] : memref<16x1xf32, #tpu.memory_space<vmem>>, vector<16x1xf32>
      %234 = arith.mulf %221, %232 : vector<16x1xf32>
      %235 = arith.subf %233, %234 : vector<16x1xf32>
      %c0_70 = arith.constant 0 : index
      %c0_71 = arith.constant 0 : index
      %236 = vector.load %arg9[%c0_70, %c0_71] : memref<64x1xf32, #tpu.memory_space<vmem>>, vector<16x1xf32>
      tpu.vector_store %arg9[%c0_70, %c0_71], %232 {strides = array<i32>} : memref<64x1xf32, #tpu.memory_space<vmem>>, vector<16x1xf32>,
      %c0_72 = arith.constant 0 : index
      %c0_73 = arith.constant 0 : index
      %237 = vector.load %arg10[%c0_72, %c0_73] : memref<64x1xf32, #tpu.memory_space<vmem>>, vector<16x1xf32>
      tpu.vector_store %arg10[%c0_72, %c0_73], %235 {strides = array<i32>} : memref<64x1xf32, #tpu.memory_space<vmem>>, vector<16x1xf32>,
      %c16 = arith.constant 16 : index
      %c0_74 = arith.constant 0 : index
      %238 = vector.load %arg9[%c16, %c0_74] : memref<64x1xf32, #tpu.memory_space<vmem>>, vector<16x1xf32>
      tpu.vector_store %arg9[%c16, %c0_74], %232 {strides = array<i32>} : memref<64x1xf32, #tpu.memory_space<vmem>>, vector<16x1xf32>,
      %c16_75 = arith.constant 16 : index
      %c0_76 = arith.constant 0 : index
      %239 = vector.load %arg10[%c16_75, %c0_76] : memref<64x1xf32, #tpu.memory_space<vmem>>, vector<16x1xf32>
      tpu.vector_store %arg10[%c16_75, %c0_76], %235 {strides = array<i32>} : memref<64x1xf32, #tpu.memory_space<vmem>>, vector<16x1xf32>,
      %c32 = arith.constant 32 : index
      %c0_77 = arith.constant 0 : index
      %240 = vector.load %arg9[%c32, %c0_77] : memref<64x1xf32, #tpu.memory_space<vmem>>, vector<16x1xf32>
      tpu.vector_store %arg9[%c32, %c0_77], %232 {strides = array<i32>} : memref<64x1xf32, #tpu.memory_space<vmem>>, vector<16x1xf32>,
      %c32_78 = arith.constant 32 : index
      %c0_79 = arith.constant 0 : index
      %241 = vector.load %arg10[%c32_78, %c0_79] : memref<64x1xf32, #tpu.memory_space<vmem>>, vector<16x1xf32>
      tpu.vector_store %arg10[%c32_78, %c0_79], %235 {strides = array<i32>} : memref<64x1xf32, #tpu.memory_space<vmem>>, vector<16x1xf32>,
      %c48 = arith.constant 48 : index
      %c0_80 = arith.constant 0 : index
      %242 = vector.load %arg9[%c48, %c0_80] : memref<64x1xf32, #tpu.memory_space<vmem>>, vector<16x1xf32>
      tpu.vector_store %arg9[%c48, %c0_80], %232 {strides = array<i32>} : memref<64x1xf32, #tpu.memory_space<vmem>>, vector<16x1xf32>,
      %c48_81 = arith.constant 48 : index
      %c0_82 = arith.constant 0 : index
      %243 = vector.load %arg10[%c48_81, %c0_82] : memref<64x1xf32, #tpu.memory_space<vmem>>, vector<16x1xf32>
      tpu.vector_store %arg10[%c48_81, %c0_82], %235 {strides = array<i32>} : memref<64x1xf32, #tpu.memory_space<vmem>>, vector<16x1xf32>,
    } else {
    }
    %c1_i32_56 = arith.constant 1 : i32
    %201 = arith.cmpi eq, %arg0, %c1_i32_56 : i32
    %202 = arith.extui %201 : i1 to i32
    %c0_i32_57 = arith.constant 0 : i32
    %203 = arith.cmpi ne, %202, %c0_i32_57 : i32
    scf.if %203 {
      %c0_58 = arith.constant 0 : index
      %c0_59 = arith.constant 0 : index
      %204 = vector.load %arg9[%c0_58, %c0_59] : memref<64x1xf32, #tpu.memory_space<vmem>>, vector<64x1xf32>
      %205 = vector.broadcast %204 : vector<64x1xf32> to vector<64x128xf32>
      %206 = arith.mulf %192, %205 : vector<64x128xf32>
      %c0_60 = arith.constant 0 : index
      %c0_61 = arith.constant 0 : index
      %207 = vector.load %arg10[%c0_60, %c0_61] : memref<64x1xf32, #tpu.memory_space<vmem>>, vector<64x1xf32>
      %208 = vector.broadcast %207 : vector<64x1xf32> to vector<64x128xf32>
      %209 = arith.addf %206, %208 : vector<64x128xf32>
      %cst_62 = arith.constant 0.000000e+00 : f32
      %210 = vector.broadcast %cst_62 : f32 to vector<64x128xf32>
      %211 = arith.maximumf %209, %210 : vector<64x128xf32>
      %212 = arith.truncf %211 : vector<64x128xf32> to vector<64x128xbf16>
      %c0_63 = arith.constant 0 : index
      %c0_64 = arith.constant 0 : index
      %213 = vector.load %arg6[%c0_63, %c0_64] : memref<64x128xbf16, #tpu.memory_space<vmem>>, vector<64x128xbf16>
      tpu.vector_store %arg6[%c0_63, %c0_64], %212 {strides = array<i32>} : memref<64x128xbf16, #tpu.memory_space<vmem>>, vector<64x128xbf16>,
    } else {
    }
    return
  }
  func.func @transform_0(%arg0: i32, %arg1: i32) -> (i32, i32) {
    %c0_i32 = arith.constant 0 : i32
    %c0_i32_0 = arith.constant 0 : i32
    return %c0_i32, %arg1 : i32, i32
  }
  func.func @transform_1(%arg0: i32, %arg1: i32) -> (i32, i32) {
    %c0_i32 = arith.constant 0 : i32
    %c0_i32_0 = arith.constant 0 : i32
    %c0_i32_1 = arith.constant 0 : i32
    return %c0_i32, %c0_i32_0 : i32, i32
  }
  func.func @transform_2(%arg0: i32, %arg1: i32) -> (i32, i32) {
    %c0_i32 = arith.constant 0 : i32
    %c0_i32_0 = arith.constant 0 : i32
    %c0_i32_1 = arith.constant 0 : i32
    return %c0_i32, %c0_i32_0 : i32, i32
  }
  func.func @transform_3(%arg0: i32, %arg1: i32) -> (i32, i32) {
    %c0_i32 = arith.constant 0 : i32
    %c0_i32_0 = arith.constant 0 : i32
    %c0_i32_1 = arith.constant 0 : i32
    return %c0_i32, %c0_i32_0 : i32, i32
  }
  func.func @transform_4(%arg0: i32, %arg1: i32) -> (i32, i32) {
    %c0_i32 = arith.constant 0 : i32
    %c0_i32_0 = arith.constant 0 : i32
    return %c0_i32, %arg1 : i32, i32
  }
}

module attributes {stable_mosaic.version = 11 : i64} {
  func.func @_bn_deconv_kernel(%arg0: i32, %arg1: i32, %arg2: memref<16x128xbf16, #tpu.memory_space<vmem>>, %arg3: memref<64x144xbf16, #tpu.memory_space<vmem>>, %arg4: memref<16x1xf32, #tpu.memory_space<vmem>>, %arg5: memref<16x1xf32, #tpu.memory_space<vmem>>, %arg6: memref<64x128xbf16, #tpu.memory_space<vmem>>, %arg7: memref<64x1xf32, #tpu.memory_space<vmem>>, %arg8: memref<64x1xf32, #tpu.memory_space<vmem>>, %arg9: memref<64x1xf32, #tpu.memory_space<vmem>>, %arg10: memref<64x1xf32, #tpu.memory_space<vmem>>) attributes {dimension_semantics = [#tpu.dimension_semantics<arbitrary>, #tpu.dimension_semantics<arbitrary>], iteration_bounds = array<i64: 2, 1>, scalar_prefetch = 0 : i64, scratch_operands = 4 : i64, tpu.core_type = #tpu.core_type<tc>, window_params = [{transform_indices = @transform_0, window_bounds = array<i64: 16, 128>}, {pipeline_mode = #tpu.pipeline_mode<synchronous>, transform_indices = @transform_1, window_bounds = array<i64: 64, 144>}, {pipeline_mode = #tpu.pipeline_mode<synchronous>, transform_indices = @transform_2, window_bounds = array<i64: 16, 1>}, {pipeline_mode = #tpu.pipeline_mode<synchronous>, transform_indices = @transform_3, window_bounds = array<i64: 16, 1>}, {transform_indices = @transform_4, window_bounds = array<i64: 64, 128>}]} {
    %c0_i32 = arith.constant 0 : i32
    %0 = arith.cmpi eq, %arg0, %c0_i32 : i32
    %c0_i32_0 = arith.constant 0 : i32
    %1 = arith.cmpi eq, %arg1, %c0_i32_0 : i32
    %2 = arith.andi %0, %1 : i1
    %3 = arith.extui %2 : i1 to i32
    %c0_i32_1 = arith.constant 0 : i32
    %4 = arith.cmpi ne, %3, %c0_i32_1 : i32
    scf.if %4 {
      %cst_59 = arith.constant 0.000000e+00 : f32
      %204 = vector.broadcast %cst_59 : f32 to vector<64x1xf32>
      %c0_60 = arith.constant 0 : index
      %c0_61 = arith.constant 0 : index
      %205 = vector.load %arg7[%c0_60, %c0_61] : memref<64x1xf32, #tpu.memory_space<vmem>>, vector<64x1xf32>
      tpu.vector_store %arg7[%c0_60, %c0_61], %204 {strides = array<i32>} : memref<64x1xf32, #tpu.memory_space<vmem>>, vector<64x1xf32>,
      %cst_62 = arith.constant 0.000000e+00 : f32
      %206 = vector.broadcast %cst_62 : f32 to vector<64x1xf32>
      %c0_63 = arith.constant 0 : index
      %c0_64 = arith.constant 0 : index
      %207 = vector.load %arg8[%c0_63, %c0_64] : memref<64x1xf32, #tpu.memory_space<vmem>>, vector<64x1xf32>
      tpu.vector_store %arg8[%c0_63, %c0_64], %206 {strides = array<i32>} : memref<64x1xf32, #tpu.memory_space<vmem>>, vector<64x1xf32>,
    } else {
    }
    %c0 = arith.constant 0 : index
    %c0_2 = arith.constant 0 : index
    %5 = vector.load %arg2[%c0, %c0_2] : memref<16x128xbf16, #tpu.memory_space<vmem>>, vector<16x128xbf16>
    %c128_i32 = arith.constant 128 : i32
    %6 = arith.muli %arg1, %c128_i32 : i32
    %7 = tpu.iota {dimensions = array<i32: 1>} : vector<1x128xi32>
    %8 = vector.broadcast %6 : i32 to vector<1x128xi32>
    %9 = arith.addi %7, %8 : vector<1x128xi32>
    %c63_i32 = arith.constant 63 : i32
    %10 = vector.broadcast %c63_i32 : i32 to vector<1x128xi32>
    %11 = arith.andi %7, %10 : vector<1x128xi32>
    %c3_i32 = arith.constant 3 : i32
    %12 = vector.broadcast %c3_i32 : i32 to vector<1x128xi32>
    %13 = arith.shrsi %11, %12 : vector<1x128xi32>
    %c7_i32 = arith.constant 7 : i32
    %14 = vector.broadcast %c7_i32 : i32 to vector<1x128xi32>
    %15 = arith.andi %11, %14 : vector<1x128xi32>
    %c128_i32_3 = arith.constant 128 : i32
    %16 = vector.broadcast %c128_i32_3 : i32 to vector<1x128xi32>
    %17 = arith.cmpi slt, %9, %16 : vector<1x128xi32>
    %cst = arith.constant 0.000000e+00 : bf16
    %18 = vector.broadcast %cst : bf16 to vector<16x128xbf16>
    %c-1_i32 = arith.constant -1 : i32
    %19 = vector.broadcast %c-1_i32 : i32 to vector<1x128xi32>
    %20 = arith.addi %13, %19 : vector<1x128xi32>
    %c0_i32_4 = arith.constant 0 : i32
    %21 = vector.broadcast %c0_i32_4 : i32 to vector<1x128xi32>
    %22 = arith.cmpi sge, %20, %21 : vector<1x128xi32>
    %c-1_i32_5 = arith.constant -1 : i32
    %23 = vector.broadcast %c-1_i32_5 : i32 to vector<1x128xi32>
    %24 = arith.addi %13, %23 : vector<1x128xi32>
    %c8_i32 = arith.constant 8 : i32
    %25 = vector.broadcast %c8_i32 : i32 to vector<1x128xi32>
    %26 = arith.cmpi slt, %24, %25 : vector<1x128xi32>
    %27 = arith.andi %22, %26 : vector<1x128xi1>
    %28 = arith.andi %17, %27 : vector<1x128xi1>
    %c-1_i32_6 = arith.constant -1 : i32
    %29 = vector.broadcast %c-1_i32_6 : i32 to vector<1x128xi32>
    %30 = arith.addi %15, %29 : vector<1x128xi32>
    %c0_i32_7 = arith.constant 0 : i32
    %31 = vector.broadcast %c0_i32_7 : i32 to vector<1x128xi32>
    %32 = arith.cmpi sge, %30, %31 : vector<1x128xi32>
    %c-1_i32_8 = arith.constant -1 : i32
    %33 = vector.broadcast %c-1_i32_8 : i32 to vector<1x128xi32>
    %34 = arith.addi %15, %33 : vector<1x128xi32>
    %c8_i32_9 = arith.constant 8 : i32
    %35 = vector.broadcast %c8_i32_9 : i32 to vector<1x128xi32>
    %36 = arith.cmpi slt, %34, %35 : vector<1x128xi32>
    %37 = arith.andi %32, %36 : vector<1x128xi1>
    %38 = arith.andi %28, %37 : vector<1x128xi1>
    %39 = vector.extract_strided_slice %5 {offsets = [0, 119], sizes = [16, 9], strides = [1, 1]} : vector<16x128xbf16> to vector<16x9xbf16>
    %40 = vector.extract_strided_slice %5 {offsets = [0, 0], sizes = [16, 119], strides = [1, 1]} : vector<16x128xbf16> to vector<16x119xbf16>
    %41 = tpu.concatenate %39, %40 in 1 : vector<16x9xbf16>, vector<16x119xbf16> -> vector<16x128xbf16>
    %42 = vector.shape_cast %38 : vector<1x128xi1> to vector<1x128xi1>
    %43 = vector.broadcast %42 : vector<1x128xi1> to vector<16x128xi1>
    %44 = arith.select %43, %41, %18 : vector<16x128xi1>, vector<16x128xbf16>
    %c-1_i32_10 = arith.constant -1 : i32
    %45 = vector.broadcast %c-1_i32_10 : i32 to vector<1x128xi32>
    %46 = arith.addi %13, %45 : vector<1x128xi32>
    %c0_i32_11 = arith.constant 0 : i32
    %47 = vector.broadcast %c0_i32_11 : i32 to vector<1x128xi32>
    %48 = arith.cmpi sge, %46, %47 : vector<1x128xi32>
    %c-1_i32_12 = arith.constant -1 : i32
    %49 = vector.broadcast %c-1_i32_12 : i32 to vector<1x128xi32>
    %50 = arith.addi %13, %49 : vector<1x128xi32>
    %c8_i32_13 = arith.constant 8 : i32
    %51 = vector.broadcast %c8_i32_13 : i32 to vector<1x128xi32>
    %52 = arith.cmpi slt, %50, %51 : vector<1x128xi32>
    %53 = arith.andi %48, %52 : vector<1x128xi1>
    %54 = arith.andi %17, %53 : vector<1x128xi1>
    %55 = vector.extract_strided_slice %5 {offsets = [0, 120], sizes = [16, 8], strides = [1, 1]} : vector<16x128xbf16> to vector<16x8xbf16>
    %56 = vector.extract_strided_slice %5 {offsets = [0, 0], sizes = [16, 120], strides = [1, 1]} : vector<16x128xbf16> to vector<16x120xbf16>
    %57 = tpu.concatenate %55, %56 in 1 : vector<16x8xbf16>, vector<16x120xbf16> -> vector<16x128xbf16>
    %58 = vector.shape_cast %54 : vector<1x128xi1> to vector<1x128xi1>
    %59 = vector.broadcast %58 : vector<1x128xi1> to vector<16x128xi1>
    %60 = arith.select %59, %57, %18 : vector<16x128xi1>, vector<16x128xbf16>
    %c-1_i32_14 = arith.constant -1 : i32
    %61 = vector.broadcast %c-1_i32_14 : i32 to vector<1x128xi32>
    %62 = arith.addi %13, %61 : vector<1x128xi32>
    %c0_i32_15 = arith.constant 0 : i32
    %63 = vector.broadcast %c0_i32_15 : i32 to vector<1x128xi32>
    %64 = arith.cmpi sge, %62, %63 : vector<1x128xi32>
    %c-1_i32_16 = arith.constant -1 : i32
    %65 = vector.broadcast %c-1_i32_16 : i32 to vector<1x128xi32>
    %66 = arith.addi %13, %65 : vector<1x128xi32>
    %c8_i32_17 = arith.constant 8 : i32
    %67 = vector.broadcast %c8_i32_17 : i32 to vector<1x128xi32>
    %68 = arith.cmpi slt, %66, %67 : vector<1x128xi32>
    %69 = arith.andi %64, %68 : vector<1x128xi1>
    %70 = arith.andi %17, %69 : vector<1x128xi1>
    %c1_i32 = arith.constant 1 : i32
    %71 = vector.broadcast %c1_i32 : i32 to vector<1x128xi32>
    %72 = arith.addi %15, %71 : vector<1x128xi32>
    %c0_i32_18 = arith.constant 0 : i32
    %73 = vector.broadcast %c0_i32_18 : i32 to vector<1x128xi32>
    %74 = arith.cmpi sge, %72, %73 : vector<1x128xi32>
    %c1_i32_19 = arith.constant 1 : i32
    %75 = vector.broadcast %c1_i32_19 : i32 to vector<1x128xi32>
    %76 = arith.addi %15, %75 : vector<1x128xi32>
    %c8_i32_20 = arith.constant 8 : i32
    %77 = vector.broadcast %c8_i32_20 : i32 to vector<1x128xi32>
    %78 = arith.cmpi slt, %76, %77 : vector<1x128xi32>
    %79 = arith.andi %74, %78 : vector<1x128xi1>
    %80 = arith.andi %70, %79 : vector<1x128xi1>
    %81 = vector.extract_strided_slice %5 {offsets = [0, 121], sizes = [16, 7], strides = [1, 1]} : vector<16x128xbf16> to vector<16x7xbf16>
    %82 = vector.extract_strided_slice %5 {offsets = [0, 0], sizes = [16, 121], strides = [1, 1]} : vector<16x128xbf16> to vector<16x121xbf16>
    %83 = tpu.concatenate %81, %82 in 1 : vector<16x7xbf16>, vector<16x121xbf16> -> vector<16x128xbf16>
    %84 = vector.shape_cast %80 : vector<1x128xi1> to vector<1x128xi1>
    %85 = vector.broadcast %84 : vector<1x128xi1> to vector<16x128xi1>
    %86 = arith.select %85, %83, %18 : vector<16x128xi1>, vector<16x128xbf16>
    %c-1_i32_21 = arith.constant -1 : i32
    %87 = vector.broadcast %c-1_i32_21 : i32 to vector<1x128xi32>
    %88 = arith.addi %15, %87 : vector<1x128xi32>
    %c0_i32_22 = arith.constant 0 : i32
    %89 = vector.broadcast %c0_i32_22 : i32 to vector<1x128xi32>
    %90 = arith.cmpi sge, %88, %89 : vector<1x128xi32>
    %c-1_i32_23 = arith.constant -1 : i32
    %91 = vector.broadcast %c-1_i32_23 : i32 to vector<1x128xi32>
    %92 = arith.addi %15, %91 : vector<1x128xi32>
    %c8_i32_24 = arith.constant 8 : i32
    %93 = vector.broadcast %c8_i32_24 : i32 to vector<1x128xi32>
    %94 = arith.cmpi slt, %92, %93 : vector<1x128xi32>
    %95 = arith.andi %90, %94 : vector<1x128xi1>
    %96 = arith.andi %17, %95 : vector<1x128xi1>
    %97 = vector.extract_strided_slice %5 {offsets = [0, 127], sizes = [16, 1], strides = [1, 1]} : vector<16x128xbf16> to vector<16x1xbf16>
    %98 = vector.extract_strided_slice %5 {offsets = [0, 0], sizes = [16, 127], strides = [1, 1]} : vector<16x128xbf16> to vector<16x127xbf16>
    %99 = tpu.concatenate %97, %98 in 1 : vector<16x1xbf16>, vector<16x127xbf16> -> vector<16x128xbf16>
    %100 = vector.shape_cast %96 : vector<1x128xi1> to vector<1x128xi1>
    %101 = vector.broadcast %100 : vector<1x128xi1> to vector<16x128xi1>
    %102 = arith.select %101, %99, %18 : vector<16x128xi1>, vector<16x128xbf16>
    %103 = vector.shape_cast %17 : vector<1x128xi1> to vector<1x128xi1>
    %104 = vector.broadcast %103 : vector<1x128xi1> to vector<16x128xi1>
    %105 = arith.select %104, %5, %18 : vector<16x128xi1>, vector<16x128xbf16>
    %c1_i32_25 = arith.constant 1 : i32
    %106 = vector.broadcast %c1_i32_25 : i32 to vector<1x128xi32>
    %107 = arith.addi %15, %106 : vector<1x128xi32>
    %c0_i32_26 = arith.constant 0 : i32
    %108 = vector.broadcast %c0_i32_26 : i32 to vector<1x128xi32>
    %109 = arith.cmpi sge, %107, %108 : vector<1x128xi32>
    %c1_i32_27 = arith.constant 1 : i32
    %110 = vector.broadcast %c1_i32_27 : i32 to vector<1x128xi32>
    %111 = arith.addi %15, %110 : vector<1x128xi32>
    %c8_i32_28 = arith.constant 8 : i32
    %112 = vector.broadcast %c8_i32_28 : i32 to vector<1x128xi32>
    %113 = arith.cmpi slt, %111, %112 : vector<1x128xi32>
    %114 = arith.andi %109, %113 : vector<1x128xi1>
    %115 = arith.andi %17, %114 : vector<1x128xi1>
    %116 = vector.extract_strided_slice %5 {offsets = [0, 1], sizes = [16, 127], strides = [1, 1]} : vector<16x128xbf16> to vector<16x127xbf16>
    %117 = vector.extract_strided_slice %5 {offsets = [0, 0], sizes = [16, 1], strides = [1, 1]} : vector<16x128xbf16> to vector<16x1xbf16>
    %118 = tpu.concatenate %116, %117 in 1 : vector<16x127xbf16>, vector<16x1xbf16> -> vector<16x128xbf16>
    %119 = vector.shape_cast %115 : vector<1x128xi1> to vector<1x128xi1>
    %120 = vector.broadcast %119 : vector<1x128xi1> to vector<16x128xi1>
    %121 = arith.select %120, %118, %18 : vector<16x128xi1>, vector<16x128xbf16>
    %c1_i32_29 = arith.constant 1 : i32
    %122 = vector.broadcast %c1_i32_29 : i32 to vector<1x128xi32>
    %123 = arith.addi %13, %122 : vector<1x128xi32>
    %c0_i32_30 = arith.constant 0 : i32
    %124 = vector.broadcast %c0_i32_30 : i32 to vector<1x128xi32>
    %125 = arith.cmpi sge, %123, %124 : vector<1x128xi32>
    %c1_i32_31 = arith.constant 1 : i32
    %126 = vector.broadcast %c1_i32_31 : i32 to vector<1x128xi32>
    %127 = arith.addi %13, %126 : vector<1x128xi32>
    %c8_i32_32 = arith.constant 8 : i32
    %128 = vector.broadcast %c8_i32_32 : i32 to vector<1x128xi32>
    %129 = arith.cmpi slt, %127, %128 : vector<1x128xi32>
    %130 = arith.andi %125, %129 : vector<1x128xi1>
    %131 = arith.andi %17, %130 : vector<1x128xi1>
    %c-1_i32_33 = arith.constant -1 : i32
    %132 = vector.broadcast %c-1_i32_33 : i32 to vector<1x128xi32>
    %133 = arith.addi %15, %132 : vector<1x128xi32>
    %c0_i32_34 = arith.constant 0 : i32
    %134 = vector.broadcast %c0_i32_34 : i32 to vector<1x128xi32>
    %135 = arith.cmpi sge, %133, %134 : vector<1x128xi32>
    %c-1_i32_35 = arith.constant -1 : i32
    %136 = vector.broadcast %c-1_i32_35 : i32 to vector<1x128xi32>
    %137 = arith.addi %15, %136 : vector<1x128xi32>
    %c8_i32_36 = arith.constant 8 : i32
    %138 = vector.broadcast %c8_i32_36 : i32 to vector<1x128xi32>
    %139 = arith.cmpi slt, %137, %138 : vector<1x128xi32>
    %140 = arith.andi %135, %139 : vector<1x128xi1>
    %141 = arith.andi %131, %140 : vector<1x128xi1>
    %142 = vector.extract_strided_slice %5 {offsets = [0, 7], sizes = [16, 121], strides = [1, 1]} : vector<16x128xbf16> to vector<16x121xbf16>
    %143 = vector.extract_strided_slice %5 {offsets = [0, 0], sizes = [16, 7], strides = [1, 1]} : vector<16x128xbf16> to vector<16x7xbf16>
    %144 = tpu.concatenate %142, %143 in 1 : vector<16x121xbf16>, vector<16x7xbf16> -> vector<16x128xbf16>
    %145 = vector.shape_cast %141 : vector<1x128xi1> to vector<1x128xi1>
    %146 = vector.broadcast %145 : vector<1x128xi1> to vector<16x128xi1>
    %147 = arith.select %146, %144, %18 : vector<16x128xi1>, vector<16x128xbf16>
    %c1_i32_37 = arith.constant 1 : i32
    %148 = vector.broadcast %c1_i32_37 : i32 to vector<1x128xi32>
    %149 = arith.addi %13, %148 : vector<1x128xi32>
    %c0_i32_38 = arith.constant 0 : i32
    %150 = vector.broadcast %c0_i32_38 : i32 to vector<1x128xi32>
    %151 = arith.cmpi sge, %149, %150 : vector<1x128xi32>
    %c1_i32_39 = arith.constant 1 : i32
    %152 = vector.broadcast %c1_i32_39 : i32 to vector<1x128xi32>
    %153 = arith.addi %13, %152 : vector<1x128xi32>
    %c8_i32_40 = arith.constant 8 : i32
    %154 = vector.broadcast %c8_i32_40 : i32 to vector<1x128xi32>
    %155 = arith.cmpi slt, %153, %154 : vector<1x128xi32>
    %156 = arith.andi %151, %155 : vector<1x128xi1>
    %157 = arith.andi %17, %156 : vector<1x128xi1>
    %158 = vector.extract_strided_slice %5 {offsets = [0, 8], sizes = [16, 120], strides = [1, 1]} : vector<16x128xbf16> to vector<16x120xbf16>
    %159 = vector.extract_strided_slice %5 {offsets = [0, 0], sizes = [16, 8], strides = [1, 1]} : vector<16x128xbf16> to vector<16x8xbf16>
    %160 = tpu.concatenate %158, %159 in 1 : vector<16x120xbf16>, vector<16x8xbf16> -> vector<16x128xbf16>
    %161 = vector.shape_cast %157 : vector<1x128xi1> to vector<1x128xi1>
    %162 = vector.broadcast %161 : vector<1x128xi1> to vector<16x128xi1>
    %163 = arith.select %162, %160, %18 : vector<16x128xi1>, vector<16x128xbf16>
    %c1_i32_41 = arith.constant 1 : i32
    %164 = vector.broadcast %c1_i32_41 : i32 to vector<1x128xi32>
    %165 = arith.addi %13, %164 : vector<1x128xi32>
    %c0_i32_42 = arith.constant 0 : i32
    %166 = vector.broadcast %c0_i32_42 : i32 to vector<1x128xi32>
    %167 = arith.cmpi sge, %165, %166 : vector<1x128xi32>
    %c1_i32_43 = arith.constant 1 : i32
    %168 = vector.broadcast %c1_i32_43 : i32 to vector<1x128xi32>
    %169 = arith.addi %13, %168 : vector<1x128xi32>
    %c8_i32_44 = arith.constant 8 : i32
    %170 = vector.broadcast %c8_i32_44 : i32 to vector<1x128xi32>
    %171 = arith.cmpi slt, %169, %170 : vector<1x128xi32>
    %172 = arith.andi %167, %171 : vector<1x128xi1>
    %173 = arith.andi %17, %172 : vector<1x128xi1>
    %c1_i32_45 = arith.constant 1 : i32
    %174 = vector.broadcast %c1_i32_45 : i32 to vector<1x128xi32>
    %175 = arith.addi %15, %174 : vector<1x128xi32>
    %c0_i32_46 = arith.constant 0 : i32
    %176 = vector.broadcast %c0_i32_46 : i32 to vector<1x128xi32>
    %177 = arith.cmpi sge, %175, %176 : vector<1x128xi32>
    %c1_i32_47 = arith.constant 1 : i32
    %178 = vector.broadcast %c1_i32_47 : i32 to vector<1x128xi32>
    %179 = arith.addi %15, %178 : vector<1x128xi32>
    %c8_i32_48 = arith.constant 8 : i32
    %180 = vector.broadcast %c8_i32_48 : i32 to vector<1x128xi32>
    %181 = arith.cmpi slt, %179, %180 : vector<1x128xi32>
    %182 = arith.andi %177, %181 : vector<1x128xi1>
    %183 = arith.andi %173, %182 : vector<1x128xi1>
    %184 = vector.extract_strided_slice %5 {offsets = [0, 9], sizes = [16, 119], strides = [1, 1]} : vector<16x128xbf16> to vector<16x119xbf16>
    %185 = vector.extract_strided_slice %5 {offsets = [0, 0], sizes = [16, 9], strides = [1, 1]} : vector<16x128xbf16> to vector<16x9xbf16>
    %186 = tpu.concatenate %184, %185 in 1 : vector<16x119xbf16>, vector<16x9xbf16> -> vector<16x128xbf16>
    %187 = vector.shape_cast %183 : vector<1x128xi1> to vector<1x128xi1>
    %188 = vector.broadcast %187 : vector<1x128xi1> to vector<16x128xi1>
    %189 = arith.select %188, %186, %18 : vector<16x128xi1>, vector<16x128xbf16>
    %190 = tpu.concatenate %44, %60, %86, %102, %105, %121, %147, %163, %189 in 0 : vector<16x128xbf16>, vector<16x128xbf16>, vector<16x128xbf16>, vector<16x128xbf16>, vector<16x128xbf16>, vector<16x128xbf16>, vector<16x128xbf16>, vector<16x128xbf16>, vector<16x128xbf16> -> vector<144x128xbf16>
    %c0_49 = arith.constant 0 : index
    %c0_50 = arith.constant 0 : index
    %191 = vector.load %arg3[%c0_49, %c0_50] : memref<64x144xbf16, #tpu.memory_space<vmem>>, vector<64x144xbf16>
    %cst_51 = arith.constant dense<0.000000e+00> : vector<64x128xf32>
    %192 = tpu.matmul %191, %190, %cst_51 {dimension_numbers = #tpu.dot_dimension_numbers<[1], [0], [0], [1], [0, 0, 1, 1], [], []>} : vector<64x144xbf16>, vector<144x128xbf16>, vector<64x128xf32> -> vector<64x128xf32>
    %c0_i32_52 = arith.constant 0 : i32
    %193 = arith.cmpi eq, %arg0, %c0_i32_52 : i32
    %194 = arith.extui %193 : i1 to i32
    %c0_i32_53 = arith.constant 0 : i32
    %195 = arith.cmpi ne, %194, %c0_i32_53 : i32
    scf.if %195 {
      %c0_59 = arith.constant 0 : index
      %c0_60 = arith.constant 0 : index
      %204 = vector.load %arg7[%c0_59, %c0_60] : memref<64x1xf32, #tpu.memory_space<vmem>>, vector<64x1xf32>
      %cst_61 = arith.constant dense<0.000000e+00> : vector<64xf32>
      %205 = vector.multi_reduction <add>, %192, %cst_61 [1] : vector<64x128xf32> to vector<64xf32>
      %206 = vector.shape_cast %205 : vector<64xf32> to vector<64x1xf32>
      %207 = arith.addf %204, %206 : vector<64x1xf32>
      %c0_62 = arith.constant 0 : index
      %c0_63 = arith.constant 0 : index
      %208 = vector.load %arg7[%c0_62, %c0_63] : memref<64x1xf32, #tpu.memory_space<vmem>>, vector<64x1xf32>
      tpu.vector_store %arg7[%c0_62, %c0_63], %207 {strides = array<i32>} : memref<64x1xf32, #tpu.memory_space<vmem>>, vector<64x1xf32>,
      %c0_64 = arith.constant 0 : index
      %c0_65 = arith.constant 0 : index
      %209 = vector.load %arg8[%c0_64, %c0_65] : memref<64x1xf32, #tpu.memory_space<vmem>>, vector<64x1xf32>
      %210 = arith.mulf %192, %192 : vector<64x128xf32>
      %cst_66 = arith.constant dense<0.000000e+00> : vector<64xf32>
      %211 = vector.multi_reduction <add>, %210, %cst_66 [1] : vector<64x128xf32> to vector<64xf32>
      %212 = vector.shape_cast %211 : vector<64xf32> to vector<64x1xf32>
      %213 = arith.addf %209, %212 : vector<64x1xf32>
      %c0_67 = arith.constant 0 : index
      %c0_68 = arith.constant 0 : index
      %214 = vector.load %arg8[%c0_67, %c0_68] : memref<64x1xf32, #tpu.memory_space<vmem>>, vector<64x1xf32>
      tpu.vector_store %arg8[%c0_67, %c0_68], %213 {strides = array<i32>} : memref<64x1xf32, #tpu.memory_space<vmem>>, vector<64x1xf32>,
    } else {
    }
    %c1_i32_54 = arith.constant 1 : i32
    %196 = arith.cmpi eq, %arg0, %c1_i32_54 : i32
    %c0_i32_55 = arith.constant 0 : i32
    %197 = arith.cmpi eq, %arg1, %c0_i32_55 : i32
    %198 = arith.andi %196, %197 : i1
    %199 = arith.extui %198 : i1 to i32
    %c0_i32_56 = arith.constant 0 : i32
    %200 = arith.cmpi ne, %199, %c0_i32_56 : i32
    scf.if %200 {
      %c0_59 = arith.constant 0 : index
      %c0_60 = arith.constant 0 : index
      %204 = vector.load %arg7[%c0_59, %c0_60] : memref<64x1xf32, #tpu.memory_space<vmem>>, vector<64x1xf32>
      %c0_61 = arith.constant 0 : index
      %c0_62 = arith.constant 0 : index
      %205 = vector.load %arg8[%c0_61, %c0_62] : memref<64x1xf32, #tpu.memory_space<vmem>>, vector<64x1xf32>
      %206 = vector.extract_strided_slice %204 {offsets = [0, 0], sizes = [16, 1], strides = [1, 1]} : vector<64x1xf32> to vector<16x1xf32>
      %207 = vector.extract_strided_slice %204 {offsets = [16, 0], sizes = [16, 1], strides = [1, 1]} : vector<64x1xf32> to vector<16x1xf32>
      %208 = arith.addf %206, %207 : vector<16x1xf32>
      %209 = vector.extract_strided_slice %204 {offsets = [32, 0], sizes = [16, 1], strides = [1, 1]} : vector<64x1xf32> to vector<16x1xf32>
      %210 = arith.addf %208, %209 : vector<16x1xf32>
      %211 = vector.extract_strided_slice %204 {offsets = [48, 0], sizes = [16, 1], strides = [1, 1]} : vector<64x1xf32> to vector<16x1xf32>
      %212 = arith.addf %210, %211 : vector<16x1xf32>
      %213 = vector.extract_strided_slice %205 {offsets = [0, 0], sizes = [16, 1], strides = [1, 1]} : vector<64x1xf32> to vector<16x1xf32>
      %214 = vector.extract_strided_slice %205 {offsets = [16, 0], sizes = [16, 1], strides = [1, 1]} : vector<64x1xf32> to vector<16x1xf32>
      %215 = arith.addf %213, %214 : vector<16x1xf32>
      %216 = vector.extract_strided_slice %205 {offsets = [32, 0], sizes = [16, 1], strides = [1, 1]} : vector<64x1xf32> to vector<16x1xf32>
      %217 = arith.addf %215, %216 : vector<16x1xf32>
      %218 = vector.extract_strided_slice %205 {offsets = [48, 0], sizes = [16, 1], strides = [1, 1]} : vector<64x1xf32> to vector<16x1xf32>
      %219 = arith.addf %217, %218 : vector<16x1xf32>
      %cst_63 = arith.constant 0.001953125 : f32
      %220 = vector.broadcast %cst_63 : f32 to vector<16x1xf32>
      %221 = arith.mulf %212, %220 : vector<16x1xf32>
      %cst_64 = arith.constant 0.001953125 : f32
      %222 = vector.broadcast %cst_64 : f32 to vector<16x1xf32>
      %223 = arith.mulf %219, %222 : vector<16x1xf32>
      %224 = arith.mulf %221, %221 : vector<16x1xf32>
      %225 = arith.subf %223, %224 : vector<16x1xf32>
      %cst_65 = arith.constant 0.000000e+00 : f32
      %226 = vector.broadcast %cst_65 : f32 to vector<16x1xf32>
      %227 = arith.maximumf %225, %226 : vector<16x1xf32>
      %c0_66 = arith.constant 0 : index
      %c0_67 = arith.constant 0 : index
      %228 = vector.load %arg4[%c0_66, %c0_67] : memref<16x1xf32, #tpu.memory_space<vmem>>, vector<16x1xf32>
      %cst_68 = arith.constant 9.99999974E-6 : f32
      %229 = vector.broadcast %cst_68 : f32 to vector<16x1xf32>
      %230 = arith.addf %227, %229 : vector<16x1xf32>
      %231 = math.rsqrt %230 : vector<16x1xf32>
      %232 = arith.mulf %228, %231 : vector<16x1xf32>
      %c0_69 = arith.constant 0 : index
      %c0_70 = arith.constant 0 : index
      %233 = vector.load %arg5[%c0_69, %c0_70] : memref<16x1xf32, #tpu.memory_space<vmem>>, vector<16x1xf32>
      %234 = arith.mulf %221, %232 : vector<16x1xf32>
      %235 = arith.subf %233, %234 : vector<16x1xf32>
      %c0_71 = arith.constant 0 : index
      %c0_72 = arith.constant 0 : index
      %236 = vector.load %arg9[%c0_71, %c0_72] : memref<64x1xf32, #tpu.memory_space<vmem>>, vector<16x1xf32>
      tpu.vector_store %arg9[%c0_71, %c0_72], %232 {strides = array<i32>} : memref<64x1xf32, #tpu.memory_space<vmem>>, vector<16x1xf32>,
      %c0_73 = arith.constant 0 : index
      %c0_74 = arith.constant 0 : index
      %237 = vector.load %arg10[%c0_73, %c0_74] : memref<64x1xf32, #tpu.memory_space<vmem>>, vector<16x1xf32>
      tpu.vector_store %arg10[%c0_73, %c0_74], %235 {strides = array<i32>} : memref<64x1xf32, #tpu.memory_space<vmem>>, vector<16x1xf32>,
      %c16 = arith.constant 16 : index
      %c0_75 = arith.constant 0 : index
      %238 = vector.load %arg9[%c16, %c0_75] : memref<64x1xf32, #tpu.memory_space<vmem>>, vector<16x1xf32>
      tpu.vector_store %arg9[%c16, %c0_75], %232 {strides = array<i32>} : memref<64x1xf32, #tpu.memory_space<vmem>>, vector<16x1xf32>,
      %c16_76 = arith.constant 16 : index
      %c0_77 = arith.constant 0 : index
      %239 = vector.load %arg10[%c16_76, %c0_77] : memref<64x1xf32, #tpu.memory_space<vmem>>, vector<16x1xf32>
      tpu.vector_store %arg10[%c16_76, %c0_77], %235 {strides = array<i32>} : memref<64x1xf32, #tpu.memory_space<vmem>>, vector<16x1xf32>,
      %c32 = arith.constant 32 : index
      %c0_78 = arith.constant 0 : index
      %240 = vector.load %arg9[%c32, %c0_78] : memref<64x1xf32, #tpu.memory_space<vmem>>, vector<16x1xf32>
      tpu.vector_store %arg9[%c32, %c0_78], %232 {strides = array<i32>} : memref<64x1xf32, #tpu.memory_space<vmem>>, vector<16x1xf32>,
      %c32_79 = arith.constant 32 : index
      %c0_80 = arith.constant 0 : index
      %241 = vector.load %arg10[%c32_79, %c0_80] : memref<64x1xf32, #tpu.memory_space<vmem>>, vector<16x1xf32>
      tpu.vector_store %arg10[%c32_79, %c0_80], %235 {strides = array<i32>} : memref<64x1xf32, #tpu.memory_space<vmem>>, vector<16x1xf32>,
      %c48 = arith.constant 48 : index
      %c0_81 = arith.constant 0 : index
      %242 = vector.load %arg9[%c48, %c0_81] : memref<64x1xf32, #tpu.memory_space<vmem>>, vector<16x1xf32>
      tpu.vector_store %arg9[%c48, %c0_81], %232 {strides = array<i32>} : memref<64x1xf32, #tpu.memory_space<vmem>>, vector<16x1xf32>,
      %c48_82 = arith.constant 48 : index
      %c0_83 = arith.constant 0 : index
      %243 = vector.load %arg10[%c48_82, %c0_83] : memref<64x1xf32, #tpu.memory_space<vmem>>, vector<16x1xf32>
      tpu.vector_store %arg10[%c48_82, %c0_83], %235 {strides = array<i32>} : memref<64x1xf32, #tpu.memory_space<vmem>>, vector<16x1xf32>,
    } else {
    }
    %c1_i32_57 = arith.constant 1 : i32
    %201 = arith.cmpi eq, %arg0, %c1_i32_57 : i32
    %202 = arith.extui %201 : i1 to i32
    %c0_i32_58 = arith.constant 0 : i32
    %203 = arith.cmpi ne, %202, %c0_i32_58 : i32
    scf.if %203 {
      %c0_59 = arith.constant 0 : index
      %c0_60 = arith.constant 0 : index
      %204 = vector.load %arg9[%c0_59, %c0_60] : memref<64x1xf32, #tpu.memory_space<vmem>>, vector<64x1xf32>
      %205 = vector.broadcast %204 : vector<64x1xf32> to vector<64x128xf32>
      %206 = arith.mulf %192, %205 : vector<64x128xf32>
      %c0_61 = arith.constant 0 : index
      %c0_62 = arith.constant 0 : index
      %207 = vector.load %arg10[%c0_61, %c0_62] : memref<64x1xf32, #tpu.memory_space<vmem>>, vector<64x1xf32>
      %208 = vector.broadcast %207 : vector<64x1xf32> to vector<64x128xf32>
      %209 = arith.addf %206, %208 : vector<64x128xf32>
      %cst_63 = arith.constant 0.000000e+00 : f32
      %210 = vector.broadcast %cst_63 : f32 to vector<64x128xf32>
      %211 = arith.maximumf %209, %210 : vector<64x128xf32>
      %212 = arith.truncf %211 : vector<64x128xf32> to vector<64x128xbf16>
      %c0_64 = arith.constant 0 : index
      %c0_65 = arith.constant 0 : index
      %213 = vector.load %arg6[%c0_64, %c0_65] : memref<64x128xbf16, #tpu.memory_space<vmem>>, vector<64x128xbf16>
      tpu.vector_store %arg6[%c0_64, %c0_65], %212 {strides = array<i32>} : memref<64x128xbf16, #tpu.memory_space<vmem>>, vector<64x128xbf16>,
    } else {
    }
    return
  }
  func.func @transform_0(%arg0: i32, %arg1: i32) -> (i32, i32) {
    %c0_i32 = arith.constant 0 : i32
    %c0_i32_0 = arith.constant 0 : i32
    return %c0_i32, %arg1 : i32, i32
  }
  func.func @transform_1(%arg0: i32, %arg1: i32) -> (i32, i32) {
    %c0_i32 = arith.constant 0 : i32
    %c0_i32_0 = arith.constant 0 : i32
    %c0_i32_1 = arith.constant 0 : i32
    return %c0_i32, %c0_i32_0 : i32, i32
  }
  func.func @transform_2(%arg0: i32, %arg1: i32) -> (i32, i32) {
    %c0_i32 = arith.constant 0 : i32
    %c0_i32_0 = arith.constant 0 : i32
    %c0_i32_1 = arith.constant 0 : i32
    return %c0_i32, %c0_i32_0 : i32, i32
  }
  func.func @transform_3(%arg0: i32, %arg1: i32) -> (i32, i32) {
    %c0_i32 = arith.constant 0 : i32
    %c0_i32_0 = arith.constant 0 : i32
    %c0_i32_1 = arith.constant 0 : i32
    return %c0_i32, %c0_i32_0 : i32, i32
  }
  func.func @transform_4(%arg0: i32, %arg1: i32) -> (i32, i32) {
    %c0_i32 = arith.constant 0 : i32
    %c0_i32_0 = arith.constant 0 : i32
    return %c0_i32, %arg1 : i32, i32
  }
}

module attributes {stable_mosaic.version = 11 : i64} {
  func.func @_tanh_deconv_kernel(%arg0: i32, %arg1: memref<16x256xbf16, #tpu.memory_space<vmem>>, %arg2: memref<64x144xbf16, #tpu.memory_space<vmem>>, %arg3: memref<64x256xbf16, #tpu.memory_space<vmem>>) attributes {dimension_semantics = [#tpu.dimension_semantics<parallel>], iteration_bounds = array<i64: 2>, scalar_prefetch = 0 : i64, scratch_operands = 0 : i64, tpu.core_type = #tpu.core_type<tc>, window_params = [{transform_indices = @transform_0, window_bounds = array<i64: 16, 256>}, {pipeline_mode = #tpu.pipeline_mode<synchronous>, transform_indices = @transform_1, window_bounds = array<i64: 64, 144>}, {transform_indices = @transform_2, window_bounds = array<i64: 64, 256>}]} {
    %c0 = arith.constant 0 : index
    %c0_0 = arith.constant 0 : index
    %0 = vector.load %arg1[%c0, %c0_0] : memref<16x256xbf16, #tpu.memory_space<vmem>>, vector<16x256xbf16>
    %c256_i32 = arith.constant 256 : i32
    %1 = arith.muli %arg0, %c256_i32 : i32
    %2 = tpu.iota {dimensions = array<i32: 1>} : vector<1x256xi32>
    %3 = vector.broadcast %1 : i32 to vector<1x256xi32>
    %4 = arith.addi %2, %3 : vector<1x256xi32>
    %c255_i32 = arith.constant 255 : i32
    %5 = vector.broadcast %c255_i32 : i32 to vector<1x256xi32>
    %6 = arith.andi %2, %5 : vector<1x256xi32>
    %c4_i32 = arith.constant 4 : i32
    %7 = vector.broadcast %c4_i32 : i32 to vector<1x256xi32>
    %8 = arith.shrsi %6, %7 : vector<1x256xi32>
    %c15_i32 = arith.constant 15 : i32
    %9 = vector.broadcast %c15_i32 : i32 to vector<1x256xi32>
    %10 = arith.andi %6, %9 : vector<1x256xi32>
    %c512_i32 = arith.constant 512 : i32
    %11 = vector.broadcast %c512_i32 : i32 to vector<1x256xi32>
    %12 = arith.cmpi slt, %4, %11 : vector<1x256xi32>
    %cst = arith.constant 0.000000e+00 : bf16
    %13 = vector.broadcast %cst : bf16 to vector<16x256xbf16>
    %c-1_i32 = arith.constant -1 : i32
    %14 = vector.broadcast %c-1_i32 : i32 to vector<1x256xi32>
    %15 = arith.addi %8, %14 : vector<1x256xi32>
    %c0_i32 = arith.constant 0 : i32
    %16 = vector.broadcast %c0_i32 : i32 to vector<1x256xi32>
    %17 = arith.cmpi sge, %15, %16 : vector<1x256xi32>
    %c-1_i32_1 = arith.constant -1 : i32
    %18 = vector.broadcast %c-1_i32_1 : i32 to vector<1x256xi32>
    %19 = arith.addi %8, %18 : vector<1x256xi32>
    %c16_i32 = arith.constant 16 : i32
    %20 = vector.broadcast %c16_i32 : i32 to vector<1x256xi32>
    %21 = arith.cmpi slt, %19, %20 : vector<1x256xi32>
    %22 = arith.andi %17, %21 : vector<1x256xi1>
    %23 = arith.andi %12, %22 : vector<1x256xi1>
    %c-1_i32_2 = arith.constant -1 : i32
    %24 = vector.broadcast %c-1_i32_2 : i32 to vector<1x256xi32>
    %25 = arith.addi %10, %24 : vector<1x256xi32>
    %c0_i32_3 = arith.constant 0 : i32
    %26 = vector.broadcast %c0_i32_3 : i32 to vector<1x256xi32>
    %27 = arith.cmpi sge, %25, %26 : vector<1x256xi32>
    %c-1_i32_4 = arith.constant -1 : i32
    %28 = vector.broadcast %c-1_i32_4 : i32 to vector<1x256xi32>
    %29 = arith.addi %10, %28 : vector<1x256xi32>
    %c16_i32_5 = arith.constant 16 : i32
    %30 = vector.broadcast %c16_i32_5 : i32 to vector<1x256xi32>
    %31 = arith.cmpi slt, %29, %30 : vector<1x256xi32>
    %32 = arith.andi %27, %31 : vector<1x256xi1>
    %33 = arith.andi %23, %32 : vector<1x256xi1>
    %34 = vector.extract_strided_slice %0 {offsets = [0, 239], sizes = [16, 17], strides = [1, 1]} : vector<16x256xbf16> to vector<16x17xbf16>
    %35 = vector.extract_strided_slice %0 {offsets = [0, 0], sizes = [16, 239], strides = [1, 1]} : vector<16x256xbf16> to vector<16x239xbf16>
    %36 = tpu.concatenate %34, %35 in 1 : vector<16x17xbf16>, vector<16x239xbf16> -> vector<16x256xbf16>
    %37 = vector.shape_cast %33 : vector<1x256xi1> to vector<1x256xi1>
    %38 = vector.broadcast %37 : vector<1x256xi1> to vector<16x256xi1>
    %39 = arith.select %38, %36, %13 : vector<16x256xi1>, vector<16x256xbf16>
    %c-1_i32_6 = arith.constant -1 : i32
    %40 = vector.broadcast %c-1_i32_6 : i32 to vector<1x256xi32>
    %41 = arith.addi %8, %40 : vector<1x256xi32>
    %c0_i32_7 = arith.constant 0 : i32
    %42 = vector.broadcast %c0_i32_7 : i32 to vector<1x256xi32>
    %43 = arith.cmpi sge, %41, %42 : vector<1x256xi32>
    %c-1_i32_8 = arith.constant -1 : i32
    %44 = vector.broadcast %c-1_i32_8 : i32 to vector<1x256xi32>
    %45 = arith.addi %8, %44 : vector<1x256xi32>
    %c16_i32_9 = arith.constant 16 : i32
    %46 = vector.broadcast %c16_i32_9 : i32 to vector<1x256xi32>
    %47 = arith.cmpi slt, %45, %46 : vector<1x256xi32>
    %48 = arith.andi %43, %47 : vector<1x256xi1>
    %49 = arith.andi %12, %48 : vector<1x256xi1>
    %50 = vector.extract_strided_slice %0 {offsets = [0, 240], sizes = [16, 16], strides = [1, 1]} : vector<16x256xbf16> to vector<16x16xbf16>
    %51 = vector.extract_strided_slice %0 {offsets = [0, 0], sizes = [16, 240], strides = [1, 1]} : vector<16x256xbf16> to vector<16x240xbf16>
    %52 = tpu.concatenate %50, %51 in 1 : vector<16x16xbf16>, vector<16x240xbf16> -> vector<16x256xbf16>
    %53 = vector.shape_cast %49 : vector<1x256xi1> to vector<1x256xi1>
    %54 = vector.broadcast %53 : vector<1x256xi1> to vector<16x256xi1>
    %55 = arith.select %54, %52, %13 : vector<16x256xi1>, vector<16x256xbf16>
    %c-1_i32_10 = arith.constant -1 : i32
    %56 = vector.broadcast %c-1_i32_10 : i32 to vector<1x256xi32>
    %57 = arith.addi %8, %56 : vector<1x256xi32>
    %c0_i32_11 = arith.constant 0 : i32
    %58 = vector.broadcast %c0_i32_11 : i32 to vector<1x256xi32>
    %59 = arith.cmpi sge, %57, %58 : vector<1x256xi32>
    %c-1_i32_12 = arith.constant -1 : i32
    %60 = vector.broadcast %c-1_i32_12 : i32 to vector<1x256xi32>
    %61 = arith.addi %8, %60 : vector<1x256xi32>
    %c16_i32_13 = arith.constant 16 : i32
    %62 = vector.broadcast %c16_i32_13 : i32 to vector<1x256xi32>
    %63 = arith.cmpi slt, %61, %62 : vector<1x256xi32>
    %64 = arith.andi %59, %63 : vector<1x256xi1>
    %65 = arith.andi %12, %64 : vector<1x256xi1>
    %c1_i32 = arith.constant 1 : i32
    %66 = vector.broadcast %c1_i32 : i32 to vector<1x256xi32>
    %67 = arith.addi %10, %66 : vector<1x256xi32>
    %c0_i32_14 = arith.constant 0 : i32
    %68 = vector.broadcast %c0_i32_14 : i32 to vector<1x256xi32>
    %69 = arith.cmpi sge, %67, %68 : vector<1x256xi32>
    %c1_i32_15 = arith.constant 1 : i32
    %70 = vector.broadcast %c1_i32_15 : i32 to vector<1x256xi32>
    %71 = arith.addi %10, %70 : vector<1x256xi32>
    %c16_i32_16 = arith.constant 16 : i32
    %72 = vector.broadcast %c16_i32_16 : i32 to vector<1x256xi32>
    %73 = arith.cmpi slt, %71, %72 : vector<1x256xi32>
    %74 = arith.andi %69, %73 : vector<1x256xi1>
    %75 = arith.andi %65, %74 : vector<1x256xi1>
    %76 = vector.extract_strided_slice %0 {offsets = [0, 241], sizes = [16, 15], strides = [1, 1]} : vector<16x256xbf16> to vector<16x15xbf16>
    %77 = vector.extract_strided_slice %0 {offsets = [0, 0], sizes = [16, 241], strides = [1, 1]} : vector<16x256xbf16> to vector<16x241xbf16>
    %78 = tpu.concatenate %76, %77 in 1 : vector<16x15xbf16>, vector<16x241xbf16> -> vector<16x256xbf16>
    %79 = vector.shape_cast %75 : vector<1x256xi1> to vector<1x256xi1>
    %80 = vector.broadcast %79 : vector<1x256xi1> to vector<16x256xi1>
    %81 = arith.select %80, %78, %13 : vector<16x256xi1>, vector<16x256xbf16>
    %c-1_i32_17 = arith.constant -1 : i32
    %82 = vector.broadcast %c-1_i32_17 : i32 to vector<1x256xi32>
    %83 = arith.addi %10, %82 : vector<1x256xi32>
    %c0_i32_18 = arith.constant 0 : i32
    %84 = vector.broadcast %c0_i32_18 : i32 to vector<1x256xi32>
    %85 = arith.cmpi sge, %83, %84 : vector<1x256xi32>
    %c-1_i32_19 = arith.constant -1 : i32
    %86 = vector.broadcast %c-1_i32_19 : i32 to vector<1x256xi32>
    %87 = arith.addi %10, %86 : vector<1x256xi32>
    %c16_i32_20 = arith.constant 16 : i32
    %88 = vector.broadcast %c16_i32_20 : i32 to vector<1x256xi32>
    %89 = arith.cmpi slt, %87, %88 : vector<1x256xi32>
    %90 = arith.andi %85, %89 : vector<1x256xi1>
    %91 = arith.andi %12, %90 : vector<1x256xi1>
    %92 = vector.extract_strided_slice %0 {offsets = [0, 255], sizes = [16, 1], strides = [1, 1]} : vector<16x256xbf16> to vector<16x1xbf16>
    %93 = vector.extract_strided_slice %0 {offsets = [0, 0], sizes = [16, 255], strides = [1, 1]} : vector<16x256xbf16> to vector<16x255xbf16>
    %94 = tpu.concatenate %92, %93 in 1 : vector<16x1xbf16>, vector<16x255xbf16> -> vector<16x256xbf16>
    %95 = vector.shape_cast %91 : vector<1x256xi1> to vector<1x256xi1>
    %96 = vector.broadcast %95 : vector<1x256xi1> to vector<16x256xi1>
    %97 = arith.select %96, %94, %13 : vector<16x256xi1>, vector<16x256xbf16>
    %98 = vector.shape_cast %12 : vector<1x256xi1> to vector<1x256xi1>
    %99 = vector.broadcast %98 : vector<1x256xi1> to vector<16x256xi1>
    %100 = arith.select %99, %0, %13 : vector<16x256xi1>, vector<16x256xbf16>
    %c1_i32_21 = arith.constant 1 : i32
    %101 = vector.broadcast %c1_i32_21 : i32 to vector<1x256xi32>
    %102 = arith.addi %10, %101 : vector<1x256xi32>
    %c0_i32_22 = arith.constant 0 : i32
    %103 = vector.broadcast %c0_i32_22 : i32 to vector<1x256xi32>
    %104 = arith.cmpi sge, %102, %103 : vector<1x256xi32>
    %c1_i32_23 = arith.constant 1 : i32
    %105 = vector.broadcast %c1_i32_23 : i32 to vector<1x256xi32>
    %106 = arith.addi %10, %105 : vector<1x256xi32>
    %c16_i32_24 = arith.constant 16 : i32
    %107 = vector.broadcast %c16_i32_24 : i32 to vector<1x256xi32>
    %108 = arith.cmpi slt, %106, %107 : vector<1x256xi32>
    %109 = arith.andi %104, %108 : vector<1x256xi1>
    %110 = arith.andi %12, %109 : vector<1x256xi1>
    %111 = vector.extract_strided_slice %0 {offsets = [0, 1], sizes = [16, 255], strides = [1, 1]} : vector<16x256xbf16> to vector<16x255xbf16>
    %112 = vector.extract_strided_slice %0 {offsets = [0, 0], sizes = [16, 1], strides = [1, 1]} : vector<16x256xbf16> to vector<16x1xbf16>
    %113 = tpu.concatenate %111, %112 in 1 : vector<16x255xbf16>, vector<16x1xbf16> -> vector<16x256xbf16>
    %114 = vector.shape_cast %110 : vector<1x256xi1> to vector<1x256xi1>
    %115 = vector.broadcast %114 : vector<1x256xi1> to vector<16x256xi1>
    %116 = arith.select %115, %113, %13 : vector<16x256xi1>, vector<16x256xbf16>
    %c1_i32_25 = arith.constant 1 : i32
    %117 = vector.broadcast %c1_i32_25 : i32 to vector<1x256xi32>
    %118 = arith.addi %8, %117 : vector<1x256xi32>
    %c0_i32_26 = arith.constant 0 : i32
    %119 = vector.broadcast %c0_i32_26 : i32 to vector<1x256xi32>
    %120 = arith.cmpi sge, %118, %119 : vector<1x256xi32>
    %c1_i32_27 = arith.constant 1 : i32
    %121 = vector.broadcast %c1_i32_27 : i32 to vector<1x256xi32>
    %122 = arith.addi %8, %121 : vector<1x256xi32>
    %c16_i32_28 = arith.constant 16 : i32
    %123 = vector.broadcast %c16_i32_28 : i32 to vector<1x256xi32>
    %124 = arith.cmpi slt, %122, %123 : vector<1x256xi32>
    %125 = arith.andi %120, %124 : vector<1x256xi1>
    %126 = arith.andi %12, %125 : vector<1x256xi1>
    %c-1_i32_29 = arith.constant -1 : i32
    %127 = vector.broadcast %c-1_i32_29 : i32 to vector<1x256xi32>
    %128 = arith.addi %10, %127 : vector<1x256xi32>
    %c0_i32_30 = arith.constant 0 : i32
    %129 = vector.broadcast %c0_i32_30 : i32 to vector<1x256xi32>
    %130 = arith.cmpi sge, %128, %129 : vector<1x256xi32>
    %c-1_i32_31 = arith.constant -1 : i32
    %131 = vector.broadcast %c-1_i32_31 : i32 to vector<1x256xi32>
    %132 = arith.addi %10, %131 : vector<1x256xi32>
    %c16_i32_32 = arith.constant 16 : i32
    %133 = vector.broadcast %c16_i32_32 : i32 to vector<1x256xi32>
    %134 = arith.cmpi slt, %132, %133 : vector<1x256xi32>
    %135 = arith.andi %130, %134 : vector<1x256xi1>
    %136 = arith.andi %126, %135 : vector<1x256xi1>
    %137 = vector.extract_strided_slice %0 {offsets = [0, 15], sizes = [16, 241], strides = [1, 1]} : vector<16x256xbf16> to vector<16x241xbf16>
    %138 = vector.extract_strided_slice %0 {offsets = [0, 0], sizes = [16, 15], strides = [1, 1]} : vector<16x256xbf16> to vector<16x15xbf16>
    %139 = tpu.concatenate %137, %138 in 1 : vector<16x241xbf16>, vector<16x15xbf16> -> vector<16x256xbf16>
    %140 = vector.shape_cast %136 : vector<1x256xi1> to vector<1x256xi1>
    %141 = vector.broadcast %140 : vector<1x256xi1> to vector<16x256xi1>
    %142 = arith.select %141, %139, %13 : vector<16x256xi1>, vector<16x256xbf16>
    %c1_i32_33 = arith.constant 1 : i32
    %143 = vector.broadcast %c1_i32_33 : i32 to vector<1x256xi32>
    %144 = arith.addi %8, %143 : vector<1x256xi32>
    %c0_i32_34 = arith.constant 0 : i32
    %145 = vector.broadcast %c0_i32_34 : i32 to vector<1x256xi32>
    %146 = arith.cmpi sge, %144, %145 : vector<1x256xi32>
    %c1_i32_35 = arith.constant 1 : i32
    %147 = vector.broadcast %c1_i32_35 : i32 to vector<1x256xi32>
    %148 = arith.addi %8, %147 : vector<1x256xi32>
    %c16_i32_36 = arith.constant 16 : i32
    %149 = vector.broadcast %c16_i32_36 : i32 to vector<1x256xi32>
    %150 = arith.cmpi slt, %148, %149 : vector<1x256xi32>
    %151 = arith.andi %146, %150 : vector<1x256xi1>
    %152 = arith.andi %12, %151 : vector<1x256xi1>
    %153 = vector.extract_strided_slice %0 {offsets = [0, 16], sizes = [16, 240], strides = [1, 1]} : vector<16x256xbf16> to vector<16x240xbf16>
    %154 = vector.extract_strided_slice %0 {offsets = [0, 0], sizes = [16, 16], strides = [1, 1]} : vector<16x256xbf16> to vector<16x16xbf16>
    %155 = tpu.concatenate %153, %154 in 1 : vector<16x240xbf16>, vector<16x16xbf16> -> vector<16x256xbf16>
    %156 = vector.shape_cast %152 : vector<1x256xi1> to vector<1x256xi1>
    %157 = vector.broadcast %156 : vector<1x256xi1> to vector<16x256xi1>
    %158 = arith.select %157, %155, %13 : vector<16x256xi1>, vector<16x256xbf16>
    %c1_i32_37 = arith.constant 1 : i32
    %159 = vector.broadcast %c1_i32_37 : i32 to vector<1x256xi32>
    %160 = arith.addi %8, %159 : vector<1x256xi32>
    %c0_i32_38 = arith.constant 0 : i32
    %161 = vector.broadcast %c0_i32_38 : i32 to vector<1x256xi32>
    %162 = arith.cmpi sge, %160, %161 : vector<1x256xi32>
    %c1_i32_39 = arith.constant 1 : i32
    %163 = vector.broadcast %c1_i32_39 : i32 to vector<1x256xi32>
    %164 = arith.addi %8, %163 : vector<1x256xi32>
    %c16_i32_40 = arith.constant 16 : i32
    %165 = vector.broadcast %c16_i32_40 : i32 to vector<1x256xi32>
    %166 = arith.cmpi slt, %164, %165 : vector<1x256xi32>
    %167 = arith.andi %162, %166 : vector<1x256xi1>
    %168 = arith.andi %12, %167 : vector<1x256xi1>
    %c1_i32_41 = arith.constant 1 : i32
    %169 = vector.broadcast %c1_i32_41 : i32 to vector<1x256xi32>
    %170 = arith.addi %10, %169 : vector<1x256xi32>
    %c0_i32_42 = arith.constant 0 : i32
    %171 = vector.broadcast %c0_i32_42 : i32 to vector<1x256xi32>
    %172 = arith.cmpi sge, %170, %171 : vector<1x256xi32>
    %c1_i32_43 = arith.constant 1 : i32
    %173 = vector.broadcast %c1_i32_43 : i32 to vector<1x256xi32>
    %174 = arith.addi %10, %173 : vector<1x256xi32>
    %c16_i32_44 = arith.constant 16 : i32
    %175 = vector.broadcast %c16_i32_44 : i32 to vector<1x256xi32>
    %176 = arith.cmpi slt, %174, %175 : vector<1x256xi32>
    %177 = arith.andi %172, %176 : vector<1x256xi1>
    %178 = arith.andi %168, %177 : vector<1x256xi1>
    %179 = vector.extract_strided_slice %0 {offsets = [0, 17], sizes = [16, 239], strides = [1, 1]} : vector<16x256xbf16> to vector<16x239xbf16>
    %180 = vector.extract_strided_slice %0 {offsets = [0, 0], sizes = [16, 17], strides = [1, 1]} : vector<16x256xbf16> to vector<16x17xbf16>
    %181 = tpu.concatenate %179, %180 in 1 : vector<16x239xbf16>, vector<16x17xbf16> -> vector<16x256xbf16>
    %182 = vector.shape_cast %178 : vector<1x256xi1> to vector<1x256xi1>
    %183 = vector.broadcast %182 : vector<1x256xi1> to vector<16x256xi1>
    %184 = arith.select %183, %181, %13 : vector<16x256xi1>, vector<16x256xbf16>
    %185 = tpu.concatenate %39, %55, %81, %97, %100, %116, %142, %158, %184 in 0 : vector<16x256xbf16>, vector<16x256xbf16>, vector<16x256xbf16>, vector<16x256xbf16>, vector<16x256xbf16>, vector<16x256xbf16>, vector<16x256xbf16>, vector<16x256xbf16>, vector<16x256xbf16> -> vector<144x256xbf16>
    %c0_45 = arith.constant 0 : index
    %c0_46 = arith.constant 0 : index
    %186 = vector.load %arg2[%c0_45, %c0_46] : memref<64x144xbf16, #tpu.memory_space<vmem>>, vector<64x144xbf16>
    %cst_47 = arith.constant dense<0.000000e+00> : vector<64x256xf32>
    %187 = tpu.matmul %186, %185, %cst_47 {dimension_numbers = #tpu.dot_dimension_numbers<[1], [0], [0], [1], [0, 0, 1, 1], [], []>} : vector<64x144xbf16>, vector<144x256xbf16>, vector<64x256xf32> -> vector<64x256xf32>
    %188 = math.tanh %187 : vector<64x256xf32>
    %189 = arith.truncf %188 : vector<64x256xf32> to vector<64x256xbf16>
    %c0_48 = arith.constant 0 : index
    %c0_49 = arith.constant 0 : index
    %190 = vector.load %arg3[%c0_48, %c0_49] : memref<64x256xbf16, #tpu.memory_space<vmem>>, vector<64x256xbf16>
    tpu.vector_store %arg3[%c0_48, %c0_49], %189 {strides = array<i32>} : memref<64x256xbf16, #tpu.memory_space<vmem>>, vector<64x256xbf16>,
    return
  }
  func.func @transform_0(%arg0: i32) -> (i32, i32) {
    %c0_i32 = arith.constant 0 : i32
    %c0_i32_0 = arith.constant 0 : i32
    return %c0_i32, %arg0 : i32, i32
  }
  func.func @transform_1(%arg0: i32) -> (i32, i32) {
    %c0_i32 = arith.constant 0 : i32
    %c0_i32_0 = arith.constant 0 : i32
    %c0_i32_1 = arith.constant 0 : i32
    return %c0_i32, %c0_i32_0 : i32, i32
  }
  func.func @transform_2(%arg0: i32) -> (i32, i32) {
    %c0_i32 = arith.constant 0 : i32
    %c0_i32_0 = arith.constant 0 : i32
    return %c0_i32, %arg0 : i32, i32
  }
}

</mosaic_0001>

<bundles_post_ra>
// kernel: generator_forward.5
= control target key start
LH: loop header
LB: loop body
LE: loop exit
PB: predicated region body
PF: predicated region fallthrough
CT: control target
= control target key end

     0   :  { %8 = vsyncpa [#allocation3], 0  ;;  %s360_s0 = inlined_call_operand.vmem [shape: bf16[2,128], index: 0, kind: input, shape index: {}]   ;;  %s361_s1 = inlined_call_operand.hbm [shape: bf16[128,256], index: 1, kind: input, shape index: {}]   ;;  %s362_s2 = inlined_call_operand.hbm [shape: f32[1,256], index: 2, kind: input, shape index: {}]   ;;  %s363_s3 = inlined_call_operand.vmem [shape: bf16[2,256], index: 3, kind: output, shape index: {}]  }
   0x1   :  { %s16_s14 = sshll.u32 %s361_s1, 4  ;;  %s17_s14 = int_to_ptr.hbm [resolvable:$true] %s16_s14 }
   0x2   :  { %9 = vsyncpa [#allocation5], 0  ;;  %s324_s15 = smov [#allocation2]   ;;  %s30_s19 = sshll.u32 %s362_s2, 4  ;;  %s31_s19 = int_to_ptr.hbm [resolvable:$true] %s30_s19 }
   0x3   :  { %s18_s16 = sshll.u32 %s324_s15, 4  ;;  %s325_s20 = smov 128   ;;  %s19_s16 = int_to_ptr.vmem [resolvable:$true] %s18_s16 }
   0x4   :  { %s326_s21 = smov 8   ;;  %s327_s22 = smov [#allocation4]  }
   0x5   :  { %24 = dma.hbm_to_vmem [thread:$0]  %s17_s14, 2048, %s19_s16, [#allocation3], %s325_s20, %s325_s20, %s326_s21  }
   0x6   :  { %s32_s23 = sshll.u32 %s327_s22, 4  ;;  %s33_s23 = int_to_ptr.vmem [resolvable:$true] %s32_s23 }
   0x7   :  { %35 = dma.hbm_to_vmem [thread:$0]  %s31_s19, 32, %s33_s23, [#allocation5]  }
   0x8   :  { %320 = dma.done.wait [#allocation3], 2048  }
   0x9   :  { %321 = vsyncadd [#allocation3], 4294965248 }
   0xa   :  { %322 = dma.done.wait [#allocation5], 32  }
   0xb   :  { %323 = vsyncadd [#allocation5], 4294967264  ;;  %v246_v0 = vld [vmem:[#allocation2 + $0x70] sm:$0xf]  ;;  %v267_v1 = vld [vmem:[#allocation2 + $0x74] sm:$0xf0] }
   0xc   :  { %v266_v2 = vld [vmem:[#allocation2 + $0x74] sm:$0xf]  ;;  %v247_v3 = vor.u32 %v267_v1, %v246_v0  ;;  %v248_v4 = vld [vmem:[#allocation2 + $0x78] sm:$0xf0]  ;;  %v238_v5 = vld [vmem:[#allocation2 + $0x60] sm:$0xf] }
   0xd   :  { %v265_v6 = vld [vmem:[#allocation2 + $0x64] sm:$0xf0]  ;;  %v251_v7 = vor.u32 %v266_v2, %v248_v4  ;;  %v264_v8 = vld [vmem:[#allocation2 + $0x64] sm:$0xf]  ;;  %v240_v9 = vld [vmem:[#allocation2 + $0x68] sm:$0xf0] }
   0xe   :  { %147 = vmatpush.bf16.msra.mxu0 %v247_v3  ;;  %v239_v10 = vor.u32 %v265_v6, %v238_v5  ;;  %v243_v11 = vor.u32 %v264_v8, %v240_v9  ;;  %v230_v12 = vld [vmem:[#allocation2 + $0x50] sm:$0xf]  ;;  %v263_v13 = vld [vmem:[#allocation2 + $0x54] sm:$0xf0]  ;;  %v262_v14 = vld [vmem:[#allocation2 + $0x54] sm:$0xf] }
   0xf   :  { %160 = vmatpush.bf16.msra.mxu1 %v251_v7  ;;  %v232_v15 = vld [vmem:[#allocation2 + $0x58] sm:$0xf0]  ;;  %v231_v16 = vor.u32 %v263_v13, %v230_v12  ;;  %v222_v18 = vld [vmem:[#allocation2 + $0x40] sm:$0xf]  ;;  %v261_v19 = vld [vmem:[#allocation2 + $0x44] sm:$0xf0] }
  0x10   :  { %v235_v17 = vor.u32 %v262_v14, %v232_v15  ;;  %v260_v20 = vld [vmem:[#allocation2 + $0x44] sm:$0xf]  ;;  %v224_v21 = vld [vmem:[#allocation2 + $0x48] sm:$0xf0]  ;;  %v223_v22 = vor.u32 %v261_v19, %v222_v18  ;;  %v214_v24 = vld [vmem:[#allocation2 + $0x30] sm:$0xf] }
  0x11   :  { %v227_v23 = vor.u32 %v260_v20, %v224_v21  ;;  %v259_v25 = vld [vmem:[#allocation2 + $0x34] sm:$0xf0]  ;;  %v258_v26 = vld [vmem:[#allocation2 + $0x34] sm:$0xf]  ;;  %v216_v27 = vld [vmem:[#allocation2 + $0x38] sm:$0xf0] }
  0x12   :  { %148 = vmatpush.bf16.msra.mxu0 %v239_v10  ;;  %v215_v28 = vor.u32 %v259_v25, %v214_v24  ;;  %v219_v29 = vor.u32 %v258_v26, %v216_v27  ;;  %v206_v30 = vld [vmem:[#allocation2 + $0x20] sm:$0xf]  ;;  %v257_v31 = vld [vmem:[#allocation2 + $0x24] sm:$0xf0]  ;;  %v256_v32 = vld [vmem:[#allocation2 + $0x24] sm:$0xf] }
  0x13   :  { %161 = vmatpush.bf16.msra.mxu1 %v243_v11  ;;  %v208_v33 = vld [vmem:[#allocation2 + $0x28] sm:$0xf0]  ;;  %v207_v34 = vor.u32 %v257_v31, %v206_v30  ;;  %v198_v36 = vld [vmem:[#allocation2 + $0x10] sm:$0xf]  ;;  %v255_v37 = vld [vmem:[#allocation2 + $0x14] sm:$0xf0] }
  0x14   :  { %v211_v35 = vor.u32 %v256_v32, %v208_v33  ;;  %v254_v38 = vld [vmem:[#allocation2 + $0x14] sm:$0xf]  ;;  %v200_v39 = vld [vmem:[#allocation2 + $0x18] sm:$0xf0]  ;;  %v199_v40 = vor.u32 %v255_v37, %v198_v36  ;;  %v190_v42 = vld [vmem:[#allocation2] sm:$0xf] }
  0x15   :  { %v203_v41 = vor.u32 %v254_v38, %v200_v39  ;;  %v253_v43 = vld [vmem:[#allocation2 + $0x4] sm:$0xf0]  ;;  %v252_v44 = vld [vmem:[#allocation2 + $0x4] sm:$0xf]  ;;  %v192_v45 = vld [vmem:[#allocation2 + $0x8] sm:$0xf0] }
  0x16   :  { %149 = vmatpush.bf16.msra.mxu0 %v231_v16  ;;  %v191_v46 = vor.u32 %v253_v43, %v190_v42  ;;  %v195_v47 = vor.u32 %v252_v44, %v192_v45  ;;  %v44_v48 = vld [vmem:[%s360_s0] sm:$0x1]  ;;  %vm176_vm0 = vcmask 1040384  }
  0x17   :  { %162 = vmatpush.bf16.msra.mxu1 %v235_v17  ;;  %v61_v49 = vld [vmem:[#allocation4] sm:$0x3] }
  0x18   :  { %v63_v50 = vperm.slane %v61_v49, 0  ;;  %v64_v51 = vperm.slane %v61_v49, 1 }
  0x1a   :  { %150 = vmatpush.bf16.msra.mxu0 %v223_v22 }
  0x1b   :  { %163 = vmatpush.bf16.msra.mxu1 %v227_v23 }
  0x1e   :  { %151 = vmatpush.bf16.msra.mxu0 %v215_v28 }
  0x1f   :  { %164 = vmatpush.bf16.msra.mxu1 %v219_v29 }
  0x22   :  { %152 = vmatpush.bf16.msra.mxu0 %v207_v34 }
  0x23   :  { %165 = vmatpush.bf16.msra.mxu1 %v211_v35 }
  0x26   :  { %153 = vmatpush.bf16.msra.mxu0 %v199_v40 }
  0x27   :  { %166 = vmatpush.bf16.msra.mxu1 %v203_v41 }
  0x2a   :  { %154 = vmatpush.bf16.msra.mxu0 %v191_v46 }
  0x2b   :  { %167 = vmatpush.bf16.msra.mxu1 %v195_v47 }
  0x2d   :  { %155 = vmatmul.bf16.vlgmr.msra.gmra.mxu0 %v44_v48 }
  0x2e   :  { %168 = vmatmul.bf16.vlgmr.msra.gmra.mxu1 %v44_v48 }
  0xaa   :  { %v156_v52 = vpop.f32.mrf.mxu0 }
  0xab   :  { %v157_v53 = vadd.f32 %v156_v52, %v63_v50  ;;  %v169_v54 = vpop.f32.mrf.mxu1 }
  0xac   :  { %v170_v55 = vadd.f32 %v169_v54, %v64_v51 }
  0xae   :  { %v173_v56 = vpack.c.bf16 %v170_v55, %v157_v53 }
  0xb0   :  { %v175_v57 = vrot.slane %v173_v56, 3 }
  0xb2   :  { %v179_v58 = vsel %vm176_vm0, %v173_v56, %v175_v57  ;;  %v158_v59 = vpop.f32.mrf.mxu0 }
  0xb3   :  { %181 = vst [vmem:[%s363_s3] sm:$0x3] %v179_v58  ;;  %v171_v60 = vpop.f32.mrf.mxu1 }
  0xb4   :  { %186 = vsyncpa [#allocation3], 1 }
  0xb5   :  { %187 = vsyncpa [#allocation5], 1 }

// kernel: generator_forward.7
= control target key start
LH: loop header
LB: loop body
LE: loop exit
PB: predicated region body
PF: predicated region fallthrough
CT: control target
= control target key end

     0   :  { %9 = vsyncpa [#allocation7], 0  ;;  %s1342_s15 = smov 0   ;;  %s1344_s16 = smov 0   ;;  %s1710_s0 = inlined_call_operand.vmem [shape: bf16[32,128], index: 0, kind: input, shape index: {}]   ;;  %s1711_s1 = inlined_call_operand.hbm [shape: bf16[64,288], index: 1, kind: input, shape index: {}]   ;;  %s1712_s2 = inlined_call_operand.vmem [shape: f32[16,1], index: 2, kind: input, shape index: {}]   ;;  %s1713_s3 = inlined_call_operand.vmem [shape: f32[16,1], index: 3, kind: input, shape index: {}]   ;;  %s1714_s4 = inlined_call_operand.vmem [shape: bf16[64,128], index: 4, kind: output, shape index: {}]  }
   0x1   :  { %s1346_s17 = smov 0  }
   0x2 LB: > { %s1062_s18 = sadd.s32 4294967295, %s1301_s17   ;;  %s27_s19 = sadd.s32 1, %s1297_s16  ;;  %s1301_s17 = sphi %s1346_s17, %s15_s17   ;;  %s1297_s16 = sphi %s1344_s16, %s1742_s16   ;;  %s1293_s15 = sphi %s1342_s15, %s1741_s15  }
   0x3   : > { %p29_p0 = scmp.ge.s32.totalorder %s27_s19, 2  ;;  %p1063_p1 = scmp.ge.s32.totalorder %s1301_s17, 1 }
   0x4   : > { %p147_p2 = scmp.lt.s32.totalorder %s1301_s17, 3  ;;  %p1198_p4 = scmp.eq.s32.totalorder %s1062_s18, 0 }
   0x5   : > { %s1744_s19 = smov (%p29_p0, %s27_s19), 0  ;;  %s165_s22 = sshll.u32 %s1711_s1, 4  ;;  %s166_s22 = int_to_ptr.hbm [resolvable:$true] %s165_s22 }
   0x6   : > { %p148_p3 = pnand %p1063_p1, %p147_p2  ;;  %s1303_s23 = smov [#allocation6]  }
   0x7   : > { %s167_s24 = sshll.u32 %s1303_s23, 4  ;;  %s1304_s25 = smov 192   ;;  %s168_s24 = int_to_ptr.vmem [resolvable:$true] %s167_s24 }
   0x8   : > { %p1194_p5 = pneg %p148_p3  ;;  %s1305_s26 = smov 12  }
   0x9   : > { %189 = sbr.rel (%p148_p3) target bundleno = 753 (0x2f1), region = 36 }
   0xa   : > { %p1195_p6 = pnand %p1198_p4, %p1194_p5 }
   0xc   : > { %1197 = dma.hbm_to_vmem [thread:$0]  (!%p1195_p6), %s166_s22, 1536, %s168_s24, [#allocation7], %s1304_s25, %s1304_s25, %s1305_s26  }
   0xe   : > { %1288 = dma.done.wait (%p1198_p4), [#allocation7], 1536  }
   0xf   : > { %1290 = vsyncadd (%p1198_p4), [#allocation7], 4294965760  ;;  %p225_p7 = scmp.eq.s32.totalorder %s1293_s15, 0 }
  0x10   : > { %vm231_vm0 = vcmask (%p225_p7), 7168   ;;  %v1306_v0 = vmov (%p225_p7), 0.0  }
  0x11   : > { %230 = sbr.rel (!%p225_p7) target bundleno = 33 (0x21), region = 44  ;;  %232 = vst.msk [vmem:[#allocation2] sm:$0xff] (%p225_p7), %vm231_vm0, %v1306_v0 }
  0x12   : > { %233 = vst.msk [vmem:[#allocation2 + $0x8] sm:$0xff] (%p225_p7), %vm231_vm0, %v1306_v0 }
  0x13   : > { %234 = vst.msk [vmem:[#allocation2 + $0x10] sm:$0xff] (%p225_p7), %vm231_vm0, %v1306_v0 }
  0x14   : > { %235 = vst.msk [vmem:[#allocation2 + $0x18] sm:$0xff] (%p225_p7), %vm231_vm0, %v1306_v0 }
  0x15   : > { %236 = vst.msk [vmem:[#allocation2 + $0x20] sm:$0xff] (%p225_p7), %vm231_vm0, %v1306_v0 }
  0x16   : > { %237 = vst.msk [vmem:[#allocation2 + $0x28] sm:$0xff] %vm231_vm0, %v1306_v0 }
  0x17   : > { %238 = vst.msk [vmem:[#allocation2 + $0x30] sm:$0xff] %vm231_vm0, %v1306_v0 }
  0x18   : > { %239 = vst.msk [vmem:[#allocation2 + $0x38] sm:$0xff] %vm231_vm0, %v1306_v0 }
  0x19   : > { %240 = vst.msk [vmem:[#allocation3] sm:$0xff] %vm231_vm0, %v1306_v0 }
  0x1a   : > { %241 = vst.msk [vmem:[#allocation3 + $0x8] sm:$0xff] %vm231_vm0, %v1306_v0 }
  0x1b   : > { %242 = vst.msk [vmem:[#allocation3 + $0x10] sm:$0xff] %vm231_vm0, %v1306_v0 }
  0x1c   : > { %243 = vst.msk [vmem:[#allocation3 + $0x18] sm:$0xff] %vm231_vm0, %v1306_v0 }
  0x1d   : > { %244 = vst.msk [vmem:[#allocation3 + $0x20] sm:$0xff] %vm231_vm0, %v1306_v0 }
  0x1e   : > { %245 = vst.msk [vmem:[#allocation3 + $0x28] sm:$0xff] %vm231_vm0, %v1306_v0 }
  0x1f   : > { %246 = vst.msk [vmem:[#allocation3 + $0x30] sm:$0xff] %vm231_vm0, %v1306_v0 }
  0x20   : > { %247 = vst.msk [vmem:[#allocation3 + $0x38] sm:$0xff] %vm231_vm0, %v1306_v0 }
  0x21 PF: > { %v1137_v1 = vld [vmem:[%s1710_s0 + $0x8] sm:$0xff]  ;;  %v1136_v2 = vld [vmem:[%s1710_s0] sm:$0xff]  ;;  %s1307_s5 = smov 1   ;;  %s1308_s6 = smov 124   ;;  %v253_v3 = vlaneseq  ;;  %vm357_vm1 = vcmask 7168   ;;  %v1315_v15 = vmov 0  }
  0x22   : > { %355 = vrot.lane.b32.xlu0 %v1137_v1, %s1307_s5  ;;  %436 = vrot.lane.b32.xlu1 %v1137_v1, %s1308_s6  ;;  %s1309_s7 = smov 3   ;;  %s1310_s8 = smov 123   ;;  %v1422_v18 = vunpack.c.l.b16 %v1315_v15  ;;  %v1425_v19 = vunpack.c.h.b16 %v1315_v15  ;;  %v1087_v34 = vld [vmem:[#allocation6 + $0x8] sm:$0xf]  ;;  %v1140_v35 = vld [vmem:[#allocation6 + $0x10] sm:$0xf0] }
  0x23   : > { %434 = vrot.lane.b32.xlu2 %v1136_v2, %s1308_s6  ;;  %s1311_s9 = smov 125   ;;  %s1312_s10 = smov 4   ;;  %v1389_v4 = vand.u32 127, %v253_v3  ;;  %v1088_v40 = vor.u32 %v1140_v35, %v1087_v34  ;;  %v1099_v59 = vld [vmem:[#allocation6 + $0x20] sm:$0xf] }
  0x24   : > { %s1313_s11 = smov 127   ;;  %s1314_s12 = smov 5   ;;  %v1143_v60 = vld [vmem:[#allocation6 + $0x28] sm:$0xf0]  ;;  %v1111_v23 = vld [vmem:[#allocation6 + $0x38] sm:$0xf] }
  0x25   : > { %v257_v5 = vand.u32 15, %v1389_v4  ;;  %vm260_vm4 = vcmp.lt.s32.totalorder %v1389_v4, 32  ;;  %v249_v39 = vld [vmem:[%s1710_s0 + $0x4] sm:$0xf]  ;;  %v1123_v58 = vld [vmem:[#allocation6 + $0x50] sm:$0xf] }
  0x26   : > { %p1129_p8 = scmp.ne.s32.totalorder %s1293_s15, 0 }
  0x27   : > { %v258_v6 = vshra.s32 %v257_v5, 2  ;;  %v259_v7 = vand.u32 3, %v257_v5 }
  0x29   : > { %v406_v8 = vadd.s32 1, %v258_v6  ;;  %v1392_v9 = vadd.s32 4294967295, %v259_v7  ;;  %v1396_v10 = vadd.s32 1, %v259_v7  ;;  %v261_v13 = vadd.s32 4294967295, %v258_v6 }
  0x2a   : > { %353 = vrot.lane.b32.xlu0 %v1136_v2, %s1307_s5  ;;  %332 = vrot.lane.b32.xlu1 %v1137_v1, %s1309_s7 }
  0x2b   : > { %459 = vrot.lane.b32.xlu2 %v1137_v1, %s1310_s8  ;;  %vm407_vm2 = vcmp.ge.s32.totalorder %v406_v8, 0  ;;  %vm408_vm3 = vcmp.lt.s32.totalorder %v406_v8, 4  ;;  %vm267_vm5 = vcmp.ge.s32.totalorder %v1392_v9, 0  ;;  %vm327_vm9 = vcmp.lt.s32.totalorder %v1396_v10, 4 }
  0x2c   : > { %vm409_vm6 = vmand %vm407_vm2, %vm408_vm3  ;;  %vm262_vm12 = vcmp.ge.s32.totalorder %v261_v13, 0  ;;  %vm263_vm13 = vcmp.lt.s32.totalorder %v261_v13, 4 }
  0x2d   : > { %vm1402_vm7 = vmand %vm260_vm4, %vm267_vm5 }
  0x2e   : > { %vm1408_vm8 = vmand %vm260_vm4, %vm409_vm6 }
  0x2f   : > { %vm456_vm10 = vmand %vm1408_vm8, %vm327_vm9 }
  0x30   : > { %vm467_vm11 = vmpackc.low %vm456_vm10, %vm456_vm10 }
  0x31   : > { %v468_v16 = vsel %vm467_vm11, 65537, %v1315_v15  ;;  %vm364_vm14 = vmpackc.low %vm1402_vm7, %vm1402_vm7 }
  0x32   : > { %330 = vrot.lane.b32.xlu0 %v1136_v2, %s1309_s7  ;;  %414 = vrot.lane.b32.xlu1 %v1137_v1, %s1311_s9  ;;  %v469_v17 = vperm.slane %v468_v16, 0  ;;  %vm444_vm15 = vmpackc.low %vm1408_vm8, %vm1408_vm8  ;;  %v365_v22 = vsel %vm364_vm14, 65537, %v1315_v15 }
  0x33   : > { %457 = vrot.lane.b32.xlu2 %v1136_v2, %s1310_s8  ;;  %vm264_vm0 = vmand %vm262_vm12, %vm263_vm13  ;;  %v445_v24 = vsel %vm444_vm15, 65537, %v1315_v15  ;;  %v366_v26 = vperm.slane %v365_v22, 0 }
  0x34   : > { %v470_v20 = vunpack.c.l.b16 %v469_v17  ;;  %v471_v21 = vunpack.c.h.b16 %v469_v17  ;;  %vm1440_vm7 = vmand %vm260_vm4, %vm264_vm0  ;;  %v446_v29 = vperm.slane %v445_v24, 0  ;;  %v1146_v24 = vld [vmem:[#allocation6 + $0x40] sm:$0xf0] }
  0x35   : > { %vm329_vm10 = vmand %vm1440_vm7, %vm327_vm9  ;;  %v367_v30 = vunpack.c.l.b16 %v366_v26  ;;  %v368_v31 = vunpack.c.h.b16 %v366_v26 }
  0x36   : > { %vm474_vm2 = vcmp.ne.s32.totalorder %v470_v20, %v1422_v18  ;;  %vm475_vm3 = vcmp.ne.s32.totalorder %v471_v21, %v1425_v19  ;;  %vm340_vm11 = vmpackc.low %vm329_vm10, %vm329_vm10  ;;  %v447_v32 = vunpack.c.l.b16 %v446_v29  ;;  %v448_v33 = vunpack.c.h.b16 %v446_v29 }
  0x37   : > { %vm1433_vm6 = vmpackc.low %vm475_vm3, %vm474_vm2  ;;  %vm371_vm12 = vcmp.ne.s32.totalorder %v367_v30, %v1422_v18  ;;  %vm372_vm13 = vcmp.ne.s32.totalorder %v368_v31, %v1425_v19  ;;  %v341_v36 = vsel %vm340_vm11, 65537, %v1315_v15  ;;  %vm567_vm2 = vcmask 261120   ;;  %v250_v30 = vld [vmem:[%s1710_s0 + $0x8] sm:$0xf]  ;;  %v251_v31 = vld [vmem:[%s1710_s0 + $0xc] sm:$0xf] }
  0x38   : > { %vm1459_vm14 = vmand %vm1408_vm8, %vm267_vm5  ;;  %vm451_vm15 = vcmp.ne.s32.totalorder %v447_v32, %v1422_v18  ;;  %vm452_vm0 = vcmp.ne.s32.totalorder %v448_v33, %v1425_v19  ;;  %v342_v42 = vperm.slane %v341_v36, 0 }
  0x39   : > { %vm1465_vm3 = vmpackc.low %vm372_vm13, %vm371_vm12 }
  0x3a   : > { %305 = vrot.lane.b32.xlu0 %v1137_v1, %s1312_s10  ;;  %412 = vrot.lane.b32.xlu1 %v1136_v2, %s1311_s9  ;;  %vm453_vm8 = vmpackc.low %vm452_vm0, %vm451_vm15  ;;  %v343_v45 = vunpack.c.l.b16 %v342_v42  ;;  %v344_v46 = vunpack.c.h.b16 %v342_v42 }
  0x3b   : > { %303 = vrot.lane.b32.xlu2 %v1136_v2, %s1312_s10  ;;  %vm313_vm12 = vmpackc.low %vm1440_vm7, %vm1440_vm7 }
  0x3c   : > { %vm347_vm10 = vcmp.ne.s32.totalorder %v343_v45, %v1422_v18  ;;  %vm348_vm11 = vcmp.ne.s32.totalorder %v344_v46, %v1425_v19  ;;  %v314_v55 = vsel %vm313_vm12, 65537, %v1315_v15  ;;  %vm1506_vm15 = vmand %vm1440_vm7, %vm267_vm5  ;;  %v1091_v45 = vld [vmem:[#allocation6 + $0x18] sm:$0xf]  ;;  %v1142_v46 = vld [vmem:[#allocation6 + $0x20] sm:$0xf0] }
  0x3d   : > { %vm1487_vm13 = vmpackc.low %vm348_vm11, %vm347_vm10  ;;  %v315_v62 = vperm.slane %v314_v55, 0 }
  0x3f   : > { %v316_v5 = vunpack.c.l.b16 %v315_v62  ;;  %v317_v6 = vunpack.c.h.b16 %v315_v62  ;;  %v1093_v62 = vld [vmem:[#allocation6 + $0x24] sm:$0xf0] }
  0x41   : > { %vm320_vm7 = vcmp.ne.s32.totalorder %v316_v5, %v1422_v18  ;;  %v1105_v5 = vld [vmem:[#allocation6 + $0x3c] sm:$0xf0] }
  0x42   : > { %386 = vrot.lane.b32.xlu0 %v1137_v1, %s1313_s11  ;;  %283 = vrot.lane.b32.xlu1 %v1137_v1, %s1314_s12  ;;  %v1100_v1 = vor.u32 %v1143_v60, %v1099_v59  ;;  %v1149_v59 = vld [vmem:[#allocation6 + $0x58] sm:$0xf0] }
  0x43   : > { %384 = vrot.lane.b32.xlu2 %v1136_v2, %s1313_s11  ;;  %v1124_v63 = vor.u32 %v1149_v59, %v1123_v58 }
  0x4a   : > { %281 = vrot.lane.b32.xlu0 %v1136_v2, %s1314_s12  ;;  %v1145_v2 = vld [vmem:[#allocation6 + $0x38] sm:$0xf0] }
  0x7d   : > { %v435_v14 = vpop.permute.xlu2 %434 }
  0x7e   : > { %v1479_v51 = vsel %vm453_vm8, %v435_v14, 0 }
  0x85   : > { %v460_v27 = vpop.permute.xlu2 %459 }
  0x86   : > { %v478_v28 = vsel %vm1433_vm6, %v460_v27, 0 }
  0x87   : > { %644 = vmatpush.bf16.msra.mxu2 %v478_v28  ;;  %v1112_v28 = vor.u32 %v1146_v24, %v1111_v23 }
  0x8d   : > { %v458_v37 = vpop.permute.xlu2 %457 }
  0x8e   : > { %v477_v38 = vsel %vm1433_vm6, %v458_v37, 0  ;;  %vm422_vm6 = vmpackc.low %vm1459_vm14, %vm1459_vm14 }
  0x8f   : > { %645 = vmatpush.bf16.msra.mxu2 %v477_v38  ;;  %v423_v47 = vsel %vm422_vm6, 65537, %v1315_v15  ;;  %vm1496_vm14 = vmand %vm260_vm4, %vm327_vm9  ;;  %v248_v38 = vld [vmem:[%s1710_s0] sm:$0xf] }
  0x90   : > { %v424_v50 = vperm.slane %v423_v47, 0  ;;  %vm291_vm6 = vmpackc.low %vm1506_vm15, %vm1506_vm15  ;;  %v1079_v47 = vld [vmem:[#allocation6] sm:$0xf] }
  0x91   : > { %v292_v9 = vsel %vm291_vm6, 65537, %v1315_v15 }
  0x92   : > { %1125 = vmatmul.msk.bf16.vlgmr.msra.gmra.mxu2 %vm567_vm2, %v1088_v40  ;;  %v425_v53 = vunpack.c.l.b16 %v424_v50  ;;  %v426_v54 = vunpack.c.h.b16 %v424_v50  ;;  %v293_v13 = vperm.slane %v292_v9, 0  ;;  %v1115_v9 = vld [vmem:[#allocation6 + $0x48] sm:$0xf] }
  0x94   : > { %v356_v43 = vpop.permute.xlu0 %355  ;;  %v437_v44 = vpop.permute.xlu1 %436  ;;  %vm429_vm9 = vcmp.ne.s32.totalorder %v425_v53, %v1422_v18  ;;  %vm430_vm0 = vcmp.ne.s32.totalorder %v426_v54, %v1425_v19  ;;  %v294_v17 = vunpack.c.l.b16 %v293_v13  ;;  %v295_v20 = vunpack.c.h.b16 %v293_v13  ;;  %v1117_v13 = vld [vmem:[#allocation6 + $0x54] sm:$0xf0] }
  0x95   : > { %v375_v48 = vsel %vm1465_vm3, %v356_v43, 0  ;;  %v1476_v49 = vsel %vm453_vm8, %v437_v44, 0  ;;  %vm1520_vm5 = vmpackc.low %vm430_vm0, %vm429_vm9  ;;  %vm321_vm8 = vcmp.ne.s32.totalorder %v317_v6, %v1425_v19  ;;  %v304_v14 = vpop.permute.xlu2 %303 }
  0x96   : > { %580 = vmatpush.bf16.msra.mxu0 %v375_v48  ;;  %1174 = vmatpush.bf16.msra.mxu3 %v375_v48  ;;  %vm322_vm10 = vmpackc.low %vm321_vm8, %vm320_vm7  ;;  %v1139_v48 = vld [vmem:[#allocation6 + $0x8] sm:$0xf0] }
  0x97   : > { %1182 = vmatpush.bf16.msra.mxu1 %v1476_v49  ;;  %v323_v27 = vsel %vm322_vm10, %v304_v14, 0  ;;  %vm1558_vm9 = vmpackc.low %vm260_vm4, %vm260_vm4 }
  0x98   : > { %v381_v35 = vsel %vm1558_vm9, %v250_v30, 0  ;;  %v382_v4 = vsel %vm1558_vm9, %v251_v31, 0  ;;  %v379_v43 = vsel %vm1558_vm9, %v248_v38, 0  ;;  %v380_v44 = vsel %vm1558_vm9, %v249_v39, 0 }
  0x99   : > { %v485_v41 = vunpack.c.l.b16 %v381_v35  ;;  %v486_v42 = vunpack.c.l.b16 %v382_v4  ;;  %v483_v52 = vunpack.c.l.b16 %v379_v43  ;;  %v484_v53 = vunpack.c.l.b16 %v380_v44 }
  0x9b   : > { %1183 = vmatpush.bf16.msra.mxu1 %v1479_v51  ;;  %v488_v50 = vpack.c.b16 %v486_v42, %v485_v41  ;;  %v487_v60 = vpack.c.b16 %v484_v53, %v483_v52 }
  0x9c   : > { %v354_v56 = vpop.permute.xlu0 %353  ;;  %v333_v57 = vpop.permute.xlu1 %332 }
  0x9d   : > { %v374_v61 = vsel %vm1465_vm3, %v354_v56, 0  ;;  %v351_v0 = vsel %vm1487_vm13, %v333_v57, 0  ;;  %vm394_vm3 = vmpackc.low %vm1496_vm14, %vm1496_vm14  ;;  %vm299_vm14 = vcmp.ne.s32.totalorder %v295_v20, %v1425_v19  ;;  %v385_v32 = vpop.permute.xlu2 %384  ;;  %v1092_v56 = vor.u32 %v1142_v46, %v1091_v45 }
  0x9e   : > { %581 = vmatpush.bf16.msra.mxu0 %v374_v61  ;;  %1175 = vmatpush.bf16.msra.mxu3 %v374_v61  ;;  %v395_v3 = vsel %vm394_vm3, 65537, %v1315_v15  ;;  %v1080_v57 = vor.u32 %v1139_v48, %v1079_v47  ;;  %v1141_v61 = vld [vmem:[#allocation6 + $0x1c] sm:$0xf] }
  0x9f   : > { %v396_v12 = vperm.slane %v395_v3, 0  ;;  %v1144_v3 = vld [vmem:[#allocation6 + $0x34] sm:$0xf] }
  0xa0   : > { %v1108_v6 = vor.u32 %v1144_v3, %v1105_v5 }
  0xa1   : > { %v397_v16 = vunpack.c.l.b16 %v396_v12  ;;  %v398_v15 = vunpack.c.h.b16 %v396_v12  ;;  %v1147_v12 = vld [vmem:[#allocation6 + $0x4c] sm:$0xf] }
  0xa2   : > { %582 = vmatpush.bf16.msra.mxu0 %v351_v0  ;;  %1176 = vmatpush.bf16.msra.mxu3 %v351_v0  ;;  %v1096_v0 = vor.u32 %v1141_v61, %v1093_v62  ;;  %v1120_v14 = vor.u32 %v1147_v12, %v1117_v13 }
  0xa3   : > { %1126 = vmatmul.msk.bf16.gmra.mxu2 %vm567_vm2, %v1100_v1  ;;  %vm401_vm11 = vcmp.ne.s32.totalorder %v397_v16, %v1422_v18  ;;  %vm402_vm12 = vcmp.ne.s32.totalorder %v398_v15, %v1425_v19  ;;  %v1103_v1 = vld [vmem:[#allocation6 + $0x30] sm:$0xf] }
  0xa4   : > { %v331_v7 = vpop.permute.xlu0 %330  ;;  %v415_v8 = vpop.permute.xlu1 %414  ;;  %vm1545_vm15 = vmpackc.low %vm402_vm12, %vm401_vm11 }
  0xa5   : > { %v350_v10 = vsel %vm1487_vm13, %v331_v7, 0  ;;  %v1531_v11 = vsel %vm1520_vm5, %v415_v8, 0  ;;  %vm298_vm13 = vcmp.ne.s32.totalorder %v294_v17, %v1422_v18  ;;  %v404_v40 = vsel %vm1545_vm15, %v385_v32, 0  ;;  %v1138_v7 = vld [vmem:[#allocation6 + $0x4] sm:$0xf] }
  0xa6   : > { %583 = vmatpush.bf16.msra.mxu0 %v350_v10  ;;  %1177 = vmatpush.bf16.msra.mxu3 %v350_v10  ;;  %vm1562_vm0 = vmpackc.low %vm299_vm14, %vm298_vm13  ;;  %v1148_v10 = vld [vmem:[#allocation6 + $0x50] sm:$0xf0] }
  0xa7   : > { %1184 = vmatpush.bf16.msra.mxu1 %v1531_v11 }
  0xac   : > { %v306_v21 = vpop.permute.xlu0 %305  ;;  %v413_v22 = vpop.permute.xlu1 %412 }
  0xad   : > { %v324_v25 = vsel %vm322_vm10, %v306_v21, 0  ;;  %v1538_v26 = vsel %vm1520_vm5, %v413_v22, 0 }
  0xae   : > { %584 = vmatpush.bf16.msra.mxu0 %v324_v25  ;;  %1178 = vmatpush.bf16.msra.mxu3 %v324_v25 }
  0xaf   : > { %1185 = vmatpush.bf16.msra.mxu1 %v1538_v26 }
  0xb2   : > { %585 = vmatpush.bf16.msra.mxu0 %v323_v27  ;;  %1179 = vmatpush.bf16.msra.mxu3 %v323_v27 }
  0xb3   : > { %1127 = vmatmul.msk.bf16.gmra.mxu2 %vm567_vm2, %v1112_v28 }
  0xb4   : > { %v387_v33 = vpop.permute.xlu0 %386  ;;  %v284_v34 = vpop.permute.xlu1 %283 }
  0xb5   : > { %v405_v36 = vsel %vm1545_vm15, %v387_v33, 0  ;;  %v302_v37 = vsel %vm1562_vm0, %v284_v34, 0 }
  0xb6   : > { %1186 = vmatpush.bf16.msra.mxu1 %v405_v36  ;;  %586 = vmatpush.bf16.msra.mxu0 %v302_v37 }
  0xb7   : > { %1180 = vmatpush.bf16.msra.mxu3 %v302_v37 }
  0xba   : > { %1187 = vmatpush.bf16.msra.mxu1 %v404_v40 }
  0xbc   : > { %v282_v54 = vpop.permute.xlu0 %281 }
  0xbd   : > { %v301_v55 = vsel %vm1562_vm0, %v282_v54, 0 }
  0xbe   : > { %587 = vmatpush.bf16.msra.mxu0 %v301_v55  ;;  %1181 = vmatpush.bf16.msra.mxu3 %v301_v55 }
  0xbf   : > { %1188 = vmatpush.bf16.msra.mxu1 %v488_v50 }
  0xc1   : > { %593 = vmatmul.bf16.vlgmr.msra.gmra.mxu3 %v1092_v56  ;;  %588 = vmatmul.bf16.vlgmr.msra.gmra.mxu0 %v1080_v57 }
  0xc2   : > { %609 = vmatpush.bf16.msrb.mxu0 %v1476_v49  ;;  %v1104_v49 = vor.u32 %v1145_v2, %v1103_v1 }
  0xc3   : > { %1189 = vmatpush.bf16.msra.mxu1 %v487_v60  ;;  %1128 = vmatmul.msk.bf16.gmra.mxu2 %vm567_vm2, %v1124_v63 }
  0xc6   : > { %610 = vmatpush.bf16.msrb.mxu0 %v1479_v51  ;;  %622 = vmatmul.bf16.vlgmr.msra.gmra.mxu1 %v1096_v0  ;;  %v1081_v51 = vld [vmem:[#allocation6 + $0xc] sm:$0xf0] }
  0xc7   : > { %v1084_v8 = vor.u32 %v1138_v7, %v1081_v51 }
  0xca   : > { %611 = vmatpush.bf16.msrb.mxu0 %v1531_v11  ;;  %v1116_v11 = vor.u32 %v1148_v10, %v1115_v9 }
  0xce   : > { %612 = vmatpush.bf16.msrb.mxu0 %v1538_v26 }
  0xd1   : > { %598 = vmatmul.bf16.gmra.mxu3 %v1104_v49 }
  0xd2   : > { %613 = vmatpush.bf16.msrb.mxu0 %v405_v36 }
  0xd6   : > { %614 = vmatpush.bf16.msrb.mxu0 %v404_v40  ;;  %627 = vmatmul.bf16.gmra.mxu1 %v1108_v6 }
  0xda   : > { %615 = vmatpush.bf16.msrb.mxu0 %v488_v50 }
  0xde   : > { %616 = vmatpush.bf16.msrb.mxu0 %v487_v60 }
  0xe1   : > { %617 = vmatmul.bf16.vlgmr.msrb.gmra.mxu0 %v1084_v8  ;;  %603 = vmatmul.bf16.gmra.mxu3 %v1116_v11 }
  0xe6   : > { %632 = vmatmul.bf16.gmra.mxu1 %v1120_v14 }
 0x115   : > { %v647_v16 = vpop.f32.mrf.mxu2 }
 0x11d   : > { %v649_v15 = vpop.f32.mrf.mxu2 }
 0x126   : > { %v652_v17 = vpop.f32.mrf.mxu2 }
 0x12e   : > { %v654_v23 = vpop.f32.mrf.mxu2 }
 0x136   : > { %v657_v30 = vpop.f32.mrf.mxu2 }
 0x13e   : > { %v589_v25 = vpop.f32.mrf.mxu0  ;;  %v659_v34 = vpop.f32.mrf.mxu2 }
 0x143   : > { %v623_v20 = vpop.f32.mrf.mxu1 }
 0x144   : > { %v594_v21 = vpop.f32.mrf.mxu3 }
 0x145   : > { %v624_v22 = vadd.f32 %v623_v20, %v594_v21 }
 0x146   : > { %v591_v31 = vpop.f32.mrf.mxu0  ;;  %v662_v43 = vpop.f32.mrf.mxu2 }
 0x147   : > { %v1594_v24 = vadd.f32 %v652_v17, %v624_v22 }
 0x14b   : > { %v625_v26 = vpop.f32.mrf.mxu1 }
 0x14c   : > { %v596_v27 = vpop.f32.mrf.mxu3 }
 0x14d   : > { %v626_v28 = vadd.f32 %v625_v26, %v596_v27 }
 0x14e   : > { %v664_v54 = vpop.f32.mrf.mxu2 }
 0x14f   : > { %v1596_v29 = vadd.f32 %v654_v23, %v626_v28 }
 0x153   : > { %v628_v18 = vpop.f32.mrf.mxu1 }
 0x154   : > { %v599_v19 = vpop.f32.mrf.mxu3 }
 0x155   : > { %v629_v32 = vadd.f32 %v628_v18, %v599_v19 }
 0x157   : > { %v1598_v33 = vadd.f32 %v657_v30, %v629_v32 }
 0x15b   : > { %v630_v35 = vpop.f32.mrf.mxu1 }
 0x15c   : > { %v601_v37 = vpop.f32.mrf.mxu3 }
 0x15d   : > { %v631_v38 = vadd.f32 %v630_v35, %v601_v37 }
 0x15e   : > { %v618_v4 = vpop.f32.mrf.mxu0 }
 0x15f   : > { %v619_v36 = vadd.f32 %v618_v4, %v589_v25  ;;  %v1602_v40 = vadd.f32 %v659_v34, %v631_v38 }
 0x161   : > { %v1600_v39 = vadd.f32 %v647_v16, %v619_v36 }
 0x163   : > { %v633_v41 = vpop.f32.mrf.mxu1 }
 0x164   : > { %v604_v45 = vpop.f32.mrf.mxu3 }
 0x165   : > { %v634_v46 = vadd.f32 %v633_v41, %v604_v45 }
 0x166   : > { %v620_v42 = vpop.f32.mrf.mxu0 }
 0x167   : > { %v621_v44 = vadd.f32 %v620_v42, %v591_v31  ;;  %v1606_v48 = vadd.f32 %v662_v43, %v634_v46 }
 0x169   : > { %v1604_v47 = vadd.f32 %v649_v15, %v621_v44 }
 0x16b   : > { %v635_v50 = vpop.f32.mrf.mxu1  ;;  %669 = sbr.rel (%p1129_p8) target bundleno = 527 (0x20f), region = 48 }
 0x16c   : > { %v606_v52 = vpop.f32.mrf.mxu3 }
 0x16d   : > { %v636_v53 = vadd.f32 %v635_v50, %v606_v52 }
 0x16f   : > { %v1608_v55 = vadd.f32 %v664_v54, %v636_v53 }
 0x170   : > { %678 = vadd.xlane.f32.xlu0 %v1600_v39  ;;  %686 = vadd.xlane.f32.xlu2 %v1598_v33  ;;  %v718_v56 = vmul.f32 %v1600_v39, %v1600_v39  ;;  %v719_v57 = vmul.f32 %v1604_v47, %v1604_v47  ;;  %v721_v58 = vmul.f32 %v1596_v29, %v1596_v29  ;;  %v670_v0 = vld [vmem:[#allocation2] sm:$0xff]  ;;  %v672_v2 = vld [vmem:[#allocation2 + $0x10] sm:$0xff]  ;;  %v671_v8 = vld [vmem:[#allocation2 + $0x8] sm:$0xff] }
 0x171   : > { %682 = vadd.xlane.f32.xlu1 %v1594_v24  ;;  %v720_v59 = vmul.f32 %v1594_v24, %v1594_v24  ;;  %v722_v60 = vmul.f32 %v1598_v33, %v1598_v33  ;;  %v724_v61 = vmul.f32 %v1606_v48, %v1606_v48  ;;  %v723_v62 = vmul.f32 %v1602_v40, %v1602_v40  ;;  %v674_v1 = vld [vmem:[#allocation2 + $0x20] sm:$0xff]  ;;  %v675_v9 = vld [vmem:[#allocation2 + $0x28] sm:$0xff]  ;;  %v673_v10 = vld [vmem:[#allocation2 + $0x18] sm:$0xff] }
 0x172   : > { %v725_v63 = vmul.f32 %v1608_v55, %v1608_v55  ;;  %v676_v17 = vld [vmem:[#allocation2 + $0x30] sm:$0xff]  ;;  %v710_v20 = vld [vmem:[#allocation3] sm:$0xff]  ;;  %v677_v21 = vld [vmem:[#allocation2 + $0x38] sm:$0xff] }
 0x173   : > { %v711_v30 = vld [vmem:[#allocation3 + $0x8] sm:$0xff]  ;;  %v713_v31 = vld [vmem:[#allocation3 + $0x18] sm:$0xff]  ;;  %v712_v18 = vld [vmem:[#allocation3 + $0x10] sm:$0xff] }
 0x174   : > { %v714_v37 = vld [vmem:[#allocation3 + $0x20] sm:$0xff]  ;;  %v716_v38 = vld [vmem:[#allocation3 + $0x30] sm:$0xff]  ;;  %v715_v41 = vld [vmem:[#allocation3 + $0x28] sm:$0xff] }
 0x175   : > { %v717_v52 = vld [vmem:[#allocation3 + $0x38] sm:$0xff] }
 0x178   : > { %680 = vadd.xlane.f32.xlu0 %v1604_v47  ;;  %688 = vadd.xlane.f32.xlu2 %v1602_v40 }
 0x179   : > { %684 = vadd.xlane.f32.xlu1 %v1596_v29 }
 0x180   : > { %690 = vadd.xlane.f32.xlu0 %v1606_v48  ;;  %726 = vadd.xlane.f32.xlu2 %v718_v56 }
 0x181   : > { %692 = vadd.xlane.f32.xlu1 %v1608_v55 }
 0x188   : > { %728 = vadd.xlane.f32.xlu0 %v719_v57  ;;  %732 = vadd.xlane.f32.xlu2 %v721_v58 }
 0x189   : > { %730 = vadd.xlane.f32.xlu1 %v720_v59 }
 0x190   : > { %734 = vadd.xlane.f32.xlu0 %v722_v60  ;;  %738 = vadd.xlane.f32.xlu2 %v724_v61 }
 0x191   : > { %736 = vadd.xlane.f32.xlu1 %v723_v62 }
 0x198   : > { %740 = vadd.xlane.f32.xlu0 %v725_v63 }
 0x1e3   : > { %v679_v49 = vpop.xlane.xlu0 %678  ;;  %v687_v3 = vpop.xlane.xlu2 %686 }
 0x1e4   : > { %v694_v5 = vadd.f32 %v679_v49, %v670_v0  ;;  %v698_v6 = vadd.f32 %v687_v3, %v674_v1  ;;  %v683_v7 = vpop.xlane.xlu1 %682 }
 0x1e5   : > { %v696_v51 = vadd.f32 %v683_v7, %v672_v2 }
 0x1e6   : > { %702 = vst.msk [vmem:[#allocation2] sm:$0xff] %vm357_vm1, %v694_v5 }
 0x1e7   : > { %706 = vst.msk [vmem:[#allocation2 + $0x20] sm:$0xff] %vm357_vm1, %v698_v6 }
 0x1e8   : > { %704 = vst.msk [vmem:[#allocation2 + $0x10] sm:$0xff] %vm357_vm1, %v696_v51 }
 0x1eb   : > { %v681_v11 = vpop.xlane.xlu0 %680  ;;  %v689_v12 = vpop.xlane.xlu2 %688 }
 0x1ec   : > { %v695_v13 = vadd.f32 %v681_v11, %v671_v8  ;;  %v699_v14 = vadd.f32 %v689_v12, %v675_v9  ;;  %v685_v16 = vpop.xlane.xlu1 %684 }
 0x1ed   : > { %v697_v15 = vadd.f32 %v685_v16, %v673_v10 }
 0x1ee   : > { %703 = vst.msk [vmem:[#allocation2 + $0x8] sm:$0xff] %vm357_vm1, %v695_v13 }
 0x1ef   : > { %707 = vst.msk [vmem:[#allocation2 + $0x28] sm:$0xff] %vm357_vm1, %v699_v14 }
 0x1f0   : > { %705 = vst.msk [vmem:[#allocation2 + $0x18] sm:$0xff] %vm357_vm1, %v697_v15 }
 0x1f3   : > { %v691_v22 = vpop.xlane.xlu0 %690  ;;  %v727_v23 = vpop.xlane.xlu2 %726 }
 0x1f4   : > { %v700_v25 = vadd.f32 %v691_v22, %v676_v17  ;;  %v693_v26 = vpop.xlane.xlu1 %692  ;;  %v742_v27 = vadd.f32 %v727_v23, %v710_v20 }
 0x1f5   : > { %v701_v28 = vadd.f32 %v693_v26, %v677_v21 }
 0x1f6   : > { %708 = vst.msk [vmem:[#allocation2 + $0x30] sm:$0xff] %vm357_vm1, %v700_v25 }
 0x1f7   : > { %709 = vst.msk [vmem:[#allocation2 + $0x38] sm:$0xff] %vm357_vm1, %v701_v28 }
 0x1f8   : > { %750 = vst.msk [vmem:[#allocation3] sm:$0xff] %vm357_vm1, %v742_v27 }
 0x1fb   : > { %v729_v19 = vpop.xlane.xlu0 %728  ;;  %v733_v32 = vpop.xlane.xlu2 %732 }
 0x1fc   : > { %v743_v34 = vadd.f32 %v729_v19, %v711_v30  ;;  %v731_v35 = vpop.xlane.xlu1 %730  ;;  %v745_v4 = vadd.f32 %v733_v32, %v713_v31 }
 0x1fd   : > { %v744_v36 = vadd.f32 %v731_v35, %v712_v18 }
 0x1fe   : > { %751 = vst.msk [vmem:[#allocation3 + $0x8] sm:$0xff] %vm357_vm1, %v743_v34 }
 0x1ff   : > { %752 = vst.msk [vmem:[#allocation3 + $0x10] sm:$0xff] %vm357_vm1, %v744_v36 }
 0x200   : > { %753 = vst.msk [vmem:[#allocation3 + $0x18] sm:$0xff] %vm357_vm1, %v745_v4 }
 0x203   : > { %v735_v42 = vpop.xlane.xlu0 %734  ;;  %v739_v43 = vpop.xlane.xlu2 %738 }
 0x204   : > { %v746_v44 = vadd.f32 %v735_v42, %v714_v37  ;;  %v737_v45 = vpop.xlane.xlu1 %736  ;;  %v748_v46 = vadd.f32 %v739_v43, %v716_v38 }
 0x205   : > { %v747_v50 = vadd.f32 %v737_v45, %v715_v41 }
 0x206   : > { %754 = vst.msk [vmem:[#allocation3 + $0x20] sm:$0xff] %vm357_vm1, %v746_v44 }
 0x207   : > { %755 = vst.msk [vmem:[#allocation3 + $0x28] sm:$0xff] %vm357_vm1, %v747_v50 }
 0x208   : > { %756 = vst.msk [vmem:[#allocation3 + $0x30] sm:$0xff] %vm357_vm1, %v748_v46 }
 0x20b   : > { %v741_v53 = vpop.xlane.xlu0 %740 }
 0x20c   : > { %v749_v54 = vadd.f32 %v741_v53, %v717_v52 }
 0x20e   : > { %757 = vst.msk [vmem:[#allocation3 + $0x38] sm:$0xff] %vm357_vm1, %v749_v54 }
 0x20f PF: > { %p758_p9 = scmp.eq.s32.totalorder %s1293_s15, 1 }
 0x210   : > { %v763_v56 = vld [vmem:[#allocation2] sm:$0xff] (%p758_p9)  ;;  %v765_v57 = vld [vmem:[#allocation2 + $0x10] sm:$0xff] (%p758_p9)  ;;  %v764_v49 = vld [vmem:[#allocation2 + $0x8] sm:$0xff] (%p758_p9) }
 0x211   : > { %762 = sbr.rel (!%p758_p9) target bundleno = 581 (0x245), region = 52  ;;  %v767_v58 = vld [vmem:[#allocation2 + $0x20] sm:$0xff] (%p758_p9)  ;;  %v773_v60 = vld [vmem:[#allocation3 + $0x10] sm:$0xff] (%p758_p9)  ;;  %v779_v61 = vadd.f32 (%p758_p9), %v765_v57, %v763_v56  ;;  %v766_v3 = vld [vmem:[#allocation2 + $0x18] sm:$0xff] (%p758_p9) }
 0x212   : > { %v771_v59 = vld [vmem:[#allocation3] sm:$0xff] (%p758_p9)  ;;  %v769_v62 = vld [vmem:[#allocation2 + $0x30] sm:$0xff] (%p758_p9)  ;;  %v768_v5 = vld [vmem:[#allocation2 + $0x28] sm:$0xff] (%p758_p9)  ;;  %v780_v8 = vadd.f32 (%p758_p9), %v766_v3, %v764_v49 }
 0x213   : > { %v775_v63 = vld [vmem:[#allocation3 + $0x20] sm:$0xff] (%p758_p9)  ;;  %v777_v0 = vld [vmem:[#allocation3 + $0x30] sm:$0xff] (%p758_p9)  ;;  %v785_v1 = vadd.f32 (%p758_p9), %v773_v60, %v771_v59  ;;  %v781_v2 = vadd.f32 (%p758_p9), %v779_v61, %v767_v58  ;;  %v772_v7 = vld [vmem:[#allocation3 + $0x8] sm:$0xff] (%p758_p9) }
 0x214   : > { %v774_v51 = vld [vmem:[#allocation3 + $0x18] sm:$0xff] (%p758_p9)  ;;  %v776_v11 = vld [vmem:[#allocation3 + $0x28] sm:$0xff] (%p758_p9)  ;;  %v782_v16 = vadd.f32 (%p758_p9), %v780_v8, %v768_v5  ;;  %v801_v44 = vld [vmem:[%s1712_s2] sm:$0xff] (%p758_p9) }
 0x215   : > { %v787_v6 = vadd.f32 (%p758_p9), %v785_v1, %v775_v63  ;;  %v783_v9 = vadd.f32 (%p758_p9), %v781_v2, %v769_v62  ;;  %v770_v10 = vld [vmem:[#allocation2 + $0x38] sm:$0xff] (%p758_p9)  ;;  %v786_v12 = vadd.f32 (%p758_p9), %v774_v51, %v772_v7  ;;  %v802_v53 = vld [vmem:[%s1712_s2 + $0x8] sm:$0xff] (%p758_p9)  ;;  %v827_v59 = vld [vmem:[%s1713_s3] sm:$0xff] (%p758_p9) }
 0x216   : > { %v778_v14 = vld [vmem:[#allocation3 + $0x38] sm:$0xff]  ;;  %v784_v21 = vadd.f32 %v782_v16, %v770_v10  ;;  %v828_v62 = vld [vmem:[%s1713_s3 + $0x8] sm:$0xff] }
 0x217   : > { %v789_v13 = vadd.f32 %v787_v6, %v777_v0  ;;  %v791_v15 = vmul.f32 0.0078125, %v783_v9  ;;  %v788_v17 = vadd.f32 %v786_v12, %v776_v11 }
 0x218   : > { %v792_v25 = vmul.f32 0.0078125, %v784_v21 }
 0x219   : > { %v793_v20 = vmul.f32 0.0078125, %v789_v13  ;;  %v795_v22 = vmul.f32 %v791_v15, %v791_v15  ;;  %v790_v23 = vadd.f32 %v788_v17, %v778_v14 }
 0x21a   : > { %v796_v28 = vmul.f32 %v792_v25, %v792_v25 }
 0x21b   : > { %v797_v26 = vsub.f32 %v793_v20, %v795_v22  ;;  %v794_v27 = vmul.f32 0.0078125, %v790_v23 }
 0x21d   : > { %v799_v30 = vmax.f32 %v797_v26, 0.0  ;;  %v798_v31 = vsub.f32 %v794_v27, %v796_v28 }
 0x21f   : > { %v803_v18 = vadd.f32 1e-05, %v799_v30  ;;  %v800_v19 = vmax.f32 %v798_v31, 0.0 }
 0x221   : > { %1238 = vrsqrt.f32 %v803_v18  ;;  %v804_v32 = vadd.f32 1e-05, %v800_v19  ;;  %vm811_vm4 = vweird.f32 %v803_v18 }
 0x223   : > { %1240 = vrsqrt.f32 %v804_v32  ;;  %vm821_vm6 = vweird.f32 %v804_v32 }
 0x227   : > { %v1239_v34 = vpop.eup %1238 }
 0x228   : > { %v806_v35 = vmul.f32 %v1239_v34, %v803_v18  ;;  %vm812_vm2 = vweird.f32 %v1239_v34 }
 0x229   : > { %v1241_v4 = vpop.eup %1240  ;;  %vm813_vm3 = vmor %vm811_vm4, %vm812_vm2 }
 0x22a   : > { %v807_v36 = vmul.f32 %v1239_v34, %v806_v35  ;;  %v816_v37 = vmul.f32 %v1241_v4, %v804_v32  ;;  %vm822_vm5 = vweird.f32 %v1241_v4 }
 0x22b   : > { %vm823_vm7 = vmor %vm821_vm6, %vm822_vm5 }
 0x22c   : > { %v808_v38 = vmul.f32 0.5, %v807_v36  ;;  %v817_v41 = vmul.f32 %v1241_v4, %v816_v37 }
 0x22e   : > { %v809_v42 = vsub.f32 1.5, %v808_v38  ;;  %v818_v43 = vmul.f32 0.5, %v817_v41 }
 0x230   : > { %v810_v45 = vmul.f32 %v1239_v34, %v809_v42  ;;  %v819_v46 = vsub.f32 1.5, %v818_v43 }
 0x232   : > { %v814_v50 = vsel %vm813_vm3, %v1239_v34, %v810_v45  ;;  %v820_v54 = vmul.f32 %v1241_v4, %v819_v46 }
 0x233   : > { %v825_v52 = vmul.f32 %v814_v50, %v801_v44 }
 0x234   : > { %v824_v56 = vsel %vm823_vm7, %v1241_v4, %v820_v54 }
 0x235   : > { %833 = vst.msk [vmem:[#allocation4] sm:$0xff] %vm357_vm1, %v825_v52  ;;  %v829_v57 = vmul.f32 %v825_v52, %v791_v15  ;;  %v826_v58 = vmul.f32 %v824_v56, %v802_v53 }
 0x236   : > { %837 = vst.msk [vmem:[#allocation4 + $0x10] sm:$0xff] %vm357_vm1, %v825_v52 }
 0x237   : > { %841 = vst.msk [vmem:[#allocation4 + $0x20] sm:$0xff] %vm357_vm1, %v825_v52  ;;  %v831_v60 = vsub.f32 %v827_v59, %v829_v57  ;;  %v830_v61 = vmul.f32 %v826_v58, %v792_v25 }
 0x238   : > { %845 = vst.msk [vmem:[#allocation4 + $0x30] sm:$0xff] %vm357_vm1, %v825_v52 }
 0x239   : > { %834 = vst.msk [vmem:[#allocation4 + $0x8] sm:$0xff] %vm357_vm1, %v826_v58  ;;  %v832_v63 = vsub.f32 %v828_v62, %v830_v61 }
 0x23a   : > { %838 = vst.msk [vmem:[#allocation4 + $0x18] sm:$0xff] %vm357_vm1, %v826_v58 }
 0x23b   : > { %842 = vst.msk [vmem:[#allocation4 + $0x28] sm:$0xff] %vm357_vm1, %v826_v58 }
 0x23c   : > { %846 = vst.msk [vmem:[#allocation4 + $0x38] sm:$0xff] %vm357_vm1, %v826_v58 }
 0x23d   : > { %835 = vst.msk [vmem:[#allocation5] sm:$0xff] %vm357_vm1, %v831_v60 }
 0x23e   : > { %839 = vst.msk [vmem:[#allocation5 + $0x10] sm:$0xff] %vm357_vm1, %v831_v60 }
 0x23f   : > { %843 = vst.msk [vmem:[#allocation5 + $0x20] sm:$0xff] %vm357_vm1, %v831_v60 }
 0x240   : > { %847 = vst.msk [vmem:[#allocation5 + $0x30] sm:$0xff] %vm357_vm1, %v831_v60 }
 0x241   : > { %836 = vst.msk [vmem:[#allocation5 + $0x8] sm:$0xff] %vm357_vm1, %v832_v63 }
 0x242   : > { %840 = vst.msk [vmem:[#allocation5 + $0x18] sm:$0xff] %vm357_vm1, %v832_v63 }
 0x243   : > { %844 = vst.msk [vmem:[#allocation5 + $0x28] sm:$0xff] %vm357_vm1, %v832_v63 }
 0x244   : > { %848 = vst.msk [vmem:[#allocation5 + $0x38] sm:$0xff] %vm357_vm1, %v832_v63 }
 0x245 PF: > { %p1131_p10 = scmp.ne.s32.totalorder %s1293_s15, 1 }
 0x247   : > { %851 = sbr.rel (%p1131_p10) target bundleno = 753 (0x2f1), region = 56 }
 0x24c   : > { %v856_v0 = vld [vmem:[#allocation4 + $0x20] sm:$0xff]  ;;  %v854_v1 = vld [vmem:[#allocation4 + $0x10] sm:$0xff]  ;;  %v1316_v49 = vmov 0   ;;  %v857_v3 = vld [vmem:[#allocation4 + $0x28] sm:$0xff] }
 0x24d   : > { %v852_v2 = vld [vmem:[#allocation4] sm:$0xff]  ;;  %1244 = vset.pattern.permute.xlu2 %v1316_v49  ;;  %1243 = vset.pattern.permute.xlu1 %v1316_v49  ;;  %v855_v5 = vld [vmem:[#allocation4 + $0x18] sm:$0xff]  ;;  %v853_v6 = vld [vmem:[#allocation4 + $0x8] sm:$0xff] }
 0x24e   : > { %1242 = vset.pattern.permute.xlu0 %v1316_v49  ;;  %882 = vperm.xlu2 %1244, %v856_v0   ;;  %v908_v7 = vld [vmem:[#allocation5] sm:$0xff]  ;;  %v859_v51 = vld [vmem:[#allocation4 + $0x38] sm:$0xff]  ;;  %v858_v8 = vld [vmem:[#allocation4 + $0x30] sm:$0xff] }
 0x24f   : > { %872 = vperm.xlu1 %1243, %v854_v1   ;;  %862 = vperm.xlu0 %1242, %v852_v2   ;;  %v911_v9 = vld [vmem:[#allocation5 + $0x18] sm:$0xff]  ;;  %v910_v10 = vld [vmem:[#allocation5 + $0x10] sm:$0xff]  ;;  %v909_v11 = vld [vmem:[#allocation5 + $0x8] sm:$0xff] }
 0x250   : > { %v914_v12 = vld [vmem:[#allocation5 + $0x30] sm:$0xff]  ;;  %v913_v13 = vld [vmem:[#allocation5 + $0x28] sm:$0xff]  ;;  %v912_v14 = vld [vmem:[#allocation5 + $0x20] sm:$0xff] }
 0x251   : > { %v915_v16 = vld [vmem:[#allocation5 + $0x38] sm:$0xff] }
 0x256   : > { %887 = vperm.xlu2 %1244, %v857_v3  }
 0x257   : > { %877 = vperm.xlu1 %1243, %v855_v5   ;;  %867 = vperm.xlu0 %1242, %v853_v6  }
 0x25e   : > { %918 = vperm.xlu2 %1244, %v908_v7  }
 0x25f   : > { %897 = vperm.xlu1 %1243, %v859_v51   ;;  %892 = vperm.xlu0 %1242, %v858_v8  }
 0x266   : > { %933 = vperm.xlu2 %1244, %v911_v9  }
 0x267   : > { %928 = vperm.xlu1 %1243, %v910_v10   ;;  %923 = vperm.xlu0 %1242, %v909_v11  }
 0x26e   : > { %948 = vperm.xlu2 %1244, %v914_v12  }
 0x26f   : > { %943 = vperm.xlu1 %1243, %v913_v13   ;;  %938 = vperm.xlu0 %1242, %v912_v14  }
 0x277   : > { %953 = vperm.xlu0 %1242, %v915_v16  }
 0x2a8   : > { %v883_v15 = vpop.permute.xlu2 %882 }
 0x2b0   : > { %v888_v21 = vpop.permute.xlu2 %887 }
 0x2b8   : > { %v919_v25 = vpop.permute.xlu2 %918 }
 0x2c0   : > { %v934_v31 = vpop.permute.xlu2 %933 }
 0x2c1   : > { %v873_v17 = vpop.permute.xlu1 %872  ;;  %v863_v20 = vpop.permute.xlu0 %862 }
 0x2c2   : > { %v900_v28 = vmul.f32 %v863_v20, %v1600_v39  ;;  %v902_v18 = vmul.f32 %v873_v17, %v1594_v24  ;;  %v904_v39 = vmul.f32 %v883_v15, %v1598_v33 }
 0x2c4   : > { %v956_v19 = vadd.f32 %v919_v25, %v900_v28 }
 0x2c6   : > { %v964_v38 = vmax.f32 %v956_v19, 0.0 }
 0x2c8   : > { %v949_v33 = vpop.permute.xlu2 %948 }
 0x2c9   : > { %v878_v22 = vpop.permute.xlu1 %877  ;;  %v868_v23 = vpop.permute.xlu0 %867 }
 0x2ca   : > { %v903_v30 = vmul.f32 %v878_v22, %v1596_v29  ;;  %v901_v34 = vmul.f32 %v868_v23, %v1604_v47  ;;  %v905_v29 = vmul.f32 %v888_v21, %v1602_v40 }
 0x2cc   : > { %v959_v32 = vadd.f32 %v934_v31, %v903_v30 }
 0x2ce   : > { %v967_v41 = vmax.f32 %v959_v32, 0.0 }
 0x2d1   : > { %v898_v26 = vpop.permute.xlu1 %897  ;;  %v893_v27 = vpop.permute.xlu0 %892 }
 0x2d2   : > { %v906_v52 = vmul.f32 %v893_v27, %v1606_v48  ;;  %v907_v40 = vmul.f32 %v898_v26, %v1608_v55 }
 0x2d4   : > { %v962_v57 = vadd.f32 %v949_v33, %v906_v52 }
 0x2d6   : > { %v970_v60 = vmax.f32 %v962_v57, 0.0 }
 0x2d9   : > { %v929_v35 = vpop.permute.xlu1 %928  ;;  %v924_v4 = vpop.permute.xlu0 %923 }
 0x2da   : > { %v958_v36 = vadd.f32 %v929_v35, %v902_v18  ;;  %v957_v37 = vadd.f32 %v924_v4, %v901_v34 }
 0x2dc   : > { %v966_v42 = vmax.f32 %v958_v36, 0.0  ;;  %v965_v43 = vmax.f32 %v957_v37, 0.0 }
 0x2de   : > { %v1159_v44 = vpack.c.bf16 %v967_v41, %v966_v42  ;;  %v1154_v45 = vpack.c.bf16 %v965_v43, %v964_v38 }
 0x2e0   : > { %1171 = vst [vmem:[%s1714_s4 + $0x8] sm:$0xff] %v1159_v44  }
 0x2e1   : > { %1155 = vst [vmem:[%s1714_s4] sm:$0xff] %v1154_v45   ;;  %v944_v24 = vpop.permute.xlu1 %943  ;;  %v939_v47 = vpop.permute.xlu0 %938 }
 0x2e2   : > { %v961_v46 = vadd.f32 %v944_v24, %v905_v29  ;;  %v960_v50 = vadd.f32 %v939_v47, %v904_v39 }
 0x2e4   : > { %v969_v53 = vmax.f32 %v961_v46, 0.0  ;;  %v968_v54 = vmax.f32 %v960_v50, 0.0 }
 0x2e6   : > { %v1164_v56 = vpack.c.bf16 %v969_v53, %v968_v54 }
 0x2e8   : > { %1172 = vst [vmem:[%s1714_s4 + $0x10] sm:$0xff] %v1164_v56  }
 0x2e9   : > { %v954_v58 = vpop.permute.xlu0 %953 }
 0x2ea   : > { %v963_v59 = vadd.f32 %v954_v58, %v907_v40 }
 0x2ec   : > { %v971_v61 = vmax.f32 %v963_v59, 0.0 }
 0x2ee   : > { %v1169_v62 = vpack.c.bf16 %v971_v61, %v970_v60 }
 0x2f0   : > { %1173 = vst [vmem:[%s1714_s4 + $0x18] sm:$0xff] %v1169_v62  }
 0x2f1 PF: > { %s15_s17 = sadd.s32 1, %s1301_s17   ;;  %s1741_s15 = smov %s1297_s16 }
 0x2f2   : > { %p12_p11 = scmp.ge.s32.totalorder %s15_s17, 4   ;;  %s1742_s16 = smov %s1744_s19 }
 0x2f4   :  { %14 = sbr.rel (!%p12_p11) target bundleno = 2 (0x2), region = 87 }
 0x2f9   :  { %1007 = vsyncpa [#allocation7], 1 }
 0x2fa   :  { %1009 = vsyncpa [#allocation7 + $0x1], 1 }

// kernel: generator_forward.6
= control target key start
LH: loop header
LB: loop body
LE: loop exit
PB: predicated region body
PF: predicated region fallthrough
CT: control target
= control target key end

     0   :  { %s2193_s15 = smov 0   ;;  %s2195_s16 = smov 0   ;;  %s3134_s0 = inlined_call_operand.vmem [shape: bf16[64,128], index: 0, kind: input, shape index: {}]   ;;  %s3135_s1 = inlined_call_operand.vmem [shape: bf16[128,576], index: 1, kind: input, shape index: {}]   ;;  %s3136_s2 = inlined_call_operand.vmem [shape: f32[32,1], index: 2, kind: input, shape index: {}]   ;;  %s3137_s3 = inlined_call_operand.vmem [shape: f32[32,1], index: 3, kind: input, shape index: {}]   ;;  %s3138_s4 = inlined_call_operand.vmem [shape: bf16[128,128], index: 4, kind: output, shape index: {}]  }
   0x1   :  { %s2197_s17 = smov 0  }
   0x2 LB: > { %s26_s18 = sadd.s32 1, %s2153_s16  ;;  %p1782_p0 = scmp.ge.s32.totalorder %s2157_s17, 1  ;;  %s2157_s17 = sphi %s2197_s17, %s14_s17   ;;  %s2153_s16 = sphi %s2195_s16, %s3176_s16   ;;  %s2149_s15 = sphi %s2193_s15, %s3175_s15  }
   0x3   : > { %p28_p1 = scmp.ge.s32.totalorder %s26_s18, 2  ;;  %p173_p2 = scmp.lt.s32.totalorder %s2157_s17, 3 }
   0x5   : > { %s3178_s18 = smov (%p28_p1, %s26_s18), 0  ;;  %p174_p3 = pnand %p1782_p0, %p173_p2 }
   0x6   : > { %p208_p4 = scmp.eq.s32.totalorder (!%p174_p3), %s2149_s15, 0 }
   0x7   : > { %177 = sbr.rel (%p174_p3) target bundleno = 971 (0x3cb), region = 36 }
   0xc   : > { %213 = sbr.rel (!%p208_p4) target bundleno = 45 (0x2d), region = 40  ;;  %vm214_vm0 = vcmask (%p208_p4), 7168   ;;  %v2159_v0 = vmov (%p208_p4), 0.0  }
   0xd   : > { %215 = vst.msk [vmem:[#allocation2] sm:$0xff] (%p208_p4), %vm214_vm0, %v2159_v0 }
   0xe   : > { %216 = vst.msk [vmem:[#allocation2 + $0x8] sm:$0xff] (%p208_p4), %vm214_vm0, %v2159_v0 }
   0xf   : > { %217 = vst.msk [vmem:[#allocation2 + $0x10] sm:$0xff] (%p208_p4), %vm214_vm0, %v2159_v0 }
  0x10   : > { %218 = vst.msk [vmem:[#allocation2 + $0x18] sm:$0xff] (%p208_p4), %vm214_vm0, %v2159_v0 }
  0x11   : > { %219 = vst.msk [vmem:[#allocation2 + $0x20] sm:$0xff] %vm214_vm0, %v2159_v0 }
  0x12   : > { %220 = vst.msk [vmem:[#allocation2 + $0x28] sm:$0xff] %vm214_vm0, %v2159_v0 }
  0x13   : > { %221 = vst.msk [vmem:[#allocation2 + $0x30] sm:$0xff] %vm214_vm0, %v2159_v0 }
  0x14   : > { %222 = vst.msk [vmem:[#allocation2 + $0x38] sm:$0xff] %vm214_vm0, %v2159_v0 }
  0x15   : > { %223 = vst.msk [vmem:[#allocation2 + $0x40] sm:$0xff] %vm214_vm0, %v2159_v0 }
  0x16   : > { %224 = vst.msk [vmem:[#allocation2 + $0x48] sm:$0xff] %vm214_vm0, %v2159_v0 }
  0x17   : > { %225 = vst.msk [vmem:[#allocation2 + $0x50] sm:$0xff] %vm214_vm0, %v2159_v0 }
  0x18   : > { %226 = vst.msk [vmem:[#allocation2 + $0x58] sm:$0xff] %vm214_vm0, %v2159_v0 }
  0x19   : > { %227 = vst.msk [vmem:[#allocation2 + $0x60] sm:$0xff] %vm214_vm0, %v2159_v0 }
  0x1a   : > { %228 = vst.msk [vmem:[#allocation2 + $0x68] sm:$0xff] %vm214_vm0, %v2159_v0 }
  0x1b   : > { %229 = vst.msk [vmem:[#allocation2 + $0x70] sm:$0xff] %vm214_vm0, %v2159_v0 }
  0x1c   : > { %230 = vst.msk [vmem:[#allocation2 + $0x78] sm:$0xff] %vm214_vm0, %v2159_v0 }
  0x1d   : > { %231 = vst.msk [vmem:[#allocation3] sm:$0xff] %vm214_vm0, %v2159_v0 }
  0x1e   : > { %232 = vst.msk [vmem:[#allocation3 + $0x8] sm:$0xff] %vm214_vm0, %v2159_v0 }
  0x1f   : > { %233 = vst.msk [vmem:[#allocation3 + $0x10] sm:$0xff] %vm214_vm0, %v2159_v0 }
  0x20   : > { %234 = vst.msk [vmem:[#allocation3 + $0x18] sm:$0xff] %vm214_vm0, %v2159_v0 }
  0x21   : > { %235 = vst.msk [vmem:[#allocation3 + $0x20] sm:$0xff] %vm214_vm0, %v2159_v0 }
  0x22   : > { %236 = vst.msk [vmem:[#allocation3 + $0x28] sm:$0xff] %vm214_vm0, %v2159_v0 }
  0x23   : > { %237 = vst.msk [vmem:[#allocation3 + $0x30] sm:$0xff] %vm214_vm0, %v2159_v0 }
  0x24   : > { %238 = vst.msk [vmem:[#allocation3 + $0x38] sm:$0xff] %vm214_vm0, %v2159_v0 }
  0x25   : > { %239 = vst.msk [vmem:[#allocation3 + $0x40] sm:$0xff] %vm214_vm0, %v2159_v0 }
  0x26   : > { %240 = vst.msk [vmem:[#allocation3 + $0x48] sm:$0xff] %vm214_vm0, %v2159_v0 }
  0x27   : > { %241 = vst.msk [vmem:[#allocation3 + $0x50] sm:$0xff] %vm214_vm0, %v2159_v0 }
  0x28   : > { %242 = vst.msk [vmem:[#allocation3 + $0x58] sm:$0xff] %vm214_vm0, %v2159_v0 }
  0x29   : > { %243 = vst.msk [vmem:[#allocation3 + $0x60] sm:$0xff] %vm214_vm0, %v2159_v0 }
  0x2a   : > { %244 = vst.msk [vmem:[#allocation3 + $0x68] sm:$0xff] %vm214_vm0, %v2159_v0 }
  0x2b   : > { %245 = vst.msk [vmem:[#allocation3 + $0x70] sm:$0xff] %vm214_vm0, %v2159_v0 }
  0x2c   : > { %246 = vst.msk [vmem:[#allocation3 + $0x78] sm:$0xff] %vm214_vm0, %v2159_v0 }
  0x2d PF: > { %v1978_v1 = vld [vmem:[%s3134_s0 + $0x18] sm:$0xff]  ;;  %v1976_v2 = vld [vmem:[%s3134_s0 + $0x8] sm:$0xff]  ;;  %s2160_s23 = smov 2   ;;  %s2161_s24 = smov 3   ;;  %v1977_v3 = vld [vmem:[%s3134_s0 + $0x10] sm:$0xff]  ;;  %v256_v5 = vlaneseq  ;;  %vm371_vm1 = vcmask 7168  }
  0x2e   : > { %332 = vrot.lane.b32.xlu0 %v1978_v1, %s2160_s23  ;;  %328 = vrot.lane.b32.xlu1 %v1976_v2, %s2160_s23  ;;  %v1975_v4 = vld [vmem:[%s3134_s0] sm:$0xff]  ;;  %s2162_s29 = smov 127   ;;  %s2163_s30 = smov 126   ;;  %v2166_v12 = vmov 0   ;;  %v1981_v23 = vld [vmem:[%s3135_s1 + $0x10] sm:$0xf0] }
  0x2f   : > { %300 = vrot.lane.b32.xlu2 %v1978_v1, %s2161_s24  ;;  %s2164_s5 = smov 1   ;;  %s2165_s6 = smov 125   ;;  %v2258_v6 = vand.u32 127, %v256_v5  ;;  %v2279_v18 = vunpack.c.l.b16 %v2166_v12  ;;  %v2282_v19 = vunpack.c.h.b16 %v2166_v12  ;;  %v1882_v11 = vld [vmem:[%s3135_s1 + $0xa0] sm:$0xf] }
  0x30   : > { %v253_v40 = vld [vmem:[%s3134_s0 + $0x18] sm:$0xf]  ;;  %p1968_p5 = scmp.ne.s32.totalorder %s2149_s15, 0 }
  0x31   : > { %v260_v7 = vand.u32 3, %v2258_v6  ;;  %vm263_vm4 = vcmp.lt.s32.totalorder %v2258_v6, 8 }
  0x33   : > { %v261_v8 = vshra.s32 %v260_v7, 1  ;;  %v262_v15 = vand.u32 1, %v260_v7 }
  0x35   : > { %v264_v9 = vadd.s32 4294967295, %v261_v8  ;;  %v2276_v17 = vadd.s32 4294967295, %v262_v15  ;;  %v2299_v27 = vadd.s32 1, %v262_v15  ;;  %v457_v29 = vadd.s32 1, %v261_v8  ;;  %v2011_v15 = vld [vmem:[%s3135_s1 + $0x100] sm:$0xf0] }
  0x36   : > { %330 = vrot.lane.b32.xlu0 %v1977_v3, %s2160_s23  ;;  %326 = vrot.lane.b32.xlu1 %v1975_v4, %s2160_s23 }
  0x37   : > { %298 = vrot.lane.b32.xlu2 %v1977_v3, %s2161_s24  ;;  %vm265_vm2 = vcmp.ge.s32.totalorder %v264_v9, 0  ;;  %vm266_vm3 = vcmp.lt.s32.totalorder %v264_v9, 2  ;;  %vm270_vm8 = vcmp.ge.s32.totalorder %v2276_v17, 0  ;;  %vm360_vm14 = vcmp.lt.s32.totalorder %v2299_v27, 2  ;;  %v1842_v9 = vld [vmem:[%s3135_s1 + $0x50] sm:$0xf] }
  0x38   : > { %vm267_vm5 = vmand %vm265_vm2, %vm266_vm3  ;;  %vm458_vm15 = vcmp.ge.s32.totalorder %v457_v29, 0  ;;  %vm459_vm0 = vcmp.lt.s32.totalorder %v457_v29, 2 }
  0x39   : > { %vm2266_vm6 = vmand %vm263_vm4, %vm267_vm5 }
  0x3a   : > { %vm344_vm7 = vmpackc.low %vm2266_vm6, %vm2266_vm6 }
  0x3b   : > { %v345_v13 = vsel %vm344_vm7, 65537, %v2166_v12  ;;  %vm273_vm11 = vmand %vm2266_vm6, %vm270_vm8 }
  0x3c   : > { %v346_v16 = vperm.slane %v345_v13, 0  ;;  %vm312_vm13 = vmpackc.low %vm273_vm11, %vm273_vm11  ;;  %v2001_v13 = vld [vmem:[%s3135_s1 + $0xb0] sm:$0xf0] }
  0x3d   : > { %v313_v28 = vsel %vm312_vm13, 65537, %v2166_v12  ;;  %vm2309_vm2 = vmand %vm263_vm4, %vm360_vm14  ;;  %v1883_v27 = vor.u32 %v2001_v13, %v1882_v11 }
  0x3e   : > { %296 = vrot.lane.b32.xlu0 %v1976_v2, %s2161_s24  ;;  %294 = vrot.lane.b32.xlu1 %v1975_v4, %s2161_s24  ;;  %v347_v20 = vunpack.c.l.b16 %v346_v16  ;;  %v348_v21 = vunpack.c.h.b16 %v346_v16  ;;  %v314_v31 = vperm.slane %v313_v28, 0  ;;  %vm460_vm3 = vmand %vm458_vm15, %vm459_vm0 }
  0x3f   : > { %431 = vrot.lane.b32.xlu2 %v1978_v1, %s2162_s29  ;;  %vm443_vm5 = vmpackc.low %vm2309_vm2, %vm2309_vm2 }
  0x40   : > { %vm351_vm9 = vcmp.ne.s32.totalorder %v347_v20, %v2279_v18  ;;  %vm352_vm10 = vcmp.ne.s32.totalorder %v348_v21, %v2282_v19  ;;  %v315_v36 = vunpack.c.l.b16 %v314_v31  ;;  %v316_v37 = vunpack.c.h.b16 %v314_v31  ;;  %vm2322_vm7 = vmand %vm263_vm4, %vm270_vm8  ;;  %v1802_v21 = vld [vmem:[%s3135_s1] sm:$0xf]  ;;  %v1994_v20 = vld [vmem:[%s3135_s1 + $0x7c] sm:$0xf] }
  0x41   : > { %vm2293_vm12 = vmpackc.low %vm352_vm10, %vm351_vm9  ;;  %v444_v41 = vsel %vm443_vm5, 65537, %v2166_v12 }
  0x42   : > { %vm2330_vm9 = vmand %vm263_vm4, %vm460_vm3  ;;  %vm319_vm10 = vcmp.ne.s32.totalorder %v315_v36, %v2279_v18  ;;  %vm320_vm11 = vcmp.ne.s32.totalorder %v316_v37, %v2282_v19  ;;  %v445_v48 = vperm.slane %v444_v41, 0  ;;  %v254_v41 = vld [vmem:[%s3134_s0 + $0x1c] sm:$0xf] }
  0x43   : > { %vm497_vm13 = vmpackc.low %vm2330_vm9, %vm2330_vm9 }
  0x44   : > { %vm399_vm15 = vmpackc.low %vm2322_vm7, %vm2322_vm7  ;;  %v498_v50 = vsel %vm497_vm13, 65537, %v2166_v12  ;;  %v446_v53 = vunpack.c.l.b16 %v445_v48  ;;  %v447_v54 = vunpack.c.h.b16 %v445_v48 }
  0x45   : > { %vm2351_vm0 = vmand %vm2330_vm9, %vm360_vm14  ;;  %v400_v49 = vsel %vm399_vm15, 65537, %v2166_v12  ;;  %v499_v56 = vperm.slane %v498_v50, 0 }
  0x46   : > { %485 = vrot.lane.b32.xlu0 %v1978_v1, %s2163_s30  ;;  %369 = vrot.lane.b32.xlu1 %v1978_v1, %s2164_s5  ;;  %vm2355_vm2 = vmpackc.low %vm320_vm11, %vm319_vm10  ;;  %v401_v52 = vperm.slane %v400_v49, 0  ;;  %vm450_vm5 = vcmp.ne.s32.totalorder %v446_v53, %v2279_v18  ;;  %vm451_vm7 = vcmp.ne.s32.totalorder %v447_v54, %v2282_v19  ;;  %v251_v53 = vld [vmem:[%s3134_s0 + $0x10] sm:$0xf]  ;;  %v252_v54 = vld [vmem:[%s3134_s0 + $0x14] sm:$0xf] }
  0x47   : > { %429 = vrot.lane.b32.xlu2 %v1977_v3, %s2162_s29  ;;  %vm530_vm3 = vmpackc.low %vm2351_vm0, %vm2351_vm0 }
  0x48   : > { %v531_v55 = vsel %vm530_vm3, 65537, %v2166_v12  ;;  %v402_v62 = vunpack.c.l.b16 %v401_v52  ;;  %v403_v63 = vunpack.c.h.b16 %v401_v52  ;;  %vm2403_vm10 = vmpackc.low %vm451_vm7, %vm450_vm5 }
  0x49   : > { %v532_v60 = vperm.slane %v531_v55, 0 }
  0x4b   : > { %v533_v5 = vunpack.c.l.b16 %v532_v60  ;;  %v534_v7 = vunpack.c.h.b16 %v532_v60 }
  0x4d   : > { %vm537_vm3 = vcmp.ne.s32.totalorder %v533_v5, %v2279_v18  ;;  %vm538_vm5 = vcmp.ne.s32.totalorder %v534_v7, %v2282_v19  ;;  %v249_v5 = vld [vmem:[%s3134_s0 + $0x8] sm:$0xf]  ;;  %v250_v7 = vld [vmem:[%s3134_s0 + $0xc] sm:$0xf] }
  0x4e   : > { %483 = vrot.lane.b32.xlu0 %v1977_v3, %s2163_s30  ;;  %367 = vrot.lane.b32.xlu1 %v1977_v3, %s2164_s5 }
  0x4f   : > { %427 = vrot.lane.b32.xlu2 %v1976_v2, %s2162_s29 }
  0x56   : > { %481 = vrot.lane.b32.xlu0 %v1976_v2, %s2163_s30  ;;  %365 = vrot.lane.b32.xlu1 %v1976_v2, %s2164_s5 }
  0x57   : > { %425 = vrot.lane.b32.xlu2 %v1975_v4, %s2162_s29 }
  0x5e   : > { %479 = vrot.lane.b32.xlu0 %v1975_v4, %s2163_s30  ;;  %363 = vrot.lane.b32.xlu1 %v1975_v4, %s2164_s5 }
  0x5f   : > { %518 = vrot.lane.b32.xlu2 %v1978_v1, %s2165_s6  ;;  %v500_v1 = vunpack.c.l.b16 %v499_v56 }
  0x61   : > { %vm504_vm13 = vcmp.ne.s32.totalorder %v500_v1, %v2279_v18  ;;  %v1996_v1 = vld [vmem:[%s3135_s1 + $0x88] sm:$0xf0] }
  0x66   : > { %516 = vrot.lane.b32.xlu0 %v1977_v3, %s2165_s6  ;;  %514 = vrot.lane.b32.xlu1 %v1976_v2, %s2165_s6  ;;  %v501_v2 = vunpack.c.h.b16 %v499_v56 }
  0x67   : > { %512 = vrot.lane.b32.xlu2 %v1975_v4, %s2165_s6  ;;  %v1902_v4 = vld [vmem:[%s3135_s1 + $0xc8] sm:$0xf] }
  0x68   : > { %vm505_vm15 = vcmp.ne.s32.totalorder %v501_v2, %v2282_v19 }
  0x69   : > { %vm2459_vm7 = vmpackc.low %vm505_vm15, %vm504_vm13 }
  0x89   : > { %v2262_v10 = vpop.permute.xlu2 %300 }
  0x8a   : > { %v325_v51 = vsel %vm2355_vm2, %v2262_v10, 0  ;;  %v1991_v10 = vld [vmem:[%s3135_s1 + $0x60] sm:$0xf0] }
  0x91   : > { %v2274_v14 = vpop.permute.xlu2 %298 }
  0x92   : > { %v324_v57 = vsel %vm2355_vm2, %v2274_v14, 0  ;;  %v1922_v14 = vld [vmem:[%s3135_s1 + $0xf0] sm:$0xf] }
  0x93   : > { %v1923_v28 = vor.u32 %v2011_v15, %v1922_v14 }
  0x99   : > { %v2287_v22 = vpop.permute.xlu2 %431 }
  0x9a   : > { %v456_v31 = vsel %vm2403_vm10, %v2287_v22, 0 }
  0xa0   : > { %v333_v24 = vpop.permute.xlu0 %332  ;;  %v329_v25 = vpop.permute.xlu1 %328 }
  0xa1   : > { %v357_v26 = vsel %vm2293_vm12, %v333_v24, 0  ;;  %v2302_v30 = vpop.permute.xlu2 %429  ;;  %v355_v39 = vsel %vm2293_vm12, %v329_v25, 0  ;;  %v247_v25 = vld [vmem:[%s3134_s0] sm:$0xf] }
  0xa2   : > { %841 = vmatpush.bf16.msra.mxu0 %v357_v26  ;;  %2067 = vmatpush.bf16.msra.mxu1 %v357_v26 }
  0xa3   : > { %2068 = vmatpush.bf16.msra.mxu2 %v357_v26  ;;  %2069 = vmatpush.bf16.msra.mxu3 %v357_v26  ;;  %v1843_v26 = vor.u32 %v1991_v10, %v1842_v9  ;;  %v1942_v9 = vld [vmem:[%s3135_s1 + $0x118] sm:$0xf]  ;;  %v2016_v10 = vld [vmem:[%s3135_s1 + $0x128] sm:$0xf0] }
  0xa8   : > { %v331_v32 = vpop.permute.xlu0 %330  ;;  %v327_v33 = vpop.permute.xlu1 %326 }
  0xa9   : > { %v356_v35 = vsel %vm2293_vm12, %v331_v32, 0  ;;  %v2340_v42 = vpop.permute.xlu2 %427  ;;  %v354_v47 = vsel %vm2293_vm12, %v327_v33, 0  ;;  %vm2384_vm12 = vmand %vm2266_vm6, %vm360_vm14  ;;  %v1803_v32 = vor.u32 %v1981_v23, %v1802_v21 }
  0xaa   : > { %842 = vmatpush.bf16.msra.mxu0 %v356_v35  ;;  %2070 = vmatpush.bf16.msra.mxu1 %v356_v35  ;;  %vm2396_vm6 = vmand %vm2330_vm9, %vm270_vm8  ;;  %vm406_vm8 = vcmp.ne.s32.totalorder %v402_v62, %v2279_v18  ;;  %vm407_vm9 = vcmp.ne.s32.totalorder %v403_v63, %v2282_v19  ;;  %v454_v6 = vsel %vm2403_vm10, %v2340_v42, 0  ;;  %v1862_v63 = vld [vmem:[%s3135_s1 + $0x78] sm:$0xf] }
  0xab   : > { %2071 = vmatpush.bf16.msra.mxu2 %v356_v35  ;;  %2072 = vmatpush.bf16.msra.mxu3 %v356_v35  ;;  %vm382_vm14 = vmpackc.low %vm2384_vm12, %vm2384_vm12  ;;  %v1863_v14 = vor.u32 %v1996_v1, %v1862_v63  ;;  %v1984_v1 = vld [vmem:[%s3135_s1 + $0x2c] sm:$0xf] }
  0xac   : > { %vm465_vm11 = vmpackc.low %vm2396_vm6, %vm2396_vm6  ;;  %v383_v36 = vsel %vm382_vm14, 65537, %v2166_v12 }
  0xad   : > { %vm2440_vm0 = vmpackc.low %vm407_vm9, %vm406_vm8  ;;  %v466_v37 = vsel %vm465_vm11, 65537, %v2166_v12  ;;  %vm816_vm11 = vcmask 523264  }
  0xae   : > { %843 = vmatpush.bf16.msra.mxu0 %v355_v39  ;;  %2073 = vmatpush.bf16.msra.mxu1 %v355_v39  ;;  %vm2503_vm12 = vmpackc.low %vm263_vm4, %vm263_vm4  ;;  %v467_v45 = vperm.slane %v466_v37, 0 }
  0xaf   : > { %2074 = vmatpush.bf16.msra.mxu2 %v355_v39  ;;  %2075 = vmatpush.bf16.msra.mxu3 %v355_v39  ;;  %v422_v50 = vsel %vm2503_vm12, %v253_v40, 0  ;;  %v420_v2 = vsel %vm2503_vm12, %v251_v53, 0  ;;  %v421_v3 = vsel %vm2503_vm12, %v252_v54, 0  ;;  %v416_v40 = vsel %vm2503_vm12, %v247_v25, 0  ;;  %v1810_v53 = vld [vmem:[%s3135_s1 + $0x8] sm:$0xf] }
  0xb0   : > { %v297_v43 = vpop.permute.xlu0 %296  ;;  %v2345_v44 = vpop.permute.xlu1 %294  ;;  %v558_v61 = vunpack.c.l.b16 %v422_v50  ;;  %v556_v21 = vunpack.c.l.b16 %v420_v2  ;;  %v557_v23 = vunpack.c.l.b16 %v421_v3  ;;  %v1980_v54 = vld [vmem:[%s3135_s1 + $0xc] sm:$0xf]  ;;  %v1830_v2 = vld [vmem:[%s3135_s1 + $0x30] sm:$0xf]  ;;  %v1987_v3 = vld [vmem:[%s3135_s1 + $0x40] sm:$0xf0] }
  0xb1   : > { %v2390_v0 = vpop.permute.xlu2 %425  ;;  %v323_v8 = vsel %vm2355_vm2, %v297_v43, 0  ;;  %v322_v24 = vsel %vm2355_vm2, %v2345_v44, 0  ;;  %vm2471_vm2 = vmpackc.low %vm538_vm5, %vm537_vm3  ;;  %v455_v43 = vsel %vm2403_vm10, %v2302_v30, 0  ;;  %v384_v44 = vperm.slane %v383_v36, 0  ;;  %v1864_v25 = vld [vmem:[%s3135_s1 + $0x8c] sm:$0xf0] }
  0xb2   : > { %844 = vmatpush.bf16.msra.mxu0 %v354_v47  ;;  %2076 = vmatpush.bf16.msra.mxu1 %v354_v47  ;;  %v453_v60 = vsel %vm2403_vm10, %v2390_v0, 0  ;;  %v562_v37 = vpack.c.b16 %v557_v23, %v556_v21  ;;  %v1992_v21 = vld [vmem:[%s3135_s1 + $0x68] sm:$0xf0]  ;;  %v1990_v23 = vld [vmem:[%s3135_s1 + $0x5c] sm:$0xf] }
  0xb3   : > { %2077 = vmatpush.bf16.msra.mxu2 %v354_v47  ;;  %2078 = vmatpush.bf16.msra.mxu3 %v354_v47  ;;  %v385_v55 = vunpack.c.l.b16 %v384_v44  ;;  %v386_v56 = vunpack.c.h.b16 %v384_v44 }
  0xb5   : > { %vm389_vm4 = vcmp.ne.s32.totalorder %v385_v55, %v2279_v18  ;;  %vm390_vm6 = vcmp.ne.s32.totalorder %v386_v56, %v2282_v19  ;;  %v1812_v55 = vld [vmem:[%s3135_s1 + $0x1c] sm:$0xf0]  ;;  %v1818_v56 = vld [vmem:[%s3135_s1 + $0x10] sm:$0xf] }
  0xb6   : > { %845 = vmatpush.bf16.msra.mxu0 %v325_v51  ;;  %2079 = vmatpush.bf16.msra.mxu1 %v325_v51  ;;  %vm2588_vm8 = vmpackc.low %vm390_vm6, %vm389_vm4 }
  0xb7   : > { %2080 = vmatpush.bf16.msra.mxu2 %v325_v51  ;;  %2081 = vmatpush.bf16.msra.mxu3 %v325_v51  ;;  %v423_v51 = vsel %vm2503_vm12, %v254_v41, 0 }
  0xb8   : > { %v486_v58 = vpop.permute.xlu0 %485  ;;  %v2378_v59 = vpop.permute.xlu1 %369  ;;  %v559_v62 = vunpack.c.l.b16 %v423_v51 }
  0xb9   : > { %v412_v29 = vsel %vm2440_vm0, %v2378_v59, 0  ;;  %v519_v33 = vpop.permute.xlu2 %518  ;;  %v510_v35 = vsel %vm2459_vm7, %v486_v58, 0  ;;  %v469_v58 = vunpack.c.h.b16 %v467_v45 }
  0xba   : > { %846 = vmatpush.bf16.msra.mxu0 %v324_v57  ;;  %2082 = vmatpush.bf16.msra.mxu1 %v324_v57  ;;  %v543_v39 = vsel %vm2471_vm2, %v519_v33, 0  ;;  %v563_v15 = vpack.c.b16 %v559_v62, %v558_v61  ;;  %v248_v33 = vld [vmem:[%s3134_s0 + $0x4] sm:$0xf]  ;;  %v1815_v62 = vor.u32 %v1980_v54, %v1812_v55  ;;  %v1918_v54 = vld [vmem:[%s3135_s1 + $0xd8] sm:$0xf] }
  0xbb   : > { %2083 = vmatpush.bf16.msra.mxu2 %v324_v57  ;;  %2084 = vmatpush.bf16.msra.mxu3 %v324_v57  ;;  %v468_v57 = vunpack.c.l.b16 %v467_v45  ;;  %vm473_vm10 = vcmp.ne.s32.totalorder %v469_v58, %v2282_v19  ;;  %v417_v41 = vsel %vm2503_vm12, %v248_v33, 0  ;;  %v1870_v33 = vld [vmem:[%s3135_s1 + $0x80] sm:$0xf]  ;;  %v2008_v55 = vld [vmem:[%s3135_s1 + $0xe8] sm:$0xf0] }
  0xbc   : > { %v553_v12 = vunpack.c.l.b16 %v417_v41 }
  0xbd   : > { %vm472_vm14 = vcmp.ne.s32.totalorder %v468_v57, %v2279_v18  ;;  %v395_v18 = vsel %vm2588_vm8, %v2378_v59, 0  ;;  %v1983_v57 = vld [vmem:[%s3135_s1 + $0x20] sm:$0xf0] }
  0xbe   : > { %847 = vmatpush.bf16.msra.mxu0 %v323_v8  ;;  %2085 = vmatpush.bf16.msra.mxu1 %v323_v8  ;;  %vm2602_vm9 = vmpackc.low %vm473_vm10, %vm472_vm14  ;;  %v1819_v63 = vor.u32 %v1983_v57, %v1818_v56 }
  0xbf   : > { %2086 = vmatpush.bf16.msra.mxu2 %v323_v8  ;;  %2087 = vmatpush.bf16.msra.mxu3 %v323_v8  ;;  %v2006_v8 = vld [vmem:[%s3135_s1 + $0xd8] sm:$0xf0]  ;;  %v478_v19 = vsel %vm2602_vm9, %v2287_v22, 0  ;;  %v477_v22 = vsel %vm2602_vm9, %v2302_v30, 0  ;;  %v1979_v30 = vld [vmem:[%s3135_s1 + $0x4] sm:$0xf] }
  0xc0   : > { %v484_v16 = vpop.permute.xlu0 %483  ;;  %v2434_v17 = vpop.permute.xlu1 %367  ;;  %v475_v58 = vsel %vm2602_vm9, %v2390_v0, 0  ;;  %v1824_v0 = vld [vmem:[%s3135_s1 + $0x3c] sm:$0xf0] }
  0xc1   : > { %v411_v38 = vsel %vm2440_vm0, %v2434_v17, 0  ;;  %v509_v46 = vsel %vm2459_vm7, %v484_v16, 0  ;;  %v1822_v16 = vld [vmem:[%s3135_s1 + $0x28] sm:$0xf]  ;;  %v394_v59 = vsel %vm2588_vm8, %v2434_v17, 0  ;;  %v513_v50 = vpop.permute.xlu2 %512  ;;  %v476_v17 = vsel %vm2602_vm9, %v2340_v42, 0 }
  0xc2   : > { %848 = vmatpush.bf16.msra.mxu0 %v322_v24  ;;  %2088 = vmatpush.bf16.msra.mxu1 %v322_v24  ;;  %v540_v42 = vsel %vm2471_vm2, %v513_v50, 0 }
  0xc3   : > { %2089 = vmatpush.bf16.msra.mxu2 %v322_v24  ;;  %2090 = vmatpush.bf16.msra.mxu3 %v322_v24 }
  0xc5   : > { %859 = vmatmul.bf16.vlgmr.msra.gmra.mxu1 %v1843_v26  ;;  %849 = vmatmul.bf16.vlgmr.msra.gmra.mxu0 %v1803_v32  ;;  %v1943_v32 = vor.u32 %v2016_v10, %v1942_v9  ;;  %v1827_v9 = vor.u32 %v1984_v1, %v1824_v0  ;;  %v1831_v10 = vor.u32 %v1987_v3, %v1830_v2  ;;  %v2010_v1 = vld [vmem:[%s3135_s1 + $0xfc] sm:$0xf]  ;;  %v1932_v0 = vld [vmem:[%s3135_s1 + $0x10c] sm:$0xf0]  ;;  %v1938_v2 = vld [vmem:[%s3135_s1 + $0x100] sm:$0xf] }
  0xc6   : > { %890 = vmatpush.bf16.msrb.mxu1 %v412_v29  ;;  %869 = vmatmul.bf16.vlgmr.msra.gmra.mxu2 %v1883_v27  ;;  %v1986_v27 = vld [vmem:[%s3135_s1 + $0x38] sm:$0xf0]  ;;  %v419_v29 = vsel %vm2503_vm12, %v250_v7, 0  ;;  %v1838_v7 = vld [vmem:[%s3135_s1 + $0x38] sm:$0xf] }
  0xc7   : > { %939 = vmatpush.bf16.msrb.mxu2 %v456_v31  ;;  %988 = vmatpush.bf16.msrb.mxu3 %v510_v35  ;;  %v1903_v31 = vor.u32 %v2006_v8, %v1902_v4  ;;  %v1823_v36 = vor.u32 %v1986_v27, %v1822_v16  ;;  %v1985_v4 = vld [vmem:[%s3135_s1 + $0x34] sm:$0xf]  ;;  %v1988_v8 = vld [vmem:[%s3135_s1 + $0x48] sm:$0xf0]  ;;  %v1850_v16 = vld [vmem:[%s3135_s1 + $0x58] sm:$0xf] }
  0xc8   : > { %879 = vmatmul.bf16.vlgmr.msra.gmra.mxu3 %v1923_v28  ;;  %v482_v47 = vpop.permute.xlu0 %481  ;;  %v2512_v48 = vpop.permute.xlu1 %365  ;;  %1041 = vmatpush.bf16.msrb.mxu0 %v543_v39  ;;  %v418_v28 = vsel %vm2503_vm12, %v249_v5, 0  ;;  %v555_v39 = vunpack.c.l.b16 %v419_v29  ;;  %v1832_v5 = vld [vmem:[%s3135_s1 + $0x44] sm:$0xf0]  ;;  %v1993_v27 = vld [vmem:[%s3135_s1 + $0x70] sm:$0xf0]  ;;  %v1851_v29 = vor.u32 %v1992_v21, %v1850_v16 }
  0xc9   : > { %v410_v49 = vsel %vm2440_vm0, %v2512_v48, 0  ;;  %v508_v52 = vsel %vm2459_vm7, %v482_v47, 0  ;;  %v393_v51 = vsel %vm2588_vm8, %v2512_v48, 0  ;;  %v1982_v48 = vld [vmem:[%s3135_s1 + $0x18] sm:$0xf0] }
  0xca   : > { %891 = vmatpush.bf16.msrb.mxu1 %v411_v38  ;;  %v554_v38 = vunpack.c.l.b16 %v418_v28  ;;  %v1811_v61 = vor.u32 %v1982_v48, %v1810_v53  ;;  %v1997_v35 = vld [vmem:[%s3135_s1 + $0x90] sm:$0xf0]  ;;  %v2007_v53 = vld [vmem:[%s3135_s1 + $0xe0] sm:$0xf0]  ;;  %v2014_v16 = vld [vmem:[%s3135_s1 + $0x11c] sm:$0xf] }
  0xcb   : > { %940 = vmatpush.bf16.msrb.mxu2 %v455_v43  ;;  %989 = vmatpush.bf16.msrb.mxu3 %v509_v46  ;;  %v552_v46 = vunpack.c.l.b16 %v416_v40  ;;  %v1867_v40 = vor.u32 %v1994_v20, %v1864_v25  ;;  %v1871_v41 = vor.u32 %v1997_v35, %v1870_v33  ;;  %v2005_v48 = vld [vmem:[%s3135_s1 + $0xd4] sm:$0xf]  ;;  %v1944_v21 = vld [vmem:[%s3135_s1 + $0x12c] sm:$0xf0] }
  0xcc   : > { %v561_v44 = vpack.c.b16 %v555_v39, %v554_v38  ;;  %v1878_v38 = vld [vmem:[%s3135_s1 + $0x88] sm:$0xf]  ;;  %v1998_v39 = vld [vmem:[%s3135_s1 + $0x98] sm:$0xf0]  ;;  %v2013_v3 = vld [vmem:[%s3135_s1 + $0x110] sm:$0xf0]  ;;  %v1947_v25 = vor.u32 %v2014_v16, %v1944_v21 }
  0xce   : > { %892 = vmatpush.bf16.msrb.mxu1 %v410_v49  ;;  %v560_v49 = vpack.c.b16 %v553_v12, %v552_v46  ;;  %v2002_v46 = vld [vmem:[%s3135_s1 + $0xb8] sm:$0xf0]  ;;  %v2000_v12 = vld [vmem:[%s3135_s1 + $0xac] sm:$0xf] }
  0xcf   : > { %941 = vmatpush.bf16.msrb.mxu2 %v454_v6  ;;  %990 = vmatpush.bf16.msrb.mxu3 %v508_v52  ;;  %v1804_v52 = vld [vmem:[%s3135_s1 + $0x14] sm:$0xf0] }
  0xd0   : > { %v480_v11 = vpop.permute.xlu0 %479  ;;  %v2567_v13 = vpop.permute.xlu1 %363 }
  0xd1   : > { %v409_v24 = vsel %vm2440_vm0, %v2567_v13, 0  ;;  %v507_v26 = vsel %vm2459_vm7, %v480_v11, 0  ;;  %v392_v34 = vsel %vm2588_vm8, %v2567_v13, 0  ;;  %v1835_v11 = vor.u32 %v1985_v4, %v1832_v5 }
  0xd2   : > { %893 = vmatpush.bf16.msrb.mxu1 %v409_v24  ;;  %v1839_v13 = vor.u32 %v1988_v8, %v1838_v7  ;;  %v1852_v24 = vld [vmem:[%s3135_s1 + $0x6c] sm:$0xf0]  ;;  %v1935_v8 = vor.u32 %v2010_v1, %v1932_v0 }
  0xd3   : > { %942 = vmatpush.bf16.msrb.mxu2 %v453_v60  ;;  %991 = vmatpush.bf16.msrb.mxu3 %v507_v26  ;;  %v1807_v60 = vor.u32 %v1979_v30, %v1804_v52  ;;  %v1858_v26 = vld [vmem:[%s3135_s1 + $0x60] sm:$0xf]  ;;  %v1910_v52 = vld [vmem:[%s3135_s1 + $0xd0] sm:$0xf] }
  0xd4   : > { %v1904_v30 = vld [vmem:[%s3135_s1 + $0xdc] sm:$0xf0]  ;;  %v1911_v57 = vor.u32 %v2007_v53, %v1910_v52 }
  0xd5   : > { %864 = vmatmul.bf16.gmra.mxu1 %v1863_v14  ;;  %854 = vmatmul.bf16.gmra.mxu0 %v1823_v36  ;;  %v1989_v14 = vld [vmem:[%s3135_s1 + $0x54] sm:$0xf]  ;;  %v1995_v36 = vld [vmem:[%s3135_s1 + $0x84] sm:$0xf] }
  0xd6   : > { %874 = vmatmul.bf16.gmra.mxu2 %v1903_v31  ;;  %894 = vmatpush.bf16.msrb.mxu1 %v395_v18  ;;  %v1855_v31 = vor.u32 %v1990_v23, %v1852_v24  ;;  %v1950_v23 = vld [vmem:[%s3135_s1 + $0x120] sm:$0xf]  ;;  %v2017_v24 = vld [vmem:[%s3135_s1 + $0x130] sm:$0xf0] }
  0xd7   : > { %943 = vmatpush.bf16.msrb.mxu2 %v563_v15  ;;  %992 = vmatpush.bf16.msrb.mxu3 %v478_v19  ;;  %v1844_v15 = vld [vmem:[%s3135_s1 + $0x64] sm:$0xf0]  ;;  %v1879_v19 = vor.u32 %v1998_v39, %v1878_v38  ;;  %v1951_v33 = vor.u32 %v2017_v24, %v1950_v23 }
  0xd8   : > { %884 = vmatmul.bf16.gmra.mxu3 %v1943_v32  ;;  %v517_v43 = vpop.permute.xlu0 %516  ;;  %v515_v45 = vpop.permute.xlu1 %514  ;;  %v1847_v28 = vor.u32 %v1989_v14, %v1844_v15  ;;  %v1859_v32 = vor.u32 %v1993_v27, %v1858_v26  ;;  %v2015_v26 = vld [vmem:[%s3135_s1 + $0x124] sm:$0xf]  ;;  %v1952_v27 = vld [vmem:[%s3135_s1 + $0x134] sm:$0xf0] }
  0xd9   : > { %v542_v47 = vsel %vm2471_vm2, %v517_v43, 0  ;;  %v541_v6 = vsel %vm2471_vm2, %v515_v45, 0  ;;  %v1999_v43 = vld [vmem:[%s3135_s1 + $0xa4] sm:$0xf]  ;;  %v1890_v45 = vld [vmem:[%s3135_s1 + $0xa8] sm:$0xf]  ;;  %v1955_v35 = vor.u32 %v2015_v26, %v1952_v27 }
  0xda   : > { %1042 = vmatpush.bf16.msrb.mxu0 %v542_v47  ;;  %895 = vmatpush.bf16.msrb.mxu1 %v394_v59  ;;  %v1892_v47 = vld [vmem:[%s3135_s1 + $0xbc] sm:$0xf0]  ;;  %v1898_v59 = vld [vmem:[%s3135_s1 + $0xb0] sm:$0xf] }
  0xdb   : > { %944 = vmatpush.bf16.msrb.mxu2 %v562_v37  ;;  %993 = vmatpush.bf16.msrb.mxu3 %v477_v22  ;;  %v1872_v37 = vld [vmem:[%s3135_s1 + $0x94] sm:$0xf0]  ;;  %v2003_v22 = vld [vmem:[%s3135_s1 + $0xc0] sm:$0xf0]  ;;  %v1895_v50 = vor.u32 %v2000_v12, %v1892_v47 }
  0xdc   : > { %v1875_v18 = vor.u32 %v1995_v36, %v1872_v37 }
  0xde   : > { %1043 = vmatpush.bf16.msrb.mxu0 %v541_v6  ;;  %896 = vmatpush.bf16.msrb.mxu1 %v393_v51  ;;  %v1899_v51 = vor.u32 %v2003_v22, %v1898_v59 }
  0xdf   : > { %945 = vmatpush.bf16.msrb.mxu2 %v561_v44  ;;  %994 = vmatpush.bf16.msrb.mxu3 %v476_v17  ;;  %v1884_v44 = vld [vmem:[%s3135_s1 + $0xb4] sm:$0xf0]  ;;  %v2004_v17 = vld [vmem:[%s3135_s1 + $0xcc] sm:$0xf] }
  0xe0   : > { %v1887_v6 = vor.u32 %v1999_v43, %v1884_v44  ;;  %v1907_v56 = vor.u32 %v2004_v17, %v1904_v30 }
  0xe2   : > { %1044 = vmatpush.bf16.msrb.mxu0 %v540_v42  ;;  %897 = vmatpush.bf16.msrb.mxu1 %v392_v34  ;;  %v1912_v42 = vld [vmem:[%s3135_s1 + $0xe4] sm:$0xf0] }
  0xe3   : > { %946 = vmatpush.bf16.msrb.mxu2 %v560_v49  ;;  %995 = vmatpush.bf16.msrb.mxu3 %v475_v58  ;;  %v1891_v49 = vor.u32 %v2002_v46, %v1890_v45  ;;  %v1915_v34 = vor.u32 %v2005_v48, %v1912_v42  ;;  %v1919_v58 = vor.u32 %v2008_v55, %v1918_v54 }
  0xe5   : > { %898 = vmatmul.bf16.vlgmr.msrb.gmra.mxu1 %v1807_v60  ;;  %1960 = vmatmul.msk.bf16.vlgmr.msrb.gmra.mxu0 %vm816_vm11, %v1819_v63  ;;  %v2009_v60 = vld [vmem:[%s3135_s1 + $0xf4] sm:$0xf]  ;;  %v2012_v63 = vld [vmem:[%s3135_s1 + $0x108] sm:$0xf0] }
  0xe6   : > { %947 = vmatmul.bf16.vlgmr.msrb.gmra.mxu2 %v1811_v61  ;;  %v1924_v61 = vld [vmem:[%s3135_s1 + $0x104] sm:$0xf0] }
  0xe7   : > { %v1927_v5 = vor.u32 %v2009_v60, %v1924_v61 }
  0xe8   : > { %996 = vmatmul.bf16.vlgmr.msrb.gmra.mxu3 %v1815_v62  ;;  %v1930_v62 = vld [vmem:[%s3135_s1 + $0xf8] sm:$0xf] }
  0xe9   : > { %v1931_v7 = vor.u32 %v2012_v63, %v1930_v62 }
  0xf5   : > { %903 = vmatmul.bf16.gmra.mxu1 %v1827_v9  ;;  %1961 = vmatmul.msk.bf16.gmra.mxu0 %vm816_vm11, %v1839_v13 }
  0xf6   : > { %952 = vmatmul.bf16.gmra.mxu2 %v1831_v10  ;;  %v1939_v10 = vor.u32 %v2013_v3, %v1938_v2 }
  0xf8   : > { %1001 = vmatmul.bf16.gmra.mxu3 %v1835_v11 }
 0x105   : > { %908 = vmatmul.bf16.gmra.mxu1 %v1847_v28  ;;  %1962 = vmatmul.msk.bf16.gmra.mxu0 %vm816_vm11, %v1859_v32  ;;  %v2018_v32 = vld [vmem:[%s3135_s1 + $0x138] sm:$0xf0] }
 0x106   : > { %957 = vmatmul.bf16.gmra.mxu2 %v1851_v29 }
 0x108   : > { %1006 = vmatmul.bf16.gmra.mxu3 %v1855_v31  ;;  %v1958_v31 = vld [vmem:[%s3135_s1 + $0x128] sm:$0xf] }
 0x109   : > { %v1959_v36 = vor.u32 %v2018_v32, %v1958_v31 }
 0x115   : > { %913 = vmatmul.bf16.gmra.mxu1 %v1867_v40  ;;  %1963 = vmatmul.msk.bf16.gmra.mxu0 %vm816_vm11, %v1879_v19 }
 0x116   : > { %962 = vmatmul.bf16.gmra.mxu2 %v1871_v41 }
 0x118   : > { %1011 = vmatmul.bf16.gmra.mxu3 %v1875_v18 }
 0x125   : > { %918 = vmatmul.bf16.gmra.mxu1 %v1887_v6  ;;  %1964 = vmatmul.msk.bf16.gmra.mxu0 %vm816_vm11, %v1899_v51 }
 0x126   : > { %967 = vmatmul.bf16.gmra.mxu2 %v1891_v49 }
 0x128   : > { %1016 = vmatmul.bf16.gmra.mxu3 %v1895_v50 }
 0x135   : > { %923 = vmatmul.bf16.gmra.mxu1 %v1907_v56  ;;  %1965 = vmatmul.msk.bf16.gmra.mxu0 %vm816_vm11, %v1919_v58 }
 0x136   : > { %972 = vmatmul.bf16.gmra.mxu2 %v1911_v57 }
 0x138   : > { %1021 = vmatmul.bf16.gmra.mxu3 %v1915_v34 }
 0x142   : > { %v2814_v4 = vpop.f32.mrf.mxu1  ;;  %v850_v9 = vpop.f32.mrf.mxu0 }
 0x145   : > { %928 = vmatmul.bf16.gmra.mxu1 %v1927_v5  ;;  %1966 = vmatmul.msk.bf16.gmra.mxu0 %vm816_vm11, %v1939_v10 }
 0x146   : > { %977 = vmatmul.bf16.gmra.mxu2 %v1931_v7 }
 0x148   : > { %1026 = vmatmul.bf16.gmra.mxu3 %v1935_v8 }
 0x149   : > { %v2817_v11 = vpop.f32.mrf.mxu2 }
 0x14a   : > { %v2821_v14 = vpop.f32.mrf.mxu1  ;;  %v852_v15 = vpop.f32.mrf.mxu0 }
 0x14b   : > { %v2819_v13 = vpop.f32.mrf.mxu3 }
 0x151   : > { %v2841_v28 = vpop.f32.mrf.mxu2 }
 0x152   : > { %v2851_v20 = vpop.f32.mrf.mxu1  ;;  %v855_v37 = vpop.f32.mrf.mxu0 }
 0x153   : > { %v2843_v29 = vpop.f32.mrf.mxu3 }
 0x155   : > { %933 = vmatmul.bf16.gmra.mxu1 %v1947_v25  ;;  %1967 = vmatmul.msk.bf16.gmra.mxu0 %vm816_vm11, %v1959_v36 }
 0x156   : > { %982 = vmatmul.bf16.gmra.mxu2 %v1951_v33 }
 0x158   : > { %1031 = vmatmul.bf16.gmra.mxu3 %v1955_v35 }
 0x159   : > { %v2854_v38 = vpop.f32.mrf.mxu2 }
 0x15a   : > { %v867_v40 = vpop.f32.mrf.mxu1  ;;  %v857_v41 = vpop.f32.mrf.mxu0 }
 0x15b   : > { %v2856_v39 = vpop.f32.mrf.mxu3 }
 0x161   : > { %v2858_v18 = vpop.f32.mrf.mxu2 }
 0x162   : > { %v899_v43 = vpop.f32.mrf.mxu1  ;;  %v1046_v45 = vpop.f32.mrf.mxu0 }
 0x163   : > { %v2860_v19 = vpop.f32.mrf.mxu3  ;;  %v900_v44 = vadd.f32 %v899_v43, %v850_v9 }
 0x169   : > { %v948_v46 = vpop.f32.mrf.mxu2 }
 0x16a   : > { %v949_v12 = vadd.f32 %v948_v46, %v900_v44  ;;  %v901_v59 = vpop.f32.mrf.mxu1  ;;  %v1048_v49 = vpop.f32.mrf.mxu0 }
 0x16b   : > { %v997_v47 = vpop.f32.mrf.mxu3  ;;  %v902_v6 = vadd.f32 %v901_v59, %v852_v15 }
 0x16c   : > { %v998_v22 = vadd.f32 %v997_v47, %v949_v12 }
 0x16e   : > { %v2862_v50 = vadd.f32 %v1046_v45, %v998_v22 }
 0x171   : > { %v950_v51 = vpop.f32.mrf.mxu2 }
 0x172   : > { %v951_v17 = vadd.f32 %v950_v51, %v902_v6  ;;  %v904_v52 = vpop.f32.mrf.mxu1  ;;  %v1051_v42 = vpop.f32.mrf.mxu0 }
 0x173   : > { %v999_v30 = vpop.f32.mrf.mxu3  ;;  %v905_v48 = vadd.f32 %v904_v52, %v855_v37 }
 0x174   : > { %v1000_v53 = vadd.f32 %v999_v30, %v951_v17 }
 0x176   : > { %v2864_v54 = vadd.f32 %v1048_v49, %v1000_v53 }
 0x179   : > { %v953_v55 = vpop.f32.mrf.mxu2 }
 0x17a   : > { %v954_v56 = vadd.f32 %v953_v55, %v905_v48  ;;  %v906_v34 = vpop.f32.mrf.mxu1  ;;  %v1053_v61 = vpop.f32.mrf.mxu0 }
 0x17b   : > { %v1002_v57 = vpop.f32.mrf.mxu3  ;;  %v907_v60 = vadd.f32 %v906_v34, %v857_v41 }
 0x17c   : > { %v1003_v58 = vadd.f32 %v1002_v57, %v954_v56 }
 0x17e   : > { %v2866_v62 = vadd.f32 %v1051_v42, %v1003_v58 }
 0x181   : > { %v955_v63 = vpop.f32.mrf.mxu2 }
 0x182   : > { %v956_v1 = vadd.f32 %v955_v63, %v907_v60  ;;  %v909_v2 = vpop.f32.mrf.mxu1  ;;  %v1056_v7 = vpop.f32.mrf.mxu0 }
 0x183   : > { %v1004_v0 = vpop.f32.mrf.mxu3  ;;  %v910_v5 = vadd.f32 %v909_v2, %v2814_v4 }
 0x184   : > { %v1005_v3 = vadd.f32 %v1004_v0, %v956_v1 }
 0x186   : > { %v2869_v8 = vadd.f32 %v1053_v61, %v1005_v3 }
 0x189   : > { %v958_v9 = vpop.f32.mrf.mxu2 }
 0x18a   : > { %v959_v10 = vadd.f32 %v958_v9, %v910_v5  ;;  %v911_v16 = vpop.f32.mrf.mxu1  ;;  %v1058_v24 = vpop.f32.mrf.mxu0 }
 0x18b   : > { %v1007_v15 = vpop.f32.mrf.mxu3  ;;  %v912_v23 = vadd.f32 %v911_v16, %v2821_v14 }
 0x18c   : > { %v1008_v21 = vadd.f32 %v1007_v15, %v959_v10 }
 0x18e   : > { %v2872_v26 = vadd.f32 %v1056_v7, %v1008_v21 }
 0x191   : > { %v960_v27 = vpop.f32.mrf.mxu2 }
 0x192   : > { %v961_v31 = vadd.f32 %v960_v27, %v912_v23  ;;  %v914_v25 = vpop.f32.mrf.mxu1  ;;  %v1061_v35 = vpop.f32.mrf.mxu0 }
 0x193   : > { %v1009_v32 = vpop.f32.mrf.mxu3  ;;  %v915_v4 = vadd.f32 %v914_v25, %v2851_v20 }
 0x194   : > { %v1010_v33 = vadd.f32 %v1009_v32, %v961_v31 }
 0x196   : > { %v2875_v36 = vadd.f32 %v1058_v24, %v1010_v33 }
 0x199   : > { %v963_v37 = vpop.f32.mrf.mxu2 }
 0x19a   : > { %v964_v41 = vadd.f32 %v963_v37, %v915_v4  ;;  %v916_v44 = vpop.f32.mrf.mxu1  ;;  %v1063_v14 = vpop.f32.mrf.mxu0 }
 0x19b   : > { %v1012_v43 = vpop.f32.mrf.mxu3  ;;  %v917_v46 = vadd.f32 %v916_v44, %v867_v40 }
 0x19c   : > { %v1013_v45 = vadd.f32 %v1012_v43, %v964_v41 }
 0x19e   : > { %v2877_v12 = vadd.f32 %v1061_v35, %v1013_v45 }
 0x1a1   : > { %v965_v47 = vpop.f32.mrf.mxu2 }
 0x1a2   : > { %v966_v59 = vadd.f32 %v965_v47, %v917_v46  ;;  %v919_v6 = vpop.f32.mrf.mxu1  ;;  %v1066_v51 = vpop.f32.mrf.mxu0 }
 0x1a3   : > { %v1014_v22 = vpop.f32.mrf.mxu3  ;;  %v920_v20 = vadd.f32 %v919_v6, %v2817_v11 }
 0x1a4   : > { %v1015_v49 = vadd.f32 %v1014_v22, %v966_v59 }
 0x1a6   : > { %v2879_v17 = vadd.f32 %v1063_v14, %v1015_v49 }
 0x1a9   : > { %v968_v30 = vpop.f32.mrf.mxu2 }
 0x1aa   : > { %v969_v52 = vadd.f32 %v968_v30, %v920_v20  ;;  %v921_v48 = vpop.f32.mrf.mxu1  ;;  %v1068_v55 = vpop.f32.mrf.mxu0 }
 0x1ab   : > { %v1017_v53 = vpop.f32.mrf.mxu3  ;;  %v922_v56 = vadd.f32 %v921_v48, %v2841_v28 }
 0x1ac   : > { %v1018_v42 = vadd.f32 %v1017_v53, %v969_v52 }
 0x1ae   : > { %v2882_v40 = vadd.f32 %v1066_v51, %v1018_v42 }
 0x1b1   : > { %v970_v57 = vpop.f32.mrf.mxu2 }
 0x1b2   : > { %v971_v34 = vadd.f32 %v970_v57, %v922_v56  ;;  %v924_v60 = vpop.f32.mrf.mxu1  ;;  %v1071_v63 = vpop.f32.mrf.mxu0 }
 0x1b3   : > { %v1019_v58 = vpop.f32.mrf.mxu3  ;;  %v925_v11 = vadd.f32 %v924_v60, %v2854_v38 }
 0x1b4   : > { %v1020_v61 = vadd.f32 %v1019_v58, %v971_v34 }
 0x1b6   : > { %v2885_v1 = vadd.f32 %v1068_v55, %v1020_v61 }
 0x1b9   : > { %v973_v0 = vpop.f32.mrf.mxu2 }
 0x1ba   : > { %v974_v2 = vadd.f32 %v973_v0, %v925_v11  ;;  %v926_v5 = vpop.f32.mrf.mxu1  ;;  %v1073_v9 = vpop.f32.mrf.mxu0 }
 0x1bb   : > { %v1022_v3 = vpop.f32.mrf.mxu3  ;;  %v927_v28 = vadd.f32 %v926_v5, %v2858_v18 }
 0x1bc   : > { %v1023_v7 = vadd.f32 %v1022_v3, %v974_v2 }
 0x1be   : > { %v2888_v10 = vadd.f32 %v1071_v63, %v1023_v7 }
 0x1c1   : > { %v975_v15 = vpop.f32.mrf.mxu2 }
 0x1c2   : > { %v976_v16 = vadd.f32 %v975_v15, %v927_v28  ;;  %v929_v23 = vpop.f32.mrf.mxu1  ;;  %v1076_v31 = vpop.f32.mrf.mxu0 }
 0x1c3   : > { %v1024_v21 = vpop.f32.mrf.mxu3  ;;  %v930_v38 = vadd.f32 %v929_v23, %v2819_v13 }
 0x1c4   : > { %v1025_v24 = vadd.f32 %v1024_v21, %v976_v16 }
 0x1c6   : > { %v2891_v27 = vadd.f32 %v1073_v9, %v1025_v24 }
 0x1c9   : > { %v978_v32 = vpop.f32.mrf.mxu2 }
 0x1ca   : > { %v979_v25 = vadd.f32 %v978_v32, %v930_v38  ;;  %v931_v4 = vpop.f32.mrf.mxu1  ;;  %v1078_v18 = vpop.f32.mrf.mxu0 }
 0x1cb   : > { %v1027_v33 = vpop.f32.mrf.mxu3  ;;  %v932_v41 = vadd.f32 %v931_v4, %v2843_v29 }
 0x1cc   : > { %v1028_v35 = vadd.f32 %v1027_v33, %v979_v25 }
 0x1ce   : > { %v2894_v37 = vadd.f32 %v1076_v31, %v1028_v35 }
 0x1d1   : > { %v980_v43 = vpop.f32.mrf.mxu2 }
 0x1d2   : > { %v981_v44 = vadd.f32 %v980_v43, %v932_v41  ;;  %v934_v46 = vpop.f32.mrf.mxu1  ;;  %v1081_v49 = vpop.f32.mrf.mxu0 }
 0x1d3   : > { %v1029_v45 = vpop.f32.mrf.mxu3  ;;  %v935_v59 = vadd.f32 %v934_v46, %v2856_v39 }
 0x1d4   : > { %v1030_v14 = vadd.f32 %v1029_v45, %v981_v44 }
 0x1d6   : > { %v2897_v47 = vadd.f32 %v1078_v18, %v1030_v14 }
 0x1d9   : > { %v983_v13 = vpop.f32.mrf.mxu2 }
 0x1da   : > { %v984_v22 = vadd.f32 %v983_v13, %v935_v59  ;;  %v936_v20 = vpop.f32.mrf.mxu1  ;;  %v1083_v55 = vpop.f32.mrf.mxu0 }
 0x1db   : > { %v1032_v6 = vpop.f32.mrf.mxu3  ;;  %v937_v29 = vadd.f32 %v936_v20, %v2860_v19 }
 0x1dc   : > { %v1033_v51 = vadd.f32 %v1032_v6, %v984_v22 }
 0x1de   : > { %v2900_v30 = vadd.f32 %v1081_v49, %v1033_v51 }
 0x1e1   : > { %v985_v52 = vpop.f32.mrf.mxu2 }
 0x1e2   : > { %v986_v53 = vadd.f32 %v985_v52, %v937_v29  ;;  %1088 = sbr.rel (%p1968_p5) target bundleno = 687 (0x2af), region = 44 }
 0x1e3   : > { %v1034_v48 = vpop.f32.mrf.mxu3 }
 0x1e4   : > { %v1035_v42 = vadd.f32 %v1034_v48, %v986_v53 }
 0x1e6   : > { %v2903_v56 = vadd.f32 %v1083_v55, %v1035_v42 }
 0x1e7   : > { %1109 = vadd.xlane.f32.xlu1 %v2866_v62  ;;  %1105 = vadd.xlane.f32.xlu0 %v2862_v50  ;;  %v1185_v39 = vmul.f32 %v2862_v50, %v2862_v50  ;;  %v1186_v19 = vmul.f32 %v2864_v54, %v2864_v54  ;;  %v1187_v57 = vmul.f32 %v2866_v62, %v2866_v62  ;;  %v1091_v15 = vld [vmem:[#allocation2 + $0x10] sm:$0xff]  ;;  %v1089_v16 = vld [vmem:[#allocation2] sm:$0xff]  ;;  %v1092_v33 = vld [vmem:[#allocation2 + $0x18] sm:$0xff] }
 0x1e8   : > { %1113 = vadd.xlane.f32.xlu2 %v2872_v26  ;;  %v1188_v34 = vmul.f32 %v2869_v8, %v2869_v8  ;;  %v1189_v58 = vmul.f32 %v2872_v26, %v2872_v26  ;;  %v1190_v60 = vmul.f32 %v2875_v36, %v2875_v36  ;;  %v1191_v61 = vmul.f32 %v2877_v12, %v2877_v12  ;;  %v1093_v21 = vld [vmem:[#allocation2 + $0x20] sm:$0xff]  ;;  %v1090_v4 = vld [vmem:[#allocation2 + $0x8] sm:$0xff]  ;;  %v1096_v14 = vld [vmem:[#allocation2 + $0x38] sm:$0xff] }
 0x1e9   : > { %v1192_v63 = vmul.f32 %v2879_v17, %v2879_v17  ;;  %v1193_v11 = vmul.f32 %v2882_v40, %v2882_v40  ;;  %v1194_v0 = vmul.f32 %v2885_v1, %v2885_v1  ;;  %v1195_v2 = vmul.f32 %v2888_v10, %v2888_v10  ;;  %v1094_v35 = vld [vmem:[#allocation2 + $0x28] sm:$0xff]  ;;  %v1095_v59 = vld [vmem:[#allocation2 + $0x30] sm:$0xff]  ;;  %v1097_v13 = vld [vmem:[#allocation2 + $0x40] sm:$0xff] }
 0x1ea   : > { %v1196_v3 = vmul.f32 %v2891_v27, %v2891_v27  ;;  %v1197_v5 = vmul.f32 %v2894_v37, %v2894_v37  ;;  %v1198_v7 = vmul.f32 %v2897_v47, %v2897_v47  ;;  %v1199_v9 = vmul.f32 %v2900_v30, %v2900_v30  ;;  %v1099_v52 = vld [vmem:[#allocation2 + $0x50] sm:$0xff]  ;;  %v1098_v53 = vld [vmem:[#allocation2 + $0x48] sm:$0xff]  ;;  %v1100_v48 = vld [vmem:[#allocation2 + $0x58] sm:$0xff] }
 0x1eb   : > { %v1200_v28 = vmul.f32 %v2903_v56, %v2903_v56 }
 0x1ef   : > { %1111 = vadd.xlane.f32.xlu1 %v2869_v8  ;;  %1107 = vadd.xlane.f32.xlu0 %v2864_v54 }
 0x1f0   : > { %1115 = vadd.xlane.f32.xlu2 %v2875_v36 }
 0x1f7   : > { %1119 = vadd.xlane.f32.xlu1 %v2879_v17  ;;  %1117 = vadd.xlane.f32.xlu0 %v2877_v12 }
 0x1f8   : > { %1121 = vadd.xlane.f32.xlu2 %v2882_v40 }
 0x1ff   : > { %1125 = vadd.xlane.f32.xlu1 %v2888_v10  ;;  %1123 = vadd.xlane.f32.xlu0 %v2885_v1 }
 0x200   : > { %1127 = vadd.xlane.f32.xlu2 %v2891_v27 }
 0x207   : > { %1131 = vadd.xlane.f32.xlu1 %v2897_v47  ;;  %1129 = vadd.xlane.f32.xlu0 %v2894_v37 }
 0x208   : > { %1133 = vadd.xlane.f32.xlu2 %v2900_v30 }
 0x20f   : > { %1135 = vadd.xlane.f32.xlu0 %v2903_v56  ;;  %1201 = vadd.xlane.f32.xlu1 %v1185_v39 }
 0x210   : > { %1203 = vadd.xlane.f32.xlu2 %v1186_v19 }
 0x217   : > { %1205 = vadd.xlane.f32.xlu0 %v1187_v57  ;;  %1207 = vadd.xlane.f32.xlu1 %v1188_v34 }
 0x218   : > { %1209 = vadd.xlane.f32.xlu2 %v1189_v58  ;;  %v1102_v58 = vld [vmem:[#allocation2 + $0x68] sm:$0xff] }
 0x21f   : > { %1211 = vadd.xlane.f32.xlu0 %v1190_v60  ;;  %1213 = vadd.xlane.f32.xlu1 %v1191_v61  ;;  %v1101_v60 = vld [vmem:[#allocation2 + $0x60] sm:$0xff]  ;;  %v1103_v61 = vld [vmem:[#allocation2 + $0x70] sm:$0xff] }
 0x220   : > { %1215 = vadd.xlane.f32.xlu2 %v1192_v63 }
 0x227   : > { %1217 = vadd.xlane.f32.xlu0 %v1193_v11  ;;  %1219 = vadd.xlane.f32.xlu1 %v1194_v0 }
 0x228   : > { %1221 = vadd.xlane.f32.xlu2 %v1195_v2 }
 0x22f   : > { %1223 = vadd.xlane.f32.xlu0 %v1196_v3  ;;  %1225 = vadd.xlane.f32.xlu1 %v1197_v5 }
 0x230   : > { %1227 = vadd.xlane.f32.xlu2 %v1198_v7  ;;  %v1104_v7 = vld [vmem:[#allocation2 + $0x78] sm:$0xff] }
 0x237   : > { %1229 = vadd.xlane.f32.xlu0 %v1199_v9  ;;  %1231 = vadd.xlane.f32.xlu1 %v1200_v28  ;;  %v1169_v9 = vld [vmem:[#allocation3] sm:$0xff]  ;;  %v1170_v28 = vld [vmem:[#allocation3 + $0x8] sm:$0xff] }
 0x25a   : > { %v1110_v23 = vpop.xlane.xlu1 %1109  ;;  %v1106_v24 = vpop.xlane.xlu0 %1105 }
 0x25b   : > { %v1139_v31 = vadd.f32 %v1110_v23, %v1091_v15  ;;  %v1137_v38 = vadd.f32 %v1106_v24, %v1089_v16  ;;  %v1114_v32 = vpop.xlane.xlu2 %1113 }
 0x25c   : > { %v1141_v25 = vadd.f32 %v1114_v32, %v1093_v21  ;;  %v1172_v32 = vld [vmem:[#allocation3 + $0x18] sm:$0xff] }
 0x25d   : > { %1155 = vst.msk [vmem:[#allocation2 + $0x10] sm:$0xff] %vm371_vm1, %v1139_v31 }
 0x25e   : > { %1153 = vst.msk [vmem:[#allocation2] sm:$0xff] %vm371_vm1, %v1137_v38  ;;  %v1171_v38 = vld [vmem:[#allocation3 + $0x10] sm:$0xff] }
 0x25f   : > { %1157 = vst.msk [vmem:[#allocation2 + $0x20] sm:$0xff] %vm371_vm1, %v1141_v25  ;;  %v1173_v25 = vld [vmem:[#allocation3 + $0x20] sm:$0xff] }
 0x262   : > { %v1112_v41 = vpop.xlane.xlu1 %1111  ;;  %v1108_v18 = vpop.xlane.xlu0 %1107 }
 0x263   : > { %v1140_v43 = vadd.f32 %v1112_v41, %v1092_v33  ;;  %v1138_v44 = vadd.f32 %v1108_v18, %v1090_v4  ;;  %v1116_v45 = vpop.xlane.xlu2 %1115 }
 0x264   : > { %v1142_v46 = vadd.f32 %v1116_v45, %v1094_v35  ;;  %v1175_v45 = vld [vmem:[#allocation3 + $0x30] sm:$0xff] }
 0x265   : > { %1156 = vst.msk [vmem:[#allocation2 + $0x18] sm:$0xff] %vm371_vm1, %v1140_v43 }
 0x266   : > { %1154 = vst.msk [vmem:[#allocation2 + $0x8] sm:$0xff] %vm371_vm1, %v1138_v44  ;;  %v1174_v44 = vld [vmem:[#allocation3 + $0x28] sm:$0xff] }
 0x267   : > { %1158 = vst.msk [vmem:[#allocation2 + $0x28] sm:$0xff] %vm371_vm1, %v1142_v46  ;;  %v1176_v46 = vld [vmem:[#allocation3 + $0x38] sm:$0xff] }
 0x26a   : > { %v1120_v22 = vpop.xlane.xlu1 %1119  ;;  %v1118_v6 = vpop.xlane.xlu0 %1117 }
 0x26b   : > { %v1144_v49 = vadd.f32 %v1120_v22, %v1096_v14  ;;  %v1143_v51 = vadd.f32 %v1118_v6, %v1095_v59  ;;  %v1122_v20 = vpop.xlane.xlu2 %1121 }
 0x26c   : > { %v1145_v29 = vadd.f32 %v1122_v20, %v1097_v13  ;;  %v1178_v20 = vld [vmem:[#allocation3 + $0x48] sm:$0xff] }
 0x26d   : > { %1160 = vst.msk [vmem:[#allocation2 + $0x38] sm:$0xff] %vm371_vm1, %v1144_v49 }
 0x26e   : > { %1159 = vst.msk [vmem:[#allocation2 + $0x30] sm:$0xff] %vm371_vm1, %v1143_v51  ;;  %v1177_v51 = vld [vmem:[#allocation3 + $0x40] sm:$0xff] }
 0x26f   : > { %1161 = vst.msk [vmem:[#allocation2 + $0x40] sm:$0xff] %vm371_vm1, %v1145_v29  ;;  %v1179_v29 = vld [vmem:[#allocation3 + $0x50] sm:$0xff] }
 0x272   : > { %v1126_v42 = vpop.xlane.xlu1 %1125  ;;  %v1124_v55 = vpop.xlane.xlu0 %1123 }
 0x273   : > { %v1147_v39 = vadd.f32 %v1126_v42, %v1099_v52  ;;  %v1146_v19 = vadd.f32 %v1124_v55, %v1098_v53  ;;  %v1128_v57 = vpop.xlane.xlu2 %1127 }
 0x274   : > { %v1148_v34 = vadd.f32 %v1128_v57, %v1100_v48  ;;  %v1181_v57 = vld [vmem:[#allocation3 + $0x60] sm:$0xff] }
 0x275   : > { %1163 = vst.msk [vmem:[#allocation2 + $0x50] sm:$0xff] %vm371_vm1, %v1147_v39 }
 0x276   : > { %1162 = vst.msk [vmem:[#allocation2 + $0x48] sm:$0xff] %vm371_vm1, %v1146_v19  ;;  %v1180_v19 = vld [vmem:[#allocation3 + $0x58] sm:$0xff] }
 0x277   : > { %1164 = vst.msk [vmem:[#allocation2 + $0x58] sm:$0xff] %vm371_vm1, %v1148_v34  ;;  %v1182_v34 = vld [vmem:[#allocation3 + $0x68] sm:$0xff] }
 0x27a   : > { %v1132_v63 = vpop.xlane.xlu1 %1131  ;;  %v1130_v11 = vpop.xlane.xlu0 %1129 }
 0x27b   : > { %v1150_v0 = vadd.f32 %v1132_v63, %v1102_v58  ;;  %v1149_v2 = vadd.f32 %v1130_v11, %v1101_v60  ;;  %v1134_v3 = vpop.xlane.xlu2 %1133 }
 0x27c   : > { %v1151_v5 = vadd.f32 %v1134_v3, %v1103_v61  ;;  %v1184_v3 = vld [vmem:[#allocation3 + $0x78] sm:$0xff] }
 0x27d   : > { %1166 = vst.msk [vmem:[#allocation2 + $0x68] sm:$0xff] %vm371_vm1, %v1150_v0 }
 0x27e   : > { %1165 = vst.msk [vmem:[#allocation2 + $0x60] sm:$0xff] %vm371_vm1, %v1149_v2  ;;  %v1183_v2 = vld [vmem:[#allocation3 + $0x70] sm:$0xff] }
 0x27f   : > { %1167 = vst.msk [vmem:[#allocation2 + $0x70] sm:$0xff] %vm371_vm1, %v1151_v5 }
 0x282   : > { %v1136_v15 = vpop.xlane.xlu0 %1135  ;;  %v1202_v16 = vpop.xlane.xlu1 %1201 }
 0x283   : > { %v1152_v21 = vadd.f32 %v1136_v15, %v1104_v7  ;;  %v1233_v23 = vadd.f32 %v1202_v16, %v1169_v9  ;;  %v1204_v24 = vpop.xlane.xlu2 %1203 }
 0x284   : > { %v1234_v31 = vadd.f32 %v1204_v24, %v1170_v28 }
 0x285   : > { %1168 = vst.msk [vmem:[#allocation2 + $0x78] sm:$0xff] %vm371_vm1, %v1152_v21 }
 0x286   : > { %1249 = vst.msk [vmem:[#allocation3] sm:$0xff] %vm371_vm1, %v1233_v23 }
 0x287   : > { %1250 = vst.msk [vmem:[#allocation3 + $0x8] sm:$0xff] %vm371_vm1, %v1234_v31 }
 0x28a   : > { %v1206_v33 = vpop.xlane.xlu0 %1205  ;;  %v1208_v4 = vpop.xlane.xlu1 %1207 }
 0x28b   : > { %v1235_v35 = vadd.f32 %v1206_v33, %v1171_v38  ;;  %v1236_v41 = vadd.f32 %v1208_v4, %v1172_v32  ;;  %v1210_v18 = vpop.xlane.xlu2 %1209 }
 0x28c   : > { %v1237_v43 = vadd.f32 %v1210_v18, %v1173_v25 }
 0x28d   : > { %1251 = vst.msk [vmem:[#allocation3 + $0x10] sm:$0xff] %vm371_vm1, %v1235_v35 }
 0x28e   : > { %1252 = vst.msk [vmem:[#allocation3 + $0x18] sm:$0xff] %vm371_vm1, %v1236_v41 }
 0x28f   : > { %1253 = vst.msk [vmem:[#allocation3 + $0x20] sm:$0xff] %vm371_vm1, %v1237_v43 }
 0x292   : > { %v1212_v14 = vpop.xlane.xlu0 %1211  ;;  %v1214_v59 = vpop.xlane.xlu1 %1213 }
 0x293   : > { %v1238_v13 = vadd.f32 %v1212_v14, %v1174_v44  ;;  %v1239_v22 = vadd.f32 %v1214_v59, %v1175_v45  ;;  %v1216_v6 = vpop.xlane.xlu2 %1215 }
 0x294   : > { %v1240_v49 = vadd.f32 %v1216_v6, %v1176_v46 }
 0x295   : > { %1254 = vst.msk [vmem:[#allocation3 + $0x28] sm:$0xff] %vm371_vm1, %v1238_v13 }
 0x296   : > { %1255 = vst.msk [vmem:[#allocation3 + $0x30] sm:$0xff] %vm371_vm1, %v1239_v22 }
 0x297   : > { %1256 = vst.msk [vmem:[#allocation3 + $0x38] sm:$0xff] %vm371_vm1, %v1240_v49 }
 0x29a   : > { %v1218_v52 = vpop.xlane.xlu0 %1217  ;;  %v1220_v53 = vpop.xlane.xlu1 %1219 }
 0x29b   : > { %v1241_v48 = vadd.f32 %v1218_v52, %v1177_v51  ;;  %v1242_v42 = vadd.f32 %v1220_v53, %v1178_v20  ;;  %v1222_v55 = vpop.xlane.xlu2 %1221 }
 0x29c   : > { %v1243_v39 = vadd.f32 %v1222_v55, %v1179_v29 }
 0x29d   : > { %1257 = vst.msk [vmem:[#allocation3 + $0x40] sm:$0xff] %vm371_vm1, %v1241_v48 }
 0x29e   : > { %1258 = vst.msk [vmem:[#allocation3 + $0x48] sm:$0xff] %vm371_vm1, %v1242_v42 }
 0x29f   : > { %1259 = vst.msk [vmem:[#allocation3 + $0x50] sm:$0xff] %vm371_vm1, %v1243_v39 }
 0x2a2   : > { %v1224_v58 = vpop.xlane.xlu0 %1223  ;;  %v1226_v60 = vpop.xlane.xlu1 %1225 }
 0x2a3   : > { %v1244_v61 = vadd.f32 %v1224_v58, %v1180_v19  ;;  %v1245_v63 = vadd.f32 %v1226_v60, %v1181_v57  ;;  %v1228_v11 = vpop.xlane.xlu2 %1227 }
 0x2a4   : > { %v1246_v0 = vadd.f32 %v1228_v11, %v1182_v34 }
 0x2a5   : > { %1260 = vst.msk [vmem:[#allocation3 + $0x58] sm:$0xff] %vm371_vm1, %v1244_v61 }
 0x2a6   : > { %1261 = vst.msk [vmem:[#allocation3 + $0x60] sm:$0xff] %vm371_vm1, %v1245_v63 }
 0x2a7   : > { %1262 = vst.msk [vmem:[#allocation3 + $0x68] sm:$0xff] %vm371_vm1, %v1246_v0 }
 0x2aa   : > { %v1230_v5 = vpop.xlane.xlu0 %1229  ;;  %v1232_v7 = vpop.xlane.xlu1 %1231 }
 0x2ab   : > { %v1247_v9 = vadd.f32 %v1230_v5, %v1183_v2  ;;  %v1248_v28 = vadd.f32 %v1232_v7, %v1184_v3 }
 0x2ad   : > { %1263 = vst.msk [vmem:[#allocation3 + $0x70] sm:$0xff] %vm371_vm1, %v1247_v9 }
 0x2ae   : > { %1264 = vst.msk [vmem:[#allocation3 + $0x78] sm:$0xff] %vm371_vm1, %v1248_v28 }
 0x2af PF: > { %p1265_p6 = scmp.eq.s32.totalorder %s2149_s15, 1 }
 0x2b0   : > { %v1270_v15 = vld [vmem:[#allocation2] sm:$0xff] (%p1265_p6)  ;;  %v1271_v35 = vld [vmem:[#allocation2 + $0x8] sm:$0xff] (%p1265_p6)  ;;  %v1272_v20 = vld [vmem:[#allocation2 + $0x10] sm:$0xff] (%p1265_p6) }
 0x2b1   : > { %1269 = sbr.rel (!%p1265_p6) target bundleno = 759 (0x2f7), region = 48  ;;  %v1274_v16 = vld [vmem:[#allocation2 + $0x20] sm:$0xff] (%p1265_p6)  ;;  %v1275_v41 = vld [vmem:[#allocation2 + $0x28] sm:$0xff] (%p1265_p6)  ;;  %v1276_v29 = vld [vmem:[#allocation2 + $0x30] sm:$0xff] (%p1265_p6) }
 0x2b2   : > { %v1278_v21 = vld [vmem:[#allocation2 + $0x40] sm:$0xff] (%p1265_p6)  ;;  %v1302_v31 = vadd.f32 (%p1265_p6), %v1274_v16, %v1270_v15  ;;  %v1279_v18 = vld [vmem:[#allocation2 + $0x48] sm:$0xff] (%p1265_p6)  ;;  %v1303_v46 = vadd.f32 (%p1265_p6), %v1275_v41, %v1271_v35  ;;  %v1280_v52 = vld [vmem:[#allocation2 + $0x50] sm:$0xff] (%p1265_p6)  ;;  %v1304_v39 = vadd.f32 (%p1265_p6), %v1276_v29, %v1272_v20 }
 0x2b3   : > { %v1286_v23 = vld [vmem:[#allocation3] sm:$0xff] (%p1265_p6)  ;;  %v1287_v44 = vld [vmem:[#allocation3 + $0x8] sm:$0xff] (%p1265_p6)  ;;  %v1288_v42 = vld [vmem:[#allocation3 + $0x10] sm:$0xff] (%p1265_p6) }
 0x2b4   : > { %v1290_v24 = vld [vmem:[#allocation3 + $0x20] sm:$0xff] (%p1265_p6)  ;;  %v1306_v4 = vadd.f32 (%p1265_p6), %v1302_v31, %v1278_v21  ;;  %v1291_v45 = vld [vmem:[#allocation3 + $0x28] sm:$0xff] (%p1265_p6)  ;;  %v1307_v51 = vadd.f32 (%p1265_p6), %v1303_v46, %v1279_v18  ;;  %v1292_v55 = vld [vmem:[#allocation3 + $0x30] sm:$0xff] (%p1265_p6)  ;;  %v1308_v0 = vadd.f32 (%p1265_p6), %v1304_v39, %v1280_v52 }
 0x2b5   : > { %v1282_v38 = vld [vmem:[#allocation2 + $0x60] sm:$0xff] (%p1265_p6)  ;;  %v1314_v33 = vadd.f32 (%p1265_p6), %v1290_v24, %v1286_v23  ;;  %v1283_v59 = vld [vmem:[#allocation2 + $0x68] sm:$0xff] (%p1265_p6)  ;;  %v1315_v6 = vadd.f32 (%p1265_p6), %v1291_v45, %v1287_v44  ;;  %v1284_v34 = vld [vmem:[#allocation2 + $0x70] sm:$0xff] (%p1265_p6)  ;;  %v1316_v61 = vadd.f32 (%p1265_p6), %v1292_v55, %v1288_v42 }
 0x2b6   : > { %v1294_v32 = vld [vmem:[#allocation3 + $0x40] sm:$0xff]  ;;  %v1310_v14 = vadd.f32 %v1306_v4, %v1282_v38  ;;  %v1295_v13 = vld [vmem:[#allocation3 + $0x48] sm:$0xff]  ;;  %v1311_v57 = vadd.f32 %v1307_v51, %v1283_v59  ;;  %v1296_v58 = vld [vmem:[#allocation3 + $0x50] sm:$0xff]  ;;  %v1312_v24 = vadd.f32 %v1308_v0, %v1284_v34 }
 0x2b7   : > { %v1298_v25 = vld [vmem:[#allocation3 + $0x60] sm:$0xff]  ;;  %v1318_v43 = vadd.f32 %v1314_v33, %v1294_v32  ;;  %v1299_v22 = vld [vmem:[#allocation3 + $0x68] sm:$0xff]  ;;  %v1319_v48 = vadd.f32 %v1315_v6, %v1295_v13  ;;  %v1300_v60 = vld [vmem:[#allocation3 + $0x70] sm:$0xff]  ;;  %v1320_v9 = vadd.f32 %v1316_v61, %v1296_v58 }
 0x2b8   : > { %v2987_v53 = vmul.f32 0.03125, %v1310_v14  ;;  %v1273_v2 = vld [vmem:[#allocation2 + $0x18] sm:$0xff]  ;;  %v2991_v7 = vmul.f32 0.03125, %v1311_v57  ;;  %v2995_v18 = vmul.f32 0.03125, %v1312_v24 }
 0x2b9   : > { %v1322_v49 = vadd.f32 %v1318_v43, %v1298_v25  ;;  %v1323_v11 = vadd.f32 %v1319_v48, %v1299_v22  ;;  %v1277_v3 = vld [vmem:[#allocation2 + $0x38] sm:$0xff]  ;;  %v1324_v33 = vadd.f32 %v1320_v9, %v1300_v60  ;;  %v1346_v9 = vld [vmem:[%s3136_s2] sm:$0xff] }
 0x2ba   : > { %v1334_v63 = vmul.f32 %v2987_v53, %v2987_v53  ;;  %v1281_v5 = vld [vmem:[#allocation2 + $0x58] sm:$0xff]  ;;  %v1305_v16 = vadd.f32 %v1277_v3, %v1273_v2  ;;  %v1335_v25 = vmul.f32 %v2991_v7, %v2991_v7  ;;  %v1336_v59 = vmul.f32 %v2995_v18, %v2995_v18 }
 0x2bb   : > { %v1330_v19 = vmul.f32 0.03125, %v1322_v49  ;;  %v1289_v28 = vld [vmem:[#allocation3 + $0x18] sm:$0xff]  ;;  %v1331_v23 = vmul.f32 0.03125, %v1323_v11  ;;  %v1332_v45 = vmul.f32 0.03125, %v1324_v33  ;;  %v1347_v33 = vld [vmem:[%s3136_s2 + $0x8] sm:$0xff] }
 0x2bc   : > { %v1293_v15 = vld [vmem:[#allocation3 + $0x38] sm:$0xff]  ;;  %v1309_v35 = vadd.f32 %v1305_v16, %v1281_v5 }
 0x2bd   : > { %v1338_v21 = vsub.f32 %v1330_v19, %v1334_v63  ;;  %v1285_v31 = vld [vmem:[#allocation2 + $0x78] sm:$0xff]  ;;  %v1317_v32 = vadd.f32 %v1293_v15, %v1289_v28  ;;  %v1339_v44 = vsub.f32 %v1331_v23, %v1335_v25  ;;  %v1340_v49 = vsub.f32 %v1332_v45, %v1336_v59 }
 0x2be   : > { %v1297_v38 = vld [vmem:[#allocation3 + $0x58] sm:$0xff]  ;;  %v1313_v46 = vadd.f32 %v1309_v35, %v1285_v31 }
 0x2bf   : > { %v1301_v4 = vld [vmem:[#allocation3 + $0x78] sm:$0xff]  ;;  %v1342_v41 = vmax.f32 %v1338_v21, 0.0  ;;  %v1321_v43 = vadd.f32 %v1317_v32, %v1297_v38  ;;  %v1343_v22 = vmax.f32 %v1339_v44, 0.0  ;;  %v1344_v52 = vmax.f32 %v1340_v49, 0.0 }
 0x2c0   : > { %v2999_v6 = vmul.f32 0.03125, %v1313_v46  ;;  %v1349_v49 = vld [vmem:[%s3136_s2 + $0x18] sm:$0xff] }
 0x2c1   : > { %v1350_v14 = vadd.f32 1e-05, %v1342_v41  ;;  %v1325_v13 = vadd.f32 %v1321_v43, %v1301_v4  ;;  %v1351_v20 = vadd.f32 1e-05, %v1343_v22  ;;  %v1352_v42 = vadd.f32 1e-05, %v1344_v52 }
 0x2c2   : > { %v1337_v29 = vmul.f32 %v2999_v6, %v2999_v6 }
 0x2c3   : > { %2124 = vrsqrt.f32 %v1350_v14  ;;  %v1333_v51 = vmul.f32 0.03125, %v1325_v13  ;;  %vm1360_vm13 = vweird.f32 %v1350_v14  ;;  %vm1370_vm3 = vweird.f32 %v1351_v20 }
 0x2c4   : > { %2126 = vrsqrt.f32 %v1351_v20  ;;  %vm1380_vm2 = vweird.f32 %v1352_v42 }
 0x2c5   : > { %v1341_v48 = vsub.f32 %v1333_v51, %v1337_v29  ;;  %2128 = vrsqrt.f32 %v1352_v42  ;;  %v1398_v29 = vld [vmem:[%s3137_s3] sm:$0xff] }
 0x2c7   : > { %v1345_v55 = vmax.f32 %v1341_v48, 0.0 }
 0x2c9   : > { %v2125_v39 = vpop.eup %2124  ;;  %v1353_v57 = vadd.f32 1e-05, %v1345_v55 }
 0x2ca   : > { %v1355_v19 = vmul.f32 %v2125_v39, %v1350_v14  ;;  %v2127_v34 = vpop.eup %2126  ;;  %vm1361_vm15 = vweird.f32 %v2125_v39  ;;  %v1348_v14 = vld [vmem:[%s3136_s2 + $0x10] sm:$0xff] }
 0x2cb   : > { %2130 = vrsqrt.f32 %v1353_v57  ;;  %v1365_v60 = vmul.f32 %v2127_v34, %v1351_v20  ;;  %v2129_v63 = vpop.eup %2128  ;;  %vm1362_vm0 = vmor %vm1360_vm13, %vm1361_vm15  ;;  %vm1371_vm5 = vweird.f32 %v2127_v34  ;;  %vm1390_vm6 = vweird.f32 %v1353_v57 }
 0x2cc   : > { %v1356_v58 = vmul.f32 %v2125_v39, %v1355_v19  ;;  %v1375_v2 = vmul.f32 %v2129_v63, %v1352_v42  ;;  %vm3006_vm7 = vmor %vm1370_vm3, %vm1371_vm5  ;;  %vm1381_vm12 = vweird.f32 %v2129_v63 }
 0x2cd   : > { %v1366_v11 = vmul.f32 %v2127_v34, %v1365_v60  ;;  %vm3016_vm4 = vmor %vm1380_vm2, %vm1381_vm12 }
 0x2ce   : > { %v1357_v61 = vmul.f32 0.5, %v1356_v58  ;;  %v1376_v15 = vmul.f32 %v2129_v63, %v1375_v2 }
 0x2cf   : > { %v1367_v3 = vmul.f32 0.5, %v1366_v11 }
 0x2d0   : > { %v1358_v0 = vsub.f32 1.5, %v1357_v61  ;;  %v1377_v31 = vmul.f32 0.5, %v1376_v15 }
 0x2d1   : > { %v2131_v5 = vpop.eup %2130  ;;  %v1368_v16 = vsub.f32 1.5, %v1367_v3 }
 0x2d2   : > { %v1359_v28 = vmul.f32 %v2125_v39, %v1358_v0  ;;  %v1385_v21 = vmul.f32 %v2131_v5, %v1353_v57  ;;  %v1378_v4 = vsub.f32 1.5, %v1377_v31  ;;  %vm1391_vm14 = vweird.f32 %v2131_v5 }
 0x2d3   : > { %v1369_v32 = vmul.f32 %v2127_v34, %v1368_v16  ;;  %vm1392_vm10 = vmor %vm1390_vm6, %vm1391_vm14 }
 0x2d4   : > { %v1363_v23 = vsel %vm1362_vm0, %v2125_v39, %v1359_v28  ;;  %v1386_v25 = vmul.f32 %v2131_v5, %v1385_v21  ;;  %v1379_v44 = vmul.f32 %v2129_v63, %v1378_v4 }
 0x2d5   : > { %v1394_v38 = vmul.f32 %v1363_v23, %v1346_v9  ;;  %v1373_v35 = vsel %vm3006_vm7, %v2127_v34, %v1369_v32 }
 0x2d6   : > { %v1387_v43 = vmul.f32 0.5, %v1386_v25  ;;  %v1395_v45 = vmul.f32 %v1373_v35, %v1347_v33  ;;  %v1383_v59 = vsel %vm3016_vm4, %v2129_v63, %v1379_v44 }
 0x2d7   : > { %1410 = vst.msk [vmem:[#allocation4] sm:$0xff] %vm371_vm1, %v1394_v38  ;;  %v1396_v22 = vmul.f32 %v1383_v59, %v1348_v14  ;;  %v1402_v20 = vmul.f32 %v1394_v38, %v2987_v53  ;;  %v1399_v53 = vld [vmem:[%s3137_s3 + $0x8] sm:$0xff] }
 0x2d8   : > { %1418 = vst.msk [vmem:[#allocation4 + $0x20] sm:$0xff] %vm371_vm1, %v1394_v38  ;;  %v1388_v46 = vsub.f32 1.5, %v1387_v43  ;;  %v1403_v42 = vmul.f32 %v1395_v45, %v2991_v7  ;;  %v1400_v7 = vld [vmem:[%s3137_s3 + $0x10] sm:$0xff] }
 0x2d9   : > { %1426 = vst.msk [vmem:[#allocation4 + $0x40] sm:$0xff] %vm371_vm1, %v1394_v38  ;;  %v1406_v48 = vsub.f32 %v1398_v29, %v1402_v20  ;;  %v1404_v39 = vmul.f32 %v1396_v22, %v2995_v18  ;;  %v1401_v18 = vld [vmem:[%s3137_s3 + $0x18] sm:$0xff] }
 0x2da   : > { %1434 = vst.msk [vmem:[#allocation4 + $0x60] sm:$0xff] %vm371_vm1, %v1394_v38  ;;  %v1389_v13 = vmul.f32 %v2131_v5, %v1388_v46  ;;  %v1407_v55 = vsub.f32 %v1399_v53, %v1403_v42 }
 0x2db   : > { %1411 = vst.msk [vmem:[#allocation4 + $0x8] sm:$0xff] %vm371_vm1, %v1395_v45  ;;  %v1408_v19 = vsub.f32 %v1400_v7, %v1404_v39 }
 0x2dc   : > { %1419 = vst.msk [vmem:[#allocation4 + $0x28] sm:$0xff] %vm371_vm1, %v1395_v45  ;;  %v1393_v51 = vsel %vm1392_vm10, %v2131_v5, %v1389_v13 }
 0x2dd   : > { %1427 = vst.msk [vmem:[#allocation4 + $0x48] sm:$0xff] %vm371_vm1, %v1395_v45  ;;  %v1397_v52 = vmul.f32 %v1393_v51, %v1349_v49 }
 0x2de   : > { %1435 = vst.msk [vmem:[#allocation4 + $0x68] sm:$0xff] %vm371_vm1, %v1395_v45 }
 0x2df   : > { %1412 = vst.msk [vmem:[#allocation4 + $0x10] sm:$0xff] %vm371_vm1, %v1396_v22  ;;  %v1405_v57 = vmul.f32 %v1397_v52, %v2999_v6 }
 0x2e0   : > { %1420 = vst.msk [vmem:[#allocation4 + $0x30] sm:$0xff] %vm371_vm1, %v1396_v22 }
 0x2e1   : > { %1428 = vst.msk [vmem:[#allocation4 + $0x50] sm:$0xff] %vm371_vm1, %v1396_v22  ;;  %v1409_v34 = vsub.f32 %v1401_v18, %v1405_v57 }
 0x2e2   : > { %1436 = vst.msk [vmem:[#allocation4 + $0x70] sm:$0xff] %vm371_vm1, %v1396_v22 }
 0x2e3   : > { %1413 = vst.msk [vmem:[#allocation4 + $0x18] sm:$0xff] %vm371_vm1, %v1397_v52 }
 0x2e4   : > { %1421 = vst.msk [vmem:[#allocation4 + $0x38] sm:$0xff] %vm371_vm1, %v1397_v52 }
 0x2e5   : > { %1429 = vst.msk [vmem:[#allocation4 + $0x58] sm:$0xff] %vm371_vm1, %v1397_v52 }
 0x2e6   : > { %1437 = vst.msk [vmem:[#allocation4 + $0x78] sm:$0xff] %vm371_vm1, %v1397_v52 }
 0x2e7   : > { %1414 = vst.msk [vmem:[#allocation5] sm:$0xff] %vm371_vm1, %v1406_v48 }
 0x2e8   : > { %1422 = vst.msk [vmem:[#allocation5 + $0x20] sm:$0xff] %vm371_vm1, %v1406_v48 }
 0x2e9   : > { %1430 = vst.msk [vmem:[#allocation5 + $0x40] sm:$0xff] %vm371_vm1, %v1406_v48 }
 0x2ea   : > { %1438 = vst.msk [vmem:[#allocation5 + $0x60] sm:$0xff] %vm371_vm1, %v1406_v48 }
 0x2eb   : > { %1415 = vst.msk [vmem:[#allocation5 + $0x8] sm:$0xff] %vm371_vm1, %v1407_v55 }
 0x2ec   : > { %1423 = vst.msk [vmem:[#allocation5 + $0x28] sm:$0xff] %vm371_vm1, %v1407_v55 }
 0x2ed   : > { %1431 = vst.msk [vmem:[#allocation5 + $0x48] sm:$0xff] %vm371_vm1, %v1407_v55 }
 0x2ee   : > { %1439 = vst.msk [vmem:[#allocation5 + $0x68] sm:$0xff] %vm371_vm1, %v1407_v55 }
 0x2ef   : > { %1416 = vst.msk [vmem:[#allocation5 + $0x10] sm:$0xff] %vm371_vm1, %v1408_v19 }
 0x2f0   : > { %1424 = vst.msk [vmem:[#allocation5 + $0x30] sm:$0xff] %vm371_vm1, %v1408_v19 }
 0x2f1   : > { %1432 = vst.msk [vmem:[#allocation5 + $0x50] sm:$0xff] %vm371_vm1, %v1408_v19 }
 0x2f2   : > { %1440 = vst.msk [vmem:[#allocation5 + $0x70] sm:$0xff] %vm371_vm1, %v1408_v19 }
 0x2f3   : > { %1417 = vst.msk [vmem:[#allocation5 + $0x18] sm:$0xff] %vm371_vm1, %v1409_v34 }
 0x2f4   : > { %1425 = vst.msk [vmem:[#allocation5 + $0x38] sm:$0xff] %vm371_vm1, %v1409_v34 }
 0x2f5   : > { %1433 = vst.msk [vmem:[#allocation5 + $0x58] sm:$0xff] %vm371_vm1, %v1409_v34 }
 0x2f6   : > { %1441 = vst.msk [vmem:[#allocation5 + $0x78] sm:$0xff] %vm371_vm1, %v1409_v34 }
 0x2f7 PF: > { %p1970_p7 = scmp.ne.s32.totalorder %s2149_s15, 1 }
 0x2f9   : > { %1444 = sbr.rel (%p1970_p7) target bundleno = 971 (0x3cb), region = 52 }
 0x2fe   : > { %v1449_v6 = vld [vmem:[#allocation4 + $0x20] sm:$0xff]  ;;  %v1447_v58 = vld [vmem:[#allocation4 + $0x10] sm:$0xff]  ;;  %v2167_v61 = vmov 0   ;;  %v1450_v63 = vld [vmem:[#allocation4 + $0x28] sm:$0xff] }
 0x2ff   : > { %v1445_v60 = vld [vmem:[#allocation4] sm:$0xff]  ;;  %2134 = vset.pattern.permute.xlu2 %v2167_v61  ;;  %2133 = vset.pattern.permute.xlu1 %v2167_v61  ;;  %v1448_v11 = vld [vmem:[#allocation4 + $0x18] sm:$0xff]  ;;  %v1446_v0 = vld [vmem:[#allocation4 + $0x8] sm:$0xff] }
 0x300   : > { %2132 = vset.pattern.permute.xlu0 %v2167_v61  ;;  %1483 = vperm.xlu2 %2134, %v1449_v6   ;;  %v1453_v2 = vld [vmem:[#allocation4 + $0x40] sm:$0xff]  ;;  %v1452_v3 = vld [vmem:[#allocation4 + $0x38] sm:$0xff]  ;;  %v1451_v5 = vld [vmem:[#allocation4 + $0x30] sm:$0xff] }
 0x301   : > { %1473 = vperm.xlu1 %2133, %v1447_v58   ;;  %1463 = vperm.xlu0 %2132, %v1445_v60   ;;  %v1456_v9 = vld [vmem:[#allocation4 + $0x58] sm:$0xff]  ;;  %v1455_v28 = vld [vmem:[#allocation4 + $0x50] sm:$0xff]  ;;  %v1454_v15 = vld [vmem:[#allocation4 + $0x48] sm:$0xff] }
 0x302   : > { %v1459_v16 = vld [vmem:[#allocation4 + $0x70] sm:$0xff]  ;;  %v1458_v21 = vld [vmem:[#allocation4 + $0x68] sm:$0xff]  ;;  %v1457_v23 = vld [vmem:[#allocation4 + $0x60] sm:$0xff] }
 0x303   : > { %v1558_v24 = vld [vmem:[#allocation5 + $0x8] sm:$0xff]  ;;  %v1557_v31 = vld [vmem:[#allocation5] sm:$0xff]  ;;  %v1460_v38 = vld [vmem:[#allocation4 + $0x78] sm:$0xff] }
 0x304   : > { %v1561_v32 = vld [vmem:[#allocation5 + $0x20] sm:$0xff]  ;;  %v1560_v25 = vld [vmem:[#allocation5 + $0x18] sm:$0xff]  ;;  %v1559_v33 = vld [vmem:[#allocation5 + $0x10] sm:$0xff] }
 0x305   : > { %v1564_v4 = vld [vmem:[#allocation5 + $0x38] sm:$0xff]  ;;  %v1563_v35 = vld [vmem:[#allocation5 + $0x30] sm:$0xff]  ;;  %v1562_v41 = vld [vmem:[#allocation5 + $0x28] sm:$0xff] }
 0x306   : > { %v1567_v43 = vld [vmem:[#allocation5 + $0x50] sm:$0xff]  ;;  %v1566_v44 = vld [vmem:[#allocation5 + $0x48] sm:$0xff]  ;;  %v1565_v45 = vld [vmem:[#allocation5 + $0x40] sm:$0xff] }
 0x307   : > { %v1570_v46 = vld [vmem:[#allocation5 + $0x68] sm:$0xff]  ;;  %v1569_v14 = vld [vmem:[#allocation5 + $0x60] sm:$0xff]  ;;  %v1568_v59 = vld [vmem:[#allocation5 + $0x58] sm:$0xff] }
 0x308   : > { %1488 = vperm.xlu2 %2134, %v1450_v63   ;;  %v1572_v13 = vld [vmem:[#allocation5 + $0x78] sm:$0xff]  ;;  %v1571_v22 = vld [vmem:[#allocation5 + $0x70] sm:$0xff] }
 0x309   : > { %1478 = vperm.xlu1 %2133, %v1448_v11   ;;  %1468 = vperm.xlu0 %2132, %v1446_v0  }
 0x310   : > { %1503 = vperm.xlu2 %2134, %v1453_v2  }
 0x311   : > { %1498 = vperm.xlu1 %2133, %v1452_v3   ;;  %1493 = vperm.xlu0 %2132, %v1451_v5  }
 0x318   : > { %1518 = vperm.xlu2 %2134, %v1456_v9  }
 0x319   : > { %1513 = vperm.xlu1 %2133, %v1455_v28   ;;  %1508 = vperm.xlu0 %2132, %v1454_v15  }
 0x320   : > { %1533 = vperm.xlu2 %2134, %v1459_v16  }
 0x321   : > { %1528 = vperm.xlu1 %2133, %v1458_v21   ;;  %1523 = vperm.xlu0 %2132, %v1457_v23  }
 0x328   : > { %1580 = vperm.xlu2 %2134, %v1558_v24  }
 0x329   : > { %1575 = vperm.xlu1 %2133, %v1557_v31   ;;  %1538 = vperm.xlu0 %2132, %v1460_v38  }
 0x330   : > { %1595 = vperm.xlu2 %2134, %v1561_v32  }
 0x331   : > { %1590 = vperm.xlu1 %2133, %v1560_v25   ;;  %1585 = vperm.xlu0 %2132, %v1559_v33  }
 0x338   : > { %1610 = vperm.xlu2 %2134, %v1564_v4  }
 0x339   : > { %1605 = vperm.xlu1 %2133, %v1563_v35   ;;  %1600 = vperm.xlu0 %2132, %v1562_v41  }
 0x340   : > { %1625 = vperm.xlu2 %2134, %v1567_v43  }
 0x341   : > { %1620 = vperm.xlu1 %2133, %v1566_v44   ;;  %1615 = vperm.xlu0 %2132, %v1565_v45  }
 0x348   : > { %1640 = vperm.xlu2 %2134, %v1570_v46  }
 0x349   : > { %1635 = vperm.xlu1 %2133, %v1569_v14   ;;  %1630 = vperm.xlu0 %2132, %v1568_v59  }
 0x351   : > { %1650 = vperm.xlu1 %2133, %v1572_v13   ;;  %1645 = vperm.xlu0 %2132, %v1571_v22  }
 0x35a   : > { %v1484_v49 = vpop.permute.xlu2 %1483 }
 0x35b   : > { %v1545_v38 = vmul.f32 %v1484_v49, %v2872_v26 }
 0x362   : > { %v1489_v51 = vpop.permute.xlu2 %1488 }
 0x36a   : > { %v1504_v20 = vpop.permute.xlu2 %1503 }
 0x372   : > { %v3076_v48 = vpop.permute.xlu2 %1518 }
 0x373   : > { %v1474_v29 = vpop.permute.xlu1 %1473  ;;  %v1464_v52 = vpop.permute.xlu0 %1463 }
 0x374   : > { %v1541_v61 = vmul.f32 %v1464_v52, %v2862_v50  ;;  %v1543_v28 = vmul.f32 %v1474_v29, %v2866_v62  ;;  %v1546_v62 = vmul.f32 %v1489_v51, %v2875_v36  ;;  %v1549_v36 = vmul.f32 %v1504_v20, %v2882_v40 }
 0x375   : > { %v1552_v20 = vmul.f32 %v3076_v48, %v2891_v27 }
 0x37a   : > { %v3078_v7 = vpop.permute.xlu2 %1533 }
 0x37b   : > { %v1479_v42 = vpop.permute.xlu1 %1478  ;;  %v1469_v53 = vpop.permute.xlu0 %1468  ;;  %v1555_v27 = vmul.f32 %v3078_v7, %v2900_v30 }
 0x37c   : > { %v1542_v58 = vmul.f32 %v1469_v53, %v2864_v54  ;;  %v1544_v15 = vmul.f32 %v1479_v42, %v2869_v8 }
 0x382   : > { %v1581_v18 = vpop.permute.xlu2 %1580 }
 0x383   : > { %v1499_v55 = vpop.permute.xlu1 %1498  ;;  %v1494_v39 = vpop.permute.xlu0 %1493  ;;  %v1654_v63 = vadd.f32 %v1581_v18, %v1542_v58 }
 0x384   : > { %v1548_v32 = vmul.f32 %v1499_v55, %v2879_v17  ;;  %v1547_v8 = vmul.f32 %v1494_v39, %v2877_v12 }
 0x385   : > { %v1670_v3 = vmax.f32 %v1654_v63, 0.0 }
 0x38a   : > { %v1596_v60 = vpop.permute.xlu2 %1595 }
 0x38b   : > { %v1514_v19 = vpop.permute.xlu1 %1513  ;;  %v1509_v57 = vpop.permute.xlu0 %1508  ;;  %v1657_v33 = vadd.f32 %v1596_v60, %v1545_v38 }
 0x38c   : > { %v1550_v12 = vmul.f32 %v1509_v57, %v2885_v1  ;;  %v1551_v55 = vmul.f32 %v1514_v19, %v2888_v10 }
 0x38d   : > { %v1673_v46 = vmax.f32 %v1657_v33, 0.0 }
 0x392   : > { %v1611_v16 = vpop.permute.xlu2 %1610 }
 0x393   : > { %v1529_v34 = vpop.permute.xlu1 %1528  ;;  %v1524_v6 = vpop.permute.xlu0 %1523  ;;  %v1660_v4 = vadd.f32 %v1611_v16, %v1548_v32 }
 0x394   : > { %v1554_v40 = vmul.f32 %v1529_v34, %v2897_v47  ;;  %v1553_v39 = vmul.f32 %v1524_v6, %v2894_v37 }
 0x395   : > { %v1676_v26 = vmax.f32 %v1660_v4, 0.0 }
 0x39a   : > { %v1626_v45 = vpop.permute.xlu2 %1625 }
 0x39b   : > { %v1576_v11 = vpop.permute.xlu1 %1575  ;;  %v3082_v0 = vpop.permute.xlu0 %1538  ;;  %v1663_v57 = vadd.f32 %v1626_v45, %v1551_v55 }
 0x39c   : > { %v1653_v2 = vadd.f32 %v1576_v11, %v1541_v61  ;;  %v1556_v37 = vmul.f32 %v3082_v0, %v2903_v56 }
 0x39d   : > { %v1679_v11 = vmax.f32 %v1663_v57, 0.0 }
 0x39e   : > { %v1669_v5 = vmax.f32 %v1653_v2, 0.0 }
 0x3a0   : > { %v2023_v9 = vpack.c.bf16 %v1670_v3, %v1669_v5 }
 0x3a2   : > { %2024 = vst [vmem:[%s3138_s4] sm:$0xff] %v2023_v9   ;;  %v1641_v53 = vpop.permute.xlu2 %1640 }
 0x3a3   : > { %v1591_v54 = vpop.permute.xlu1 %1590  ;;  %v1586_v21 = vpop.permute.xlu0 %1585  ;;  %v1666_v18 = vadd.f32 %v1641_v53, %v1554_v40 }
 0x3a4   : > { %v1656_v50 = vadd.f32 %v1591_v54, %v1544_v15  ;;  %v1655_v23 = vadd.f32 %v1586_v21, %v1543_v28 }
 0x3a5   : > { %v1682_v10 = vmax.f32 %v1666_v18, 0.0 }
 0x3a6   : > { %v1672_v24 = vmax.f32 %v1656_v50, 0.0  ;;  %v1671_v31 = vmax.f32 %v1655_v23, 0.0 }
 0x3a8   : > { %v2028_v25 = vpack.c.bf16 %v1672_v24, %v1671_v31 }
 0x3aa   : > { %2060 = vst [vmem:[%s3138_s4 + $0x8] sm:$0xff] %v2028_v25  }
 0x3ab   : > { %v1606_v35 = vpop.permute.xlu1 %1605  ;;  %v1601_v41 = vpop.permute.xlu0 %1600 }
 0x3ac   : > { %v1659_v43 = vadd.f32 %v1606_v35, %v1547_v8  ;;  %v1658_v44 = vadd.f32 %v1601_v41, %v1546_v62 }
 0x3ae   : > { %v1675_v14 = vmax.f32 %v1659_v43, 0.0  ;;  %v1674_v17 = vmax.f32 %v1658_v44, 0.0 }
 0x3b0   : > { %v2038_v59 = vpack.c.bf16 %v1676_v26, %v1675_v14  ;;  %v2033_v13 = vpack.c.bf16 %v1674_v17, %v1673_v46 }
 0x3b2   : > { %2062 = vst [vmem:[%s3138_s4 + $0x18] sm:$0xff] %v2038_v59  }
 0x3b3   : > { %2061 = vst [vmem:[%s3138_s4 + $0x10] sm:$0xff] %v2033_v13   ;;  %v1621_v22 = vpop.permute.xlu1 %1620  ;;  %v1616_v49 = vpop.permute.xlu0 %1615 }
 0x3b4   : > { %v1662_v51 = vadd.f32 %v1621_v22, %v1550_v12  ;;  %v1661_v29 = vadd.f32 %v1616_v49, %v1549_v36 }
 0x3b6   : > { %v1678_v52 = vmax.f32 %v1662_v51, 0.0  ;;  %v1677_v42 = vmax.f32 %v1661_v29, 0.0 }
 0x3b8   : > { %v2043_v1 = vpack.c.bf16 %v1678_v52, %v1677_v42 }
 0x3ba   : > { %2063 = vst [vmem:[%s3138_s4 + $0x20] sm:$0xff] %v2043_v1  }
 0x3bb   : > { %v1636_v58 = vpop.permute.xlu1 %1635  ;;  %v1631_v60 = vpop.permute.xlu0 %1630 }
 0x3bc   : > { %v1665_v61 = vadd.f32 %v1636_v58, %v1553_v39  ;;  %v1664_v63 = vadd.f32 %v1631_v60, %v1552_v20 }
 0x3be   : > { %v1681_v19 = vmax.f32 %v1665_v61, 0.0  ;;  %v1680_v47 = vmax.f32 %v1664_v63, 0.0 }
 0x3c0   : > { %v2053_v34 = vpack.c.bf16 %v1682_v10, %v1681_v19  ;;  %v2048_v2 = vpack.c.bf16 %v1680_v47, %v1679_v11 }
 0x3c2   : > { %2065 = vst [vmem:[%s3138_s4 + $0x30] sm:$0xff] %v2053_v34  }
 0x3c3   : > { %2064 = vst [vmem:[%s3138_s4 + $0x28] sm:$0xff] %v2048_v2   ;;  %v1651_v48 = vpop.permute.xlu1 %1650  ;;  %v1646_v6 = vpop.permute.xlu0 %1645 }
 0x3c4   : > { %v1668_v3 = vadd.f32 %v1651_v48, %v1556_v37  ;;  %v1667_v5 = vadd.f32 %v1646_v6, %v1555_v27 }
 0x3c6   : > { %v1684_v9 = vmax.f32 %v1668_v3, 0.0  ;;  %v1683_v28 = vmax.f32 %v1667_v5, 0.0 }
 0x3c8   : > { %v2058_v15 = vpack.c.bf16 %v1684_v9, %v1683_v28 }
 0x3ca   : > { %2066 = vst [vmem:[%s3138_s4 + $0x38] sm:$0xff] %v2058_v15  }
 0x3cb PF: > { %s14_s17 = sadd.s32 1, %s2157_s17   ;;  %s3175_s15 = smov %s2153_s16 }
 0x3cc   : > { %p11_p8 = scmp.ge.s32.totalorder %s14_s17, 4   ;;  %s3176_s16 = smov %s3178_s18 }
 0x3ce   :  { %13 = sbr.rel (!%p11_p8) target bundleno = 2 (0x2), region = 82 }

// kernel: generator_forward.8
= control target key start
LH: loop header
LB: loop body
LE: loop exit
PB: predicated region body
PF: predicated region fallthrough
CT: control target
= control target key end

     0   :  { %9 = vsyncpa [#allocation7], 0  ;;  %s1196_s15 = smov 0   ;;  %s1198_s16 = smov 0   ;;  %s1458_s0 = inlined_call_operand.vmem [shape: bf16[16,128], index: 0, kind: input, shape index: {}]   ;;  %s1459_s1 = inlined_call_operand.hbm [shape: bf16[64,144], index: 1, kind: input, shape index: {}]   ;;  %s1460_s2 = inlined_call_operand.vmem [shape: f32[16,1], index: 2, kind: input, shape index: {}]   ;;  %s1461_s3 = inlined_call_operand.vmem [shape: f32[16,1], index: 3, kind: input, shape index: {}]   ;;  %s1462_s4 = inlined_call_operand.vmem [shape: bf16[64,128], index: 4, kind: output, shape index: {}]  }
   0x1   :  { %s1200_s17 = smov 0  }
   0x2 LB: > { %s946_s18 = sadd.s32 4294967295, %s1154_s17   ;;  %s27_s19 = sadd.s32 1, %s1150_s16  ;;  %s1154_s17 = sphi %s1200_s17, %s15_s17   ;;  %s1150_s16 = sphi %s1198_s16, %s1474_s16   ;;  %s1146_s15 = sphi %s1196_s15, %s1473_s15  }
   0x3   : > { %p29_p0 = scmp.ge.s32.totalorder %s27_s19, 2  ;;  %p947_p1 = scmp.ge.s32.totalorder %s1154_s17, 1 }
   0x4   : > { %p147_p2 = scmp.lt.s32.totalorder %s1154_s17, 3  ;;  %p1050_p4 = scmp.eq.s32.totalorder %s946_s18, 0 }
   0x5   : > { %s1476_s19 = smov (%p29_p0, %s27_s19), 0  ;;  %s165_s22 = sshll.u32 %s1459_s1, 4  ;;  %s166_s22 = int_to_ptr.hbm [resolvable:$true] %s165_s22 }
   0x6   : > { %p148_p3 = pnand %p947_p1, %p147_p2  ;;  %s1156_s23 = smov [#allocation6]  }
   0x7   : > { %s167_s24 = sshll.u32 %s1156_s23, 4  ;;  %s1157_s25 = smov 128   ;;  %s168_s24 = int_to_ptr.vmem [resolvable:$true] %s167_s24 }
   0x8   : > { %p1046_p5 = pneg %p148_p3  ;;  %s1158_s26 = smov 8  }
   0x9   : > { %189 = sbr.rel (%p148_p3) target bundleno = 728 (0x2d8), region = 36 }
   0xa   : > { %p1047_p6 = pnand %p1050_p4, %p1046_p5 }
   0xc   : > { %1049 = dma.hbm_to_vmem [thread:$0]  (!%p1047_p6), %s166_s22, 1024, %s168_s24, [#allocation7], %s1157_s25, %s1157_s25, %s1158_s26  }
   0xe   : > { %1141 = dma.done.wait (%p1050_p4), [#allocation7], 1024  }
   0xf   : > { %1143 = vsyncadd (%p1050_p4), [#allocation7], 4294966272  ;;  %p225_p7 = scmp.eq.s32.totalorder %s1146_s15, 0 }
  0x10   : > { %vm231_vm0 = vcmask (%p225_p7), 7168   ;;  %v1159_v0 = vmov (%p225_p7), 0.0  }
  0x11   : > { %230 = sbr.rel (!%p225_p7) target bundleno = 33 (0x21), region = 44  ;;  %232 = vst.msk [vmem:[#allocation2] sm:$0xff] (%p225_p7), %vm231_vm0, %v1159_v0 }
  0x12   : > { %233 = vst.msk [vmem:[#allocation2 + $0x8] sm:$0xff] (%p225_p7), %vm231_vm0, %v1159_v0 }
  0x13   : > { %234 = vst.msk [vmem:[#allocation2 + $0x10] sm:$0xff] (%p225_p7), %vm231_vm0, %v1159_v0 }
  0x14   : > { %235 = vst.msk [vmem:[#allocation2 + $0x18] sm:$0xff] (%p225_p7), %vm231_vm0, %v1159_v0 }
  0x15   : > { %236 = vst.msk [vmem:[#allocation2 + $0x20] sm:$0xff] (%p225_p7), %vm231_vm0, %v1159_v0 }
  0x16   : > { %237 = vst.msk [vmem:[#allocation2 + $0x28] sm:$0xff] %vm231_vm0, %v1159_v0 }
  0x17   : > { %238 = vst.msk [vmem:[#allocation2 + $0x30] sm:$0xff] %vm231_vm0, %v1159_v0 }
  0x18   : > { %239 = vst.msk [vmem:[#allocation2 + $0x38] sm:$0xff] %vm231_vm0, %v1159_v0 }
  0x19   : > { %240 = vst.msk [vmem:[#allocation3] sm:$0xff] %vm231_vm0, %v1159_v0 }
  0x1a   : > { %241 = vst.msk [vmem:[#allocation3 + $0x8] sm:$0xff] %vm231_vm0, %v1159_v0 }
  0x1b   : > { %242 = vst.msk [vmem:[#allocation3 + $0x10] sm:$0xff] %vm231_vm0, %v1159_v0 }
  0x1c   : > { %243 = vst.msk [vmem:[#allocation3 + $0x18] sm:$0xff] %vm231_vm0, %v1159_v0 }
  0x1d   : > { %244 = vst.msk [vmem:[#allocation3 + $0x20] sm:$0xff] %vm231_vm0, %v1159_v0 }
  0x1e   : > { %245 = vst.msk [vmem:[#allocation3 + $0x28] sm:$0xff] %vm231_vm0, %v1159_v0 }
  0x1f   : > { %246 = vst.msk [vmem:[#allocation3 + $0x30] sm:$0xff] %vm231_vm0, %v1159_v0 }
  0x20   : > { %247 = vst.msk [vmem:[#allocation3 + $0x38] sm:$0xff] %vm231_vm0, %v1159_v0 }
  0x21 PF: > { %v1000_v1 = vld [vmem:[%s1458_s0] sm:$0xff]  ;;  %s1160_s29 = smov 127   ;;  %s1161_s30 = smov 120   ;;  %v251_v2 = vlaneseq  ;;  %vm333_vm1 = vcmask 7168   ;;  %v1168_v10 = vmov 0  }
  0x22   : > { %355 = vrot.lane.b32.xlu1 %v1000_v1, %s1160_s29  ;;  %395 = vrot.lane.b32.xlu0 %v1000_v1, %s1161_s30  ;;  %s1162_s5 = smov 1   ;;  %s1163_s6 = smov 119   ;;  %v1248_v14 = vunpack.c.l.b16 %v1168_v10  ;;  %v1251_v15 = vunpack.c.h.b16 %v1168_v10  ;;  %v248_v36 = vld [vmem:[%s1458_s0] sm:$0xf]  ;;  %v249_v37 = vld [vmem:[%s1458_s0 + $0x4] sm:$0xf] }
  0x23   : > { %331 = vrot.lane.b32.xlu2 %v1000_v1, %s1162_s5  ;;  %s1164_s7 = smov 121   ;;  %s1165_s8 = smov 7   ;;  %v252_v3 = vand.u32 127, %v251_v2  ;;  %v1003_v42 = vld [vmem:[#allocation6 + $0x14] sm:$0xf] }
  0x24   : > { %s1166_s9 = smov 8   ;;  %s1167_s10 = smov 9   ;;  %v969_v43 = vld [vmem:[#allocation6 + $0x18] sm:$0xf0]  ;;  %v1001_v50 = vld [vmem:[#allocation6 + $0x4] sm:$0xf] }
  0x25   : > { %v255_v4 = vand.u32 63, %v252_v3  ;;  %v961_v51 = vld [vmem:[#allocation6 + $0x8] sm:$0xf0]  ;;  %v972_v54 = vor.u32 %v1003_v42, %v969_v43  ;;  %v975_v23 = vld [vmem:[#allocation6 + $0x20] sm:$0xf]  ;;  %p993_p8 = scmp.ne.s32.totalorder %s1146_s15, 0 }
  0x26   : > { %v964_v61 = vor.u32 %v1001_v50, %v961_v51  ;;  %v1004_v29 = vld [vmem:[#allocation6 + $0x14] sm:$0xf0] }
  0x27   : > { %v256_v5 = vshra.s32 %v255_v4, 3  ;;  %v257_v7 = vand.u32 7, %v255_v4 }
  0x29   : > { %v372_v6 = vadd.s32 1, %v256_v5  ;;  %v1240_v8 = vadd.s32 4294967295, %v257_v7  ;;  %v308_v9 = vadd.s32 1, %v257_v7  ;;  %v259_v13 = vadd.s32 4294967295, %v256_v5 }
  0x2a   : > { %413 = vrot.lane.b32.xlu1 %v1000_v1, %s1163_s6  ;;  %378 = vrot.lane.b32.xlu0 %v1000_v1, %s1164_s7 }
  0x2b   : > { %313 = vrot.lane.b32.xlu2 %v1000_v1, %s1165_s8  ;;  %vm373_vm2 = vcmp.ge.s32.totalorder %v372_v6, 0  ;;  %vm374_vm3 = vcmp.lt.s32.totalorder %v372_v6, 8  ;;  %vm265_vm6 = vcmp.ge.s32.totalorder %v1240_v8, 0  ;;  %vm310_vm7 = vcmp.lt.s32.totalorder %v308_v9, 8 }
  0x2c   : > { %vm375_vm4 = vmand %vm373_vm2, %vm374_vm3  ;;  %vm260_vm13 = vcmp.ge.s32.totalorder %v259_v13, 0  ;;  %vm261_vm14 = vcmp.lt.s32.totalorder %v259_v13, 8  ;;  %v977_v13 = vld [vmem:[#allocation6 + $0x28] sm:$0xf0] }
  0x2d   : > { %vm401_vm5 = vmpackc.low %vm375_vm4, %vm375_vm4 }
  0x2e   : > { %v402_v11 = vsel %vm401_vm5, 65537, %v1168_v10  ;;  %vm377_vm8 = vmand %vm375_vm4, %vm265_vm6 }
  0x2f   : > { %v403_v12 = vperm.slane %v402_v11, 0  ;;  %vm412_vm9 = vmand %vm375_vm4, %vm310_vm7 }
  0x30   : > { %vm384_vm10 = vmpackc.low %vm377_vm8, %vm377_vm8 }
  0x31   : > { %vm419_vm11 = vmpackc.low %vm412_vm9, %vm412_vm9  ;;  %v404_v16 = vunpack.c.l.b16 %v403_v12  ;;  %v405_v17 = vunpack.c.h.b16 %v403_v12  ;;  %v385_v18 = vsel %vm384_vm10, 65537, %v1168_v10  ;;  %v1005_v12 = vld [vmem:[#allocation6 + $0x24] sm:$0xf] }
  0x32   : > { %291 = vrot.lane.b32.xlu0 %v1000_v1, %s1166_s9  ;;  %274 = vrot.lane.b32.xlu1 %v1000_v1, %s1167_s10  ;;  %v420_v19 = vsel %vm419_vm11, 65537, %v1168_v10  ;;  %vm361_vm12 = vmpackc.low %vm310_vm7, %vm310_vm7  ;;  %v386_v20 = vperm.slane %v385_v18, 0 }
  0x33   : > { %vm408_vm15 = vcmp.ne.s32.totalorder %v404_v16, %v1248_v14  ;;  %vm409_vm0 = vcmp.ne.s32.totalorder %v405_v17, %v1251_v15  ;;  %v421_v21 = vperm.slane %v420_v19, 0  ;;  %v362_v22 = vsel %vm361_vm12, 65537, %v1168_v10  ;;  %vm1260_vm2 = vmand %vm260_vm13, %vm261_vm14 }
  0x34   : > { %vm410_vm3 = vmpackc.low %vm409_vm0, %vm408_vm15  ;;  %v387_v24 = vunpack.c.l.b16 %v386_v20  ;;  %v388_v25 = vunpack.c.h.b16 %v386_v20  ;;  %v363_v28 = vperm.slane %v362_v22, 0  ;;  %vm1169_vm12 = vmmov 1   ;;  %v959_v20 = vld [vmem:[#allocation6] sm:$0xf] }
  0x35   : > { %vm338_vm4 = vmpackc.low %vm265_vm6, %vm265_vm6  ;;  %v422_v26 = vunpack.c.l.b16 %v421_v21  ;;  %v423_v27 = vunpack.c.h.b16 %v421_v21  ;;  %v980_v17 = vor.u32 %v1005_v12, %v977_v13  ;;  %v1002_v21 = vld [vmem:[#allocation6 + $0x4] sm:$0xf0] }
  0x36   : > { %vm1270_vm5 = vmand %vm1260_vm2, %vm310_vm7  ;;  %vm391_vm8 = vcmp.ne.s32.totalorder %v387_v24, %v1248_v14  ;;  %vm392_vm9 = vcmp.ne.s32.totalorder %v388_v25, %v1251_v15  ;;  %v339_v33 = vsel %vm338_vm4, 65537, %v1168_v10  ;;  %v364_v34 = vunpack.c.l.b16 %v363_v28  ;;  %v1006_v24 = vld [vmem:[#allocation6 + $0x24] sm:$0xf0] }
  0x37   : > { %vm319_vm10 = vmpackc.low %vm1270_vm5, %vm1270_vm5  ;;  %vm426_vm7 = vcmp.ne.s32.totalorder %v422_v26, %v1248_v14  ;;  %vm427_vm11 = vcmp.ne.s32.totalorder %v423_v27, %v1251_v15  ;;  %v365_v35 = vunpack.c.h.b16 %v363_v28  ;;  %v340_v40 = vperm.slane %v339_v33, 0  ;;  %v985_v26 = vld [vmem:[#allocation6 + $0x38] sm:$0xf0]  ;;  %v967_v28 = vld [vmem:[#allocation6 + $0x10] sm:$0xf] }
  0x38   : > { %vm1288_vm13 = vmpackc.low %vm1169_vm12, %vm1169_vm12  ;;  %v320_v41 = vsel %vm319_vm10, 65537, %v1168_v10  ;;  %vm368_vm0 = vcmp.ne.s32.totalorder %v364_v34, %v1248_v14  ;;  %v960_v25 = vor.u32 %v1002_v21, %v959_v20 }
  0x39   : > { %vm1292_vm14 = vmpackc.low %vm392_vm9, %vm391_vm8  ;;  %v352_v44 = vsel %vm1288_vm13, %v248_v36, 0  ;;  %v353_v45 = vsel %vm1288_vm13, %v249_v37, 0  ;;  %v321_v48 = vperm.slane %v320_v41, 0  ;;  %v341_v55 = vunpack.c.l.b16 %v340_v40 }
  0x3a   : > { %vm428_vm15 = vmpackc.low %vm427_vm11, %vm426_vm7  ;;  %v432_v57 = vunpack.c.l.b16 %v352_v44  ;;  %v433_v58 = vunpack.c.l.b16 %v353_v45  ;;  %v342_v59 = vunpack.c.h.b16 %v340_v40 }
  0x3b   : > { %vm297_vm4 = vmpackc.low %vm1260_vm2, %vm1260_vm2  ;;  %v322_v62 = vunpack.c.l.b16 %v321_v48  ;;  %v323_v0 = vunpack.c.h.b16 %v321_v48  ;;  %vm345_vm10 = vcmp.ne.s32.totalorder %v341_v55, %v1248_v14 }
  0x3c   : > { %vm1310_vm5 = vmand %vm1260_vm2, %vm265_vm6  ;;  %v298_v60 = vsel %vm297_vm4, 65537, %v1168_v10  ;;  %vm480_vm6 = vcmask 130048   ;;  %v434_v2 = vpack.c.b16 %v433_v58, %v432_v57  ;;  %vm346_vm2 = vcmp.ne.s32.totalorder %v342_v59, %v1251_v15 }
  0x3d   : > { %vm280_vm9 = vmpackc.low %vm1310_vm5, %vm1310_vm5  ;;  %v299_v1 = vperm.slane %v298_v60, 0  ;;  %vm326_vm7 = vcmp.ne.s32.totalorder %v322_v62, %v1248_v14  ;;  %vm327_vm12 = vcmp.ne.s32.totalorder %v323_v0, %v1251_v15 }
  0x3e   : > { %v281_v3 = vsel %vm280_vm9, 65537, %v1168_v10  ;;  %vm347_vm11 = vmpackc.low %vm346_vm2, %vm345_vm10 }
  0x3f   : > { %v300_v4 = vunpack.c.l.b16 %v299_v1  ;;  %v301_v5 = vunpack.c.h.b16 %v299_v1  ;;  %v282_v6 = vperm.slane %v281_v3, 0  ;;  %vm328_vm13 = vmpackc.low %vm327_vm12, %vm326_vm7 }
  0x41   : > { %v283_v9 = vunpack.c.l.b16 %v282_v6  ;;  %v284_v10 = vunpack.c.h.b16 %v282_v6 }
  0x43   : > { %vm288_vm4 = vcmp.ne.s32.totalorder %v284_v10, %v1251_v15 }
  0x7d   : > { %v332_v56 = vpop.permute.xlu2 %331 }
  0x7e   : > { %v348_v7 = vsel %vm347_vm11, %v332_v56, 0 }
  0x85   : > { %v314_v8 = vpop.permute.xlu2 %313 }
  0x86   : > { %v329_v11 = vsel %vm328_vm13, %v314_v8, 0 }
  0x94   : > { %v356_v30 = vpop.permute.xlu1 %355  ;;  %v396_v31 = vpop.permute.xlu0 %395 }
  0x95   : > { %v411_v32 = vsel %vm410_vm3, %v396_v31, 0  ;;  %vm369_vm3 = vcmp.ne.s32.totalorder %v365_v35, %v1251_v15  ;;  %v1008_v31 = vld [vmem:[#allocation6 + $0x34] sm:$0xf0] }
  0x96   : > { %493 = vmatpush.bf16.msra.mxu0 %v411_v32  ;;  %1033 = vmatpush.bf16.msra.mxu2 %v411_v32  ;;  %vm370_vm8 = vmpackc.low %vm369_vm3, %vm368_vm0  ;;  %vm287_vm3 = vcmp.ne.s32.totalorder %v283_v9, %v1248_v14  ;;  %v968_v32 = vor.u32 %v1004_v29, %v967_v28 }
  0x97   : > { %v371_v63 = vsel %vm370_vm8, %v356_v30, 0  ;;  %vm289_vm5 = vmpackc.low %vm288_vm4, %vm287_vm3  ;;  %v983_v30 = vld [vmem:[#allocation6 + $0x30] sm:$0xf] }
  0x98   : > { %v984_v33 = vor.u32 %v1008_v31, %v983_v30 }
  0x9c   : > { %v414_v46 = vpop.permute.xlu1 %413  ;;  %v379_v47 = vpop.permute.xlu0 %378 }
  0x9d   : > { %v394_v52 = vsel %vm1292_vm14, %v379_v47, 0  ;;  %v429_v53 = vsel %vm428_vm15, %v414_v46, 0  ;;  %vm304_vm14 = vcmp.ne.s32.totalorder %v300_v4, %v1248_v14  ;;  %vm305_vm15 = vcmp.ne.s32.totalorder %v301_v5, %v1251_v15  ;;  %v1007_v15 = vld [vmem:[#allocation6 + $0x34] sm:$0xf] }
  0x9e   : > { %494 = vmatpush.bf16.msra.mxu0 %v394_v52  ;;  %1034 = vmatpush.bf16.msra.mxu2 %v394_v52  ;;  %vm306_vm0 = vmpackc.low %vm305_vm15, %vm304_vm14  ;;  %v976_v14 = vor.u32 %v1006_v24, %v975_v23  ;;  %v988_v27 = vor.u32 %v1007_v15, %v985_v26 }
  0x9f   : > { %1041 = vmatpush.bf16.msra.mxu3 %v429_v53  ;;  %529 = vmatpush.bf16.msra.mxu1 %v429_v53 }
  0xa2   : > { %990 = vmatmul.msk.bf16.vlgmr.msra.gmra.mxu3 %vm480_vm6, %v972_v54  ;;  %495 = vmatpush.bf16.msra.mxu0 %v371_v63 }
  0xa3   : > { %1035 = vmatpush.bf16.msra.mxu2 %v371_v63  ;;  %989 = vmatmul.msk.bf16.vlgmr.msra.gmra.mxu1 %vm480_vm6, %v964_v61 }
  0xa4   : > { %v292_v16 = vpop.permute.xlu0 %291  ;;  %v275_v19 = vpop.permute.xlu1 %274 }
  0xa5   : > { %v307_v18 = vsel %vm306_vm0, %v292_v16, 0  ;;  %v290_v22 = vsel %vm289_vm5, %v275_v19, 0 }
  0xa6   : > { %496 = vmatpush.bf16.msra.mxu0 %v434_v2 }
  0xa7   : > { %1036 = vmatpush.bf16.msra.mxu2 %v434_v2 }
  0xaa   : > { %497 = vmatpush.bf16.msra.mxu0 %v348_v7 }
  0xab   : > { %1037 = vmatpush.bf16.msra.mxu2 %v348_v7 }
  0xae   : > { %498 = vmatpush.bf16.msra.mxu0 %v329_v11 }
  0xaf   : > { %1038 = vmatpush.bf16.msra.mxu2 %v329_v11 }
  0xb2   : > { %991 = vmatmul.msk.bf16.gmra.mxu3 %vm480_vm6, %v980_v17  ;;  %499 = vmatpush.bf16.msra.mxu0 %v307_v18 }
  0xb3   : > { %1039 = vmatpush.bf16.msra.mxu2 %v307_v18 }
  0xb6   : > { %500 = vmatpush.bf16.msra.mxu0 %v290_v22 }
  0xb7   : > { %1040 = vmatpush.bf16.msra.mxu2 %v290_v22 }
  0xb9   : > { %501 = vmatmul.bf16.vlgmr.msra.gmra.mxu0 %v960_v25 }
  0xba   : > { %511 = vmatmul.bf16.vlgmr.msra.gmra.mxu2 %v976_v14 }
  0xc2   : > { %992 = vmatmul.msk.bf16.gmra.mxu3 %vm480_vm6, %v988_v27 }
  0xc9   : > { %506 = vmatmul.bf16.gmra.mxu0 %v968_v32 }
  0xca   : > { %516 = vmatmul.bf16.gmra.mxu2 %v984_v33 }
 0x120   : > { %v531_v36 = vpop.f32.mrf.mxu1 }
 0x125   : > { %v536_v34 = vpop.f32.mrf.mxu3 }
 0x128   : > { %v533_v40 = vpop.f32.mrf.mxu1 }
 0x12d   : > { %v538_v35 = vpop.f32.mrf.mxu3 }
 0x135   : > { %v541_v38 = vpop.f32.mrf.mxu3 }
 0x136   : > { %v502_v37 = vpop.f32.mrf.mxu0 }
 0x137   : > { %v1342_v39 = vadd.f32 %v531_v36, %v502_v37 }
 0x13d   : > { %v512_v41 = vpop.f32.mrf.mxu2  ;;  %v543_v45 = vpop.f32.mrf.mxu3 }
 0x13e   : > { %v1344_v42 = vadd.f32 %v541_v38, %v512_v41  ;;  %v504_v43 = vpop.f32.mrf.mxu0 }
 0x13f   : > { %v1346_v44 = vadd.f32 %v533_v40, %v504_v43 }
 0x145   : > { %v514_v46 = vpop.f32.mrf.mxu2  ;;  %v546_v50 = vpop.f32.mrf.mxu3 }
 0x146   : > { %v1348_v47 = vadd.f32 %v543_v45, %v514_v46  ;;  %v507_v48 = vpop.f32.mrf.mxu0 }
 0x147   : > { %v1350_v49 = vadd.f32 %v536_v34, %v507_v48 }
 0x14d   : > { %v517_v51 = vpop.f32.mrf.mxu2  ;;  %v548_v55 = vpop.f32.mrf.mxu3 }
 0x14e   : > { %v1352_v52 = vadd.f32 %v546_v50, %v517_v51  ;;  %v509_v53 = vpop.f32.mrf.mxu0 }
 0x14f   : > { %v1354_v54 = vadd.f32 %v538_v35, %v509_v53 }
 0x152   : > { %553 = sbr.rel (%p993_p8) target bundleno = 502 (0x1f6), region = 48 }
 0x155   : > { %v519_v56 = vpop.f32.mrf.mxu2 }
 0x156   : > { %v1356_v57 = vadd.f32 %v548_v55, %v519_v56 }
 0x157   : > { %562 = vadd.xlane.f32.xlu0 %v1342_v39  ;;  %570 = vadd.xlane.f32.xlu2 %v1344_v42  ;;  %v602_v58 = vmul.f32 %v1342_v39, %v1342_v39  ;;  %v603_v59 = vmul.f32 %v1346_v44, %v1346_v44  ;;  %v605_v60 = vmul.f32 %v1354_v54, %v1354_v54  ;;  %v554_v2 = vld [vmem:[#allocation2] sm:$0xff]  ;;  %v556_v4 = vld [vmem:[#allocation2 + $0x10] sm:$0xff]  ;;  %v555_v11 = vld [vmem:[#allocation2 + $0x8] sm:$0xff] }
 0x158   : > { %566 = vadd.xlane.f32.xlu1 %v1350_v49  ;;  %v604_v61 = vmul.f32 %v1350_v49, %v1350_v49  ;;  %v606_v62 = vmul.f32 %v1344_v42, %v1344_v42  ;;  %v608_v63 = vmul.f32 %v1352_v52, %v1352_v52  ;;  %v607_v0 = vmul.f32 %v1348_v47, %v1348_v47  ;;  %v558_v3 = vld [vmem:[#allocation2 + $0x20] sm:$0xff]  ;;  %v559_v12 = vld [vmem:[#allocation2 + $0x28] sm:$0xff]  ;;  %v557_v13 = vld [vmem:[#allocation2 + $0x18] sm:$0xff] }
 0x159   : > { %v609_v1 = vmul.f32 %v1356_v57, %v1356_v57  ;;  %v560_v22 = vld [vmem:[#allocation2 + $0x30] sm:$0xff]  ;;  %v594_v23 = vld [vmem:[#allocation3] sm:$0xff]  ;;  %v561_v24 = vld [vmem:[#allocation2 + $0x38] sm:$0xff] }
 0x15a   : > { %v595_v29 = vld [vmem:[#allocation3 + $0x8] sm:$0xff]  ;;  %v597_v30 = vld [vmem:[#allocation3 + $0x18] sm:$0xff]  ;;  %v596_v31 = vld [vmem:[#allocation3 + $0x10] sm:$0xff] }
 0x15b   : > { %v598_v38 = vld [vmem:[#allocation3 + $0x20] sm:$0xff]  ;;  %v600_v40 = vld [vmem:[#allocation3 + $0x30] sm:$0xff]  ;;  %v599_v41 = vld [vmem:[#allocation3 + $0x28] sm:$0xff] }
 0x15c   : > { %v601_v53 = vld [vmem:[#allocation3 + $0x38] sm:$0xff] }
 0x15f   : > { %564 = vadd.xlane.f32.xlu0 %v1346_v44  ;;  %572 = vadd.xlane.f32.xlu2 %v1348_v47 }
 0x160   : > { %568 = vadd.xlane.f32.xlu1 %v1354_v54 }
 0x167   : > { %574 = vadd.xlane.f32.xlu0 %v1352_v52  ;;  %610 = vadd.xlane.f32.xlu2 %v602_v58 }
 0x168   : > { %576 = vadd.xlane.f32.xlu1 %v1356_v57 }
 0x16f   : > { %612 = vadd.xlane.f32.xlu0 %v603_v59  ;;  %616 = vadd.xlane.f32.xlu2 %v605_v60 }
 0x170   : > { %614 = vadd.xlane.f32.xlu1 %v604_v61 }
 0x177   : > { %618 = vadd.xlane.f32.xlu0 %v606_v62  ;;  %622 = vadd.xlane.f32.xlu2 %v608_v63 }
 0x178   : > { %620 = vadd.xlane.f32.xlu1 %v607_v0 }
 0x17f   : > { %624 = vadd.xlane.f32.xlu0 %v609_v1 }
 0x1ca   : > { %v563_v5 = vpop.xlane.xlu0 %562  ;;  %v571_v6 = vpop.xlane.xlu2 %570 }
 0x1cb   : > { %v578_v7 = vadd.f32 %v563_v5, %v554_v2  ;;  %v582_v8 = vadd.f32 %v571_v6, %v558_v3  ;;  %v567_v9 = vpop.xlane.xlu1 %566 }
 0x1cc   : > { %v580_v10 = vadd.f32 %v567_v9, %v556_v4 }
 0x1cd   : > { %586 = vst.msk [vmem:[#allocation2] sm:$0xff] %vm333_vm1, %v578_v7 }
 0x1ce   : > { %590 = vst.msk [vmem:[#allocation2 + $0x20] sm:$0xff] %vm333_vm1, %v582_v8 }
 0x1cf   : > { %588 = vst.msk [vmem:[#allocation2 + $0x10] sm:$0xff] %vm333_vm1, %v580_v10 }
 0x1d2   : > { %v565_v16 = vpop.xlane.xlu0 %564  ;;  %v573_v17 = vpop.xlane.xlu2 %572 }
 0x1d3   : > { %v579_v18 = vadd.f32 %v565_v16, %v555_v11  ;;  %v583_v19 = vadd.f32 %v573_v17, %v559_v12  ;;  %v569_v20 = vpop.xlane.xlu1 %568 }
 0x1d4   : > { %v581_v21 = vadd.f32 %v569_v20, %v557_v13 }
 0x1d5   : > { %587 = vst.msk [vmem:[#allocation2 + $0x8] sm:$0xff] %vm333_vm1, %v579_v18 }
 0x1d6   : > { %591 = vst.msk [vmem:[#allocation2 + $0x28] sm:$0xff] %vm333_vm1, %v583_v19 }
 0x1d7   : > { %589 = vst.msk [vmem:[#allocation2 + $0x18] sm:$0xff] %vm333_vm1, %v581_v21 }
 0x1da   : > { %v575_v25 = vpop.xlane.xlu0 %574  ;;  %v611_v14 = vpop.xlane.xlu2 %610 }
 0x1db   : > { %v584_v15 = vadd.f32 %v575_v25, %v560_v22  ;;  %v577_v26 = vpop.xlane.xlu1 %576  ;;  %v626_v27 = vadd.f32 %v611_v14, %v594_v23 }
 0x1dc   : > { %v585_v28 = vadd.f32 %v577_v26, %v561_v24 }
 0x1dd   : > { %592 = vst.msk [vmem:[#allocation2 + $0x30] sm:$0xff] %vm333_vm1, %v584_v15 }
 0x1de   : > { %593 = vst.msk [vmem:[#allocation2 + $0x38] sm:$0xff] %vm333_vm1, %v585_v28 }
 0x1df   : > { %634 = vst.msk [vmem:[#allocation3] sm:$0xff] %vm333_vm1, %v626_v27 }
 0x1e2   : > { %v613_v32 = vpop.xlane.xlu0 %612  ;;  %v617_v33 = vpop.xlane.xlu2 %616 }
 0x1e3   : > { %v627_v34 = vadd.f32 %v613_v32, %v595_v29  ;;  %v615_v35 = vpop.xlane.xlu1 %614  ;;  %v629_v36 = vadd.f32 %v617_v33, %v597_v30 }
 0x1e4   : > { %v628_v37 = vadd.f32 %v615_v35, %v596_v31 }
 0x1e5   : > { %635 = vst.msk [vmem:[#allocation3 + $0x8] sm:$0xff] %vm333_vm1, %v627_v34 }
 0x1e6   : > { %636 = vst.msk [vmem:[#allocation3 + $0x10] sm:$0xff] %vm333_vm1, %v628_v37 }
 0x1e7   : > { %637 = vst.msk [vmem:[#allocation3 + $0x18] sm:$0xff] %vm333_vm1, %v629_v36 }
 0x1ea   : > { %v619_v43 = vpop.xlane.xlu0 %618  ;;  %v623_v45 = vpop.xlane.xlu2 %622 }
 0x1eb   : > { %v630_v46 = vadd.f32 %v619_v43, %v598_v38  ;;  %v621_v48 = vpop.xlane.xlu1 %620  ;;  %v632_v50 = vadd.f32 %v623_v45, %v600_v40 }
 0x1ec   : > { %v631_v51 = vadd.f32 %v621_v48, %v599_v41 }
 0x1ed   : > { %638 = vst.msk [vmem:[#allocation3 + $0x20] sm:$0xff] %vm333_vm1, %v630_v46 }
 0x1ee   : > { %639 = vst.msk [vmem:[#allocation3 + $0x28] sm:$0xff] %vm333_vm1, %v631_v51 }
 0x1ef   : > { %640 = vst.msk [vmem:[#allocation3 + $0x30] sm:$0xff] %vm333_vm1, %v632_v50 }
 0x1f2   : > { %v625_v55 = vpop.xlane.xlu0 %624 }
 0x1f3   : > { %v633_v56 = vadd.f32 %v625_v55, %v601_v53 }
 0x1f5   : > { %641 = vst.msk [vmem:[#allocation3 + $0x38] sm:$0xff] %vm333_vm1, %v633_v56 }
 0x1f6 PF: > { %p642_p9 = scmp.eq.s32.totalorder %s1146_s15, 1 }
 0x1f7   : > { %v647_v58 = vld [vmem:[#allocation2] sm:$0xff] (%p642_p9)  ;;  %v649_v59 = vld [vmem:[#allocation2 + $0x10] sm:$0xff] (%p642_p9)  ;;  %v648_v5 = vld [vmem:[#allocation2 + $0x8] sm:$0xff] (%p642_p9) }
 0x1f8   : > { %646 = sbr.rel (!%p642_p9) target bundleno = 556 (0x22c), region = 52  ;;  %v651_v60 = vld [vmem:[#allocation2 + $0x20] sm:$0xff] (%p642_p9)  ;;  %v657_v62 = vld [vmem:[#allocation3 + $0x10] sm:$0xff] (%p642_p9)  ;;  %v663_v63 = vadd.f32 (%p642_p9), %v649_v59, %v647_v58  ;;  %v650_v6 = vld [vmem:[#allocation2 + $0x18] sm:$0xff] (%p642_p9) }
 0x1f9   : > { %v655_v61 = vld [vmem:[#allocation3] sm:$0xff] (%p642_p9)  ;;  %v653_v0 = vld [vmem:[#allocation2 + $0x30] sm:$0xff] (%p642_p9)  ;;  %v652_v7 = vld [vmem:[#allocation2 + $0x28] sm:$0xff] (%p642_p9)  ;;  %v664_v11 = vadd.f32 (%p642_p9), %v650_v6, %v648_v5 }
 0x1fa   : > { %v659_v1 = vld [vmem:[#allocation3 + $0x20] sm:$0xff] (%p642_p9)  ;;  %v661_v2 = vld [vmem:[#allocation3 + $0x30] sm:$0xff] (%p642_p9)  ;;  %v669_v3 = vadd.f32 (%p642_p9), %v657_v62, %v655_v61  ;;  %v665_v4 = vadd.f32 (%p642_p9), %v663_v63, %v651_v60  ;;  %v656_v9 = vld [vmem:[#allocation3 + $0x8] sm:$0xff] (%p642_p9) }
 0x1fb   : > { %v658_v10 = vld [vmem:[#allocation3 + $0x18] sm:$0xff] (%p642_p9)  ;;  %v660_v16 = vld [vmem:[#allocation3 + $0x28] sm:$0xff] (%p642_p9)  ;;  %v666_v20 = vadd.f32 (%p642_p9), %v664_v11, %v652_v7  ;;  %v685_v46 = vld [vmem:[%s1460_s2] sm:$0xff] (%p642_p9) }
 0x1fc   : > { %v671_v8 = vadd.f32 (%p642_p9), %v669_v3, %v659_v1  ;;  %v667_v12 = vadd.f32 (%p642_p9), %v665_v4, %v653_v0  ;;  %v654_v13 = vld [vmem:[#allocation2 + $0x38] sm:$0xff] (%p642_p9)  ;;  %v670_v17 = vadd.f32 (%p642_p9), %v658_v10, %v656_v9  ;;  %v686_v55 = vld [vmem:[%s1460_s2 + $0x8] sm:$0xff] (%p642_p9)  ;;  %v711_v61 = vld [vmem:[%s1461_s3] sm:$0xff] (%p642_p9) }
 0x1fd   : > { %v662_v19 = vld [vmem:[#allocation3 + $0x38] sm:$0xff]  ;;  %v668_v24 = vadd.f32 %v666_v20, %v654_v13  ;;  %v712_v0 = vld [vmem:[%s1461_s3 + $0x8] sm:$0xff] }
 0x1fe   : > { %v673_v18 = vadd.f32 %v671_v8, %v661_v2  ;;  %v675_v21 = vmul.f32 0.001953125, %v667_v12  ;;  %v672_v22 = vadd.f32 %v670_v17, %v660_v16 }
 0x1ff   : > { %v676_v15 = vmul.f32 0.001953125, %v668_v24 }
 0x200   : > { %v677_v23 = vmul.f32 0.001953125, %v673_v18  ;;  %v679_v25 = vmul.f32 %v675_v21, %v675_v21  ;;  %v674_v14 = vadd.f32 %v672_v22, %v662_v19 }
 0x201   : > { %v680_v28 = vmul.f32 %v676_v15, %v676_v15 }
 0x202   : > { %v681_v26 = vsub.f32 %v677_v23, %v679_v25  ;;  %v678_v27 = vmul.f32 0.001953125, %v674_v14 }
 0x204   : > { %v683_v29 = vmax.f32 %v681_v26, 0.0  ;;  %v682_v30 = vsub.f32 %v678_v27, %v680_v28 }
 0x206   : > { %v687_v31 = vadd.f32 1e-05, %v683_v29  ;;  %v684_v32 = vmax.f32 %v682_v30, 0.0 }
 0x208   : > { %1091 = vrsqrt.f32 %v687_v31  ;;  %v688_v33 = vadd.f32 1e-05, %v684_v32  ;;  %vm695_vm8 = vweird.f32 %v687_v31 }
 0x20a   : > { %1093 = vrsqrt.f32 %v688_v33  ;;  %vm705_vm10 = vweird.f32 %v688_v33 }
 0x20e   : > { %v1092_v34 = vpop.eup %1091 }
 0x20f   : > { %v690_v35 = vmul.f32 %v1092_v34, %v687_v31  ;;  %vm696_vm6 = vweird.f32 %v1092_v34 }
 0x210   : > { %v1094_v36 = vpop.eup %1093  ;;  %vm697_vm9 = vmor %vm695_vm8, %vm696_vm6 }
 0x211   : > { %v691_v37 = vmul.f32 %v1092_v34, %v690_v35  ;;  %v700_v38 = vmul.f32 %v1094_v36, %v688_v33  ;;  %vm706_vm2 = vweird.f32 %v1094_v36 }
 0x212   : > { %vm707_vm7 = vmor %vm705_vm10, %vm706_vm2 }
 0x213   : > { %v692_v40 = vmul.f32 0.5, %v691_v37  ;;  %v701_v41 = vmul.f32 %v1094_v36, %v700_v38 }
 0x215   : > { %v693_v43 = vsub.f32 1.5, %v692_v40  ;;  %v702_v45 = vmul.f32 0.5, %v701_v41 }
 0x217   : > { %v694_v48 = vmul.f32 %v1092_v34, %v693_v43  ;;  %v703_v50 = vsub.f32 1.5, %v702_v45 }
 0x219   : > { %v698_v51 = vsel %vm697_vm9, %v1092_v34, %v694_v48  ;;  %v704_v56 = vmul.f32 %v1094_v36, %v703_v50 }
 0x21a   : > { %v709_v53 = vmul.f32 %v698_v51, %v685_v46 }
 0x21b   : > { %v708_v58 = vsel %vm707_vm7, %v1094_v36, %v704_v56 }
 0x21c   : > { %717 = vst.msk [vmem:[#allocation4] sm:$0xff] %vm333_vm1, %v709_v53  ;;  %v713_v59 = vmul.f32 %v709_v53, %v675_v21  ;;  %v710_v60 = vmul.f32 %v708_v58, %v686_v55 }
 0x21d   : > { %721 = vst.msk [vmem:[#allocation4 + $0x10] sm:$0xff] %vm333_vm1, %v709_v53 }
 0x21e   : > { %725 = vst.msk [vmem:[#allocation4 + $0x20] sm:$0xff] %vm333_vm1, %v709_v53  ;;  %v715_v62 = vsub.f32 %v711_v61, %v713_v59  ;;  %v714_v63 = vmul.f32 %v710_v60, %v676_v15 }
 0x21f   : > { %729 = vst.msk [vmem:[#allocation4 + $0x30] sm:$0xff] %vm333_vm1, %v709_v53 }
 0x220   : > { %718 = vst.msk [vmem:[#allocation4 + $0x8] sm:$0xff] %vm333_vm1, %v710_v60  ;;  %v716_v1 = vsub.f32 %v712_v0, %v714_v63 }
 0x221   : > { %722 = vst.msk [vmem:[#allocation4 + $0x18] sm:$0xff] %vm333_vm1, %v710_v60 }
 0x222   : > { %726 = vst.msk [vmem:[#allocation4 + $0x28] sm:$0xff] %vm333_vm1, %v710_v60 }
 0x223   : > { %730 = vst.msk [vmem:[#allocation4 + $0x38] sm:$0xff] %vm333_vm1, %v710_v60 }
 0x224   : > { %719 = vst.msk [vmem:[#allocation5] sm:$0xff] %vm333_vm1, %v715_v62 }
 0x225   : > { %723 = vst.msk [vmem:[#allocation5 + $0x10] sm:$0xff] %vm333_vm1, %v715_v62 }
 0x226   : > { %727 = vst.msk [vmem:[#allocation5 + $0x20] sm:$0xff] %vm333_vm1, %v715_v62 }
 0x227   : > { %731 = vst.msk [vmem:[#allocation5 + $0x30] sm:$0xff] %vm333_vm1, %v715_v62 }
 0x228   : > { %720 = vst.msk [vmem:[#allocation5 + $0x8] sm:$0xff] %vm333_vm1, %v716_v1 }
 0x229   : > { %724 = vst.msk [vmem:[#allocation5 + $0x18] sm:$0xff] %vm333_vm1, %v716_v1 }
 0x22a   : > { %728 = vst.msk [vmem:[#allocation5 + $0x28] sm:$0xff] %vm333_vm1, %v716_v1 }
 0x22b   : > { %732 = vst.msk [vmem:[#allocation5 + $0x38] sm:$0xff] %vm333_vm1, %v716_v1 }
 0x22c PF: > { %p995_p10 = scmp.ne.s32.totalorder %s1146_s15, 1 }
 0x22e   : > { %735 = sbr.rel (%p995_p10) target bundleno = 728 (0x2d8), region = 56 }
 0x233   : > { %v740_v2 = vld [vmem:[#allocation4 + $0x20] sm:$0xff]  ;;  %v738_v3 = vld [vmem:[#allocation4 + $0x10] sm:$0xff]  ;;  %v1170_v5 = vmov 0   ;;  %v741_v6 = vld [vmem:[#allocation4 + $0x28] sm:$0xff] }
 0x234   : > { %v736_v4 = vld [vmem:[#allocation4] sm:$0xff]  ;;  %1097 = vset.pattern.permute.xlu2 %v1170_v5  ;;  %1096 = vset.pattern.permute.xlu1 %v1170_v5  ;;  %v739_v7 = vld [vmem:[#allocation4 + $0x18] sm:$0xff]  ;;  %v737_v8 = vld [vmem:[#allocation4 + $0x8] sm:$0xff] }
 0x235   : > { %1095 = vset.pattern.permute.xlu0 %v1170_v5  ;;  %766 = vperm.xlu2 %1097, %v740_v2   ;;  %v792_v9 = vld [vmem:[#allocation5] sm:$0xff]  ;;  %v743_v10 = vld [vmem:[#allocation4 + $0x38] sm:$0xff]  ;;  %v742_v11 = vld [vmem:[#allocation4 + $0x30] sm:$0xff] }
 0x236   : > { %756 = vperm.xlu1 %1096, %v738_v3   ;;  %746 = vperm.xlu0 %1095, %v736_v4   ;;  %v795_v12 = vld [vmem:[#allocation5 + $0x18] sm:$0xff]  ;;  %v794_v13 = vld [vmem:[#allocation5 + $0x10] sm:$0xff]  ;;  %v793_v16 = vld [vmem:[#allocation5 + $0x8] sm:$0xff] }
 0x237   : > { %v798_v17 = vld [vmem:[#allocation5 + $0x30] sm:$0xff]  ;;  %v797_v18 = vld [vmem:[#allocation5 + $0x28] sm:$0xff]  ;;  %v796_v19 = vld [vmem:[#allocation5 + $0x20] sm:$0xff] }
 0x238   : > { %v799_v20 = vld [vmem:[#allocation5 + $0x38] sm:$0xff] }
 0x23d   : > { %771 = vperm.xlu2 %1097, %v741_v6  }
 0x23e   : > { %761 = vperm.xlu1 %1096, %v739_v7   ;;  %751 = vperm.xlu0 %1095, %v737_v8  }
 0x245   : > { %802 = vperm.xlu2 %1097, %v792_v9  }
 0x246   : > { %781 = vperm.xlu1 %1096, %v743_v10   ;;  %776 = vperm.xlu0 %1095, %v742_v11  }
 0x24d   : > { %817 = vperm.xlu2 %1097, %v795_v12  }
 0x24e   : > { %812 = vperm.xlu1 %1096, %v794_v13   ;;  %807 = vperm.xlu0 %1095, %v793_v16  }
 0x255   : > { %832 = vperm.xlu2 %1097, %v798_v17  }
 0x256   : > { %827 = vperm.xlu1 %1096, %v797_v18   ;;  %822 = vperm.xlu0 %1095, %v796_v19  }
 0x25e   : > { %837 = vperm.xlu0 %1095, %v799_v20  }
 0x28f   : > { %v767_v21 = vpop.permute.xlu2 %766 }
 0x297   : > { %v772_v24 = vpop.permute.xlu2 %771 }
 0x29f   : > { %v803_v15 = vpop.permute.xlu2 %802 }
 0x2a7   : > { %v818_v30 = vpop.permute.xlu2 %817 }
 0x2a8   : > { %v757_v22 = vpop.permute.xlu1 %756  ;;  %v747_v23 = vpop.permute.xlu0 %746 }
 0x2a9   : > { %v784_v28 = vmul.f32 %v747_v23, %v1342_v39  ;;  %v786_v31 = vmul.f32 %v757_v22, %v1350_v49  ;;  %v788_v39 = vmul.f32 %v767_v21, %v1344_v42 }
 0x2ab   : > { %v840_v32 = vadd.f32 %v803_v15, %v784_v28 }
 0x2ad   : > { %v848_v40 = vmax.f32 %v840_v32, 0.0 }
 0x2af   : > { %v833_v42 = vpop.permute.xlu2 %832 }
 0x2b0   : > { %v762_v25 = vpop.permute.xlu1 %761  ;;  %v752_v14 = vpop.permute.xlu0 %751 }
 0x2b1   : > { %v787_v29 = vmul.f32 %v762_v25, %v1354_v54  ;;  %v785_v34 = vmul.f32 %v752_v14, %v1346_v44  ;;  %v789_v54 = vmul.f32 %v772_v24, %v1348_v47 }
 0x2b3   : > { %v843_v33 = vadd.f32 %v818_v30, %v787_v29 }
 0x2b5   : > { %v851_v41 = vmax.f32 %v843_v33, 0.0 }
 0x2b8   : > { %v782_v26 = vpop.permute.xlu1 %781  ;;  %v777_v27 = vpop.permute.xlu0 %776 }
 0x2b9   : > { %v790_v53 = vmul.f32 %v777_v27, %v1352_v52  ;;  %v791_v47 = vmul.f32 %v782_v26, %v1356_v57 }
 0x2bb   : > { %v846_v59 = vadd.f32 %v833_v42, %v790_v53 }
 0x2bd   : > { %v854_v62 = vmax.f32 %v846_v59, 0.0 }
 0x2c0   : > { %v813_v35 = vpop.permute.xlu1 %812  ;;  %v808_v36 = vpop.permute.xlu0 %807 }
 0x2c1   : > { %v842_v37 = vadd.f32 %v813_v35, %v786_v31  ;;  %v841_v38 = vadd.f32 %v808_v36, %v785_v34 }
 0x2c3   : > { %v850_v43 = vmax.f32 %v842_v37, 0.0  ;;  %v849_v45 = vmax.f32 %v841_v38, 0.0 }
 0x2c5   : > { %v1018_v46 = vpack.c.bf16 %v851_v41, %v850_v43  ;;  %v1013_v48 = vpack.c.bf16 %v849_v45, %v848_v40 }
 0x2c7   : > { %1030 = vst [vmem:[%s1462_s4 + $0x8] sm:$0xff] %v1018_v46  }
 0x2c8   : > { %1014 = vst [vmem:[%s1462_s4] sm:$0xff] %v1013_v48   ;;  %v828_v44 = vpop.permute.xlu1 %827  ;;  %v823_v49 = vpop.permute.xlu0 %822 }
 0x2c9   : > { %v845_v50 = vadd.f32 %v828_v44, %v789_v54  ;;  %v844_v51 = vadd.f32 %v823_v49, %v788_v39 }
 0x2cb   : > { %v853_v55 = vmax.f32 %v845_v50, 0.0  ;;  %v852_v56 = vmax.f32 %v844_v51, 0.0 }
 0x2cd   : > { %v1023_v58 = vpack.c.bf16 %v853_v55, %v852_v56 }
 0x2cf   : > { %1031 = vst [vmem:[%s1462_s4 + $0x10] sm:$0xff] %v1023_v58  }
 0x2d0   : > { %v838_v60 = vpop.permute.xlu0 %837 }
 0x2d1   : > { %v847_v61 = vadd.f32 %v838_v60, %v791_v47 }
 0x2d3   : > { %v855_v63 = vmax.f32 %v847_v61, 0.0 }
 0x2d5   : > { %v1028_v0 = vpack.c.bf16 %v855_v63, %v854_v62 }
 0x2d7   : > { %1032 = vst [vmem:[%s1462_s4 + $0x18] sm:$0xff] %v1028_v0  }
 0x2d8 PF: > { %s15_s17 = sadd.s32 1, %s1154_s17   ;;  %s1473_s15 = smov %s1150_s16 }
 0x2d9   : > { %p12_p11 = scmp.ge.s32.totalorder %s15_s17, 4   ;;  %s1474_s16 = smov %s1476_s19 }
 0x2db   :  { %14 = sbr.rel (!%p12_p11) target bundleno = 2 (0x2), region = 87 }
 0x2e0   :  { %891 = vsyncpa [#allocation7], 1 }
 0x2e1   :  { %893 = vsyncpa [#allocation7 + $0x1], 1 }

// kernel: generator_forward.9
= control target key start
LH: loop header
LB: loop body
LE: loop exit
PB: predicated region body
PF: predicated region fallthrough
CT: control target
= control target key end

     0   :  { %7 = vsyncpa [#allocation4], 0  ;;  %s1162_s9 = smov 0   ;;  %s1164_s10 = smov 0   ;;  %s1645_s0 = inlined_call_operand.vmem [shape: bf16[16,512], index: 0, kind: input, shape index: {}]   ;;  %s1646_s1 = inlined_call_operand.hbm [shape: bf16[64,144], index: 1, kind: input, shape index: {}]   ;;  %s1647_s2 = inlined_call_operand.vmem [shape: bf16[64,512], index: 2, kind: output, shape index: {}]  }
   0x1   :  { %s1166_s11 = smov 0  }
   0x2 LB: > { %s1178_s12 = sadd.s32 4294967295, %s1133_s11   ;;  %s1181_s13 = sadd.s32 1, %s1133_s11   ;;  %s1133_s11 = sphi %s1166_s11, %s1734_s11   ;;  %s1129_s10 = sphi %s1164_s10, %s1733_s10   ;;  %s1125_s9 = sphi %s1162_s9, %s1732_s9  }
   0x3   : > { %s17_s14 = ssub.s32 %s1133_s11, %s1181_s13  ;;  %s20_s15 = sadd.s32 1, %s1129_s10 }
   0x4   : > { %p18_p0 = scmp.eq.s32.totalorder %s17_s14, 0  ;;  %p27_p1 = scmp.ne.s32.totalorder %s1129_s10, %s1125_s9 }
   0x5   : > { %p28_p2 = scmp.eq.s32.totalorder %s1133_s11, 0  ;;  %p78_p3 = scmp.eq.s32.totalorder %s1178_s12, 1 }
   0x6   : > { %s1191_s16 = scalar_select %p18_p0, %s1129_s10, %s20_s15  }
   0x7   : > { %p1193_p4 = por %p28_p2, %p27_p1  ;;  %p1197_p5 = por %p78_p3, %p27_p1 }
   0x8   : > { %p923_p6 = scmp.ge.s32.totalorder %s1133_s11, 1  ;;  %p91_p7 = scmp.lt.s32.totalorder %s1133_s11, 3 }
   0x9   : > { %p1007_p8 = scmp.eq.s32.totalorder %s1178_s12, 0  ;;  %s102_s22 = sshll.u32 %s1646_s1, 4  ;;  %s103_s22 = int_to_ptr.hbm [resolvable:$true] %s102_s22 }
   0xa   : > { %p1204_p9 = pnand %p923_p6, %p91_p7  ;;  %s1135_s23 = smov [#allocation3]  }
   0xb   : > { %s104_s24 = sshll.u32 %s1135_s23, 4  ;;  %s1136_s25 = smov 128   ;;  %s105_s24 = int_to_ptr.vmem [resolvable:$true] %s104_s24 }
   0xc   : > { %p1003_p10 = pneg %p1204_p9  ;;  %s1137_s26 = smov 8  }
   0xd   : > { %p925_p12 = scmp.ge.s32.totalorder %s1133_s11, 2 }
   0xe   : > { %p1004_p11 = pnand %p1007_p8, %p1003_p10 }
   0xf   : > { %114 = sbr.rel (%p925_p12) target bundleno = 26 (0x1a), region = 20 }
  0x10   : > { %1006 = dma.hbm_to_vmem [thread:$0]  (!%p1004_p11), %s103_s22, 1024, %s105_s24, [#allocation4], %s1136_s25, %s1136_s25, %s1137_s26  }
  0x14   : > { %117 = sbr.rel (!%p1193_p4) target bundleno = 26 (0x1a), region = 24  ;;  %s119_s27 = sand.u32 (%p1193_p4), 1, %s1129_s10  }
  0x15   : > { %s987_s28 = sshll.u32 (%p1193_p4), %s1133_s11, 3  ;;  %s926_s29 = sshll.u32 (%p1193_p4), %s119_s27, 4 }
  0x16   : > { %s124_s4 = scalar_lea.vmem (%p1193_p4), %s1645_s0, %s987_s28  ;;  %s121_s5 = scalar_lea.vmem (%p1193_p4), [#allocation2], %s926_s29 }
  0x17   : > { %v155_v0 = vld [vmem:[%s124_s4] sm:$0xff] (%p1193_p4)  ;;  %v157_v1 = vld [vmem:[%s124_s4 + $0x10] sm:$0xff] (%p1193_p4) }
  0x18   : > { %156 = vst [vmem:[%s121_s5] sm:$0xff] (%p1193_p4), %v155_v0 }
  0x19   : > { %158 = vst [vmem:[%s121_s5 + $0x8] sm:$0xff] %v157_v1 }
  0x1a PF: > { %167 = sbr.rel (%p1204_p9) target bundleno = 403 (0x193), region = 62  ;;  %s170_s6 = sand.u32 (!%p1204_p9), 1, %s1125_s9  }
  0x1b   : > { %s930_s7 = sshll.u32 (!%p1204_p9), %s170_s6, 4 }
  0x1c   : > { %s1228_s8 = scalar_lea.vmem (!%p1204_p9), [#allocation2], %s930_s7 }
  0x1f   : > { %1120 = dma.done.wait (%p1007_p8), [#allocation4], 1024  }
  0x20   : > { %1122 = vsyncadd (%p1007_p8), [#allocation4], 4294966272  ;;  %v940_v2 = vld [vmem:[%s1228_s8] sm:$0xf]  ;;  %v989_v3 = vld [vmem:[%s1228_s8 + $0x4] sm:$0xf0]  ;;  %v203_v8 = vlaneseq }
  0x21   : > { %v941_v4 = vor.u32 %v989_v3, %v940_v2  ;;  %s1138_s11 = smov 113   ;;  %s1139_s14 = smov 112   ;;  %v988_v5 = vld [vmem:[%s1228_s8 + $0x4] sm:$0xf]  ;;  %v934_v6 = vld [vmem:[%s1228_s8 + $0x8] sm:$0xf0] }
  0x22   : > { %s1140_s15 = smov 127   ;;  %v937_v7 = vor.u32 %v988_v5, %v934_v6  ;;  %s1141_s17 = smov 1   ;;  %v204_v9 = vand.u32 127, %v203_v8  ;;  %v1661_v23 = vmov 0  ;;  %v1663_v24 = vmov 0  ;;  %v200_v3 = vld [vmem:[%s1228_s8] sm:$0xff] }
  0x23   : > { %458 = vrot.lane.b32.xlu1 %v941_v4, %s1138_s11  ;;  %494 = vrot.lane.b32.xlu0 %v941_v4, %s1139_s14  ;;  %s1142_s19 = smov 15   ;;  %s1143_s20 = smov 16   ;;  %v1665_v27 = vmov 0  ;;  %v1146_v29 = vmov 0   ;;  %v1678_v49 = vmov 0  ;;  %v1683_v59 = vmov 0 }
  0x24   : > { %410 = vrot.lane.b32.xlu2 %v941_v4, %s1140_s15  ;;  %s1144_s21 = smov 17   ;;  %s1145_s22 = smov 111   ;;  %v205_v10 = vadd.s32 128, %v204_v9  ;;  %v209_v11 = vand.u32 255, %v204_v9  ;;  %v1293_v34 = vunpack.c.l.b16 %v1146_v29  ;;  %v1304_v38 = vunpack.c.h.b16 %v1146_v29  ;;  %v970_v5 = vld [vmem:[#allocation3 + $0x38] sm:$0xf0] }
  0x25   : > { %s933_s23 = sshll.u32 %s1178_s12, 8  ;;  %v1689_v0 = vmov 0  ;;  %s932_s24 = sshll.u32 %s170_s6, 6 }
  0x26   : > { %v210_v12 = vand.u32 255, %v205_v10  ;;  %v211_v13 = vshra.s32 %v209_v11, 4  ;;  %v206_v15 = vstv %s933_s23  ;;  %v213_v21 = vand.u32 15, %v209_v11  ;;  %s1611_s25 = scalar_lea.vmem [#allocation5], %s932_s24  ;;  %s998_s9 = sshll.u32 (%p1197_p5), %s1178_s12, 3 }
  0x27   : > { %v1239_v18 = vadd.s32 %v206_v15, %v204_v9  ;;  %v1241_v19 = vadd.s32 %v206_v15, %v205_v10  ;;  %s791_s28 = scalar_lea.vmem (%p1197_p5), %s1647_s2, %s998_s9 }
  0x28   : > { %v212_v14 = vshra.s32 %v210_v12, 4  ;;  %v446_v16 = vadd.s32 1, %v211_v13  ;;  %v214_v20 = vand.u32 15, %v210_v12  ;;  %v1257_v25 = vadd.s32 4294967295, %v213_v21 }
  0x29   : > { %vm215_vm4 = vcmp.lt.s32.totalorder %v1239_v18, 512  ;;  %vm1649_vm6 = vcmp.lt.s32.totalorder %v1241_v19, 512  ;;  %v1268_v28 = vadd.s32 1, %v213_v21  ;;  %v217_v37 = vadd.s32 4294967295, %v211_v13 }
  0x2a   : > { %v447_v17 = vadd.s32 1, %v212_v14  ;;  %vm448_vm0 = vcmp.ge.s32.totalorder %v446_v16, 0  ;;  %vm450_vm1 = vcmp.lt.s32.totalorder %v446_v16, 16  ;;  %v228_v22 = vadd.s32 4294967295, %v214_v20 }
  0x2b   : > { %460 = vrot.lane.b32.xlu1 %v937_v7, %s1138_s11  ;;  %496 = vrot.lane.b32.xlu0 %v937_v7, %s1139_s14  ;;  %vm452_vm5 = vmand %vm448_vm0, %vm450_vm1  ;;  %v318_v26 = vadd.s32 1, %v214_v20  ;;  %vm1652_vm13 = vcmp.ge.s32.totalorder %v1257_v25, 0  ;;  %v218_v40 = vadd.s32 4294967295, %v212_v14 }
  0x2c   : > { %412 = vrot.lane.b32.xlu2 %v937_v7, %s1140_s15  ;;  %vm449_vm2 = vcmp.ge.s32.totalorder %v447_v17, 0  ;;  %vm451_vm3 = vcmp.lt.s32.totalorder %v447_v17, 16  ;;  %vm1247_vm8 = vmand %vm215_vm4, %vm452_vm5  ;;  %vm230_vm10 = vcmp.ge.s32.totalorder %v228_v22, 0  ;;  %vm232_vm11 = vcmp.lt.s32.totalorder %v228_v22, 16 }
  0x2d   : > { %vm453_vm7 = vmand %vm449_vm2, %vm451_vm3  ;;  %v1662_v23 = vsel %vm1247_vm8, 4294967295, %v1661_v23  ;;  %vm320_vm0 = vcmp.ge.s32.totalorder %v318_v26, 0  ;;  %vm322_vm1 = vcmp.lt.s32.totalorder %v318_v26, 16  ;;  %vm1648_vm3 = vcmp.lt.s32.totalorder %v1268_v28, 16 }
  0x2e   : > { %vm1253_vm9 = vmand %vm1649_vm6, %vm453_vm7 }
  0x2f   : > { %v1664_v24 = vsel %vm1253_vm9, 4294967295, %v1663_v24  ;;  %vm510_vm12 = vmpackc.low %vm1253_vm9, %vm1247_vm8 }
  0x30   : > { %vm1264_vm14 = vmand %vm230_vm10, %vm232_vm11  ;;  %v511_v30 = vsel %vm510_vm12, 65537, %v1146_v29 }
  0x31   : > { %v1666_v27 = vsel %vm1264_vm14, 4294967295, %v1665_v27  ;;  %vm456_vm15 = vmand %vm1247_vm8, %vm1652_vm13  ;;  %v512_v31 = vperm.slane %v511_v30, 0  ;;  %v513_v42 = vperm.slane %v511_v30, 4 }
  0x32   : > { %vm457_vm2 = vmand %vm1253_vm9, %vm1264_vm14 }
  0x33   : > { %367 = vrot.lane.b32.xlu1 %v941_v4, %s1141_s17  ;;  %365 = vrot.lane.b32.xlu0 %v937_v7, %s1141_s17  ;;  %vm1280_vm5 = vmand %vm320_vm0, %vm322_vm1  ;;  %v514_v35 = vunpack.c.l.b16 %v512_v31  ;;  %v515_v39 = vunpack.c.h.b16 %v512_v31  ;;  %vm219_vm0 = vcmp.ge.s32.totalorder %v217_v37, 0  ;;  %vm221_vm1 = vcmp.lt.s32.totalorder %v217_v37, 16 }
  0x34   : > { %327 = vrot.lane.b32.xlu2 %v937_v7, %s1142_s19  ;;  %vm474_vm7 = vmpackc.low %vm457_vm2, %vm456_vm15  ;;  %v521_v50 = vunpack.c.l.b16 %v513_v42  ;;  %v522_v51 = vunpack.c.h.b16 %v513_v42 }
  0x35   : > { %vm1288_vm10 = vmand %vm215_vm4, %vm1648_vm3  ;;  %v475_v41 = vsel %vm474_vm7, 65537, %v1146_v29  ;;  %vm518_vm15 = vcmp.ne.s32.totalorder %v514_v35, %v1293_v34  ;;  %vm519_vm2 = vcmp.ne.s32.totalorder %v515_v39, %v1304_v38  ;;  %vm220_vm7 = vcmp.ge.s32.totalorder %v218_v40, 0 }
  0x36   : > { %vm1299_vm11 = vmand %vm1649_vm6, %vm1280_vm5  ;;  %v476_v43 = vperm.slane %v475_v41, 0  ;;  %vm222_vm6 = vcmp.lt.s32.totalorder %v218_v40, 16  ;;  %v477_v48 = vperm.slane %v475_v41, 4 }
  0x37   : > { %vm426_vm12 = vmpackc.low %vm1299_vm11, %vm1288_vm10  ;;  %vm1675_vm10 = vcmp.lt.s32.totalorder %v1241_v19, 512 }
  0x38   : > { %vm1317_vm3 = vmand %vm215_vm4, %vm1652_vm13  ;;  %v427_v46 = vsel %vm426_vm12, 65537, %v1146_v29  ;;  %v478_v54 = vunpack.c.l.b16 %v476_v43  ;;  %v479_v55 = vunpack.c.h.b16 %v476_v43  ;;  %v485_v60 = vunpack.c.l.b16 %v477_v48 }
  0x39   : > { %vm1328_vm11 = vmpackc.low %vm1675_vm10, %vm215_vm4  ;;  %v428_v56 = vperm.slane %v427_v46, 0  ;;  %v429_v58 = vperm.slane %v427_v46, 4  ;;  %v486_v61 = vunpack.c.h.b16 %v477_v48 }
  0x3a   : > { %vm223_vm9 = vmand %vm219_vm0, %vm221_vm1  ;;  %vm525_vm1 = vcmp.ne.s32.totalorder %v521_v50, %v1293_v34  ;;  %v406_v12 = vsel %vm1328_vm11, %v200_v3, 0 }
  0x3b   : > { %281 = vrot.lane.b32.xlu1 %v937_v7, %s1143_s20  ;;  %329 = vrot.lane.b32.xlu0 %v941_v4, %s1142_s19  ;;  %vm1332_vm13 = vmpackc.low %vm519_vm2, %vm518_vm15  ;;  %vm526_vm2 = vcmp.ne.s32.totalorder %v522_v51, %v1304_v38  ;;  %v430_v63 = vunpack.c.l.b16 %v428_v56  ;;  %v431_v1 = vunpack.c.h.b16 %v428_v56  ;;  %v437_v2 = vunpack.c.l.b16 %v429_v58 }
  0x3c   : > { %283 = vrot.lane.b32.xlu2 %v941_v4, %s1143_s20  ;;  %v1679_v49 = vsel %vm1332_vm13, 4294967295, %v1678_v49  ;;  %vm224_vm8 = vmand %vm220_vm7, %vm222_vm6  ;;  %v438_v6 = vunpack.c.h.b16 %v429_v58  ;;  %vm1694_vm13 = vcmp.ne.s32.totalorder %v479_v55, %v1304_v38  ;;  %v570_v36 = vunpack.c.l.b16 %v406_v12 }
  0x3d   : > { %vm1680_vm12 = vmmov %vm1675_vm10  ;;  %v571_v39 = vunpack.c.h.b16 %v406_v12 }
  0x3e   : > { %vm1340_vm10 = vmand %vm1680_vm12, %vm1264_vm14  ;;  %vm434_vm14 = vcmp.ne.s32.totalorder %v430_v63, %v1293_v34 }
  0x3f   : > { %vm1346_vm15 = vmand %vm215_vm4, %vm223_vm9  ;;  %vm498_vm4 = vcmask 916480   ;;  %vm489_vm9 = vcmp.ne.s32.totalorder %v485_v60, %v1293_v34 }
  0x40   : > { %v1684_v59 = vsel %vm1346_vm15, 4294967295, %v1683_v59  ;;  %vm1685_vm6 = vmmov %vm1680_vm12  ;;  %vm1688_vm12 = vcmp.lt.s32.totalorder %v1268_v28, 16 }
  0x41   : > { %vm1352_vm0 = vmand %vm1685_vm6, %vm224_vm8 }
  0x42   : > { %vm1368_vm8 = vmand %vm1346_vm15, %vm1688_vm12  ;;  %vm490_vm12 = vcmp.ne.s32.totalorder %v486_v61, %v1304_v38  ;;  %vm1693_vm15 = vcmp.ne.s32.totalorder %v478_v54, %v1293_v34 }
  0x43   : > { %247 = vrot.lane.b32.xlu1 %v941_v4, %s1144_s21  ;;  %242 = vrot.lane.b32.xlu0 %v937_v7, %s1144_s21  ;;  %v1690_v0 = vsel %vm1368_vm8, 4294967295, %v1689_v0  ;;  %vm326_vm6 = vmand %vm1352_vm0, %vm1280_vm5 }
  0x44   : > { %532 = vrot.lane.b32.xlu2 %v941_v4, %s1145_s22  ;;  %v201_v4 = vld [vmem:[%s1228_s8 + $0x8] sm:$0xff]  ;;  %vm1378_vm7 = vmpackc.low %vm526_vm2, %vm525_vm1  ;;  %vm414_vm2 = vcmask 1039360  }
  0x45   : > { %vm1388_vm8 = vmpackc.low %vm1694_vm13, %vm1693_vm15  ;;  %v407_v13 = vsel %vm1328_vm11, %v201_v4, 0  ;;  %vm1698_vm13 = vnez %v1690_v0  ;;  %vm441_vm15 = vcmp.ne.s32.totalorder %v437_v2, %v1293_v34  ;;  %v997_v4 = vld [vmem:[#allocation3 + $0x34] sm:$0xf0] }
  0x46   : > { %vm1697_vm1 = vmpackc.low %vm1340_vm10, %vm1317_vm3  ;;  %vm435_vm10 = vcmp.ne.s32.totalorder %v431_v1, %v1304_v38  ;;  %v572_v37 = vunpack.c.l.b16 %v407_v13  ;;  %v573_v44 = vunpack.c.h.b16 %v407_v13 }
  0x47   : > { %v382_v9 = vsel %vm1697_vm1, 65537, %v1146_v29  ;;  %vm1410_vm3 = vmpackc.low %vm326_vm6, %vm1698_vm13  ;;  %vm1703_vm6 = vnez %v1679_v49  ;;  %vm1704_vm1 = vnez %v1684_v59 }
  0x48   : > { %vm1420_vm11 = vmpackc.low %vm490_vm12, %vm489_vm9  ;;  %v383_v20 = vperm.slane %v382_v9, 0  ;;  %vm1705_vm12 = vcmask 924672   ;;  %v384_v26 = vperm.slane %v382_v9, 4  ;;  %v344_v30 = vsel %vm1410_vm3, 65537, %v1146_v29 }
  0x49   : > { %vm297_vm9 = vmpackc.low %vm1352_vm0, %vm1704_vm1  ;;  %v574_v57 = vpack.c.b16 %v572_v37, %v570_v36 }
  0x4a   : > { %vm1706_vm13 = vmmov %vm1705_vm12  ;;  %v298_v40 = vsel %vm297_vm9, 65537, %v1146_v29  ;;  %v385_v47 = vunpack.c.l.b16 %v383_v20  ;;  %v386_v48 = vunpack.c.h.b16 %v383_v20  ;;  %v392_v49 = vunpack.c.l.b16 %v384_v26 }
  0x4b   : > { %534 = vrot.lane.b32.xlu0 %v937_v7, %s1145_s22  ;;  %vm1460_vm3 = vmpackc.low %vm435_vm10, %vm434_vm14  ;;  %v299_v54 = vperm.slane %v298_v40, 0  ;;  %v300_v58 = vperm.slane %v298_v40, 4 }
  0x4c   : > { %vm390_vm9 = vcmp.ne.s32.totalorder %v386_v48, %v1304_v38 }
  0x4d   : > { %v301_v63 = vunpack.c.l.b16 %v299_v54  ;;  %v302_v0 = vunpack.c.h.b16 %v299_v54  ;;  %v308_v1 = vunpack.c.l.b16 %v300_v58  ;;  %v309_v2 = vunpack.c.h.b16 %v300_v58  ;;  %v993_v58 = vld [vmem:[#allocation3 + $0x14] sm:$0xf0] }
  0x7e   : > { %v1321_v45 = vpop.permute.xlu2 %410 }
  0x86   : > { %v413_v7 = vpop.permute.xlu2 %412 }
  0x87   : > { %v415_v33 = vsel %vm414_vm2, %v1321_v45, %v413_v7  ;;  %v420_v35 = vsel %vm414_vm2, %v413_v7, %v1321_v45  ;;  %v345_v45 = vperm.slane %v344_v30, 0 }
  0x88   : > { %v444_v56 = vsel %vm1460_vm3, %v415_v33, 0  ;;  %vm331_vm3 = vcmask 121856  }
  0x89   : > { %v347_v59 = vunpack.c.l.b16 %v345_v45 }
  0x8e   : > { %v1477_v46 = vpop.permute.xlu2 %327 }
  0x95   : > { %v459_v52 = vpop.permute.xlu1 %458  ;;  %v495_v53 = vpop.permute.xlu0 %494 }
  0x96   : > { %v284_v13 = vpop.permute.xlu2 %283 }
  0x9d   : > { %v461_v10 = vpop.permute.xlu1 %460  ;;  %v497_v11 = vpop.permute.xlu0 %496 }
  0x9e   : > { %v499_v15 = vsel %vm498_vm4, %v495_v53, %v497_v11  ;;  %v504_v16 = vsel %vm498_vm4, %v497_v11, %v495_v53  ;;  %vm442_vm4 = vcmp.ne.s32.totalorder %v438_v6, %v1304_v38  ;;  %v463_v21 = vsel %vm1705_vm12, %v459_v52, %v461_v10 }
  0x9f   : > { %v528_v18 = vsel %vm1703_vm6, %v499_v15, 0  ;;  %v529_v19 = vsel %vm1378_vm7, %v504_v16, 0  ;;  %v468_v22 = vsel %vm1706_vm13, %v461_v10, %v459_v52  ;;  %vm1707_vm7 = vcmp.ge.s32.totalorder %v1257_v25, 0  ;;  %vm1473_vm2 = vmpackc.low %vm442_vm4, %vm441_vm15 }
  0xa0   : > { %634 = vmatpush.bf16.msra.mxu0 %v528_v18  ;;  %692 = vmatpush.bf16.msra.mxu2 %v529_v19  ;;  %vm1444_vm6 = vmand %vm1704_vm1, %vm1707_vm7  ;;  %vm1710_vm12 = vnez %v1666_v27  ;;  %v492_v41 = vsel %vm1388_vm8, %v463_v21, 0  ;;  %v493_v42 = vsel %vm1420_vm11, %v468_v22, 0  ;;  %v393_v52 = vunpack.c.h.b16 %v384_v26 }
  0xa1   : > { %vm236_vm13 = vmand %vm1352_vm0, %vm1710_vm12  ;;  %v346_v53 = vperm.slane %v344_v30, 4  ;;  %vm1715_vm8 = vcmp.lt.s32.totalorder %v1268_v28, 16  ;;  %vm1716_vm11 = vnez %v1662_v23  ;;  %v445_v27 = vsel %vm1473_vm2, %v420_v35, 0 }
  0xa2   : > { %vm261_vm14 = vmpackc.low %vm236_vm13, %vm1444_vm6  ;;  %vm1719_vm0 = vnez %v1664_v24  ;;  %v575_v28 = vpack.c.b16 %v573_v44, %v571_v39  ;;  %v348_v23 = vunpack.c.h.b16 %v345_v45  ;;  %vm369_vm4 = vcmask 7168  }
  0xa3   : > { %vm1490_vm10 = vmand %vm1716_vm11, %vm1715_vm8  ;;  %v262_v60 = vsel %vm261_vm14, 65537, %v1146_v29  ;;  %vm389_vm1 = vcmp.ne.s32.totalorder %v385_v47, %v1293_v34  ;;  %vm396_vm7 = vcmp.ne.s32.totalorder %v392_v49, %v1293_v34  ;;  %vm397_vm6 = vcmp.ne.s32.totalorder %v393_v52, %v1304_v38  ;;  %v991_v47 = vld [vmem:[#allocation3 + $0x4] sm:$0xf0]  ;;  %v990_v52 = vld [vmem:[#allocation3 + $0x4] sm:$0xf] }
  0xa4   : > { %635 = vmatpush.bf16.msra.mxu0 %v492_v41  ;;  %693 = vmatpush.bf16.msra.mxu2 %v493_v42  ;;  %vm531_vm15 = vmand %vm1719_vm0, %vm1280_vm5  ;;  %v354_v61 = vunpack.c.l.b16 %v346_v53  ;;  %v355_v62 = vunpack.c.h.b16 %v346_v53  ;;  %v263_v3 = vperm.slane %v262_v60, 0  ;;  %vm351_vm2 = vcmp.ne.s32.totalorder %v347_v59, %v1293_v34  ;;  %v946_v53 = vld [vmem:[#allocation3 + $0x8] sm:$0xf0]  ;;  %v992_v59 = vld [vmem:[#allocation3 + $0x14] sm:$0xf] }
  0xa5   : > { %v368_v50 = vpop.permute.xlu1 %367  ;;  %v366_v51 = vpop.permute.xlu0 %365  ;;  %vm548_vm12 = vmpackc.low %vm531_vm15, %vm1490_vm10  ;;  %vm352_vm14 = vcmp.ne.s32.totalorder %v348_v23, %v1304_v38  ;;  %v264_v6 = vperm.slane %v262_v60, 4  ;;  %vm285_vm10 = vcmask 130048   ;;  %vm305_vm0 = vcmp.ne.s32.totalorder %v301_v63, %v1293_v34  ;;  %v954_v23 = vld [vmem:[#allocation3 + $0x18] sm:$0xf0] }
  0xa6   : > { %vm1514_vm13 = vmpackc.low %vm390_vm9, %vm389_vm1  ;;  %v375_v24 = vsel %vm369_vm4, %v366_v51, %v368_v50  ;;  %v370_v32 = vsel %vm369_vm4, %v368_v50, %v366_v51  ;;  %v549_v7 = vsel %vm548_vm12, 65537, %v1146_v29  ;;  %vm358_vm8 = vcmp.ne.s32.totalorder %v354_v61, %v1293_v34  ;;  %v533_v50 = vpop.permute.xlu2 %532  ;;  %v960_v61 = vld [vmem:[#allocation3 + $0x20] sm:$0xf] }
  0xa7   : > { %vm1526_vm5 = vmpackc.low %vm397_vm6, %vm396_vm7  ;;  %vm359_vm11 = vcmp.ne.s32.totalorder %v355_v62, %v1304_v38  ;;  %vm306_vm15 = vcmp.ne.s32.totalorder %v302_v0, %v1304_v38  ;;  %vm312_vm4 = vcmp.ne.s32.totalorder %v308_v1, %v1293_v34  ;;  %vm313_vm1 = vcmp.ne.s32.totalorder %v309_v2, %v1304_v38  ;;  %v995_v62 = vld [vmem:[#allocation3 + $0x24] sm:$0xf0]  ;;  %v994_v0 = vld [vmem:[#allocation3 + $0x24] sm:$0xf] }
  0xa8   : > { %636 = vmatpush.bf16.msra.mxu0 %v444_v56  ;;  %694 = vmatpush.bf16.msra.mxu2 %v445_v27  ;;  %v265_v10 = vunpack.c.l.b16 %v263_v3  ;;  %v399_v11 = vsel %vm1514_vm13, %v375_v24, 0  ;;  %v400_v29 = vsel %vm1526_vm5, %v370_v32, 0  ;;  %vm1545_vm9 = vmpackc.low %vm352_vm14, %vm351_vm2  ;;  %v266_v14 = vunpack.c.h.b16 %v263_v3  ;;  %v962_v1 = vld [vmem:[#allocation3 + $0x28] sm:$0xf0]  ;;  %v968_v3 = vld [vmem:[#allocation3 + $0x30] sm:$0xf] }
  0xa9   : > { %v550_v15 = vperm.slane %v549_v7, 0  ;;  %vm360_vm7 = vmpackc.low %vm359_vm11, %vm358_vm8  ;;  %v272_v18 = vunpack.c.l.b16 %v264_v6  ;;  %v273_v19 = vunpack.c.h.b16 %v264_v6  ;;  %v551_v21 = vperm.slane %v549_v7, 4  ;;  %v996_v32 = vld [vmem:[#allocation3 + $0x34] sm:$0xf] }
  0xaa   : > { %vm1561_vm6 = vmpackc.low %vm306_vm15, %vm305_vm0  ;;  %vm249_vm13 = vcmask 138240   ;;  %vm270_vm2 = vcmp.ne.s32.totalorder %v266_v14, %v1304_v38  ;;  %v957_v60 = vor.u32 %v992_v59, %v954_v23  ;;  %v961_v63 = vor.u32 %v995_v62, %v960_v61 }
  0xab   : > { %vm1571_vm12 = vmpackc.low %vm313_vm1, %vm312_vm4  ;;  %v552_v35 = vunpack.c.l.b16 %v550_v15  ;;  %vm276_vm14 = vcmp.ne.s32.totalorder %v272_v18, %v1293_v34  ;;  %vm277_vm5 = vcmp.ne.s32.totalorder %v273_v19, %v1304_v38  ;;  %v553_v25 = vunpack.c.h.b16 %v550_v15 }
  0xac   : > { %637 = vmatpush.bf16.msra.mxu0 %v574_v57  ;;  %695 = vmatpush.bf16.msra.mxu2 %v575_v28  ;;  %v559_v41 = vunpack.c.l.b16 %v551_v21  ;;  %v560_v42 = vunpack.c.h.b16 %v551_v21  ;;  %vm278_vm0 = vmpackc.low %vm277_vm5, %vm276_vm14  ;;  %v949_v57 = vor.u32 %v990_v52, %v946_v53  ;;  %v965_v2 = vor.u32 %v994_v0, %v962_v1 }
  0xad   : > { %v282_v8 = vpop.permute.xlu1 %281  ;;  %v330_v9 = vpop.permute.xlu0 %329  ;;  %vm556_vm11 = vcmp.ne.s32.totalorder %v552_v35, %v1293_v34  ;;  %vm557_vm15 = vcmp.ne.s32.totalorder %v553_v25, %v1304_v38  ;;  %v969_v24 = vor.u32 %v997_v4, %v968_v3  ;;  %v973_v6 = vor.u32 %v996_v32, %v970_v5 }
  0xae   : > { %v337_v16 = vsel %vm331_vm3, %v1477_v46, %v330_v9  ;;  %v332_v17 = vsel %vm331_vm3, %v330_v9, %v1477_v46  ;;  %v291_v22 = vsel %vm285_vm10, %v282_v8, %v284_v13  ;;  %v286_v26 = vsel %vm285_vm10, %v284_v13, %v282_v8  ;;  %v944_v46 = vld [vmem:[#allocation3] sm:$0xf] }
  0xaf   : > { %v361_v31 = vsel %vm1545_vm9, %v337_v16, 0  ;;  %v362_v33 = vsel %vm360_vm7, %v332_v17, 0  ;;  %vm269_vm3 = vcmp.ne.s32.totalorder %v265_v10, %v1293_v34  ;;  %v315_v39 = vsel %vm1561_vm6, %v291_v22, 0  ;;  %vm558_vm7 = vmpackc.low %vm557_vm15, %vm556_vm11 }
  0xb0   : > { %638 = vmatpush.bf16.msra.mxu0 %v399_v11  ;;  %696 = vmatpush.bf16.msra.mxu2 %v400_v29  ;;  %v316_v40 = vsel %vm1571_vm12, %v286_v26, 0  ;;  %vm1585_vm8 = vmpackc.low %vm270_vm2, %vm269_vm3  ;;  %vm563_vm4 = vcmp.ne.s32.totalorder %v559_v41, %v1293_v34  ;;  %vm564_vm1 = vcmp.ne.s32.totalorder %v560_v42, %v1304_v38  ;;  %v945_v51 = vor.u32 %v991_v47, %v944_v46  ;;  %v952_v34 = vld [vmem:[#allocation3 + $0x10] sm:$0xf] }
  0xb1   : > { %vm536_vm9 = vcmask 908288   ;;  %vm565_vm6 = vmpackc.low %vm564_vm1, %vm563_vm4  ;;  %v953_v28 = vor.u32 %v993_v58, %v952_v34 }
  0xb4   : > { %639 = vmatpush.bf16.msra.mxu0 %v361_v31  ;;  %697 = vmatpush.bf16.msra.mxu2 %v362_v33 }
  0xb5   : > { %v248_v36 = vpop.permute.xlu1 %247  ;;  %v243_v37 = vpop.permute.xlu0 %242 }
  0xb6   : > { %v255_v44 = vsel %vm249_vm13, %v243_v37, %v248_v36  ;;  %v250_v45 = vsel %vm249_vm13, %v248_v36, %v243_v37 }
  0xb7   : > { %v279_v48 = vsel %vm1585_vm8, %v255_v44, 0  ;;  %v280_v49 = vsel %vm278_vm0, %v250_v45, 0 }
  0xb8   : > { %640 = vmatpush.bf16.msra.mxu0 %v315_v39  ;;  %698 = vmatpush.bf16.msra.mxu2 %v316_v40 }
  0xbc   : > { %641 = vmatpush.bf16.msra.mxu0 %v279_v48  ;;  %699 = vmatpush.bf16.msra.mxu2 %v280_v49 }
  0xbd   : > { %v535_v54 = vpop.permute.xlu0 %534 }
  0xbe   : > { %v537_v55 = vsel %vm536_vm9, %v533_v50, %v535_v54  ;;  %v542_v56 = vsel %vm536_vm9, %v535_v54, %v533_v50 }
  0xbf   : > { %700 = vmatmul.bf16.vlgmr.msra.gmra.mxu2 %v945_v51  ;;  %v566_v38 = vsel %vm558_vm7, %v537_v55, 0  ;;  %v567_v27 = vsel %vm565_vm6, %v542_v56, 0  ;;  %642 = vmatmul.bf16.vlgmr.msra.gmra.mxu0 %v945_v51 }
  0xc0   : > { %670 = vmatpush.bf16.msra.mxu1 %v566_v38  ;;  %728 = vmatpush.bf16.msra.mxu3 %v567_v27 }
  0xc3   : > { %974 = vmatmul.msk.bf16.vlgmr.msra.gmra.mxu1 %vm285_vm10, %v949_v57  ;;  %978 = vmatmul.msk.bf16.vlgmr.msra.gmra.mxu3 %vm285_vm10, %v949_v57 }
  0xcf   : > { %705 = vmatmul.bf16.gmra.mxu2 %v953_v28  ;;  %647 = vmatmul.bf16.gmra.mxu0 %v953_v28 }
  0xd3   : > { %975 = vmatmul.msk.bf16.gmra.mxu1 %vm285_vm10, %v957_v60  ;;  %979 = vmatmul.msk.bf16.gmra.mxu3 %vm285_vm10, %v957_v60 }
  0xdf   : > { %710 = vmatmul.bf16.gmra.mxu2 %v961_v63  ;;  %652 = vmatmul.bf16.gmra.mxu0 %v961_v63 }
  0xe3   : > { %976 = vmatmul.msk.bf16.gmra.mxu1 %vm285_vm10, %v965_v2  ;;  %980 = vmatmul.msk.bf16.gmra.mxu3 %vm285_vm10, %v965_v2 }
  0xef   : > { %715 = vmatmul.bf16.gmra.mxu2 %v969_v24  ;;  %657 = vmatmul.bf16.gmra.mxu0 %v969_v24 }
  0xf3   : > { %977 = vmatmul.msk.bf16.gmra.mxu1 %vm285_vm10, %v973_v6  ;;  %981 = vmatmul.msk.bf16.gmra.mxu3 %vm285_vm10, %v973_v6 }
 0x13c   : > { %v643_v7 = vpop.f32.mrf.mxu0 }
 0x140   : > { %v672_v8 = vpop.f32.mrf.mxu1 }
 0x141   : > { %v673_v10 = vadd.f32 %v672_v8, %v643_v7 }
 0x142   : > { %v701_v9 = vpop.f32.mrf.mxu2 }
 0x143   : > { %1045 = vtanh.f32 %v673_v10 }
 0x144   : > { %v645_v11 = vpop.f32.mrf.mxu0 }
 0x146   : > { %v730_v29 = vpop.f32.mrf.mxu3 }
 0x147   : > { %v731_v12 = vadd.f32 %v730_v29, %v701_v9 }
 0x148   : > { %v674_v13 = vpop.f32.mrf.mxu1 }
 0x149   : > { %1047 = vtanh.f32 %v731_v12  ;;  %v675_v15 = vadd.f32 %v674_v13, %v645_v11  ;;  %v1046_v17 = vpop.eup %1045 }
 0x14a   : > { %v703_v14 = vpop.f32.mrf.mxu2 }
 0x14b   : > { %1049 = vtanh.f32 %v675_v15 }
 0x14c   : > { %v648_v16 = vpop.f32.mrf.mxu0 }
 0x14e   : > { %v732_v18 = vpop.f32.mrf.mxu3 }
 0x14f   : > { %v1048_v19 = vpop.eup %1047  ;;  %v733_v20 = vadd.f32 %v732_v18, %v703_v14 }
 0x150   : > { %v766_v21 = vpack.c.bf16 %v1048_v19, %v1046_v17  ;;  %v677_v22 = vpop.f32.mrf.mxu1 }
 0x151   : > { %1051 = vtanh.f32 %v733_v20  ;;  %v678_v30 = vadd.f32 %v677_v22, %v648_v16  ;;  %v1050_v33 = vpop.eup %1049 }
 0x152   : > { %774 = vst [vmem:[%s1611_s25] sm:$0xff] %v766_v21  ;;  %v706_v26 = vpop.f32.mrf.mxu2 }
 0x153   : > { %1053 = vtanh.f32 %v678_v30 }
 0x154   : > { %v650_v31 = vpop.f32.mrf.mxu0 }
 0x156   : > { %v735_v35 = vpop.f32.mrf.mxu3 }
 0x157   : > { %v1052_v25 = vpop.eup %1051  ;;  %v736_v36 = vadd.f32 %v735_v35, %v706_v26 }
 0x158   : > { %v767_v37 = vpack.c.bf16 %v1052_v25, %v1050_v33  ;;  %v679_v39 = vpop.f32.mrf.mxu1 }
 0x159   : > { %1055 = vtanh.f32 %v736_v36  ;;  %v680_v41 = vadd.f32 %v679_v39, %v650_v31  ;;  %v1054_v42 = vpop.eup %1053  ;;  %v834_v14 = vld [vmem:[%s1611_s25] sm:$0xff] (%p1197_p5) }
 0x15a   : > { %775 = vst [vmem:[%s1611_s25 + $0x8] sm:$0xff] %v767_v37  ;;  %v708_v40 = vpop.f32.mrf.mxu2 }
 0x15b   : > { %1057 = vtanh.f32 %v680_v41  ;;  %835 = vst [vmem:[%s791_s28] sm:$0xff] (%p1197_p5), %v834_v14 }
 0x15c   : > { %v653_v43 = vpop.f32.mrf.mxu0 }
 0x15e   : > { %v737_v44 = vpop.f32.mrf.mxu3 }
 0x15f   : > { %v1056_v45 = vpop.eup %1055  ;;  %v738_v46 = vadd.f32 %v737_v44, %v708_v40 }
 0x160   : > { %v768_v47 = vpack.c.bf16 %v1056_v45, %v1054_v42  ;;  %v682_v48 = vpop.f32.mrf.mxu1 }
 0x161   : > { %1059 = vtanh.f32 %v738_v46  ;;  %v683_v50 = vadd.f32 %v682_v48, %v653_v43  ;;  %v1058_v51 = vpop.eup %1057  ;;  %v836_v15 = vld [vmem:[%s1611_s25 + $0x8] sm:$0xff] (%p1197_p5) }
 0x162   : > { %776 = vst [vmem:[%s1611_s25 + $0x10] sm:$0xff] %v768_v47  ;;  %v711_v49 = vpop.f32.mrf.mxu2 }
 0x163   : > { %1061 = vtanh.f32 %v683_v50  ;;  %837 = vst [vmem:[%s791_s28 + $0x10] sm:$0xff] (%p1197_p5), %v836_v15 }
 0x164   : > { %v655_v54 = vpop.f32.mrf.mxu0 }
 0x166   : > { %v740_v52 = vpop.f32.mrf.mxu3 }
 0x167   : > { %v1060_v53 = vpop.eup %1059  ;;  %v741_v55 = vadd.f32 %v740_v52, %v711_v49 }
 0x168   : > { %v769_v56 = vpack.c.bf16 %v1060_v53, %v1058_v51  ;;  %v684_v38 = vpop.f32.mrf.mxu1 }
 0x169   : > { %1063 = vtanh.f32 %v741_v55  ;;  %v685_v57 = vadd.f32 %v684_v38, %v655_v54  ;;  %v1062_v34 = vpop.eup %1061  ;;  %v838_v16 = vld [vmem:[%s1611_s25 + $0x10] sm:$0xff] (%p1197_p5) }
 0x16a   : > { %777 = vst [vmem:[%s1611_s25 + $0x18] sm:$0xff] %v769_v56  ;;  %v713_v27 = vpop.f32.mrf.mxu2 }
 0x16b   : > { %1065 = vtanh.f32 %v685_v57  ;;  %839 = vst [vmem:[%s791_s28 + $0x20] sm:$0xff] (%p1197_p5), %v838_v16 }
 0x16c   : > { %v658_v61 = vpop.f32.mrf.mxu0 }
 0x16e   : > { %v742_v58 = vpop.f32.mrf.mxu3 }
 0x16f   : > { %v1064_v28 = vpop.eup %1063  ;;  %v743_v59 = vadd.f32 %v742_v58, %v713_v27 }
 0x170   : > { %v770_v23 = vpack.c.bf16 %v1064_v28, %v1062_v34  ;;  %v687_v60 = vpop.f32.mrf.mxu1 }
 0x171   : > { %1067 = vtanh.f32 %v743_v59  ;;  %v688_v62 = vadd.f32 %v687_v60, %v658_v61  ;;  %v1066_v0 = vpop.eup %1065  ;;  %v840_v17 = vld [vmem:[%s1611_s25 + $0x18] sm:$0xff] (%p1197_p5) }
 0x172   : > { %778 = vst [vmem:[%s1611_s25 + $0x20] sm:$0xff] %v770_v23  ;;  %v716_v63 = vpop.f32.mrf.mxu2 }
 0x173   : > { %1069 = vtanh.f32 %v688_v62  ;;  %841 = vst [vmem:[%s791_s28 + $0x30] sm:$0xff] (%p1197_p5), %v840_v17 }
 0x174   : > { %v660_v32 = vpop.f32.mrf.mxu0 }
 0x176   : > { %v745_v1 = vpop.f32.mrf.mxu3 }
 0x177   : > { %v1068_v2 = vpop.eup %1067  ;;  %v746_v3 = vadd.f32 %v745_v1, %v716_v63 }
 0x178   : > { %v771_v4 = vpack.c.bf16 %v1068_v2, %v1066_v0  ;;  %v689_v24 = vpop.f32.mrf.mxu1 }
 0x179   : > { %1071 = vtanh.f32 %v746_v3  ;;  %v690_v5 = vadd.f32 %v689_v24, %v660_v32  ;;  %v1070_v6 = vpop.eup %1069  ;;  %v842_v18 = vld [vmem:[%s1611_s25 + $0x20] sm:$0xff] (%p1197_p5) }
 0x17a   : > { %779 = vst [vmem:[%s1611_s25 + $0x28] sm:$0xff] %v771_v4  ;;  %v718_v7 = vpop.f32.mrf.mxu2 }
 0x17b   : > { %1073 = vtanh.f32 %v690_v5  ;;  %843 = vst [vmem:[%s791_s28 + $0x40] sm:$0xff] (%p1197_p5), %v842_v18 }
 0x17e   : > { %v747_v8 = vpop.f32.mrf.mxu3 }
 0x17f   : > { %v1072_v9 = vpop.eup %1071  ;;  %v748_v10 = vadd.f32 %v747_v8, %v718_v7 }
 0x180   : > { %v772_v11 = vpack.c.bf16 %v1072_v9, %v1070_v6 }
 0x181   : > { %1075 = vtanh.f32 %v748_v10  ;;  %v1074_v29 = vpop.eup %1073  ;;  %v844_v19 = vld [vmem:[%s1611_s25 + $0x28] sm:$0xff] (%p1197_p5) }
 0x182   : > { %780 = vst [vmem:[%s1611_s25 + $0x30] sm:$0xff] %v772_v11 }
 0x183   : > { %845 = vst [vmem:[%s791_s28 + $0x50] sm:$0xff] (%p1197_p5), %v844_v19 }
 0x186   : > { %788 = sbr.rel (!%p1197_p5) target bundleno = 403 (0x193), region = 74 }
 0x187   : > { %v1076_v12 = vpop.eup %1075 }
 0x188   : > { %v773_v13 = vpack.c.bf16 %v1076_v12, %v1074_v29 }
 0x189   : > { %v846_v20 = vld [vmem:[%s1611_s25 + $0x30] sm:$0xff] (%p1197_p5) }
 0x18a   : > { %781 = vst [vmem:[%s1611_s25 + $0x38] sm:$0xff] %v773_v13 }
 0x18b   : > { %847 = vst [vmem:[%s791_s28 + $0x60] sm:$0xff] %v846_v20 }
 0x191   : > { %v848_v21 = vld [vmem:[%s1611_s25 + $0x38] sm:$0xff] }
 0x192   : > { %849 = vst [vmem:[%s791_s28 + $0x70] sm:$0xff] %v848_v21 }
 0x193 PF: > { %p10_p13 = scmp.ge.s32.totalorder %s1181_s13, 4   ;;  %s1732_s9 = smov %s1129_s10 }
 0x194   : > { %s1733_s10 = smov %s1191_s16  ;;  %s1734_s11 = smov %s1181_s13 }
 0x195   :  { %12 = sbr.rel (!%p10_p13) target bundleno = 2 (0x2), region = 144 }
 0x19a   :  { %865 = vsyncpa [#allocation4], 1 }
 0x19b   :  { %867 = vsyncpa [#allocation4 + $0x1], 1 }

</bundles_post_ra>
